<compile_context>
chip_gen: v7x
topology: tpu7x:2x2x1
jax: 0.10.0
libtpu: 0.0.40
codegen_flags: <defaults>
</compile_context>

<pallas_src>
import functools
import math

import jax
import jax.numpy as jnp
from jax import lax
from jax.experimental import pallas as pl
from jax.experimental.pallas import tpu as pltpu


# ----------------------------------------------------------------------------
# Static network configuration (fixed by the PyTorch module).
# ----------------------------------------------------------------------------
C = 32                       # channels everywhere
PAD = 2                      # largest padding in the live chain (the 5x5 convs)
KSIZES = (3, 5, 3, 5, 3)     # conv3, conv4, conv5, conv6, conv7
MAX_K = max(KSIZES)


def _round_up(x, m):
    return (x + m - 1) // m * m


def _geometry(H, W):
    """Flattened zero-bordered canvas geometry (all Python ints, shape-static)."""
    Hp, Wp = H + 2 * PAD, W + 2 * PAD
    head = PAD * Wp + PAD                    # first valid pixel in the flat canvas
    L = (H - 1) * Wp + W                     # window covering all valid pixels
    LP = _round_up(L, 128)                   # lane-dense window width
    win0 = _round_up(head, 128)              # lane-aligned window start in scratch
    off = win0 - head                        # left shift of the raw canvas
    canvas = _round_up(max(off + Hp * Wp, win0 + head + LP), 128)
    return dict(Hp=Hp, Wp=Wp, head=head, L=L, LP=LP, win0=win0, off=off,
                canvas=canvas)


# ----------------------------------------------------------------------------
# Fused kernel: conv3 -> conv4 -> conv5 -> conv6 -> conv7 (+ residuals, ReLUs).
# ----------------------------------------------------------------------------
def _fused_u_branch_kernel(x1_ref, x2_ref, x3_ref, mask_ref,
                           w33_ref, w55_ref, b_ref, o_ref,
                           canvas_ref, slab_ref, *, Wp, win0, LP):
    mask = mask_ref[...]                       # (1, LP): 1 on valid pixels

    # Stage-0 activation: x3's zero-bordered canvas (built host-side, zeros
    # everywhere outside the valid pixels, including the lane-padding tail).
    canvas_ref[...] = x3_ref[...]

    def conv(w, ksize):
        """One conv = im2col slab build in VMEM + a single MXU matmul."""
        p = (ksize - 1) // 2
        for kh in range(ksize):
            for kw in range(ksize):
                t = kh * ksize + kw
                start = win0 + (kh - p) * Wp + (kw - p)     # static offset
                slab_ref[t * C:(t + 1) * C, :] = canvas_ref[:, start:start + LP]
        return jnp.dot(w, slab_ref[0:ksize * ksize * C, :],
                       preferred_element_type=jnp.float32)

    def stash(act):
        # Re-zero border / tail lanes and install the activation as the next
        # stage's canvas interior (lane-aligned store: win0 is a multiple of 128).
        canvas_ref[:, win0:win0 + LP] = act * mask

    relu = lambda v: jnp.maximum(v, 0.0)
    x1 = x1_ref[...]

    # u2 = conv3(x3) + x1            (groups=2 folded block-diagonal host-side)
    u2 = conv(w33_ref[0], 3) + b_ref[0] + x1
    stash(relu(u2))                                          # u3

    # u6 = relu(conv4(u3) + x1)
    u6 = relu(conv(w55_ref[0], 5) + b_ref[1] + x1)
    stash(u6)

    # u9 = relu(2 * conv5(u6))       (2x folded into w5 / b5 host-side, exact)
    u9 = relu(conv(w33_ref[1], 3) + b_ref[2])
    stash(u9)

    # u12 = relu(conv6(u9) + u2)     (u2 residual kept in registers)
    u12 = relu(conv(w55_ref[1], 5) + b_ref[3] + u2)
    stash(u12)

    # u15 = relu(conv7(u12) + x2)    (no trailing mask; host crop drops border)
    o_ref[...] = relu(conv(w33_ref[2], 3) + b_ref[4] + x2_ref[...])


# ----------------------------------------------------------------------------
# One-time weight repacking (hoisted out of the per-call path).
# ----------------------------------------------------------------------------
def pack_params(params):
    """Repack conv3..conv7 into im2col weight matrices + biases. Call ONCE."""
    w3, b3 = params['conv3']                  # (32, 16, 3, 3), groups=2
    half = C // 2
    w3d = jnp.zeros((C, C, 3, 3), jnp.float32)
    w3d = w3d.at[:half, :half].set(w3[:half])     # block-diagonal dense
    w3d = w3d.at[half:, half:].set(w3[half:])
    w4, b4 = params['conv4']
    w5, b5 = params['conv5']
    w6, b6 = params['conv6']
    w7, b7 = params['conv7']
    w5, b5 = w5 * 2.0, b5 * 2.0               # fold u8 = u7 + u7 (exact, pow-2)

    def im2col(w):                            # (O, I, K, K) -> (O, K*K*I)
        o, i, k, _ = w.shape
        return jnp.transpose(w, (0, 2, 3, 1)).reshape(o, k * k * i)

    w33 = jnp.stack([im2col(w3d), im2col(w5), im2col(w7)]).astype(jnp.float32)
    w55 = jnp.stack([im2col(w4), im2col(w6)]).astype(jnp.float32)
    b = jnp.stack([b3, b4, b5, b6, b7]).astype(jnp.float32)[..., None]  # (5,32,1)
    return {'w33': w33, 'w55': w55, 'b': b}


# ----------------------------------------------------------------------------
# Host-side (jit-fused) layout glue: NCHW <-> flattened padded canvas.
# ----------------------------------------------------------------------------
def _to_canvas(x, geo):
    """(1, C, H, W) -> (C, canvas) zero-bordered flattened canvas."""
    xp = jnp.pad(x[0], ((0, 0), (PAD, PAD), (PAD, PAD)))
    flat = xp.reshape(C, geo['Hp'] * geo['Wp'])
    return jnp.pad(flat, ((0, 0), (geo['off'],
                                   geo['canvas'] - geo['off'] - geo['Hp'] * geo['Wp'])))


def _to_window(x, geo):
    """(1, C, H, W) -> (C, LP) lane-padded valid-pixel window of the canvas."""
    xp = jnp.pad(x[0], ((0, 0), (PAD, PAD), (PAD, PAD)))
    flat = xp.reshape(C, geo['Hp'] * geo['Wp'])
    pad_r = max(0, geo['head'] + geo['LP'] - geo['Hp'] * geo['Wp'])
    flat = jnp.pad(flat, ((0, 0), (0, pad_r)))
    return flat[:, geo['head']:geo['head'] + geo['LP']]


def _from_window(y, H, W, geo):
    """(C, LP) window -> (1, C, H, W)."""
    hpwp = geo['Hp'] * geo['Wp']
    flat = jnp.pad(y, ((0, 0), (geo['head'], max(0, hpwp - geo['head'] - geo['LP']))))
    img = flat[:, :hpwp].reshape(C, geo['Hp'], geo['Wp'])[:, PAD:PAD + H, PAD:PAD + W]
    return img[None]


def _interior_mask(H, W, geo):
    pos = jnp.arange(geo['LP']) + geo['head']
    row, col = pos // geo['Wp'], pos % geo['Wp']
    m = ((row >= PAD) & (row < PAD + H) & (col >= PAD) & (col < PAD + W))
    return m.astype(jnp.float32)[None, :]


@jax.jit
def pallas_forward(x1, x2, x3, packed):
    n, c, H, W = x1.shape
    assert n == 1 and c == C, "kernel assumes batch=1 and 32 channels (module spec)"
    geo = _geometry(H, W)
    LP, canvas = geo['LP'], geo['canvas']

    a1 = _to_window(x1, geo)          # residual for u2 / u5
    a2 = _to_window(x2, geo)          # residual for u14
    a3 = _to_canvas(x3, geo)          # conv3 input canvas
    mask = _interior_mask(H, W, geo)

    kernel = functools.partial(_fused_u_branch_kernel,
                               Wp=geo['Wp'], win0=geo['win0'], LP=LP)
    out = pl.pallas_call(
        kernel,
        out_shape=jax.ShapeDtypeStruct((C, LP), jnp.float32),
        grid=(1,),
        in_specs=[
            pl.BlockSpec((C, LP), lambda i: (0, 0)),             # x1 window
            pl.BlockSpec((C, LP), lambda i: (0, 0)),             # x2 window
            pl.BlockSpec((C, canvas), lambda i: (0, 0)),         # x3 canvas
            pl.BlockSpec((1, LP), lambda i: (0, 0)),             # interior mask
            pl.BlockSpec((3, C, 9 * C), lambda i: (0, 0, 0)),    # 3x3 im2col weights
            pl.BlockSpec((2, C, 25 * C), lambda i: (0, 0, 0)),   # 5x5 im2col weights
            pl.BlockSpec((5, C, 1), lambda i: (0, 0, 0)),        # biases
        ],
        out_specs=pl.BlockSpec((C, LP), lambda i: (0, 0)),
        scratch_shapes=[
            pltpu.VMEM((C, canvas), jnp.float32),                # canvas (~80 KB)
            pltpu.VMEM((MAX_K * MAX_K * C, LP), jnp.float32),    # im2col slab (~1.2 MB)
        ],
        compiler_params=pltpu.CompilerParams(
            dimension_semantics=("arbitrary",)),
    )(a1, a2, a3, mask, packed['w33'], packed['w55'], packed['b'])

    return _from_window(out, H, W, geo)


# ----------------------------------------------------------------------------
# Pure-JAX reference mirroring the full PyTorch forward (for verification).
# ----------------------------------------------------------------------------
@jax.jit
def ref_forward(x1, x2, x3, params):
    def conv(x, p, groups, pad):
        w, b = p
        y = lax.conv_general_dilated(
            x, w, window_strides=(1, 1), padding=[(pad, pad), (pad, pad)],
            dimension_numbers=('NCHW', 'OIHW', 'NCHW'),
            feature_group_count=groups)
        return y + b[None, :, None, None]

    relu = jax.nn.relu
    v1 = conv(x1, params['conv1'], 2, 3); v2 = v1 + x2; v3 = relu(v2)
    v4 = conv(v3, params['conv2'], 2, 2); v5 = v4 + v2; _v6 = relu(v5)
    u1 = conv(x3, params['conv3'], 2, 1); u2 = u1 + x1; u3 = relu(u2)
    u4 = conv(u3, params['conv4'], 1, 2); u5 = u4 + x1; u6 = relu(u5)
    u7 = conv(u6, params['conv5'], 1, 1); u8 = u7 + u7; u9 = relu(u8)
    u10 = conv(u9, params['conv6'], 1, 2); u11 = u10 + u2; u12 = relu(u11)
    u13 = conv(u12, params['conv7'], 1, 1); u14 = x2 + u13; u15 = relu(u14)
    return u15


def init_conv_params(key, cout, cin_g, k):
    # PyTorch-style Conv2d init: U(-1/sqrt(fan_in), 1/sqrt(fan_in)).
    fan_in = cin_g * k * k
    bound = 1.0 / math.sqrt(fan_in)
    kw_, kb_ = jax.random.split(key)
    w = jax.random.uniform(kw_, (cout, cin_g, k, k), jnp.float32, -bound, bound)
    b = jax.random.uniform(kb_, (cout,), jnp.float32, -bound, bound)
    return w, b


if __name__ == "__main__":
    key = jax.random.PRNGKey(0)
    k_in, k_par = jax.random.split(key)
    k1, k2, k3 = jax.random.split(k_in, 3)

    N, H, W = 1, 16, 16   # small spatial size; channels fixed at 32 by the module
    x1 = jax.random.normal(k1, (N, C, H, W), jnp.float32)
    x2 = jax.random.normal(k2, (N, C, H, W), jnp.float32)
    x3 = jax.random.normal(k3, (N, C, H, W), jnp.float32)

    specs = {
        'conv1': (32, 16, 7), 'conv2': (32, 16, 5), 'conv3': (32, 16, 3),
        'conv4': (32, 32, 5), 'conv5': (32, 32, 3), 'conv6': (32, 32, 5),
        'conv7': (32, 32, 3),
    }
    params = {}
    pkeys = jax.random.split(k_par, len(specs))
    for pk, (name, (cout, cin_g, k)) in zip(pkeys, specs.items()):
        params[name] = init_conv_params(pk, cout, cin_g, k)

    # One-time weight repacking, outside the per-call path.
    packed = jax.tree_util.tree_map(jax.block_until_ready, pack_params(params))

    out = jax.block_until_ready(pallas_forward(x1, x2, x3, packed))
    ref = jax.block_until_ready(ref_forward(x1, x2, x3, params))

    assert out.shape == (N, C, H, W)
    if not jnp.allclose(out, ref, atol=2e-3, rtol=2e-3):
        raise AssertionError("Pallas output does not match reference")
    print("KERNEL_OK")
</pallas_src>

<mosaic_0001>
module attributes {stable_mosaic.version = 11 : i64} {
  func.func @_fused_u_branch_kernel(%arg0: i32, %arg1: memref<32x384xf32, #tpu.memory_space<vmem>>, %arg2: memref<32x384xf32, #tpu.memory_space<vmem>>, %arg3: memref<32x640xf32, #tpu.memory_space<vmem>>, %arg4: memref<1x384xf32, #tpu.memory_space<vmem>>, %arg5: memref<3x32x288xf32, #tpu.memory_space<vmem>>, %arg6: memref<2x32x800xf32, #tpu.memory_space<vmem>>, %arg7: memref<5x32x1xf32, #tpu.memory_space<vmem>>, %arg8: memref<32x384xf32, #tpu.memory_space<vmem>>, %arg9: memref<32x640xf32, #tpu.memory_space<vmem>>, %arg10: memref<800x384xf32, #tpu.memory_space<vmem>>) attributes {dimension_semantics = [#tpu.dimension_semantics<arbitrary>], iteration_bounds = array<i64: 1>, scalar_prefetch = 0 : i64, scratch_operands = 2 : i64, tpu.core_type = #tpu.core_type<tc>, window_params = [{pipeline_mode = #tpu.pipeline_mode<synchronous>, transform_indices = @transform_0, window_bounds = array<i64: 32, 384>}, {pipeline_mode = #tpu.pipeline_mode<synchronous>, transform_indices = @transform_1, window_bounds = array<i64: 32, 384>}, {pipeline_mode = #tpu.pipeline_mode<synchronous>, transform_indices = @transform_2, window_bounds = array<i64: 32, 640>}, {pipeline_mode = #tpu.pipeline_mode<synchronous>, transform_indices = @transform_3, window_bounds = array<i64: 1, 384>}, {pipeline_mode = #tpu.pipeline_mode<synchronous>, transform_indices = @transform_4, window_bounds = array<i64: 3, 32, 288>}, {pipeline_mode = #tpu.pipeline_mode<synchronous>, transform_indices = @transform_5, window_bounds = array<i64: 2, 32, 800>}, {pipeline_mode = #tpu.pipeline_mode<synchronous>, transform_indices = @transform_6, window_bounds = array<i64: 5, 32, 1>}, {pipeline_mode = #tpu.pipeline_mode<synchronous>, transform_indices = @transform_7, window_bounds = array<i64: 32, 384>}]} {
    %c0 = arith.constant 0 : index
    %c0_0 = arith.constant 0 : index
    %0 = vector.load %arg4[%c0, %c0_0] : memref<1x384xf32, #tpu.memory_space<vmem>>, vector<1x384xf32>
    %c0_1 = arith.constant 0 : index
    %c0_2 = arith.constant 0 : index
    %1 = vector.load %arg3[%c0_1, %c0_2] : memref<32x640xf32, #tpu.memory_space<vmem>>, vector<32x640xf32>
    %c0_3 = arith.constant 0 : index
    %c0_4 = arith.constant 0 : index
    %2 = vector.load %arg9[%c0_3, %c0_4] : memref<32x640xf32, #tpu.memory_space<vmem>>, vector<32x640xf32>
    tpu.vector_store %arg9[%c0_3, %c0_4], %1 {strides = array<i32>} : memref<32x640xf32, #tpu.memory_space<vmem>>, vector<32x640xf32>,
    %c0_5 = arith.constant 0 : index
    %c0_6 = arith.constant 0 : index
    %3 = vector.load %arg1[%c0_5, %c0_6] : memref<32x384xf32, #tpu.memory_space<vmem>>, vector<32x384xf32>
    %c0_7 = arith.constant 0 : index
    %c0_8 = arith.constant 0 : index
    %c0_9 = arith.constant 0 : index
    %4 = vector.load %arg5[%c0_7, %c0_8, %c0_9] : memref<3x32x288xf32, #tpu.memory_space<vmem>>, vector<1x32x288xf32>
    %5 = vector.shape_cast %4 : vector<1x32x288xf32> to vector<32x288xf32>
    %c0_10 = arith.constant 0 : index
    %c107 = arith.constant 107 : index
    %6 = vector.load %arg9[%c0_10, %c107] : memref<32x640xf32, #tpu.memory_space<vmem>>, vector<32x384xf32>
    %c0_11 = arith.constant 0 : index
    %c0_12 = arith.constant 0 : index
    %7 = vector.load %arg10[%c0_11, %c0_12] : memref<800x384xf32, #tpu.memory_space<vmem>>, vector<32x384xf32>
    tpu.vector_store %arg10[%c0_11, %c0_12], %6 {strides = array<i32>} : memref<800x384xf32, #tpu.memory_space<vmem>>, vector<32x384xf32>,
    %c0_13 = arith.constant 0 : index
    %c108 = arith.constant 108 : index
    %8 = vector.load %arg9[%c0_13, %c108] : memref<32x640xf32, #tpu.memory_space<vmem>>, vector<32x384xf32>
    %c32 = arith.constant 32 : index
    %c0_14 = arith.constant 0 : index
    %9 = vector.load %arg10[%c32, %c0_14] : memref<800x384xf32, #tpu.memory_space<vmem>>, vector<32x384xf32>
    tpu.vector_store %arg10[%c32, %c0_14], %8 {strides = array<i32>} : memref<800x384xf32, #tpu.memory_space<vmem>>, vector<32x384xf32>,
    %c0_15 = arith.constant 0 : index
    %c109 = arith.constant 109 : index
    %10 = vector.load %arg9[%c0_15, %c109] : memref<32x640xf32, #tpu.memory_space<vmem>>, vector<32x384xf32>
    %c64 = arith.constant 64 : index
    %c0_16 = arith.constant 0 : index
    %11 = vector.load %arg10[%c64, %c0_16] : memref<800x384xf32, #tpu.memory_space<vmem>>, vector<32x384xf32>
    tpu.vector_store %arg10[%c64, %c0_16], %10 {strides = array<i32>} : memref<800x384xf32, #tpu.memory_space<vmem>>, vector<32x384xf32>,
    %c0_17 = arith.constant 0 : index
    %c127 = arith.constant 127 : index
    %12 = vector.load %arg9[%c0_17, %c127] : memref<32x640xf32, #tpu.memory_space<vmem>>, vector<32x384xf32>
    %c96 = arith.constant 96 : index
    %c0_18 = arith.constant 0 : index
    %13 = vector.load %arg10[%c96, %c0_18] : memref<800x384xf32, #tpu.memory_space<vmem>>, vector<32x384xf32>
    tpu.vector_store %arg10[%c96, %c0_18], %12 {strides = array<i32>} : memref<800x384xf32, #tpu.memory_space<vmem>>, vector<32x384xf32>,
    %c0_19 = arith.constant 0 : index
    %c128 = arith.constant 128 : index
    %14 = vector.load %arg9[%c0_19, %c128] : memref<32x640xf32, #tpu.memory_space<vmem>>, vector<32x384xf32>
    %c128_20 = arith.constant 128 : index
    %c0_21 = arith.constant 0 : index
    %15 = vector.load %arg10[%c128_20, %c0_21] : memref<800x384xf32, #tpu.memory_space<vmem>>, vector<32x384xf32>
    tpu.vector_store %arg10[%c128_20, %c0_21], %14 {strides = array<i32>} : memref<800x384xf32, #tpu.memory_space<vmem>>, vector<32x384xf32>,
    %c0_22 = arith.constant 0 : index
    %c129 = arith.constant 129 : index
    %16 = vector.load %arg9[%c0_22, %c129] : memref<32x640xf32, #tpu.memory_space<vmem>>, vector<32x384xf32>
    %c160 = arith.constant 160 : index
    %c0_23 = arith.constant 0 : index
    %17 = vector.load %arg10[%c160, %c0_23] : memref<800x384xf32, #tpu.memory_space<vmem>>, vector<32x384xf32>
    tpu.vector_store %arg10[%c160, %c0_23], %16 {strides = array<i32>} : memref<800x384xf32, #tpu.memory_space<vmem>>, vector<32x384xf32>,
    %c0_24 = arith.constant 0 : index
    %c147 = arith.constant 147 : index
    %18 = vector.load %arg9[%c0_24, %c147] : memref<32x640xf32, #tpu.memory_space<vmem>>, vector<32x384xf32>
    %c192 = arith.constant 192 : index
    %c0_25 = arith.constant 0 : index
    %19 = vector.load %arg10[%c192, %c0_25] : memref<800x384xf32, #tpu.memory_space<vmem>>, vector<32x384xf32>
    tpu.vector_store %arg10[%c192, %c0_25], %18 {strides = array<i32>} : memref<800x384xf32, #tpu.memory_space<vmem>>, vector<32x384xf32>,
    %c0_26 = arith.constant 0 : index
    %c148 = arith.constant 148 : index
    %20 = vector.load %arg9[%c0_26, %c148] : memref<32x640xf32, #tpu.memory_space<vmem>>, vector<32x384xf32>
    %c224 = arith.constant 224 : index
    %c0_27 = arith.constant 0 : index
    %21 = vector.load %arg10[%c224, %c0_27] : memref<800x384xf32, #tpu.memory_space<vmem>>, vector<32x384xf32>
    tpu.vector_store %arg10[%c224, %c0_27], %20 {strides = array<i32>} : memref<800x384xf32, #tpu.memory_space<vmem>>, vector<32x384xf32>,
    %c0_28 = arith.constant 0 : index
    %c149 = arith.constant 149 : index
    %22 = vector.load %arg9[%c0_28, %c149] : memref<32x640xf32, #tpu.memory_space<vmem>>, vector<32x384xf32>
    %c256 = arith.constant 256 : index
    %c0_29 = arith.constant 0 : index
    %23 = vector.load %arg10[%c256, %c0_29] : memref<800x384xf32, #tpu.memory_space<vmem>>, vector<32x384xf32>
    tpu.vector_store %arg10[%c256, %c0_29], %22 {strides = array<i32>} : memref<800x384xf32, #tpu.memory_space<vmem>>, vector<32x384xf32>,
    %c0_30 = arith.constant 0 : index
    %c0_31 = arith.constant 0 : index
    %24 = vector.load %arg10[%c0_30, %c0_31] : memref<800x384xf32, #tpu.memory_space<vmem>>, vector<288x384xf32>
    %cst = arith.constant dense<0.000000e+00> : vector<32x384xf32>
    %25 = tpu.matmul %5, %24, %cst {dimension_numbers = #tpu.dot_dimension_numbers<[1], [0], [0], [1], [0, 0, 1, 1], [], []>} : vector<32x288xf32>, vector<288x384xf32>, vector<32x384xf32> -> vector<32x384xf32>
    %c0_32 = arith.constant 0 : index
    %c0_33 = arith.constant 0 : index
    %c0_34 = arith.constant 0 : index
    %26 = vector.load %arg7[%c0_32, %c0_33, %c0_34] : memref<5x32x1xf32, #tpu.memory_space<vmem>>, vector<1x32x1xf32>
    %27 = vector.shape_cast %26 : vector<1x32x1xf32> to vector<32x1xf32>
    %28 = vector.broadcast %27 : vector<32x1xf32> to vector<32x384xf32>
    %29 = arith.addf %25, %28 : vector<32x384xf32>
    %30 = arith.addf %29, %3 : vector<32x384xf32>
    %cst_35 = arith.constant 0.000000e+00 : f32
    %31 = vector.broadcast %cst_35 : f32 to vector<32x384xf32>
    %32 = arith.maximumf %30, %31 : vector<32x384xf32>
    %33 = vector.broadcast %0 : vector<1x384xf32> to vector<32x384xf32>
    %34 = arith.mulf %32, %33 : vector<32x384xf32>
    %c0_36 = arith.constant 0 : index
    %c128_37 = arith.constant 128 : index
    %35 = vector.load %arg9[%c0_36, %c128_37] : memref<32x640xf32, #tpu.memory_space<vmem>>, vector<32x384xf32>
    tpu.vector_store %arg9[%c0_36, %c128_37], %34 {strides = array<i32>} : memref<32x640xf32, #tpu.memory_space<vmem>>, vector<32x384xf32>,
    %c0_38 = arith.constant 0 : index
    %c0_39 = arith.constant 0 : index
    %c0_40 = arith.constant 0 : index
    %36 = vector.load %arg6[%c0_38, %c0_39, %c0_40] : memref<2x32x800xf32, #tpu.memory_space<vmem>>, vector<1x32x800xf32>
    %37 = vector.shape_cast %36 : vector<1x32x800xf32> to vector<32x800xf32>
    %c0_41 = arith.constant 0 : index
    %c86 = arith.constant 86 : index
    %38 = vector.load %arg9[%c0_41, %c86] : memref<32x640xf32, #tpu.memory_space<vmem>>, vector<32x384xf32>
    %c0_42 = arith.constant 0 : index
    %c0_43 = arith.constant 0 : index
    %39 = vector.load %arg10[%c0_42, %c0_43] : memref<800x384xf32, #tpu.memory_space<vmem>>, vector<32x384xf32>
    tpu.vector_store %arg10[%c0_42, %c0_43], %38 {strides = array<i32>} : memref<800x384xf32, #tpu.memory_space<vmem>>, vector<32x384xf32>,
    %c0_44 = arith.constant 0 : index
    %c87 = arith.constant 87 : index
    %40 = vector.load %arg9[%c0_44, %c87] : memref<32x640xf32, #tpu.memory_space<vmem>>, vector<32x384xf32>
    %c32_45 = arith.constant 32 : index
    %c0_46 = arith.constant 0 : index
    %41 = vector.load %arg10[%c32_45, %c0_46] : memref<800x384xf32, #tpu.memory_space<vmem>>, vector<32x384xf32>
    tpu.vector_store %arg10[%c32_45, %c0_46], %40 {strides = array<i32>} : memref<800x384xf32, #tpu.memory_space<vmem>>, vector<32x384xf32>,
    %c0_47 = arith.constant 0 : index
    %c88 = arith.constant 88 : index
    %42 = vector.load %arg9[%c0_47, %c88] : memref<32x640xf32, #tpu.memory_space<vmem>>, vector<32x384xf32>
    %c64_48 = arith.constant 64 : index
    %c0_49 = arith.constant 0 : index
    %43 = vector.load %arg10[%c64_48, %c0_49] : memref<800x384xf32, #tpu.memory_space<vmem>>, vector<32x384xf32>
    tpu.vector_store %arg10[%c64_48, %c0_49], %42 {strides = array<i32>} : memref<800x384xf32, #tpu.memory_space<vmem>>, vector<32x384xf32>,
    %c0_50 = arith.constant 0 : index
    %c89 = arith.constant 89 : index
    %44 = vector.load %arg9[%c0_50, %c89] : memref<32x640xf32, #tpu.memory_space<vmem>>, vector<32x384xf32>
    %c96_51 = arith.constant 96 : index
    %c0_52 = arith.constant 0 : index
    %45 = vector.load %arg10[%c96_51, %c0_52] : memref<800x384xf32, #tpu.memory_space<vmem>>, vector<32x384xf32>
    tpu.vector_store %arg10[%c96_51, %c0_52], %44 {strides = array<i32>} : memref<800x384xf32, #tpu.memory_space<vmem>>, vector<32x384xf32>,
    %c0_53 = arith.constant 0 : index
    %c90 = arith.constant 90 : index
    %46 = vector.load %arg9[%c0_53, %c90] : memref<32x640xf32, #tpu.memory_space<vmem>>, vector<32x384xf32>
    %c128_54 = arith.constant 128 : index
    %c0_55 = arith.constant 0 : index
    %47 = vector.load %arg10[%c128_54, %c0_55] : memref<800x384xf32, #tpu.memory_space<vmem>>, vector<32x384xf32>
    tpu.vector_store %arg10[%c128_54, %c0_55], %46 {strides = array<i32>} : memref<800x384xf32, #tpu.memory_space<vmem>>, vector<32x384xf32>,
    %c0_56 = arith.constant 0 : index
    %c106 = arith.constant 106 : index
    %48 = vector.load %arg9[%c0_56, %c106] : memref<32x640xf32, #tpu.memory_space<vmem>>, vector<32x384xf32>
    %c160_57 = arith.constant 160 : index
    %c0_58 = arith.constant 0 : index
    %49 = vector.load %arg10[%c160_57, %c0_58] : memref<800x384xf32, #tpu.memory_space<vmem>>, vector<32x384xf32>
    tpu.vector_store %arg10[%c160_57, %c0_58], %48 {strides = array<i32>} : memref<800x384xf32, #tpu.memory_space<vmem>>, vector<32x384xf32>,
    %c0_59 = arith.constant 0 : index
    %c107_60 = arith.constant 107 : index
    %50 = vector.load %arg9[%c0_59, %c107_60] : memref<32x640xf32, #tpu.memory_space<vmem>>, vector<32x384xf32>
    %c192_61 = arith.constant 192 : index
    %c0_62 = arith.constant 0 : index
    %51 = vector.load %arg10[%c192_61, %c0_62] : memref<800x384xf32, #tpu.memory_space<vmem>>, vector<32x384xf32>
    tpu.vector_store %arg10[%c192_61, %c0_62], %50 {strides = array<i32>} : memref<800x384xf32, #tpu.memory_space<vmem>>, vector<32x384xf32>,
    %c0_63 = arith.constant 0 : index
    %c108_64 = arith.constant 108 : index
    %52 = vector.load %arg9[%c0_63, %c108_64] : memref<32x640xf32, #tpu.memory_space<vmem>>, vector<32x384xf32>
    %c224_65 = arith.constant 224 : index
    %c0_66 = arith.constant 0 : index
    %53 = vector.load %arg10[%c224_65, %c0_66] : memref<800x384xf32, #tpu.memory_space<vmem>>, vector<32x384xf32>
    tpu.vector_store %arg10[%c224_65, %c0_66], %52 {strides = array<i32>} : memref<800x384xf32, #tpu.memory_space<vmem>>, vector<32x384xf32>,
    %c0_67 = arith.constant 0 : index
    %c109_68 = arith.constant 109 : index
    %54 = vector.load %arg9[%c0_67, %c109_68] : memref<32x640xf32, #tpu.memory_space<vmem>>, vector<32x384xf32>
    %c256_69 = arith.constant 256 : index
    %c0_70 = arith.constant 0 : index
    %55 = vector.load %arg10[%c256_69, %c0_70] : memref<800x384xf32, #tpu.memory_space<vmem>>, vector<32x384xf32>
    tpu.vector_store %arg10[%c256_69, %c0_70], %54 {strides = array<i32>} : memref<800x384xf32, #tpu.memory_space<vmem>>, vector<32x384xf32>,
    %c0_71 = arith.constant 0 : index
    %c110 = arith.constant 110 : index
    %56 = vector.load %arg9[%c0_71, %c110] : memref<32x640xf32, #tpu.memory_space<vmem>>, vector<32x384xf32>
    %c288 = arith.constant 288 : index
    %c0_72 = arith.constant 0 : index
    %57 = vector.load %arg10[%c288, %c0_72] : memref<800x384xf32, #tpu.memory_space<vmem>>, vector<32x384xf32>
    tpu.vector_store %arg10[%c288, %c0_72], %56 {strides = array<i32>} : memref<800x384xf32, #tpu.memory_space<vmem>>, vector<32x384xf32>,
    %c0_73 = arith.constant 0 : index
    %c126 = arith.constant 126 : index
    %58 = vector.load %arg9[%c0_73, %c126] : memref<32x640xf32, #tpu.memory_space<vmem>>, vector<32x384xf32>
    %c320 = arith.constant 320 : index
    %c0_74 = arith.constant 0 : index
    %59 = vector.load %arg10[%c320, %c0_74] : memref<800x384xf32, #tpu.memory_space<vmem>>, vector<32x384xf32>
    tpu.vector_store %arg10[%c320, %c0_74], %58 {strides = array<i32>} : memref<800x384xf32, #tpu.memory_space<vmem>>, vector<32x384xf32>,
    %c0_75 = arith.constant 0 : index
    %c127_76 = arith.constant 127 : index
    %60 = vector.load %arg9[%c0_75, %c127_76] : memref<32x640xf32, #tpu.memory_space<vmem>>, vector<32x384xf32>
    %c352 = arith.constant 352 : index
    %c0_77 = arith.constant 0 : index
    %61 = vector.load %arg10[%c352, %c0_77] : memref<800x384xf32, #tpu.memory_space<vmem>>, vector<32x384xf32>
    tpu.vector_store %arg10[%c352, %c0_77], %60 {strides = array<i32>} : memref<800x384xf32, #tpu.memory_space<vmem>>, vector<32x384xf32>,
    %c0_78 = arith.constant 0 : index
    %c128_79 = arith.constant 128 : index
    %62 = vector.load %arg9[%c0_78, %c128_79] : memref<32x640xf32, #tpu.memory_space<vmem>>, vector<32x384xf32>
    %c384 = arith.constant 384 : index
    %c0_80 = arith.constant 0 : index
    %63 = vector.load %arg10[%c384, %c0_80] : memref<800x384xf32, #tpu.memory_space<vmem>>, vector<32x384xf32>
    tpu.vector_store %arg10[%c384, %c0_80], %62 {strides = array<i32>} : memref<800x384xf32, #tpu.memory_space<vmem>>, vector<32x384xf32>,
    %c0_81 = arith.constant 0 : index
    %c129_82 = arith.constant 129 : index
    %64 = vector.load %arg9[%c0_81, %c129_82] : memref<32x640xf32, #tpu.memory_space<vmem>>, vector<32x384xf32>
    %c416 = arith.constant 416 : index
    %c0_83 = arith.constant 0 : index
    %65 = vector.load %arg10[%c416, %c0_83] : memref<800x384xf32, #tpu.memory_space<vmem>>, vector<32x384xf32>
    tpu.vector_store %arg10[%c416, %c0_83], %64 {strides = array<i32>} : memref<800x384xf32, #tpu.memory_space<vmem>>, vector<32x384xf32>,
    %c0_84 = arith.constant 0 : index
    %c130 = arith.constant 130 : index
    %66 = vector.load %arg9[%c0_84, %c130] : memref<32x640xf32, #tpu.memory_space<vmem>>, vector<32x384xf32>
    %c448 = arith.constant 448 : index
    %c0_85 = arith.constant 0 : index
    %67 = vector.load %arg10[%c448, %c0_85] : memref<800x384xf32, #tpu.memory_space<vmem>>, vector<32x384xf32>
    tpu.vector_store %arg10[%c448, %c0_85], %66 {strides = array<i32>} : memref<800x384xf32, #tpu.memory_space<vmem>>, vector<32x384xf32>,
    %c0_86 = arith.constant 0 : index
    %c146 = arith.constant 146 : index
    %68 = vector.load %arg9[%c0_86, %c146] : memref<32x640xf32, #tpu.memory_space<vmem>>, vector<32x384xf32>
    %c480 = arith.constant 480 : index
    %c0_87 = arith.constant 0 : index
    %69 = vector.load %arg10[%c480, %c0_87] : memref<800x384xf32, #tpu.memory_space<vmem>>, vector<32x384xf32>
    tpu.vector_store %arg10[%c480, %c0_87], %68 {strides = array<i32>} : memref<800x384xf32, #tpu.memory_space<vmem>>, vector<32x384xf32>,
    %c0_88 = arith.constant 0 : index
    %c147_89 = arith.constant 147 : index
    %70 = vector.load %arg9[%c0_88, %c147_89] : memref<32x640xf32, #tpu.memory_space<vmem>>, vector<32x384xf32>
    %c512 = arith.constant 512 : index
    %c0_90 = arith.constant 0 : index
    %71 = vector.load %arg10[%c512, %c0_90] : memref<800x384xf32, #tpu.memory_space<vmem>>, vector<32x384xf32>
    tpu.vector_store %arg10[%c512, %c0_90], %70 {strides = array<i32>} : memref<800x384xf32, #tpu.memory_space<vmem>>, vector<32x384xf32>,
    %c0_91 = arith.constant 0 : index
    %c148_92 = arith.constant 148 : index
    %72 = vector.load %arg9[%c0_91, %c148_92] : memref<32x640xf32, #tpu.memory_space<vmem>>, vector<32x384xf32>
    %c544 = arith.constant 544 : index
    %c0_93 = arith.constant 0 : index
    %73 = vector.load %arg10[%c544, %c0_93] : memref<800x384xf32, #tpu.memory_space<vmem>>, vector<32x384xf32>
    tpu.vector_store %arg10[%c544, %c0_93], %72 {strides = array<i32>} : memref<800x384xf32, #tpu.memory_space<vmem>>, vector<32x384xf32>,
    %c0_94 = arith.constant 0 : index
    %c149_95 = arith.constant 149 : index
    %74 = vector.load %arg9[%c0_94, %c149_95] : memref<32x640xf32, #tpu.memory_space<vmem>>, vector<32x384xf32>
    %c576 = arith.constant 576 : index
    %c0_96 = arith.constant 0 : index
    %75 = vector.load %arg10[%c576, %c0_96] : memref<800x384xf32, #tpu.memory_space<vmem>>, vector<32x384xf32>
    tpu.vector_store %arg10[%c576, %c0_96], %74 {strides = array<i32>} : memref<800x384xf32, #tpu.memory_space<vmem>>, vector<32x384xf32>,
    %c0_97 = arith.constant 0 : index
    %c150 = arith.constant 150 : index
    %76 = vector.load %arg9[%c0_97, %c150] : memref<32x640xf32, #tpu.memory_space<vmem>>, vector<32x384xf32>
    %c608 = arith.constant 608 : index
    %c0_98 = arith.constant 0 : index
    %77 = vector.load %arg10[%c608, %c0_98] : memref<800x384xf32, #tpu.memory_space<vmem>>, vector<32x384xf32>
    tpu.vector_store %arg10[%c608, %c0_98], %76 {strides = array<i32>} : memref<800x384xf32, #tpu.memory_space<vmem>>, vector<32x384xf32>,
    %c0_99 = arith.constant 0 : index
    %c166 = arith.constant 166 : index
    %78 = vector.load %arg9[%c0_99, %c166] : memref<32x640xf32, #tpu.memory_space<vmem>>, vector<32x384xf32>
    %c640 = arith.constant 640 : index
    %c0_100 = arith.constant 0 : index
    %79 = vector.load %arg10[%c640, %c0_100] : memref<800x384xf32, #tpu.memory_space<vmem>>, vector<32x384xf32>
    tpu.vector_store %arg10[%c640, %c0_100], %78 {strides = array<i32>} : memref<800x384xf32, #tpu.memory_space<vmem>>, vector<32x384xf32>,
    %c0_101 = arith.constant 0 : index
    %c167 = arith.constant 167 : index
    %80 = vector.load %arg9[%c0_101, %c167] : memref<32x640xf32, #tpu.memory_space<vmem>>, vector<32x384xf32>
    %c672 = arith.constant 672 : index
    %c0_102 = arith.constant 0 : index
    %81 = vector.load %arg10[%c672, %c0_102] : memref<800x384xf32, #tpu.memory_space<vmem>>, vector<32x384xf32>
    tpu.vector_store %arg10[%c672, %c0_102], %80 {strides = array<i32>} : memref<800x384xf32, #tpu.memory_space<vmem>>, vector<32x384xf32>,
    %c0_103 = arith.constant 0 : index
    %c168 = arith.constant 168 : index
    %82 = vector.load %arg9[%c0_103, %c168] : memref<32x640xf32, #tpu.memory_space<vmem>>, vector<32x384xf32>
    %c704 = arith.constant 704 : index
    %c0_104 = arith.constant 0 : index
    %83 = vector.load %arg10[%c704, %c0_104] : memref<800x384xf32, #tpu.memory_space<vmem>>, vector<32x384xf32>
    tpu.vector_store %arg10[%c704, %c0_104], %82 {strides = array<i32>} : memref<800x384xf32, #tpu.memory_space<vmem>>, vector<32x384xf32>,
    %c0_105 = arith.constant 0 : index
    %c169 = arith.constant 169 : index
    %84 = vector.load %arg9[%c0_105, %c169] : memref<32x640xf32, #tpu.memory_space<vmem>>, vector<32x384xf32>
    %c736 = arith.constant 736 : index
    %c0_106 = arith.constant 0 : index
    %85 = vector.load %arg10[%c736, %c0_106] : memref<800x384xf32, #tpu.memory_space<vmem>>, vector<32x384xf32>
    tpu.vector_store %arg10[%c736, %c0_106], %84 {strides = array<i32>} : memref<800x384xf32, #tpu.memory_space<vmem>>, vector<32x384xf32>,
    %c0_107 = arith.constant 0 : index
    %c170 = arith.constant 170 : index
    %86 = vector.load %arg9[%c0_107, %c170] : memref<32x640xf32, #tpu.memory_space<vmem>>, vector<32x384xf32>
    %c768 = arith.constant 768 : index
    %c0_108 = arith.constant 0 : index
    %87 = vector.load %arg10[%c768, %c0_108] : memref<800x384xf32, #tpu.memory_space<vmem>>, vector<32x384xf32>
    tpu.vector_store %arg10[%c768, %c0_108], %86 {strides = array<i32>} : memref<800x384xf32, #tpu.memory_space<vmem>>, vector<32x384xf32>,
    %c0_109 = arith.constant 0 : index
    %c0_110 = arith.constant 0 : index
    %88 = vector.load %arg10[%c0_109, %c0_110] : memref<800x384xf32, #tpu.memory_space<vmem>>, vector<800x384xf32>
    %cst_111 = arith.constant dense<0.000000e+00> : vector<32x384xf32>
    %89 = tpu.matmul %37, %88, %cst_111 {dimension_numbers = #tpu.dot_dimension_numbers<[1], [0], [0], [1], [0, 0, 1, 1], [], []>} : vector<32x800xf32>, vector<800x384xf32>, vector<32x384xf32> -> vector<32x384xf32>
    %c1 = arith.constant 1 : index
    %c0_112 = arith.constant 0 : index
    %c0_113 = arith.constant 0 : index
    %90 = vector.load %arg7[%c1, %c0_112, %c0_113] : memref<5x32x1xf32, #tpu.memory_space<vmem>>, vector<1x32x1xf32>
    %91 = vector.shape_cast %90 : vector<1x32x1xf32> to vector<32x1xf32>
    %92 = vector.broadcast %91 : vector<32x1xf32> to vector<32x384xf32>
    %93 = arith.addf %89, %92 : vector<32x384xf32>
    %94 = arith.addf %93, %3 : vector<32x384xf32>
    %cst_114 = arith.constant 0.000000e+00 : f32
    %95 = vector.broadcast %cst_114 : f32 to vector<32x384xf32>
    %96 = arith.maximumf %94, %95 : vector<32x384xf32>
    %97 = vector.broadcast %0 : vector<1x384xf32> to vector<32x384xf32>
    %98 = arith.mulf %96, %97 : vector<32x384xf32>
    %c0_115 = arith.constant 0 : index
    %c128_116 = arith.constant 128 : index
    %99 = vector.load %arg9[%c0_115, %c128_116] : memref<32x640xf32, #tpu.memory_space<vmem>>, vector<32x384xf32>
    tpu.vector_store %arg9[%c0_115, %c128_116], %98 {strides = array<i32>} : memref<32x640xf32, #tpu.memory_space<vmem>>, vector<32x384xf32>,
    %c1_117 = arith.constant 1 : index
    %c0_118 = arith.constant 0 : index
    %c0_119 = arith.constant 0 : index
    %100 = vector.load %arg5[%c1_117, %c0_118, %c0_119] : memref<3x32x288xf32, #tpu.memory_space<vmem>>, vector<1x32x288xf32>
    %101 = vector.shape_cast %100 : vector<1x32x288xf32> to vector<32x288xf32>
    %c0_120 = arith.constant 0 : index
    %c107_121 = arith.constant 107 : index
    %102 = vector.load %arg9[%c0_120, %c107_121] : memref<32x640xf32, #tpu.memory_space<vmem>>, vector<32x384xf32>
    %c0_122 = arith.constant 0 : index
    %c0_123 = arith.constant 0 : index
    %103 = vector.load %arg10[%c0_122, %c0_123] : memref<800x384xf32, #tpu.memory_space<vmem>>, vector<32x384xf32>
    tpu.vector_store %arg10[%c0_122, %c0_123], %102 {strides = array<i32>} : memref<800x384xf32, #tpu.memory_space<vmem>>, vector<32x384xf32>,
    %c0_124 = arith.constant 0 : index
    %c108_125 = arith.constant 108 : index
    %104 = vector.load %arg9[%c0_124, %c108_125] : memref<32x640xf32, #tpu.memory_space<vmem>>, vector<32x384xf32>
    %c32_126 = arith.constant 32 : index
    %c0_127 = arith.constant 0 : index
    %105 = vector.load %arg10[%c32_126, %c0_127] : memref<800x384xf32, #tpu.memory_space<vmem>>, vector<32x384xf32>
    tpu.vector_store %arg10[%c32_126, %c0_127], %104 {strides = array<i32>} : memref<800x384xf32, #tpu.memory_space<vmem>>, vector<32x384xf32>,
    %c0_128 = arith.constant 0 : index
    %c109_129 = arith.constant 109 : index
    %106 = vector.load %arg9[%c0_128, %c109_129] : memref<32x640xf32, #tpu.memory_space<vmem>>, vector<32x384xf32>
    %c64_130 = arith.constant 64 : index
    %c0_131 = arith.constant 0 : index
    %107 = vector.load %arg10[%c64_130, %c0_131] : memref<800x384xf32, #tpu.memory_space<vmem>>, vector<32x384xf32>
    tpu.vector_store %arg10[%c64_130, %c0_131], %106 {strides = array<i32>} : memref<800x384xf32, #tpu.memory_space<vmem>>, vector<32x384xf32>,
    %c0_132 = arith.constant 0 : index
    %c127_133 = arith.constant 127 : index
    %108 = vector.load %arg9[%c0_132, %c127_133] : memref<32x640xf32, #tpu.memory_space<vmem>>, vector<32x384xf32>
    %c96_134 = arith.constant 96 : index
    %c0_135 = arith.constant 0 : index
    %109 = vector.load %arg10[%c96_134, %c0_135] : memref<800x384xf32, #tpu.memory_space<vmem>>, vector<32x384xf32>
    tpu.vector_store %arg10[%c96_134, %c0_135], %108 {strides = array<i32>} : memref<800x384xf32, #tpu.memory_space<vmem>>, vector<32x384xf32>,
    %c0_136 = arith.constant 0 : index
    %c128_137 = arith.constant 128 : index
    %110 = vector.load %arg9[%c0_136, %c128_137] : memref<32x640xf32, #tpu.memory_space<vmem>>, vector<32x384xf32>
    %c128_138 = arith.constant 128 : index
    %c0_139 = arith.constant 0 : index
    %111 = vector.load %arg10[%c128_138, %c0_139] : memref<800x384xf32, #tpu.memory_space<vmem>>, vector<32x384xf32>
    tpu.vector_store %arg10[%c128_138, %c0_139], %110 {strides = array<i32>} : memref<800x384xf32, #tpu.memory_space<vmem>>, vector<32x384xf32>,
    %c0_140 = arith.constant 0 : index
    %c129_141 = arith.constant 129 : index
    %112 = vector.load %arg9[%c0_140, %c129_141] : memref<32x640xf32, #tpu.memory_space<vmem>>, vector<32x384xf32>
    %c160_142 = arith.constant 160 : index
    %c0_143 = arith.constant 0 : index
    %113 = vector.load %arg10[%c160_142, %c0_143] : memref<800x384xf32, #tpu.memory_space<vmem>>, vector<32x384xf32>
    tpu.vector_store %arg10[%c160_142, %c0_143], %112 {strides = array<i32>} : memref<800x384xf32, #tpu.memory_space<vmem>>, vector<32x384xf32>,
    %c0_144 = arith.constant 0 : index
    %c147_145 = arith.constant 147 : index
    %114 = vector.load %arg9[%c0_144, %c147_145] : memref<32x640xf32, #tpu.memory_space<vmem>>, vector<32x384xf32>
    %c192_146 = arith.constant 192 : index
    %c0_147 = arith.constant 0 : index
    %115 = vector.load %arg10[%c192_146, %c0_147] : memref<800x384xf32, #tpu.memory_space<vmem>>, vector<32x384xf32>
    tpu.vector_store %arg10[%c192_146, %c0_147], %114 {strides = array<i32>} : memref<800x384xf32, #tpu.memory_space<vmem>>, vector<32x384xf32>,
    %c0_148 = arith.constant 0 : index
    %c148_149 = arith.constant 148 : index
    %116 = vector.load %arg9[%c0_148, %c148_149] : memref<32x640xf32, #tpu.memory_space<vmem>>, vector<32x384xf32>
    %c224_150 = arith.constant 224 : index
    %c0_151 = arith.constant 0 : index
    %117 = vector.load %arg10[%c224_150, %c0_151] : memref<800x384xf32, #tpu.memory_space<vmem>>, vector<32x384xf32>
    tpu.vector_store %arg10[%c224_150, %c0_151], %116 {strides = array<i32>} : memref<800x384xf32, #tpu.memory_space<vmem>>, vector<32x384xf32>,
    %c0_152 = arith.constant 0 : index
    %c149_153 = arith.constant 149 : index
    %118 = vector.load %arg9[%c0_152, %c149_153] : memref<32x640xf32, #tpu.memory_space<vmem>>, vector<32x384xf32>
    %c256_154 = arith.constant 256 : index
    %c0_155 = arith.constant 0 : index
    %119 = vector.load %arg10[%c256_154, %c0_155] : memref<800x384xf32, #tpu.memory_space<vmem>>, vector<32x384xf32>
    tpu.vector_store %arg10[%c256_154, %c0_155], %118 {strides = array<i32>} : memref<800x384xf32, #tpu.memory_space<vmem>>, vector<32x384xf32>,
    %c0_156 = arith.constant 0 : index
    %c0_157 = arith.constant 0 : index
    %120 = vector.load %arg10[%c0_156, %c0_157] : memref<800x384xf32, #tpu.memory_space<vmem>>, vector<288x384xf32>
    %cst_158 = arith.constant dense<0.000000e+00> : vector<32x384xf32>
    %121 = tpu.matmul %101, %120, %cst_158 {dimension_numbers = #tpu.dot_dimension_numbers<[1], [0], [0], [1], [0, 0, 1, 1], [], []>} : vector<32x288xf32>, vector<288x384xf32>, vector<32x384xf32> -> vector<32x384xf32>
    %c2 = arith.constant 2 : index
    %c0_159 = arith.constant 0 : index
    %c0_160 = arith.constant 0 : index
    %122 = vector.load %arg7[%c2, %c0_159, %c0_160] : memref<5x32x1xf32, #tpu.memory_space<vmem>>, vector<1x32x1xf32>
    %123 = vector.shape_cast %122 : vector<1x32x1xf32> to vector<32x1xf32>
    %124 = vector.broadcast %123 : vector<32x1xf32> to vector<32x384xf32>
    %125 = arith.addf %121, %124 : vector<32x384xf32>
    %cst_161 = arith.constant 0.000000e+00 : f32
    %126 = vector.broadcast %cst_161 : f32 to vector<32x384xf32>
    %127 = arith.maximumf %125, %126 : vector<32x384xf32>
    %128 = vector.broadcast %0 : vector<1x384xf32> to vector<32x384xf32>
    %129 = arith.mulf %127, %128 : vector<32x384xf32>
    %c0_162 = arith.constant 0 : index
    %c128_163 = arith.constant 128 : index
    %130 = vector.load %arg9[%c0_162, %c128_163] : memref<32x640xf32, #tpu.memory_space<vmem>>, vector<32x384xf32>
    tpu.vector_store %arg9[%c0_162, %c128_163], %129 {strides = array<i32>} : memref<32x640xf32, #tpu.memory_space<vmem>>, vector<32x384xf32>,
    %c1_164 = arith.constant 1 : index
    %c0_165 = arith.constant 0 : index
    %c0_166 = arith.constant 0 : index
    %131 = vector.load %arg6[%c1_164, %c0_165, %c0_166] : memref<2x32x800xf32, #tpu.memory_space<vmem>>, vector<1x32x800xf32>
    %132 = vector.shape_cast %131 : vector<1x32x800xf32> to vector<32x800xf32>
    %c0_167 = arith.constant 0 : index
    %c86_168 = arith.constant 86 : index
    %133 = vector.load %arg9[%c0_167, %c86_168] : memref<32x640xf32, #tpu.memory_space<vmem>>, vector<32x384xf32>
    %c0_169 = arith.constant 0 : index
    %c0_170 = arith.constant 0 : index
    %134 = vector.load %arg10[%c0_169, %c0_170] : memref<800x384xf32, #tpu.memory_space<vmem>>, vector<32x384xf32>
    tpu.vector_store %arg10[%c0_169, %c0_170], %133 {strides = array<i32>} : memref<800x384xf32, #tpu.memory_space<vmem>>, vector<32x384xf32>,
    %c0_171 = arith.constant 0 : index
    %c87_172 = arith.constant 87 : index
    %135 = vector.load %arg9[%c0_171, %c87_172] : memref<32x640xf32, #tpu.memory_space<vmem>>, vector<32x384xf32>
    %c32_173 = arith.constant 32 : index
    %c0_174 = arith.constant 0 : index
    %136 = vector.load %arg10[%c32_173, %c0_174] : memref<800x384xf32, #tpu.memory_space<vmem>>, vector<32x384xf32>
    tpu.vector_store %arg10[%c32_173, %c0_174], %135 {strides = array<i32>} : memref<800x384xf32, #tpu.memory_space<vmem>>, vector<32x384xf32>,
    %c0_175 = arith.constant 0 : index
    %c88_176 = arith.constant 88 : index
    %137 = vector.load %arg9[%c0_175, %c88_176] : memref<32x640xf32, #tpu.memory_space<vmem>>, vector<32x384xf32>
    %c64_177 = arith.constant 64 : index
    %c0_178 = arith.constant 0 : index
    %138 = vector.load %arg10[%c64_177, %c0_178] : memref<800x384xf32, #tpu.memory_space<vmem>>, vector<32x384xf32>
    tpu.vector_store %arg10[%c64_177, %c0_178], %137 {strides = array<i32>} : memref<800x384xf32, #tpu.memory_space<vmem>>, vector<32x384xf32>,
    %c0_179 = arith.constant 0 : index
    %c89_180 = arith.constant 89 : index
    %139 = vector.load %arg9[%c0_179, %c89_180] : memref<32x640xf32, #tpu.memory_space<vmem>>, vector<32x384xf32>
    %c96_181 = arith.constant 96 : index
    %c0_182 = arith.constant 0 : index
    %140 = vector.load %arg10[%c96_181, %c0_182] : memref<800x384xf32, #tpu.memory_space<vmem>>, vector<32x384xf32>
    tpu.vector_store %arg10[%c96_181, %c0_182], %139 {strides = array<i32>} : memref<800x384xf32, #tpu.memory_space<vmem>>, vector<32x384xf32>,
    %c0_183 = arith.constant 0 : index
    %c90_184 = arith.constant 90 : index
    %141 = vector.load %arg9[%c0_183, %c90_184] : memref<32x640xf32, #tpu.memory_space<vmem>>, vector<32x384xf32>
    %c128_185 = arith.constant 128 : index
    %c0_186 = arith.constant 0 : index
    %142 = vector.load %arg10[%c128_185, %c0_186] : memref<800x384xf32, #tpu.memory_space<vmem>>, vector<32x384xf32>
    tpu.vector_store %arg10[%c128_185, %c0_186], %141 {strides = array<i32>} : memref<800x384xf32, #tpu.memory_space<vmem>>, vector<32x384xf32>,
    %c0_187 = arith.constant 0 : index
    %c106_188 = arith.constant 106 : index
    %143 = vector.load %arg9[%c0_187, %c106_188] : memref<32x640xf32, #tpu.memory_space<vmem>>, vector<32x384xf32>
    %c160_189 = arith.constant 160 : index
    %c0_190 = arith.constant 0 : index
    %144 = vector.load %arg10[%c160_189, %c0_190] : memref<800x384xf32, #tpu.memory_space<vmem>>, vector<32x384xf32>
    tpu.vector_store %arg10[%c160_189, %c0_190], %143 {strides = array<i32>} : memref<800x384xf32, #tpu.memory_space<vmem>>, vector<32x384xf32>,
    %c0_191 = arith.constant 0 : index
    %c107_192 = arith.constant 107 : index
    %145 = vector.load %arg9[%c0_191, %c107_192] : memref<32x640xf32, #tpu.memory_space<vmem>>, vector<32x384xf32>
    %c192_193 = arith.constant 192 : index
    %c0_194 = arith.constant 0 : index
    %146 = vector.load %arg10[%c192_193, %c0_194] : memref<800x384xf32, #tpu.memory_space<vmem>>, vector<32x384xf32>
    tpu.vector_store %arg10[%c192_193, %c0_194], %145 {strides = array<i32>} : memref<800x384xf32, #tpu.memory_space<vmem>>, vector<32x384xf32>,
    %c0_195 = arith.constant 0 : index
    %c108_196 = arith.constant 108 : index
    %147 = vector.load %arg9[%c0_195, %c108_196] : memref<32x640xf32, #tpu.memory_space<vmem>>, vector<32x384xf32>
    %c224_197 = arith.constant 224 : index
    %c0_198 = arith.constant 0 : index
    %148 = vector.load %arg10[%c224_197, %c0_198] : memref<800x384xf32, #tpu.memory_space<vmem>>, vector<32x384xf32>
    tpu.vector_store %arg10[%c224_197, %c0_198], %147 {strides = array<i32>} : memref<800x384xf32, #tpu.memory_space<vmem>>, vector<32x384xf32>,
    %c0_199 = arith.constant 0 : index
    %c109_200 = arith.constant 109 : index
    %149 = vector.load %arg9[%c0_199, %c109_200] : memref<32x640xf32, #tpu.memory_space<vmem>>, vector<32x384xf32>
    %c256_201 = arith.constant 256 : index
    %c0_202 = arith.constant 0 : index
    %150 = vector.load %arg10[%c256_201, %c0_202] : memref<800x384xf32, #tpu.memory_space<vmem>>, vector<32x384xf32>
    tpu.vector_store %arg10[%c256_201, %c0_202], %149 {strides = array<i32>} : memref<800x384xf32, #tpu.memory_space<vmem>>, vector<32x384xf32>,
    %c0_203 = arith.constant 0 : index
    %c110_204 = arith.constant 110 : index
    %151 = vector.load %arg9[%c0_203, %c110_204] : memref<32x640xf32, #tpu.memory_space<vmem>>, vector<32x384xf32>
    %c288_205 = arith.constant 288 : index
    %c0_206 = arith.constant 0 : index
    %152 = vector.load %arg10[%c288_205, %c0_206] : memref<800x384xf32, #tpu.memory_space<vmem>>, vector<32x384xf32>
    tpu.vector_store %arg10[%c288_205, %c0_206], %151 {strides = array<i32>} : memref<800x384xf32, #tpu.memory_space<vmem>>, vector<32x384xf32>,
    %c0_207 = arith.constant 0 : index
    %c126_208 = arith.constant 126 : index
    %153 = vector.load %arg9[%c0_207, %c126_208] : memref<32x640xf32, #tpu.memory_space<vmem>>, vector<32x384xf32>
    %c320_209 = arith.constant 320 : index
    %c0_210 = arith.constant 0 : index
    %154 = vector.load %arg10[%c320_209, %c0_210] : memref<800x384xf32, #tpu.memory_space<vmem>>, vector<32x384xf32>
    tpu.vector_store %arg10[%c320_209, %c0_210], %153 {strides = array<i32>} : memref<800x384xf32, #tpu.memory_space<vmem>>, vector<32x384xf32>,
    %c0_211 = arith.constant 0 : index
    %c127_212 = arith.constant 127 : index
    %155 = vector.load %arg9[%c0_211, %c127_212] : memref<32x640xf32, #tpu.memory_space<vmem>>, vector<32x384xf32>
    %c352_213 = arith.constant 352 : index
    %c0_214 = arith.constant 0 : index
    %156 = vector.load %arg10[%c352_213, %c0_214] : memref<800x384xf32, #tpu.memory_space<vmem>>, vector<32x384xf32>
    tpu.vector_store %arg10[%c352_213, %c0_214], %155 {strides = array<i32>} : memref<800x384xf32, #tpu.memory_space<vmem>>, vector<32x384xf32>,
    %c0_215 = arith.constant 0 : index
    %c128_216 = arith.constant 128 : index
    %157 = vector.load %arg9[%c0_215, %c128_216] : memref<32x640xf32, #tpu.memory_space<vmem>>, vector<32x384xf32>
    %c384_217 = arith.constant 384 : index
    %c0_218 = arith.constant 0 : index
    %158 = vector.load %arg10[%c384_217, %c0_218] : memref<800x384xf32, #tpu.memory_space<vmem>>, vector<32x384xf32>
    tpu.vector_store %arg10[%c384_217, %c0_218], %157 {strides = array<i32>} : memref<800x384xf32, #tpu.memory_space<vmem>>, vector<32x384xf32>,
    %c0_219 = arith.constant 0 : index
    %c129_220 = arith.constant 129 : index
    %159 = vector.load %arg9[%c0_219, %c129_220] : memref<32x640xf32, #tpu.memory_space<vmem>>, vector<32x384xf32>
    %c416_221 = arith.constant 416 : index
    %c0_222 = arith.constant 0 : index
    %160 = vector.load %arg10[%c416_221, %c0_222] : memref<800x384xf32, #tpu.memory_space<vmem>>, vector<32x384xf32>
    tpu.vector_store %arg10[%c416_221, %c0_222], %159 {strides = array<i32>} : memref<800x384xf32, #tpu.memory_space<vmem>>, vector<32x384xf32>,
    %c0_223 = arith.constant 0 : index
    %c130_224 = arith.constant 130 : index
    %161 = vector.load %arg9[%c0_223, %c130_224] : memref<32x640xf32, #tpu.memory_space<vmem>>, vector<32x384xf32>
    %c448_225 = arith.constant 448 : index
    %c0_226 = arith.constant 0 : index
    %162 = vector.load %arg10[%c448_225, %c0_226] : memref<800x384xf32, #tpu.memory_space<vmem>>, vector<32x384xf32>
    tpu.vector_store %arg10[%c448_225, %c0_226], %161 {strides = array<i32>} : memref<800x384xf32, #tpu.memory_space<vmem>>, vector<32x384xf32>,
    %c0_227 = arith.constant 0 : index
    %c146_228 = arith.constant 146 : index
    %163 = vector.load %arg9[%c0_227, %c146_228] : memref<32x640xf32, #tpu.memory_space<vmem>>, vector<32x384xf32>
    %c480_229 = arith.constant 480 : index
    %c0_230 = arith.constant 0 : index
    %164 = vector.load %arg10[%c480_229, %c0_230] : memref<800x384xf32, #tpu.memory_space<vmem>>, vector<32x384xf32>
    tpu.vector_store %arg10[%c480_229, %c0_230], %163 {strides = array<i32>} : memref<800x384xf32, #tpu.memory_space<vmem>>, vector<32x384xf32>,
    %c0_231 = arith.constant 0 : index
    %c147_232 = arith.constant 147 : index
    %165 = vector.load %arg9[%c0_231, %c147_232] : memref<32x640xf32, #tpu.memory_space<vmem>>, vector<32x384xf32>
    %c512_233 = arith.constant 512 : index
    %c0_234 = arith.constant 0 : index
    %166 = vector.load %arg10[%c512_233, %c0_234] : memref<800x384xf32, #tpu.memory_space<vmem>>, vector<32x384xf32>
    tpu.vector_store %arg10[%c512_233, %c0_234], %165 {strides = array<i32>} : memref<800x384xf32, #tpu.memory_space<vmem>>, vector<32x384xf32>,
    %c0_235 = arith.constant 0 : index
    %c148_236 = arith.constant 148 : index
    %167 = vector.load %arg9[%c0_235, %c148_236] : memref<32x640xf32, #tpu.memory_space<vmem>>, vector<32x384xf32>
    %c544_237 = arith.constant 544 : index
    %c0_238 = arith.constant 0 : index
    %168 = vector.load %arg10[%c544_237, %c0_238] : memref<800x384xf32, #tpu.memory_space<vmem>>, vector<32x384xf32>
    tpu.vector_store %arg10[%c544_237, %c0_238], %167 {strides = array<i32>} : memref<800x384xf32, #tpu.memory_space<vmem>>, vector<32x384xf32>,
    %c0_239 = arith.constant 0 : index
    %c149_240 = arith.constant 149 : index
    %169 = vector.load %arg9[%c0_239, %c149_240] : memref<32x640xf32, #tpu.memory_space<vmem>>, vector<32x384xf32>
    %c576_241 = arith.constant 576 : index
    %c0_242 = arith.constant 0 : index
    %170 = vector.load %arg10[%c576_241, %c0_242] : memref<800x384xf32, #tpu.memory_space<vmem>>, vector<32x384xf32>
    tpu.vector_store %arg10[%c576_241, %c0_242], %169 {strides = array<i32>} : memref<800x384xf32, #tpu.memory_space<vmem>>, vector<32x384xf32>,
    %c0_243 = arith.constant 0 : index
    %c150_244 = arith.constant 150 : index
    %171 = vector.load %arg9[%c0_243, %c150_244] : memref<32x640xf32, #tpu.memory_space<vmem>>, vector<32x384xf32>
    %c608_245 = arith.constant 608 : index
    %c0_246 = arith.constant 0 : index
    %172 = vector.load %arg10[%c608_245, %c0_246] : memref<800x384xf32, #tpu.memory_space<vmem>>, vector<32x384xf32>
    tpu.vector_store %arg10[%c608_245, %c0_246], %171 {strides = array<i32>} : memref<800x384xf32, #tpu.memory_space<vmem>>, vector<32x384xf32>,
    %c0_247 = arith.constant 0 : index
    %c166_248 = arith.constant 166 : index
    %173 = vector.load %arg9[%c0_247, %c166_248] : memref<32x640xf32, #tpu.memory_space<vmem>>, vector<32x384xf32>
    %c640_249 = arith.constant 640 : index
    %c0_250 = arith.constant 0 : index
    %174 = vector.load %arg10[%c640_249, %c0_250] : memref<800x384xf32, #tpu.memory_space<vmem>>, vector<32x384xf32>
    tpu.vector_store %arg10[%c640_249, %c0_250], %173 {strides = array<i32>} : memref<800x384xf32, #tpu.memory_space<vmem>>, vector<32x384xf32>,
    %c0_251 = arith.constant 0 : index
    %c167_252 = arith.constant 167 : index
    %175 = vector.load %arg9[%c0_251, %c167_252] : memref<32x640xf32, #tpu.memory_space<vmem>>, vector<32x384xf32>
    %c672_253 = arith.constant 672 : index
    %c0_254 = arith.constant 0 : index
    %176 = vector.load %arg10[%c672_253, %c0_254] : memref<800x384xf32, #tpu.memory_space<vmem>>, vector<32x384xf32>
    tpu.vector_store %arg10[%c672_253, %c0_254], %175 {strides = array<i32>} : memref<800x384xf32, #tpu.memory_space<vmem>>, vector<32x384xf32>,
    %c0_255 = arith.constant 0 : index
    %c168_256 = arith.constant 168 : index
    %177 = vector.load %arg9[%c0_255, %c168_256] : memref<32x640xf32, #tpu.memory_space<vmem>>, vector<32x384xf32>
    %c704_257 = arith.constant 704 : index
    %c0_258 = arith.constant 0 : index
    %178 = vector.load %arg10[%c704_257, %c0_258] : memref<800x384xf32, #tpu.memory_space<vmem>>, vector<32x384xf32>
    tpu.vector_store %arg10[%c704_257, %c0_258], %177 {strides = array<i32>} : memref<800x384xf32, #tpu.memory_space<vmem>>, vector<32x384xf32>,
    %c0_259 = arith.constant 0 : index
    %c169_260 = arith.constant 169 : index
    %179 = vector.load %arg9[%c0_259, %c169_260] : memref<32x640xf32, #tpu.memory_space<vmem>>, vector<32x384xf32>
    %c736_261 = arith.constant 736 : index
    %c0_262 = arith.constant 0 : index
    %180 = vector.load %arg10[%c736_261, %c0_262] : memref<800x384xf32, #tpu.memory_space<vmem>>, vector<32x384xf32>
    tpu.vector_store %arg10[%c736_261, %c0_262], %179 {strides = array<i32>} : memref<800x384xf32, #tpu.memory_space<vmem>>, vector<32x384xf32>,
    %c0_263 = arith.constant 0 : index
    %c170_264 = arith.constant 170 : index
    %181 = vector.load %arg9[%c0_263, %c170_264] : memref<32x640xf32, #tpu.memory_space<vmem>>, vector<32x384xf32>
    %c768_265 = arith.constant 768 : index
    %c0_266 = arith.constant 0 : index
    %182 = vector.load %arg10[%c768_265, %c0_266] : memref<800x384xf32, #tpu.memory_space<vmem>>, vector<32x384xf32>
    tpu.vector_store %arg10[%c768_265, %c0_266], %181 {strides = array<i32>} : memref<800x384xf32, #tpu.memory_space<vmem>>, vector<32x384xf32>,
    %c0_267 = arith.constant 0 : index
    %c0_268 = arith.constant 0 : index
    %183 = vector.load %arg10[%c0_267, %c0_268] : memref<800x384xf32, #tpu.memory_space<vmem>>, vector<800x384xf32>
    %cst_269 = arith.constant dense<0.000000e+00> : vector<32x384xf32>
    %184 = tpu.matmul %132, %183, %cst_269 {dimension_numbers = #tpu.dot_dimension_numbers<[1], [0], [0], [1], [0, 0, 1, 1], [], []>} : vector<32x800xf32>, vector<800x384xf32>, vector<32x384xf32> -> vector<32x384xf32>
    %c3 = arith.constant 3 : index
    %c0_270 = arith.constant 0 : index
    %c0_271 = arith.constant 0 : index
    %185 = vector.load %arg7[%c3, %c0_270, %c0_271] : memref<5x32x1xf32, #tpu.memory_space<vmem>>, vector<1x32x1xf32>
    %186 = vector.shape_cast %185 : vector<1x32x1xf32> to vector<32x1xf32>
    %187 = vector.broadcast %186 : vector<32x1xf32> to vector<32x384xf32>
    %188 = arith.addf %184, %187 : vector<32x384xf32>
    %189 = arith.addf %188, %30 : vector<32x384xf32>
    %cst_272 = arith.constant 0.000000e+00 : f32
    %190 = vector.broadcast %cst_272 : f32 to vector<32x384xf32>
    %191 = arith.maximumf %189, %190 : vector<32x384xf32>
    %192 = vector.broadcast %0 : vector<1x384xf32> to vector<32x384xf32>
    %193 = arith.mulf %191, %192 : vector<32x384xf32>
    %c0_273 = arith.constant 0 : index
    %c128_274 = arith.constant 128 : index
    %194 = vector.load %arg9[%c0_273, %c128_274] : memref<32x640xf32, #tpu.memory_space<vmem>>, vector<32x384xf32>
    tpu.vector_store %arg9[%c0_273, %c128_274], %193 {strides = array<i32>} : memref<32x640xf32, #tpu.memory_space<vmem>>, vector<32x384xf32>,
    %c2_275 = arith.constant 2 : index
    %c0_276 = arith.constant 0 : index
    %c0_277 = arith.constant 0 : index
    %195 = vector.load %arg5[%c2_275, %c0_276, %c0_277] : memref<3x32x288xf32, #tpu.memory_space<vmem>>, vector<1x32x288xf32>
    %196 = vector.shape_cast %195 : vector<1x32x288xf32> to vector<32x288xf32>
    %c0_278 = arith.constant 0 : index
    %c107_279 = arith.constant 107 : index
    %197 = vector.load %arg9[%c0_278, %c107_279] : memref<32x640xf32, #tpu.memory_space<vmem>>, vector<32x384xf32>
    %c0_280 = arith.constant 0 : index
    %c0_281 = arith.constant 0 : index
    %198 = vector.load %arg10[%c0_280, %c0_281] : memref<800x384xf32, #tpu.memory_space<vmem>>, vector<32x384xf32>
    tpu.vector_store %arg10[%c0_280, %c0_281], %197 {strides = array<i32>} : memref<800x384xf32, #tpu.memory_space<vmem>>, vector<32x384xf32>,
    %c0_282 = arith.constant 0 : index
    %c108_283 = arith.constant 108 : index
    %199 = vector.load %arg9[%c0_282, %c108_283] : memref<32x640xf32, #tpu.memory_space<vmem>>, vector<32x384xf32>
    %c32_284 = arith.constant 32 : index
    %c0_285 = arith.constant 0 : index
    %200 = vector.load %arg10[%c32_284, %c0_285] : memref<800x384xf32, #tpu.memory_space<vmem>>, vector<32x384xf32>
    tpu.vector_store %arg10[%c32_284, %c0_285], %199 {strides = array<i32>} : memref<800x384xf32, #tpu.memory_space<vmem>>, vector<32x384xf32>,
    %c0_286 = arith.constant 0 : index
    %c109_287 = arith.constant 109 : index
    %201 = vector.load %arg9[%c0_286, %c109_287] : memref<32x640xf32, #tpu.memory_space<vmem>>, vector<32x384xf32>
    %c64_288 = arith.constant 64 : index
    %c0_289 = arith.constant 0 : index
    %202 = vector.load %arg10[%c64_288, %c0_289] : memref<800x384xf32, #tpu.memory_space<vmem>>, vector<32x384xf32>
    tpu.vector_store %arg10[%c64_288, %c0_289], %201 {strides = array<i32>} : memref<800x384xf32, #tpu.memory_space<vmem>>, vector<32x384xf32>,
    %c0_290 = arith.constant 0 : index
    %c127_291 = arith.constant 127 : index
    %203 = vector.load %arg9[%c0_290, %c127_291] : memref<32x640xf32, #tpu.memory_space<vmem>>, vector<32x384xf32>
    %c96_292 = arith.constant 96 : index
    %c0_293 = arith.constant 0 : index
    %204 = vector.load %arg10[%c96_292, %c0_293] : memref<800x384xf32, #tpu.memory_space<vmem>>, vector<32x384xf32>
    tpu.vector_store %arg10[%c96_292, %c0_293], %203 {strides = array<i32>} : memref<800x384xf32, #tpu.memory_space<vmem>>, vector<32x384xf32>,
    %c0_294 = arith.constant 0 : index
    %c128_295 = arith.constant 128 : index
    %205 = vector.load %arg9[%c0_294, %c128_295] : memref<32x640xf32, #tpu.memory_space<vmem>>, vector<32x384xf32>
    %c128_296 = arith.constant 128 : index
    %c0_297 = arith.constant 0 : index
    %206 = vector.load %arg10[%c128_296, %c0_297] : memref<800x384xf32, #tpu.memory_space<vmem>>, vector<32x384xf32>
    tpu.vector_store %arg10[%c128_296, %c0_297], %205 {strides = array<i32>} : memref<800x384xf32, #tpu.memory_space<vmem>>, vector<32x384xf32>,
    %c0_298 = arith.constant 0 : index
    %c129_299 = arith.constant 129 : index
    %207 = vector.load %arg9[%c0_298, %c129_299] : memref<32x640xf32, #tpu.memory_space<vmem>>, vector<32x384xf32>
    %c160_300 = arith.constant 160 : index
    %c0_301 = arith.constant 0 : index
    %208 = vector.load %arg10[%c160_300, %c0_301] : memref<800x384xf32, #tpu.memory_space<vmem>>, vector<32x384xf32>
    tpu.vector_store %arg10[%c160_300, %c0_301], %207 {strides = array<i32>} : memref<800x384xf32, #tpu.memory_space<vmem>>, vector<32x384xf32>,
    %c0_302 = arith.constant 0 : index
    %c147_303 = arith.constant 147 : index
    %209 = vector.load %arg9[%c0_302, %c147_303] : memref<32x640xf32, #tpu.memory_space<vmem>>, vector<32x384xf32>
    %c192_304 = arith.constant 192 : index
    %c0_305 = arith.constant 0 : index
    %210 = vector.load %arg10[%c192_304, %c0_305] : memref<800x384xf32, #tpu.memory_space<vmem>>, vector<32x384xf32>
    tpu.vector_store %arg10[%c192_304, %c0_305], %209 {strides = array<i32>} : memref<800x384xf32, #tpu.memory_space<vmem>>, vector<32x384xf32>,
    %c0_306 = arith.constant 0 : index
    %c148_307 = arith.constant 148 : index
    %211 = vector.load %arg9[%c0_306, %c148_307] : memref<32x640xf32, #tpu.memory_space<vmem>>, vector<32x384xf32>
    %c224_308 = arith.constant 224 : index
    %c0_309 = arith.constant 0 : index
    %212 = vector.load %arg10[%c224_308, %c0_309] : memref<800x384xf32, #tpu.memory_space<vmem>>, vector<32x384xf32>
    tpu.vector_store %arg10[%c224_308, %c0_309], %211 {strides = array<i32>} : memref<800x384xf32, #tpu.memory_space<vmem>>, vector<32x384xf32>,
    %c0_310 = arith.constant 0 : index
    %c149_311 = arith.constant 149 : index
    %213 = vector.load %arg9[%c0_310, %c149_311] : memref<32x640xf32, #tpu.memory_space<vmem>>, vector<32x384xf32>
    %c256_312 = arith.constant 256 : index
    %c0_313 = arith.constant 0 : index
    %214 = vector.load %arg10[%c256_312, %c0_313] : memref<800x384xf32, #tpu.memory_space<vmem>>, vector<32x384xf32>
    tpu.vector_store %arg10[%c256_312, %c0_313], %213 {strides = array<i32>} : memref<800x384xf32, #tpu.memory_space<vmem>>, vector<32x384xf32>,
    %c0_314 = arith.constant 0 : index
    %c0_315 = arith.constant 0 : index
    %215 = vector.load %arg10[%c0_314, %c0_315] : memref<800x384xf32, #tpu.memory_space<vmem>>, vector<288x384xf32>
    %cst_316 = arith.constant dense<0.000000e+00> : vector<32x384xf32>
    %216 = tpu.matmul %196, %215, %cst_316 {dimension_numbers = #tpu.dot_dimension_numbers<[1], [0], [0], [1], [0, 0, 1, 1], [], []>} : vector<32x288xf32>, vector<288x384xf32>, vector<32x384xf32> -> vector<32x384xf32>
    %c4 = arith.constant 4 : index
    %c0_317 = arith.constant 0 : index
    %c0_318 = arith.constant 0 : index
    %217 = vector.load %arg7[%c4, %c0_317, %c0_318] : memref<5x32x1xf32, #tpu.memory_space<vmem>>, vector<1x32x1xf32>
    %218 = vector.shape_cast %217 : vector<1x32x1xf32> to vector<32x1xf32>
    %219 = vector.broadcast %218 : vector<32x1xf32> to vector<32x384xf32>
    %220 = arith.addf %216, %219 : vector<32x384xf32>
    %c0_319 = arith.constant 0 : index
    %c0_320 = arith.constant 0 : index
    %221 = vector.load %arg2[%c0_319, %c0_320] : memref<32x384xf32, #tpu.memory_space<vmem>>, vector<32x384xf32>
    %222 = arith.addf %220, %221 : vector<32x384xf32>
    %cst_321 = arith.constant 0.000000e+00 : f32
    %223 = vector.broadcast %cst_321 : f32 to vector<32x384xf32>
    %224 = arith.maximumf %222, %223 : vector<32x384xf32>
    %c0_322 = arith.constant 0 : index
    %c0_323 = arith.constant 0 : index
    %225 = vector.load %arg8[%c0_322, %c0_323] : memref<32x384xf32, #tpu.memory_space<vmem>>, vector<32x384xf32>
    tpu.vector_store %arg8[%c0_322, %c0_323], %224 {strides = array<i32>} : memref<32x384xf32, #tpu.memory_space<vmem>>, vector<32x384xf32>,
    return
  }
  func.func @transform_0(%arg0: i32) -> (i32, i32) {
    %c0_i32 = arith.constant 0 : i32
    %c0_i32_0 = arith.constant 0 : i32
    %c0_i32_1 = arith.constant 0 : i32
    return %c0_i32, %c0_i32_0 : i32, i32
  }
  func.func @transform_1(%arg0: i32) -> (i32, i32) {
    %c0_i32 = arith.constant 0 : i32
    %c0_i32_0 = arith.constant 0 : i32
    %c0_i32_1 = arith.constant 0 : i32
    return %c0_i32, %c0_i32_0 : i32, i32
  }
  func.func @transform_2(%arg0: i32) -> (i32, i32) {
    %c0_i32 = arith.constant 0 : i32
    %c0_i32_0 = arith.constant 0 : i32
    %c0_i32_1 = arith.constant 0 : i32
    return %c0_i32, %c0_i32_0 : i32, i32
  }
  func.func @transform_3(%arg0: i32) -> (i32, i32) {
    %c0_i32 = arith.constant 0 : i32
    %c0_i32_0 = arith.constant 0 : i32
    %c0_i32_1 = arith.constant 0 : i32
    return %c0_i32, %c0_i32_0 : i32, i32
  }
  func.func @transform_4(%arg0: i32) -> (i32, i32, i32) {
    %c0_i32 = arith.constant 0 : i32
    %c0_i32_0 = arith.constant 0 : i32
    %c0_i32_1 = arith.constant 0 : i32
    %c0_i32_2 = arith.constant 0 : i32
    return %c0_i32, %c0_i32_0, %c0_i32_1 : i32, i32, i32
  }
  func.func @transform_5(%arg0: i32) -> (i32, i32, i32) {
    %c0_i32 = arith.constant 0 : i32
    %c0_i32_0 = arith.constant 0 : i32
    %c0_i32_1 = arith.constant 0 : i32
    %c0_i32_2 = arith.constant 0 : i32
    return %c0_i32, %c0_i32_0, %c0_i32_1 : i32, i32, i32
  }
  func.func @transform_6(%arg0: i32) -> (i32, i32, i32) {
    %c0_i32 = arith.constant 0 : i32
    %c0_i32_0 = arith.constant 0 : i32
    %c0_i32_1 = arith.constant 0 : i32
    %c0_i32_2 = arith.constant 0 : i32
    return %c0_i32, %c0_i32_0, %c0_i32_1 : i32, i32, i32
  }
  func.func @transform_7(%arg0: i32) -> (i32, i32) {
    %c0_i32 = arith.constant 0 : i32
    %c0_i32_0 = arith.constant 0 : i32
    %c0_i32_1 = arith.constant 0 : i32
    return %c0_i32, %c0_i32_0 : i32, i32
  }
}

</mosaic_0001>

<bundles_post_ra>
// kernel: pallas_forward.1
= control target key start
LH: loop header
LB: loop body
LE: loop exit
PB: predicated region body
PF: predicated region fallthrough
CT: control target
= control target key end

     0   :  { %s15947_s30 = smov 21   ;;  %s15948_s12 = smov 20   ;;  %vm155_vm0 = vcmask 171008   ;;  %vm256_vm1 = vcmask 162816   ;;  %vm357_vm2 = vcmask 154624   ;;  %vm458_vm3 = vcmask 7168   ;;  %s22354_s2 = inlined_call_operand.vmem [shape: f32[32,640], index: 2, kind: input, shape index: {}]   ;;  %s22355_s4 = inlined_call_operand.vmem [shape: f32[3,32,288], index: 4, kind: input, shape index: {}]   ;;  %s22356_s6 = inlined_call_operand.vmem [shape: f32[5,32,1], index: 6, kind: input, shape index: {}]   ;;  %s22357_s0 = inlined_call_operand.vmem [shape: f32[32,384], index: 0, kind: input, shape index: {}]   ;;  %s22358_s3 = inlined_call_operand.vmem [shape: f32[1,384], index: 3, kind: input, shape index: {}]   ;;  %s22359_s5 = inlined_call_operand.vmem [shape: f32[2,32,800], index: 5, kind: input, shape index: {}]   ;;  %s22360_s1 = inlined_call_operand.vmem [shape: f32[32,384], index: 1, kind: input, shape index: {}]   ;;  %s22361_s7 = inlined_call_operand.vmem [shape: f32[32,384], index: 7, kind: output, shape index: {}]  }
   0x1   :  { %v32_v0 = vld [vmem:[%s22354_s2 + $0x28] sm:$0xff]  ;;  %v16019_v1 = vld [vmem:[%s22354_s2 + $0x30] sm:$0xff]  ;;  %v27_v3 = vld [vmem:[%s22354_s2] sm:$0xff]  ;;  %s15949_s13 = smov 19   ;;  %s15950_s14 = smov 1   ;;  %vm583_vm4 = vcmask 1039360  }
   0x2   :  { %v13017_v2 = vpack.i.bf16 %v16019_v1, %v32_v0  ;;  %v16029_v4 = vld [vmem:[%s22354_s2 + $0x8] sm:$0xff]  ;;  %v16034_v5 = vld [vmem:[%s22354_s2 + $0x38] sm:$0xff]  ;;  %v16039_v6 = vld [vmem:[%s22354_s2 + $0x40] sm:$0xff]  ;;  %s15951_s19 = smov 127   ;;  %s15952_s24 = smov 109   ;;  %vm684_vm5 = vcmask 891904  }
   0x3   :  { %v13007_v7 = vpack.i.bf16 %v16029_v4, %v27_v3  ;;  %v13022_v8 = vpack.i.bf16 %v16039_v6, %v16034_v5  ;;  %v16047_v9 = vld [vmem:[%s22354_s2 + $0x10] sm:$0xff]  ;;  %v30_v10 = vld [vmem:[%s22354_s2 + $0x18] sm:$0xff]  ;;  %v16055_v11 = vld [vmem:[%s22354_s2 + $0x60] sm:$0xff]  ;;  %v16100_v23 = vpack.i.bf16 %v16034_v5, %v16019_v1  ;;  %v11959_v32 = vpack.c.bf16 %v16019_v1, %v16029_v4  ;;  %s15953_s25 = smov 108   ;;  %s15954_s28 = smov 107  }
   0x4   :  { %13018 = vrot.lane.b32.xlu1 %v13017_v2, %s15947_s30  ;;  %v16060_v12 = vld [vmem:[%s22354_s2 + $0x68] sm:$0xff]  ;;  %v13012_v13 = vpack.i.bf16 %v30_v10, %v16047_v9  ;;  %v37_v14 = vld [vmem:[%s22354_s2 + $0x50] sm:$0xff]  ;;  %v16073_v16 = vld [vmem:[%s22354_s2 + $0x58] sm:$0xff]  ;;  %v16112_v26 = vpack.i.bf16 %v16047_v9, %v16029_v4  ;;  %v11997_v28 = vpack.c.bf16 %v16039_v6, %v30_v10  ;;  %v11957_v31 = vpack.c.bf16 %v16034_v5, %v16047_v9  ;;  %s15957_s20 = smov 42   ;;  %s15958_s21 = smov 41  }
   0x5   :  { %13008 = vrot.lane.b32.xlu0 %v13007_v7, %s15947_s30  ;;  %v13032_v15 = vpack.i.bf16 %v16060_v12, %v16055_v11  ;;  %v16078_v17 = vld [vmem:[%s22354_s2 + $0x88] sm:$0xff]  ;;  %v16083_v18 = vld [vmem:[%s22354_s2 + $0x90] sm:$0xff]  ;;  %v13027_v19 = vpack.i.bf16 %v16073_v16, %v37_v14  ;;  %v42_v20 = vld [vmem:[%s22354_s2 + $0x78] sm:$0xff]  ;;  %v16104_v24 = vpack.i.bf16 %v16055_v11, %v16073_v16  ;;  %vm785_vm6 = vcmask 883712   ;;  %s15959_s22 = smov 40   ;;  %s22469_s23 = smov 39  }
   0x6   :  { %v13042_v21 = vpack.i.bf16 %v16083_v18, %v16078_v17  ;;  %v16096_v22 = vld [vmem:[%s22354_s2 + $0x80] sm:$0xff]  ;;  %v12001_v29 = vpack.c.bf16 %v16083_v18, %v16060_v12  ;;  %11998 = vmatprep.subr.bf16.mxu1 %v11997_v28  ;;  %v36_v34 = vld [vmem:[%s22354_s2 + $0x48] sm:$0xff]  ;;  %v11961_v35 = vpack.c.bf16 %v16078_v17, %v16055_v11  ;;  %v41_v38 = vld [vmem:[%s22354_s2 + $0x70] sm:$0xff]  ;;  %vm22598_vm7 = vcmask 875520   ;;  %s22465_s9 = smov 38   ;;  %s22463_s15 = smov 22  }
   0x7   :  { %v16108_v25 = vpack.i.bf16 %v16078_v17, %v16096_v22  ;;  %v13037_v27 = vpack.i.bf16 %v16096_v22, %v42_v20  ;;  %v31_v30 = vld [vmem:[%s22354_s2 + $0x20] sm:$0xff]  ;;  %v11963_v36 = vpack.c.bf16 %v16096_v22, %v16073_v16  ;;  %v13182_v37 = vpack.i.bf16 %v36_v34, %v16039_v6  ;;  %v46_v40 = vld [vmem:[%s22354_s2 + $0x98] sm:$0xff]  ;;  %v80_v42 = vld [vmem:[%s22355_s4 + $0x8] sm:$0xff]  ;;  %s15963_s16 = smov 18   ;;  %s15964_s17 = smov 2  }
   0x8   :  { %13023 = vrot.lane.b32.xlu1 %v13022_v8, %s15947_s30  ;;  %v13172_v33 = vpack.i.bf16 %v31_v30, %v30_v10  ;;  %v13192_v39 = vpack.i.bf16 %v41_v38, %v16060_v12  ;;  %v13202_v41 = vpack.i.bf16 %v46_v40, %v16083_v18  ;;  %1132 = vmatprep.mubr.f32.mxu0 %v80_v42  ;;  %v15955_v40 = vmov 0   ;;  %s22456_s10 = smov 126   ;;  %s15966_s18 = smov 110  }
   0x9   :  { %13013 = vrot.lane.b32.xlu0 %v13012_v13, %s15947_s30  ;;  %1310 = vmatprep.mubr.f32.mxu1 %v80_v42  ;;  %v1032_v42 = vld [vmem:[%s22356_s6 + $0x8] sm:$0xff]  ;;  %vm22427_vm8 = vcmask 261120   ;;  %vm1572_vm9 = vcmask 343040   ;;  %vm22504_vm10 = vcmask 310272   ;;  %vm22497_vm11 = vcmask 334848   ;;  %s15967_s26 = smov 106  }
   0xa   :  { %13327 = vset.pattern.permute.xlu0 %v15955_v40  ;;  %13328 = vset.pattern.permute.xlu1 %v15955_v40  ;;  %vm22489_vm12 = vcmask 326656   ;;  %vm22510_vm13 = vcmask 318464   ;;  %vm22458_vm14 = vcmask 179200   ;;  %vm22471_vm15 = vcmask 146432   ;;  %s15968_s27 = smov 90   ;;  %s22524_s29 = smov 89  }
   0xb   :  { %s22522_s8 = smov 88   ;;  %s22520_s11 = smov 87  }
   0xc   :  { %13033 = vrot.lane.b32.xlu1 %v13032_v15, %s15947_s30 }
   0xd   :  { %13028 = vrot.lane.b32.xlu0 %v13027_v19, %s15947_s30 }
  0x10   :  { %13043 = vrot.lane.b32.xlu1 %v13042_v21, %s15947_s30 }
  0x11   :  { %13038 = vrot.lane.b32.xlu0 %v13037_v27, %s15947_s30 }
  0x14   :  { %13053 = vrot.lane.b32.xlu1 %v13012_v13, %s15948_s12 }
  0x15   :  { %13048 = vrot.lane.b32.xlu0 %v13007_v7, %s15948_s12 }
  0x18   :  { %13063 = vrot.lane.b32.xlu1 %v13022_v8, %s15948_s12 }
  0x19   :  { %13058 = vrot.lane.b32.xlu0 %v13017_v2, %s15948_s12 }
  0x1c   :  { %13073 = vrot.lane.b32.xlu1 %v13032_v15, %s15948_s12 }
  0x1d   :  { %13068 = vrot.lane.b32.xlu0 %v13027_v19, %s15948_s12 }
  0x20   :  { %13083 = vrot.lane.b32.xlu1 %v13042_v21, %s15948_s12 }
  0x21   :  { %13078 = vrot.lane.b32.xlu0 %v13037_v27, %s15948_s12 }
  0x24   :  { %13093 = vrot.lane.b32.xlu1 %v13012_v13, %s15949_s13 }
  0x25   :  { %13088 = vrot.lane.b32.xlu0 %v13007_v7, %s15949_s13 }
  0x28   :  { %13103 = vrot.lane.b32.xlu1 %v13022_v8, %s15949_s13 }
  0x29   :  { %13098 = vrot.lane.b32.xlu0 %v13017_v2, %s15949_s13 }
  0x2c   :  { %13113 = vrot.lane.b32.xlu1 %v13032_v15, %s15949_s13 }
  0x2d   :  { %13108 = vrot.lane.b32.xlu0 %v13027_v19, %s15949_s13 }
  0x30   :  { %13123 = vrot.lane.b32.xlu1 %v13042_v21, %s15949_s13 }
  0x31   :  { %13118 = vrot.lane.b32.xlu0 %v13037_v27, %s15949_s13 }
  0x34   :  { %13133 = vrot.lane.b32.xlu1 %v13012_v13, %s15950_s14 }
  0x35   :  { %13128 = vrot.lane.b32.xlu0 %v13007_v7, %s15950_s14 }
  0x38   :  { %13143 = vrot.lane.b32.xlu1 %v13022_v8, %s15950_s14 }
  0x39   :  { %13138 = vrot.lane.b32.xlu0 %v13017_v2, %s15950_s14 }
  0x3c   :  { %13153 = vrot.lane.b32.xlu1 %v13032_v15, %s15950_s14 }
  0x3d   :  { %13148 = vrot.lane.b32.xlu0 %v13027_v19, %s15950_s14 }
  0x40   :  { %13163 = vrot.lane.b32.xlu1 %v13042_v21, %s15950_s14 }
  0x41   :  { %13158 = vrot.lane.b32.xlu0 %v13037_v27, %s15950_s14 }
  0x44   :  { %13173 = vrot.lane.b32.xlu1 %v13172_v33, %s15951_s19 }
  0x45   :  { %13168 = vrot.lane.b32.xlu0 %v16112_v26, %s15951_s19 }
  0x48   :  { %13183 = vrot.lane.b32.xlu1 %v13182_v37, %s15951_s19 }
  0x49   :  { %13178 = vrot.lane.b32.xlu0 %v16100_v23, %s15951_s19 }
  0x4c   :  { %13193 = vrot.lane.b32.xlu1 %v13192_v39, %s15951_s19 }
  0x4d   :  { %13188 = vrot.lane.b32.xlu0 %v16104_v24, %s15951_s19 }
  0x50   :  { %13203 = vrot.lane.b32.xlu1 %v13202_v41, %s15951_s19 }
  0x51   :  { %13198 = vrot.lane.b32.xlu0 %v16108_v25, %s15951_s19 }
  0x54   :  { %13213 = vrot.lane.b32.xlu1 %v13172_v33, %s15952_s24 }
  0x55   :  { %13208 = vrot.lane.b32.xlu0 %v16112_v26, %s15952_s24 }
  0x58   :  { %13223 = vrot.lane.b32.xlu1 %v13182_v37, %s15952_s24 }
  0x59   :  { %13218 = vrot.lane.b32.xlu0 %v16100_v23, %s15952_s24 }
  0x5c   :  { %13233 = vrot.lane.b32.xlu1 %v13192_v39, %s15952_s24 }
  0x5d   :  { %13228 = vrot.lane.b32.xlu0 %v16104_v24, %s15952_s24 }
  0x60   :  { %13243 = vrot.lane.b32.xlu1 %v13202_v41, %s15952_s24 }
  0x61   :  { %13238 = vrot.lane.b32.xlu0 %v16108_v25, %s15952_s24 }
  0x64   :  { %13253 = vrot.lane.b32.xlu1 %v13172_v33, %s15953_s25 }
  0x65   :  { %13248 = vrot.lane.b32.xlu0 %v16112_v26, %s15953_s25 }
  0x68   :  { %13263 = vrot.lane.b32.xlu1 %v13182_v37, %s15953_s25 }
  0x69   :  { %13258 = vrot.lane.b32.xlu0 %v16100_v23, %s15953_s25 }
  0x6c   :  { %13273 = vrot.lane.b32.xlu1 %v13192_v39, %s15953_s25 }
  0x6d   :  { %13268 = vrot.lane.b32.xlu0 %v16104_v24, %s15953_s25 }
  0x70   :  { %13283 = vrot.lane.b32.xlu1 %v13202_v41, %s15953_s25 }
  0x71   :  { %13278 = vrot.lane.b32.xlu0 %v16108_v25, %s15953_s25 }
  0x74   :  { %13293 = vrot.lane.b32.xlu1 %v13172_v33, %s15954_s28 }
  0x75   :  { %13288 = vrot.lane.b32.xlu0 %v16112_v26, %s15954_s28 }
  0x76   :  { %v13019_v43 = vpop.permute.xlu1 %13018 }
  0x77   :  { %v13009_v44 = vpop.permute.xlu0 %13008  ;;  %v13021_v45 = vunpack.i.h.bf16 %v13019_v43  ;;  %v13020_v46 = vunpack.i.l.bf16 %v13019_v43 }
  0x78   :  { %13303 = vrot.lane.b32.xlu1 %v13182_v37, %s15954_s28  ;;  %v13011_v48 = vunpack.i.h.bf16 %v13009_v44  ;;  %v13010_v49 = vunpack.i.l.bf16 %v13009_v44 }
  0x79   :  { %13298 = vrot.lane.b32.xlu0 %v16100_v23, %s15954_s28  ;;  %v159_v59 = vsel %vm155_vm0, %v13020_v46, %v13021_v45 }
  0x7a   :  { %v13024_v47 = vpop.permute.xlu1 %13023  ;;  %v156_v58 = vsel %vm155_vm0, %v13010_v49, %v13011_v48 }
  0x7b   :  { %v13026_v50 = vunpack.i.h.bf16 %v13024_v47  ;;  %v13025_v51 = vunpack.i.l.bf16 %v13024_v47  ;;  %v13014_v52 = vpop.permute.xlu0 %13013  ;;  %v11927_v6 = vpack.c.bf16 %v159_v59, %v156_v58  ;;  %v1034_v47 = vld [vmem:[%s22356_s6 + $0x18] sm:$0xff] }
  0x7c   :  { %13313 = vrot.lane.b32.xlu1 %v13192_v39, %s15954_s28  ;;  %v13016_v53 = vunpack.i.h.bf16 %v13014_v52  ;;  %v13015_v54 = vunpack.i.l.bf16 %v13014_v52 }
  0x7d   :  { %v160_v56 = vsel %vm155_vm0, %v13021_v45, %v13025_v51  ;;  %v161_v57 = vsel %vm155_vm0, %v13025_v51, %v13026_v50  ;;  %13308 = vrot.lane.b32.xlu0 %v16104_v24, %s15954_s28 }
  0x7e   :  { %v13034_v55 = vpop.permute.xlu1 %13033  ;;  %v157_v60 = vsel %vm155_vm0, %v13011_v48, %v13015_v54  ;;  %v158_v61 = vsel %vm155_vm0, %v13015_v54, %v13016_v53  ;;  %v1033_v48 = vld [vmem:[%s22356_s6 + $0x10] sm:$0xff] }
  0x7f   :  { %v13036_v62 = vunpack.i.h.bf16 %v13034_v55  ;;  %v13035_v63 = vunpack.i.l.bf16 %v13034_v55  ;;  %v13029_v0 = vpop.permute.xlu0 %13028  ;;  %v11925_v2 = vpack.c.bf16 %v160_v56, %v157_v60  ;;  %v11999_v3 = vpack.c.bf16 %v161_v57, %v158_v61 }
  0x80   :  { %13323 = vrot.lane.b32.xlu1 %v13202_v41, %s15954_s28  ;;  %v13031_v13 = vunpack.i.h.bf16 %v13029_v0  ;;  %v13030_v14 = vunpack.i.l.bf16 %v13029_v0  ;;  %v1031_v41 = vld [vmem:[%s22356_s6] sm:$0xff] }
  0x81   :  { %13318 = vrot.lane.b32.xlu0 %v16108_v25, %s15954_s28  ;;  %11926 = vmatprep.subr.bf16.mxu0 %v11925_v2  ;;  %v164_v19 = vsel %vm155_vm0, %v13035_v63, %v13036_v62 }
  0x82   :  { %v13044_v7 = vpop.permute.xlu1 %13043  ;;  %12000 = vmatpush3.bf16.msra.mxu1 %v11999_v3  ;;  %11928 = vmatpush1.bf16.msra.mxu0 %v11927_v6  ;;  %v163_v26 = vsel %vm155_vm0, %v13031_v13, %v13035_v63  ;;  %v162_v28 = vsel %vm155_vm0, %v13030_v14, %v13031_v13 }
  0x83   :  { %v13046_v8 = vunpack.i.h.bf16 %v13044_v7  ;;  %v13045_v10 = vunpack.i.l.bf16 %v13044_v7  ;;  %v13039_v15 = vpop.permute.xlu0 %13038  ;;  %12002 = vmatprep.subr.bf16.mxu1 %v12001_v29 }
  0x84   :  { %v13041_v21 = vunpack.i.h.bf16 %v13039_v15  ;;  %v13040_v23 = vunpack.i.l.bf16 %v13039_v15  ;;  %1042 = vperm.xlu1 %13328, %v1032_v42  }
  0x85   :  { %v167_v20 = vsel %vm155_vm0, %v13045_v10, %v13046_v8  ;;  %1037 = vperm.xlu0 %13327, %v1031_v41  }
  0x86   :  { %v16230_v24 = vpop.permute.xlu1 %13053  ;;  %v12003_v25 = vpack.c.bf16 %v167_v20, %v164_v19  ;;  %v166_v27 = vsel %vm155_vm0, %v13041_v21, %v13045_v10  ;;  %v165_v30 = vsel %vm155_vm0, %v13040_v23, %v13041_v21 }
  0x87   :  { %v13049_v12 = vpop.permute.xlu0 %13048  ;;  %v11929_v18 = vpack.c.bf16 %v166_v27, %v163_v26  ;;  %v11931_v29 = vpack.c.bf16 %v165_v30, %v162_v28  ;;  %v13055_v34 = vunpack.i.l.bf16 %v16230_v24 }
  0x88   :  { %12004 = vmatpush3.bf16.msra.mxu1 %v12003_v25  ;;  %v13051_v37 = vunpack.i.h.bf16 %v13049_v12  ;;  %v13050_v38 = vunpack.i.l.bf16 %v13049_v12  ;;  %1047 = vperm.xlu1 %13328, %v1033_v48  }
  0x89   :  { %11930 = vmatprep.subr.bf16.mxu0 %v11929_v18  ;;  %1052 = vperm.xlu0 %13327, %v1034_v47  }
  0x8a   :  { %v16236_v33 = vpop.permute.xlu1 %13063  ;;  %11932 = vmatpush1.bf16.msra.mxu0 %v11931_v29  ;;  %v258_v49 = vsel %vm256_vm1, %v13051_v37, %v13055_v34  ;;  %v257_v51 = vsel %vm256_vm1, %v13050_v38, %v13051_v37 }
  0x8b   :  { %v13065_v39 = vunpack.i.l.bf16 %v16236_v33  ;;  %v13059_v43 = vpop.permute.xlu0 %13058 }
  0x8c   :  { %v13061_v44 = vunpack.i.h.bf16 %v13059_v43  ;;  %v13060_v45 = vunpack.i.l.bf16 %v13059_v43 }
  0x8e   :  { %v16246_v46 = vpop.permute.xlu1 %13073  ;;  %v261_v50 = vsel %vm256_vm1, %v13061_v44, %v13065_v39  ;;  %v260_v52 = vsel %vm256_vm1, %v13060_v45, %v13061_v44 }
  0x8f   :  { %v13069_v53 = vpop.permute.xlu0 %13068  ;;  %v11933_v54 = vpack.c.bf16 %v261_v50, %v258_v49  ;;  %v11935_v55 = vpack.c.bf16 %v260_v52, %v257_v51  ;;  %v13075_v57 = vunpack.i.l.bf16 %v16246_v46  ;;  %v13076_v9 = vunpack.i.h.bf16 %v16246_v46 }
  0x90   :  { %v13071_v58 = vunpack.i.h.bf16 %v13069_v53  ;;  %v13070_v59 = vunpack.i.l.bf16 %v13069_v53 }
  0x91   :  { %11934 = vmatprep.subr.bf16.mxu0 %v11933_v54 }
  0x92   :  { %v16262_v56 = vpop.permute.xlu1 %13083  ;;  %11936 = vmatpush1.bf16.msra.mxu0 %v11935_v55  ;;  %v264_v2 = vsel %vm256_vm1, %v13071_v58, %v13075_v57  ;;  %v263_v6 = vsel %vm256_vm1, %v13070_v59, %v13071_v58 }
  0x93   :  { %v13085_v60 = vunpack.i.l.bf16 %v16262_v56  ;;  %v13079_v61 = vpop.permute.xlu0 %13078 }
  0x94   :  { %v13081_v62 = vunpack.i.h.bf16 %v13079_v61  ;;  %v13080_v63 = vunpack.i.l.bf16 %v13079_v61 }
  0x96   :  { %v16266_v0 = vpop.permute.xlu1 %13093  ;;  %v267_v3 = vsel %vm256_vm1, %v13081_v62, %v13085_v60  ;;  %v266_v7 = vsel %vm256_vm1, %v13080_v63, %v13081_v62 }
  0x97   :  { %v13089_v8 = vpop.permute.xlu0 %13088  ;;  %v11937_v10 = vpack.c.bf16 %v267_v3, %v264_v2  ;;  %v11939_v13 = vpack.c.bf16 %v266_v7, %v263_v6  ;;  %v13095_v15 = vunpack.i.l.bf16 %v16266_v0 }
  0x98   :  { %v13091_v19 = vunpack.i.h.bf16 %v13089_v8  ;;  %v13090_v20 = vunpack.i.l.bf16 %v13089_v8 }
  0x99   :  { %11938 = vmatprep.subr.bf16.mxu0 %v11937_v10 }
  0x9a   :  { %v16276_v14 = vpop.permute.xlu1 %13103  ;;  %11940 = vmatpush1.bf16.msra.mxu0 %v11939_v13  ;;  %v359_v28 = vsel %vm357_vm2, %v13091_v19, %v13095_v15  ;;  %v358_v12 = vsel %vm357_vm2, %v13090_v20, %v13091_v19 }
  0x9b   :  { %v13105_v21 = vunpack.i.l.bf16 %v16276_v14  ;;  %v13099_v23 = vpop.permute.xlu0 %13098 }
  0x9c   :  { %v13101_v25 = vunpack.i.h.bf16 %v13099_v23  ;;  %v13100_v26 = vunpack.i.l.bf16 %v13099_v23 }
  0x9e   :  { %v16280_v27 = vpop.permute.xlu1 %13113  ;;  %v362_v30 = vsel %vm357_vm2, %v13101_v25, %v13105_v21  ;;  %v361_v18 = vsel %vm357_vm2, %v13100_v26, %v13101_v25 }
  0x9f   :  { %v13109_v29 = vpop.permute.xlu0 %13108  ;;  %v11941_v37 = vpack.c.bf16 %v362_v30, %v359_v28  ;;  %v11943_v38 = vpack.c.bf16 %v361_v18, %v358_v12  ;;  %v13115_v41 = vunpack.i.l.bf16 %v16280_v27 }
  0xa0   :  { %v13111_v42 = vunpack.i.h.bf16 %v13109_v29  ;;  %v13110_v43 = vunpack.i.l.bf16 %v13109_v29 }
  0xa1   :  { %11942 = vmatprep.subr.bf16.mxu0 %v11941_v37 }
  0xa2   :  { %v16290_v40 = vpop.permute.xlu1 %13123  ;;  %11944 = vmatpush1.bf16.msra.mxu0 %v11943_v38  ;;  %v365_v50 = vsel %vm357_vm2, %v13111_v42, %v13115_v41  ;;  %v364_v52 = vsel %vm357_vm2, %v13110_v43, %v13111_v42 }
  0xa3   :  { %v13125_v44 = vunpack.i.l.bf16 %v16290_v40  ;;  %v13119_v45 = vpop.permute.xlu0 %13118 }
  0xa4   :  { %v13121_v47 = vunpack.i.h.bf16 %v13119_v45  ;;  %v13120_v48 = vunpack.i.l.bf16 %v13119_v45  ;;  %v13056_v45 = vunpack.i.h.bf16 %v16230_v24 }
  0xa6   :  { %v16294_v49 = vpop.permute.xlu1 %13133  ;;  %v368_v51 = vsel %vm357_vm2, %v13121_v47, %v13125_v44  ;;  %v367_v53 = vsel %vm357_vm2, %v13120_v48, %v13121_v47  ;;  %v13066_v47 = vunpack.i.h.bf16 %v16236_v33 }
  0xa7   :  { %v13129_v54 = vpop.permute.xlu0 %13128  ;;  %v11945_v55 = vpack.c.bf16 %v368_v51, %v365_v50  ;;  %v11947_v58 = vpack.c.bf16 %v367_v53, %v364_v52  ;;  %v13135_v61 = vunpack.i.l.bf16 %v16294_v49 }
  0xa8   :  { %v13131_v62 = vunpack.i.h.bf16 %v13129_v54  ;;  %v13130_v63 = vunpack.i.l.bf16 %v13129_v54 }
  0xa9   :  { %11946 = vmatprep.subr.bf16.mxu0 %v11945_v55 }
  0xaa   :  { %v16304_v59 = vpop.permute.xlu1 %13143  ;;  %11948 = vmatpush1.bf16.msra.mxu0 %v11947_v58  ;;  %v460_v10 = vsel %vm458_vm3, %v13131_v62, %v13135_v61  ;;  %v459_v19 = vsel %vm458_vm3, %v13130_v63, %v13131_v62 }
  0xab   :  { %v13145_v2 = vunpack.i.l.bf16 %v16304_v59  ;;  %v13139_v3 = vpop.permute.xlu0 %13138 }
  0xac   :  { %v13141_v6 = vunpack.i.h.bf16 %v13139_v3  ;;  %v13140_v7 = vunpack.i.l.bf16 %v13139_v3 }
  0xae   :  { %v16308_v8 = vpop.permute.xlu1 %13153  ;;  %v463_v13 = vsel %vm458_vm3, %v13141_v6, %v13145_v2  ;;  %v462_v20 = vsel %vm458_vm3, %v13140_v7, %v13141_v6  ;;  %v262_v7 = vsel %vm256_vm1, %v13065_v39, %v13066_v47  ;;  %v13086_v39 = vunpack.i.h.bf16 %v16262_v56 }
  0xaf   :  { %v13149_v23 = vpop.permute.xlu0 %13148  ;;  %v11949_v25 = vpack.c.bf16 %v463_v13, %v460_v10  ;;  %v11951_v26 = vpack.c.bf16 %v462_v20, %v459_v19  ;;  %v13155_v30 = vunpack.i.l.bf16 %v16308_v8  ;;  %v259_v20 = vsel %vm256_vm1, %v13055_v34, %v13056_v45 }
  0xb0   :  { %v13151_v12 = vunpack.i.h.bf16 %v13149_v23  ;;  %v13150_v18 = vunpack.i.l.bf16 %v13149_v23  ;;  %v268_v11 = vsel %vm256_vm1, %v13085_v60, %v13086_v39 }
  0xb1   :  { %11950 = vmatprep.subr.bf16.mxu0 %v11949_v25 }
  0xb2   :  { %v16318_v28 = vpop.permute.xlu1 %13163  ;;  %11952 = vmatpush1.bf16.msra.mxu0 %v11951_v26  ;;  %v466_v48 = vsel %vm458_vm3, %v13151_v12, %v13155_v30  ;;  %v465_v51 = vsel %vm458_vm3, %v13150_v18, %v13151_v12  ;;  %v12007_v18 = vpack.c.bf16 %v262_v7, %v259_v20  ;;  %v13096_v7 = vunpack.i.h.bf16 %v16266_v0 }
  0xb3   :  { %v13165_v29 = vunpack.i.l.bf16 %v16318_v28  ;;  %v13159_v37 = vpop.permute.xlu0 %13158  ;;  %v13116_v0 = vunpack.i.h.bf16 %v16280_v27  ;;  %v13136_v27 = vunpack.i.h.bf16 %v16294_v49  ;;  %v13156_v49 = vunpack.i.h.bf16 %v16308_v8  ;;  %v79_v8 = vld [vmem:[%s22355_s4] sm:$0xff] }
  0xb4   :  { %v13161_v38 = vunpack.i.h.bf16 %v13159_v37  ;;  %v13160_v42 = vunpack.i.l.bf16 %v13159_v37 }
  0xb6   :  { %v13174_v43 = vpop.permute.xlu1 %13173  ;;  %v469_v50 = vsel %vm458_vm3, %v13161_v38, %v13165_v29  ;;  %v468_v52 = vsel %vm458_vm3, %v13160_v42, %v13161_v38 }
  0xb7   :  { %v13176_v53 = vunpack.i.h.bf16 %v13174_v43  ;;  %v13175_v54 = vunpack.i.l.bf16 %v13174_v43  ;;  %v13169_v55 = vpop.permute.xlu0 %13168  ;;  %v11953_v58 = vpack.c.bf16 %v469_v50, %v466_v48  ;;  %v11955_v62 = vpack.c.bf16 %v468_v52, %v465_v51 }
  0xb8   :  { %v13171_v23 = vunpack.i.h.bf16 %v13169_v55  ;;  %v265_v51 = vsel %vm256_vm1, %v13075_v57, %v13076_v9 }
  0xb9   :  { %11954 = vmatprep.subr.bf16.mxu0 %v11953_v58  ;;  %v586_v13 = vsel %vm583_vm4, %v13175_v54, %v13176_v53  ;;  %v12011_v60 = vpack.c.bf16 %v268_v11, %v265_v51 }
  0xba   :  { %v13184_v63 = vpop.permute.xlu1 %13183  ;;  %11956 = vmatpush1.bf16.msra.mxu0 %v11955_v62  ;;  %v585_v42 = vsel %vm583_vm4, %v13171_v23, %v13175_v54  ;;  %v13106_v54 = vunpack.i.h.bf16 %v16276_v14 }
  0xbb   :  { %v13186_v3 = vunpack.i.h.bf16 %v13184_v63  ;;  %v13185_v6 = vunpack.i.l.bf16 %v13184_v63  ;;  %v13179_v10 = vpop.permute.xlu0 %13178  ;;  %11958 = vmatprep.subr.bf16.mxu0 %v11957_v31  ;;  %v13170_v31 = vunpack.i.l.bf16 %v13169_v55 }
  0xbc   :  { %v13181_v25 = vunpack.i.h.bf16 %v13179_v10  ;;  %v13180_v26 = vunpack.i.l.bf16 %v13179_v10 }
  0xbd   :  { %v589_v19 = vsel %vm583_vm4, %v13185_v6, %v13186_v3 }
  0xbe   :  { %v13194_v12 = vpop.permute.xlu1 %13193  ;;  %v12005_v33 = vpack.c.bf16 %v589_v19, %v586_v13  ;;  %11960 = vmatpush1.bf16.msra.mxu0 %v11959_v32  ;;  %v588_v5 = vsel %vm583_vm4, %v13181_v25, %v13185_v6  ;;  %v587_v1 = vsel %vm583_vm4, %v13180_v26, %v13181_v25  ;;  %v363_v25 = vsel %vm357_vm2, %v13105_v21, %v13106_v54 }
  0xbf   :  { %v13196_v24 = vunpack.i.h.bf16 %v13194_v12  ;;  %v13195_v34 = vunpack.i.l.bf16 %v13194_v12  ;;  %v13189_v37 = vpop.permute.xlu0 %13188  ;;  %11962 = vmatprep.subr.bf16.mxu0 %v11961_v35  ;;  %v11965_v45 = vpack.c.bf16 %v588_v5, %v585_v42  ;;  %v584_v35 = vsel %vm583_vm4, %v13170_v31, %v13171_v23 }
  0xc0   :  { %12006 = vmatprep.subr.bf16.mxu1 %v12005_v33  ;;  %v13191_v4 = vunpack.i.h.bf16 %v13189_v37  ;;  %v13190_v47 = vunpack.i.l.bf16 %v13189_v37  ;;  %v11967_v16 = vpack.c.bf16 %v587_v1, %v584_v35  ;;  %v360_v31 = vsel %vm357_vm2, %v13095_v15, %v13096_v7 }
  0xc1   :  { %12008 = vmatpush3.bf16.msra.mxu1 %v12007_v18  ;;  %v592_v48 = vsel %vm583_vm4, %v13195_v34, %v13196_v24  ;;  %v13126_v24 = vunpack.i.h.bf16 %v16290_v40 }
  0xc2   :  { %v13204_v38 = vpop.permute.xlu1 %13203  ;;  %11964 = vmatpush1.bf16.msra.mxu0 %v11963_v36  ;;  %v591_v56 = vsel %vm583_vm4, %v13191_v4, %v13195_v34  ;;  %v590_v58 = vsel %vm583_vm4, %v13190_v47, %v13191_v4  ;;  %v12015_v34 = vpack.c.bf16 %v363_v25, %v360_v31 }
  0xc3   :  { %v13206_v32 = vunpack.i.h.bf16 %v13204_v38  ;;  %v13205_v43 = vunpack.i.l.bf16 %v13204_v38  ;;  %v13199_v17 = vpop.permute.xlu0 %13198  ;;  %11966 = vmatprep.subr.bf16.mxu0 %v11965_v45  ;;  %v369_v35 = vsel %vm357_vm2, %v13125_v44, %v13126_v24 }
  0xc4   :  { %v13201_v52 = vunpack.i.h.bf16 %v13199_v17  ;;  %v13200_v53 = vunpack.i.l.bf16 %v13199_v17 }
  0xc5   :  { %v595_v50 = vsel %vm583_vm4, %v13205_v43, %v13206_v32 }
  0xc6   :  { %v13214_v22 = vpop.permute.xlu1 %13213  ;;  %v12009_v36 = vpack.c.bf16 %v595_v50, %v592_v48  ;;  %11968 = vmatpush1.bf16.msra.mxu0 %v11967_v16  ;;  %v594_v55 = vsel %vm583_vm4, %v13201_v52, %v13205_v43  ;;  %v593_v46 = vsel %vm583_vm4, %v13200_v53, %v13201_v52 }
  0xc7   :  { %v13216_v62 = vunpack.i.h.bf16 %v13214_v22  ;;  %v13215_v57 = vunpack.i.l.bf16 %v13214_v22  ;;  %v13209_v63 = vpop.permute.xlu0 %13208  ;;  %v11969_v3 = vpack.c.bf16 %v594_v55, %v591_v56  ;;  %v11971_v6 = vpack.c.bf16 %v593_v46, %v590_v58 }
  0xc8   :  { %12010 = vmatprep.subr.bf16.mxu1 %v12009_v36  ;;  %v13211_v20 = vunpack.i.h.bf16 %v13209_v63  ;;  %v13210_v23 = vunpack.i.l.bf16 %v13209_v63  ;;  %v366_v36 = vsel %vm357_vm2, %v13115_v41, %v13116_v0  ;;  %v13146_v56 = vunpack.i.h.bf16 %v16304_v59 }
  0xc9   :  { %12012 = vmatpush3.bf16.msra.mxu1 %v12011_v60  ;;  %11970 = vmatprep.subr.bf16.mxu0 %v11969_v3  ;;  %v687_v12 = vsel %vm684_vm5, %v13215_v57, %v13216_v62  ;;  %v12019_v60 = vpack.c.bf16 %v369_v35, %v366_v36  ;;  %v467_v35 = vsel %vm458_vm3, %v13155_v30, %v13156_v49 }
  0xca   :  { %v13224_v10 = vpop.permute.xlu1 %13223  ;;  %11972 = vmatpush1.bf16.msra.mxu0 %v11971_v6  ;;  %v686_v14 = vsel %vm684_vm5, %v13211_v20, %v13215_v57  ;;  %v685_v37 = vsel %vm684_vm5, %v13210_v23, %v13211_v20 }
  0xcb   :  { %v13226_v13 = vunpack.i.h.bf16 %v13224_v10  ;;  %v13225_v19 = vunpack.i.l.bf16 %v13224_v10  ;;  %v13219_v26 = vpop.permute.xlu0 %13218 }
  0xcc   :  { %v13221_v18 = vunpack.i.h.bf16 %v13219_v26  ;;  %v13220_v39 = vunpack.i.l.bf16 %v13219_v26 }
  0xcd   :  { %v690_v33 = vsel %vm684_vm5, %v13225_v19, %v13226_v13  ;;  %v464_v13 = vsel %vm458_vm3, %v13145_v2, %v13146_v56  ;;  %v83_v56 = vld [vmem:[%s22355_s4 + $0x20] sm:$0xff] }
  0xce   :  { %v13234_v5 = vpop.permute.xlu1 %13233  ;;  %v12013_v9 = vpack.c.bf16 %v690_v33, %v687_v12  ;;  %v689_v21 = vsel %vm684_vm5, %v13221_v18, %v13225_v19  ;;  %v688_v38 = vsel %vm684_vm5, %v13220_v39, %v13221_v18  ;;  %v461_v18 = vsel %vm458_vm3, %v13135_v61, %v13136_v27 }
  0xcf   :  { %v13236_v42 = vunpack.i.h.bf16 %v13234_v5  ;;  %v13235_v1 = vunpack.i.l.bf16 %v13234_v5  ;;  %v13229_v4 = vpop.permute.xlu0 %13228  ;;  %v11973_v32 = vpack.c.bf16 %v689_v21, %v686_v14  ;;  %v11975_v43 = vpack.c.bf16 %v688_v38, %v685_v37 }
  0xd0   :  { %12014 = vmatprep.subr.bf16.mxu1 %v12013_v9  ;;  %v13231_v11 = vunpack.i.h.bf16 %v13229_v4  ;;  %v13230_v17 = vunpack.i.l.bf16 %v13229_v4  ;;  %v13166_v39 = vunpack.i.h.bf16 %v16318_v28  ;;  %v12023_v5 = vpack.c.bf16 %v464_v13, %v461_v18 }
  0xd1   :  { %12016 = vmatpush3.bf16.msra.mxu1 %v12015_v34  ;;  %11974 = vmatprep.subr.bf16.mxu0 %v11973_v32  ;;  %v693_v50 = vsel %vm684_vm5, %v13235_v1, %v13236_v42 }
  0xd2   :  { %v13244_v15 = vpop.permute.xlu1 %13243  ;;  %11976 = vmatpush1.bf16.msra.mxu0 %v11975_v43  ;;  %v692_v40 = vsel %vm684_vm5, %v13231_v11, %v13235_v1  ;;  %v691_v54 = vsel %vm684_vm5, %v13230_v17, %v13231_v11  ;;  %v470_v32 = vsel %vm458_vm3, %v13165_v29, %v13166_v39 }
  0xd3   :  { %v13246_v45 = vunpack.i.h.bf16 %v13244_v15  ;;  %v13245_v47 = vunpack.i.l.bf16 %v13244_v15  ;;  %v13239_v48 = vpop.permute.xlu0 %13238 }
  0xd4   :  { %v13241_v52 = vunpack.i.h.bf16 %v13239_v48  ;;  %v13240_v53 = vunpack.i.l.bf16 %v13239_v48  ;;  %v12027_v48 = vpack.c.bf16 %v470_v32, %v467_v35 }
  0xd5   :  { %v696_v51 = vsel %vm684_vm5, %v13245_v47, %v13246_v45 }
  0xd6   :  { %v13254_v16 = vpop.permute.xlu1 %13253  ;;  %v12017_v22 = vpack.c.bf16 %v696_v51, %v693_v50  ;;  %v695_v44 = vsel %vm684_vm5, %v13241_v52, %v13245_v47  ;;  %v694_v55 = vsel %vm684_vm5, %v13240_v53, %v13241_v52 }
  0xd7   :  { %v13256_v58 = vunpack.i.h.bf16 %v13254_v16  ;;  %v13255_v46 = vunpack.i.l.bf16 %v13254_v16  ;;  %v13249_v62 = vpop.permute.xlu0 %13248  ;;  %v11977_v57 = vpack.c.bf16 %v695_v44, %v692_v40  ;;  %v11979_v63 = vpack.c.bf16 %v694_v55, %v691_v54 }
  0xd8   :  { %12018 = vmatprep.subr.bf16.mxu1 %v12017_v22  ;;  %v13251_v7 = vunpack.i.h.bf16 %v13249_v62  ;;  %v13250_v10 = vunpack.i.l.bf16 %v13249_v62 }
  0xd9   :  { %12020 = vmatpush3.bf16.msra.mxu1 %v12019_v60  ;;  %11978 = vmatprep.subr.bf16.mxu0 %v11977_v57  ;;  %v788_v20 = vsel %vm785_vm6, %v13255_v46, %v13256_v58  ;;  %v82_v58 = vld [vmem:[%s22355_s4 + $0x18] sm:$0xff] }
  0xda   :  { %v13264_v41 = vpop.permute.xlu1 %13263  ;;  %11980 = vmatpush1.bf16.msra.mxu0 %v11979_v63  ;;  %v787_v59 = vsel %vm785_vm6, %v13251_v7, %v13255_v46  ;;  %v786_v9 = vsel %vm785_vm6, %v13250_v10, %v13251_v7 }
  0xdb   :  { %v13266_v3 = vunpack.i.h.bf16 %v13264_v41  ;;  %v13265_v6 = vunpack.i.l.bf16 %v13264_v41  ;;  %v13259_v19 = vpop.permute.xlu0 %13258 }
  0xdc   :  { %v13261_v25 = vunpack.i.h.bf16 %v13259_v19  ;;  %v13260_v26 = vunpack.i.l.bf16 %v13259_v19 }
  0xdd   :  { %v791_v23 = vsel %vm785_vm6, %v13265_v6, %v13266_v3  ;;  %v86_v3 = vld [vmem:[%s22355_s4 + $0x38] sm:$0xff] }
  0xde   :  { %v13274_v12 = vpop.permute.xlu1 %13273  ;;  %v12021_v33 = vpack.c.bf16 %v791_v23, %v788_v20  ;;  %v790_v2 = vsel %vm785_vm6, %v13261_v25, %v13265_v6  ;;  %v789_v31 = vsel %vm785_vm6, %v13260_v26, %v13261_v25 }
  0xdf   :  { %v13276_v24 = vunpack.i.h.bf16 %v13274_v12  ;;  %v13275_v34 = vunpack.i.l.bf16 %v13274_v12  ;;  %v13269_v14 = vpop.permute.xlu0 %13268  ;;  %v11981_v21 = vpack.c.bf16 %v790_v2, %v787_v59  ;;  %v11983_v37 = vpack.c.bf16 %v789_v31, %v786_v9  ;;  %v89_v2 = vld [vmem:[%s22355_s4 + $0x50] sm:$0xff] }
  0xe0   :  { %12022 = vmatprep.subr.bf16.mxu1 %v12021_v33  ;;  %v13271_v1 = vunpack.i.h.bf16 %v13269_v14  ;;  %v13270_v4 = vunpack.i.l.bf16 %v13269_v14  ;;  %v85_v33 = vld [vmem:[%s22355_s4 + $0x30] sm:$0xff] }
  0xe1   :  { %12024 = vmatpush3.bf16.msra.mxu1 %v12023_v5  ;;  %11982 = vmatprep.subr.bf16.mxu0 %v11981_v21  ;;  %v794_v0 = vsel %vm785_vm6, %v13275_v34, %v13276_v24  ;;  %v88_v21 = vld [vmem:[%s22355_s4 + $0x48] sm:$0xff] }
  0xe2   :  { %v13284_v61 = vpop.permute.xlu1 %13283  ;;  %11984 = vmatpush1.bf16.msra.mxu0 %v11983_v37  ;;  %v793_v50 = vsel %vm785_vm6, %v13271_v1, %v13275_v34  ;;  %v792_v29 = vsel %vm785_vm6, %v13270_v4, %v13271_v1 }
  0xe3   :  { %v13286_v38 = vunpack.i.h.bf16 %v13284_v61  ;;  %v13285_v42 = vunpack.i.l.bf16 %v13284_v61  ;;  %v13279_v43 = vpop.permute.xlu0 %13278  ;;  %v81_v61 = vld [vmem:[%s22355_s4 + $0x10] sm:$0xff] }
  0xe4   :  { %v13281_v45 = vunpack.i.h.bf16 %v13279_v43  ;;  %v13280_v47 = vunpack.i.l.bf16 %v13279_v43  ;;  %v84_v43 = vld [vmem:[%s22355_s4 + $0x28] sm:$0xff] }
  0xe5   :  { %v797_v15 = vsel %vm785_vm6, %v13285_v42, %v13286_v38 }
  0xe6   :  { %v13294_v11 = vpop.permute.xlu1 %13293  ;;  %v12025_v17 = vpack.c.bf16 %v797_v15, %v794_v0  ;;  %v796_v28 = vsel %vm785_vm6, %v13281_v45, %v13285_v42  ;;  %v795_v51 = vsel %vm785_vm6, %v13280_v47, %v13281_v45  ;;  %v87_v0 = vld [vmem:[%s22355_s4 + $0x40] sm:$0xff]  ;;  %v22362_v15 = vmov 0.0   ;;  %v90_v45 = vld [vmem:[%s22355_s4 + $0x58] sm:$0xff] }
  0xe7   :  { %v13296_v52 = vunpack.i.h.bf16 %v13294_v11  ;;  %v13295_v53 = vunpack.i.l.bf16 %v13294_v11  ;;  %v13289_v16 = vpop.permute.xlu0 %13288  ;;  %v11985_v22 = vpack.c.bf16 %v796_v28, %v793_v50  ;;  %v11987_v36 = vpack.c.bf16 %v795_v51, %v792_v29 }
  0xe8   :  { %12026 = vmatprep.subr.bf16.mxu1 %v12025_v17  ;;  %v13291_v60 = vunpack.i.h.bf16 %v13289_v16  ;;  %v13290_v40 = vunpack.i.l.bf16 %v13289_v16  ;;  %v1441_v29 = vlaneseq }
  0xe9   :  { %12028 = vmatpush3.bf16.msra.mxu1 %v12027_v48  ;;  %11986 = vmatprep.subr.bf16.mxu0 %v11985_v22  ;;  %v889_v46 = vsel %vm22598_vm7, %v13295_v53, %v13296_v52 }
  0xea   :  { %v13304_v30 = vpop.permute.xlu1 %13303  ;;  %11988 = vmatpush1.bf16.msra.mxu0 %v11987_v36  ;;  %v887_v6 = vsel %vm22598_vm7, %v13290_v40, %v13291_v60  ;;  %v888_v10 = vsel %vm22598_vm7, %v13291_v60, %v13295_v53  ;;  %v1442_v36 = vshrl.u32 %v1441_v29, 7 }
  0xeb   :  { %v13306_v44 = vunpack.i.h.bf16 %v13304_v30  ;;  %v13305_v54 = vunpack.i.l.bf16 %v13304_v30  ;;  %v13299_v55 = vpop.permute.xlu0 %13298 }
  0xec   :  { %1311 = vmatmul.mubr.f32.vlgmr.msra.gmra.mrb[0].mxu1 %v79_v8  ;;  %v13301_v57 = vunpack.i.h.bf16 %v13299_v55  ;;  %v13300_v63 = vunpack.i.l.bf16 %v13299_v55 }
  0xed   :  { %1315 = vmatprep.mubr.f32.mxu1 %v83_v56  ;;  %v892_v62 = vsel %vm22598_vm7, %v13305_v54, %v13306_v44  ;;  %1133 = vmatmul.mubr.f32.vlgmr.msra.gmra.mrb[0].mxu0 %v79_v8  ;;  %v1451_v44 = vsub.s32 2, %v1442_v36 }
  0xee   :  { %v13314_v27 = vpop.permute.xlu1 %13313  ;;  %v12029_v41 = vpack.c.bf16 %v892_v62, %v889_v46  ;;  %v890_v7 = vsel %vm22598_vm7, %v13300_v63, %v13301_v57  ;;  %1138 = vmatprep.mubr.f32.mxu0 %v83_v56  ;;  %v891_v13 = vsel %vm22598_vm7, %v13301_v57, %v13305_v54  ;;  %v1443_v46 = vsub.s32 0, %v1442_v36  ;;  %v69_v57 = vld [vmem:[%s22357_s0 + $0x10] sm:$0xff] }
  0xef   :  { %v13316_v19 = vunpack.i.h.bf16 %v13314_v27  ;;  %v13315_v20 = vunpack.i.l.bf16 %v13314_v27  ;;  %v13309_v23 = vpop.permute.xlu0 %13308  ;;  %v11989_v25 = vpack.c.bf16 %v891_v13, %v888_v10  ;;  %v11991_v26 = vpack.c.bf16 %v890_v7, %v887_v6  ;;  %v67_v27 = vld [vmem:[%s22357_s0] sm:$0xff]  ;;  %v68_v10 = vld [vmem:[%s22357_s0 + $0x8] sm:$0xff] }
  0xf0   :  { %1316 = vmatmul.mubr.f32.gmra.mrb[2].mxu1 %v82_v58  ;;  %12030 = vmatprep.subr.bf16.mxu1 %v12029_v41  ;;  %v13311_v18 = vunpack.i.h.bf16 %v13309_v23  ;;  %v13310_v39 = vunpack.i.l.bf16 %v13309_v23 }
  0xf1   :  { %1320 = vmatprep.mubr.f32.mxu1 %v86_v3  ;;  %12032 = vmatpush3.bf16.msra.mxu1 %v12029_v41  ;;  %v895_v31 = vsel %vm22598_vm7, %v13315_v20, %v13316_v19 }
  0xf2   :  { %v13324_v12 = vpop.permute.xlu1 %13323  ;;  %1139 = vmatmul.mubr.f32.gmra.mrb[2].mxu0 %v82_v58  ;;  %11990 = vmatprep.subr.bf16.mxu0 %v11989_v25  ;;  %v893_v49 = vsel %vm22598_vm7, %v13310_v39, %v13311_v18  ;;  %v894_v42 = vsel %vm22598_vm7, %v13311_v18, %v13315_v20  ;;  %v26_v58 = vld [vmem:[%s22358_s3] sm:$0x7]  ;;  %s22984_s3 = smov 39  }
  0xf3   :  { %v13326_v5 = vunpack.i.h.bf16 %v13324_v12  ;;  %v13325_v59 = vunpack.i.l.bf16 %v13324_v12  ;;  %11992 = vmatpush1.bf16.msra.mxu0 %v11991_v26  ;;  %1144 = vmatprep.mubr.f32.mxu0 %v86_v3  ;;  %v13319_v9 = vpop.permute.xlu0 %13318  ;;  %v1447_v3 = vsub.s32 1, %v1442_v36  ;;  %v16503_v20 = vrot.slane %v26_v58, %v1451_v44 }
  0xf4   :  { %1321 = vmatmul.mubr.f32.gmra.mrb[4].mxu1 %v85_v33  ;;  %v13321_v34 = vunpack.i.h.bf16 %v13319_v9  ;;  %v13320_v14 = vunpack.i.l.bf16 %v13319_v9  ;;  %v16509_v18 = vrot.slane %v26_v58, %v1443_v46 }
  0xf5   :  { %v898_v24 = vsel %vm22598_vm7, %v13325_v59, %v13326_v5  ;;  %1325 = vmatprep.mubr.f32.mxu1 %v89_v2  ;;  %22705 = vst [vmem:[#allocation4_spill] sm:$0xff] %v16503_v20 }
  0xf6   :  { %v12033_v37 = vpack.c.bf16 %v898_v24, %v895_v31  ;;  %1145 = vmatmul.mubr.f32.gmra.mrb[4].mxu0 %v85_v33  ;;  %v896_v38 = vsel %vm22598_vm7, %v13320_v14, %v13321_v34  ;;  %v897_v1 = vsel %vm22598_vm7, %v13321_v34, %v13325_v59  ;;  %22708 = vst [vmem:[#allocation7_spill] sm:$0xff] %v16509_v18 }
  0xf7   :  { %1150 = vmatprep.mubr.f32.mxu0 %v89_v2  ;;  %v11993_v4 = vpack.c.bf16 %v897_v1, %v894_v42  ;;  %v11995_v32 = vpack.c.bf16 %v896_v38, %v893_v49  ;;  %v16513_v2 = vrot.slane %v26_v58, %v1447_v3  ;;  %v15889_v1 = vld [vmem:[%s22354_s2] sm:$0xff] }
  0xf8   :  { %12034 = vmatprep.subr.bf16.mxu1 %v12033_v37  ;;  %1326 = vmatmul.mubr.f32.gmra.mrb[6].mxu1 %v88_v21 }
  0xf9   :  { %12036 = vmatpush3.bf16.msra.mxu1 %v12033_v37  ;;  %11863 = vmatprep.mubr.msk.f32.mxu1 %vm22427_vm8, %v81_v61  ;;  %22710 = vst [vmem:[#allocation9_spill] sm:$0xff] %v16513_v2 }
  0xfa   :  { %1151 = vmatmul.mubr.f32.gmra.mrb[6].mxu0 %v88_v21  ;;  %11994 = vmatprep.subr.bf16.mxu0 %v11993_v4 }
  0xfb   :  { %11996 = vmatpush1.bf16.msra.mxu0 %v11995_v32  ;;  %1221 = vmatprep.mubr.f32.mxu0 %v22362_v15 }
  0xfc   :  { %11864 = vmatmul.mubr.msk.f32.vlgmr.msra.gmra.mrb[8].mxu1 %vm22427_vm8, %v84_v43 }
  0xfd   :  { %11866 = vmatprep.mubr.msk.f32.mxu1 %vm22427_vm8, %v87_v0 }
  0xfe   :  { %11311 = vmatmul.mubr.msk.f32.vlgmr.msra.gmra.mrb[0].mxu0 %vm22427_vm8, %v81_v61 }
  0xff   :  { %1227 = vmatprep.mubr.f32.mxu0 %v22362_v15 }
 0x100   :  { %11867 = vmatmul.mubr.msk.f32.gmra.mrb[10].mxu1 %vm22427_vm8, %v90_v45 }
 0x102   :  { %11312 = vmatmul.mubr.msk.f32.gmra.mrb[2].mxu0 %vm22427_vm8, %v84_v43 }
 0x103   :  { %1233 = vmatprep.mubr.f32.mxu0 %v22362_v15  ;;  %v16483_v53 = vpop.permute.xlu1 %1042 }
 0x104   :  { %v1038_v16 = vpop.permute.xlu0 %1037 }
 0x106   :  { %11313 = vmatmul.mubr.msk.f32.gmra.mrb[4].mxu0 %vm22427_vm8, %v87_v0 }
 0x107   :  { %1239 = vmatprep.mubr.f32.mxu0 %v22362_v15  ;;  %v1048_v55 = vpop.permute.xlu1 %1047  ;;  %v15892_v15 = vld [vmem:[%s22354_s2 + $0x78] sm:$0xff] }
 0x108   :  { %v16486_v60 = vpop.permute.xlu0 %1052 }
 0x10a   :  { %11314 = vmatmul.mubr.msk.f32.gmra.mrb[6].mxu0 %vm22427_vm8, %v90_v45  ;;  %v70_v45 = vld [vmem:[%s22357_s0 + $0x18] sm:$0xff]  ;;  %vm22481_vm8 = vcmask 15360  }
 0x1bf   :  { %v11451_v47 = vpop.f32.mrb[0].mxu1 }
 0x1c0   :  { %v11452_v11 = vpop.f32.mrb[1].mxu1 }
 0x1c1   :  { %v11453_v17 = vadd.f32 %v11452_v11, %v11451_v47 }
 0x1c3   :  { %v11454_v35 = vpop.f32.mrb[2].mxu1  ;;  %v1313_v54 = vadd.f32 %v11453_v17, %v1038_v16 }
 0x1c4   :  { %v11455_v48 = vpop.f32.mrb[3].mxu1 }
 0x1c5   :  { %v11456_v50 = vadd.f32 %v11455_v48, %v11454_v35  ;;  %v71_v48 = vld [vmem:[%s22357_s0 + $0x20] sm:$0xff] }
 0x1c7   :  { %v11457_v28 = vpop.f32.mrb[4].mxu1  ;;  %v1318_v56 = vadd.f32 %v11456_v50, %v16483_v53  ;;  %v73_v50 = vld [vmem:[%s22357_s0 + $0x30] sm:$0xff] }
 0x1c8   :  { %v11458_v51 = vpop.f32.mrb[5].mxu1 }
 0x1c9   :  { %v11459_v52 = vadd.f32 %v11458_v51, %v11457_v28  ;;  %v74_v28 = vld [vmem:[%s22357_s0 + $0x38] sm:$0xff]  ;;  %v72_v51 = vld [vmem:[%s22357_s0 + $0x28] sm:$0xff] }
 0x1cb   :  { %v11460_v22 = vpop.f32.mrb[6].mxu1  ;;  %v1323_v12 = vadd.f32 %v11459_v52, %v1048_v55  ;;  %v78_v52 = vld [vmem:[%s22357_s0 + $0x58] sm:$0xff] }
 0x1cc   :  { %v11461_v8 = vpop.f32.mrb[7].mxu1 }
 0x1cd   :  { %v11462_v30 = vadd.f32 %v11461_v8, %v11460_v22 }
 0x1cf   :  { %v11865_v40 = vpop.f32.mrb[8].mxu1  ;;  %v1328_v19 = vadd.f32 %v11462_v30, %v16486_v60 }
 0x1d0   :  { %v16491_v62 = vadd.f32 %v11865_v40, %v1318_v56  ;;  %v1397_v63 = vpop.f32.mrb[9].mxu1  ;;  %v76_v40 = vld [vmem:[%s22357_s0 + $0x48] sm:$0xff] }
 0x1d1   :  { %v1223_v41 = vpop.f32.mrb[0].mxu0  ;;  %v1398_v6 = vadd.f32 %v1397_v63, %v1313_v54 }
 0x1d2   :  { %v12869_v7 = vadd.f32 %v1223_v41, %v1038_v16  ;;  %v1225_v13 = vpop.f32.mrb[1].mxu0 }
 0x1d3   :  { %v12870_v23 = vadd.f32 %v1225_v13, %v1038_v16  ;;  %v16505_v25 = vadd.f32 %v1398_v6, %v69_v57  ;;  %v11868_v26 = vpop.f32.mrb[10].mxu1  ;;  %v75_v16 = vld [vmem:[%s22357_s0 + $0x40] sm:$0xff] }
 0x1d4   :  { %v16507_v33 = vadd.f32 %v12869_v7, %v67_v27  ;;  %v1413_v39 = vadd.f32 %v11868_v26, %v1328_v19  ;;  %v1407_v5 = vpop.f32.mrb[11].mxu1 }
 0x1d5   :  { %22706 = vst [vmem:[#allocation5_spill] sm:$0xff] %v16505_v25  ;;  %v16511_v59 = vadd.f32 %v12870_v23, %v68_v10  ;;  %v1430_v9 = vmax.f32 %v16505_v25, 0.0  ;;  %v1229_v31 = vpop.f32.mrb[2].mxu0  ;;  %v1408_v24 = vadd.f32 %v1407_v5, %v1323_v12  ;;  %v15895_v25 = vld [vmem:[%s22354_s2 + $0x70] sm:$0xff] }
 0x1d6   :  { %22707 = vst [vmem:[#allocation6_spill] sm:$0xff] %v16507_v33  ;;  %v1428_v34 = vmax.f32 %v16507_v33, 0.0  ;;  %v1231_v14 = vpop.f32.mrb[3].mxu0  ;;  %v12871_v47 = vadd.f32 %v1229_v31, %v16483_v53  ;;  %v16599_v44 = vadd.f32 %v1413_v39, %v78_v52 }
 0x1d7   :  { %22709 = vst [vmem:[#allocation8_spill] sm:$0xff] %v16511_v59  ;;  %v1429_v21 = vmax.f32 %v16511_v59, 0.0  ;;  %v16519_v37 = vmul.f32 %v16503_v20, %v1430_v9  ;;  %v12872_v11 = vadd.f32 %v1231_v14, %v16483_v53  ;;  %v77_v53 = vld [vmem:[%s22357_s0 + $0x50] sm:$0xff] }
 0x1d8   :  { %v16522_v49 = vmul.f32 %v16509_v18, %v1428_v34  ;;  %v16583_v36 = vadd.f32 %v12871_v47, %v70_v45  ;;  %22719 = vst [vmem:[#allocation18_spill] sm:$0xff] %v16599_v44  ;;  %v1439_v41 = vmax.f32 %v16599_v44, 0.0  ;;  %v15894_v47 = vld [vmem:[%s22354_s2 + $0x48] sm:$0xff] }
 0x1d9   :  { %22711 = vst [vmem:[#allocation10_spill] sm:$0xff] %v16519_v37  ;;  %v16525_v61 = vmul.f32 %v16513_v2, %v1429_v21  ;;  %v1235_v38 = vpop.f32.mrb[4].mxu0  ;;  %v16585_v8 = vadd.f32 %v12872_v11, %v71_v48 }
 0x1da   :  { %22712 = vst [vmem:[#allocation11_spill] sm:$0xff] %v16522_v49  ;;  %v1237_v42 = vpop.f32.mrb[5].mxu0  ;;  %v16531_v4 = vpack.i.bf16 %v16522_v49, %v15889_v1  ;;  %v12873_v17 = vadd.f32 %v1235_v38, %v1048_v55  ;;  %22714 = vst [vmem:[#allocation13_spill] sm:$0xff] %v16583_v36  ;;  %v1431_v46 = vmax.f32 %v16583_v36, 0.0  ;;  %v16640_v12 = vmul.f32 %v16503_v20, %v1439_v41 }
 0x1db   :  { %22713 = vst [vmem:[#allocation12_spill] sm:$0xff] %v16525_v61  ;;  %v16535_v32 = vpack.i.bf16 %v16519_v37, %v16525_v61  ;;  %v12874_v35 = vadd.f32 %v1237_v42, %v1048_v55  ;;  %22715 = vst [vmem:[#allocation14_spill] sm:$0xff] %v16585_v8  ;;  %v16603_v55 = vadd.f32 %v1408_v24, %v75_v16  ;;  %v1432_v57 = vmax.f32 %v16585_v8, 0.0 }
 0x1dc   :  { %13330 = vrot.lane.b32.xlu1 %v16531_v4, %s15957_s20  ;;  %v16587_v30 = vadd.f32 %v12873_v17, %v73_v50  ;;  %v16623_v10 = vmul.f32 %v16509_v18, %v1431_v46  ;;  %22728 = vst [vmem:[#allocation27_spill] sm:$0xff] %v16640_v12  ;;  %v16665_v34 = vpack.i.bf16 %v16525_v61, %v16522_v49  ;;  %v15890_v50 = vld [vmem:[%s22354_s2 + $0x28] sm:$0xff] }
 0x1dd   :  { %v1241_v43 = vpop.f32.mrb[6].mxu0  ;;  %13390 = vrot.lane.b32.xlu0 %v16535_v32, %s15957_s20  ;;  %v16589_v56 = vadd.f32 %v12874_v35, %v74_v28  ;;  %22721 = vst [vmem:[#allocation20_spill] sm:$0xff] %v16603_v55  ;;  %v1436_v6 = vmax.f32 %v16603_v55, 0.0  ;;  %v16626_v13 = vmul.f32 %v16513_v2, %v1432_v57  ;;  %v15893_v35 = vld [vmem:[%s22354_s2 + $0x20] sm:$0xff] }
 0x1de   :  { %v1243_v0 = vpop.f32.mrb[7].mxu0  ;;  %v12875_v22 = vadd.f32 %v1241_v43, %v16486_v60  ;;  %22716 = vst [vmem:[#allocation15_spill] sm:$0xff] %v16587_v30  ;;  %v1434_v63 = vmax.f32 %v16587_v30, 0.0  ;;  %22723 = vst [vmem:[#allocation22_spill] sm:$0xff] %v16623_v10  ;;  %v16687_v1 = vpack.i.bf16 %v16623_v10, %v16522_v49  ;;  %v13454_v28 = vpack.i.bf16 %v16623_v10, %v15890_v50  ;;  %v15896_v49 = vld [vmem:[%s22354_s2 + $0x98] sm:$0xff] }
 0x1df   :  { %v12876_v29 = vadd.f32 %v1243_v0, %v16486_v60  ;;  %22717 = vst [vmem:[#allocation16_spill] sm:$0xff] %v16589_v56  ;;  %v16597_v60 = vadd.f32 %v16491_v62, %v72_v51  ;;  %v1435_v62 = vmax.f32 %v16589_v56, 0.0  ;;  %22724 = vst [vmem:[#allocation23_spill] sm:$0xff] %v16626_v13  ;;  %v16646_v5 = vmul.f32 %v16503_v20, %v1436_v6 }
 0x1e0   :  { %13335 = vrot.lane.b32.xlu1 %v16531_v4, %s15958_s21  ;;  %v16605_v58 = vadd.f32 %v12875_v22, %v76_v40  ;;  %v16629_v19 = vmul.f32 %v16509_v18, %v1434_v63  ;;  %v16657_v31 = vpack.i.bf16 %v16626_v13, %v16623_v10 }
 0x1e1   :  { %13395 = vrot.lane.b32.xlu0 %v16535_v32, %s15958_s21  ;;  %22718 = vst [vmem:[#allocation17_spill] sm:$0xff] %v16597_v60  ;;  %v16601_v54 = vadd.f32 %v12876_v29, %v77_v53  ;;  %v1433_v27 = vmax.f32 %v16597_v60, 0.0  ;;  %v16632_v23 = vmul.f32 %v16513_v2, %v1435_v62  ;;  %22730 = vst [vmem:[#allocation29_spill] sm:$0xff] %v16646_v5  ;;  %v15891_v29 = vld [vmem:[%s22354_s2 + $0x50] sm:$0xff] }
 0x1e2   :  { %22722 = vst [vmem:[#allocation21_spill] sm:$0xff] %v16605_v58  ;;  %v1437_v7 = vmax.f32 %v16605_v58, 0.0  ;;  %22725 = vst [vmem:[#allocation24_spill] sm:$0xff] %v16629_v19  ;;  %v13574_v51 = vpack.i.bf16 %v16629_v19, %v15891_v29  ;;  %v16895_v60 = vpack.i.bf16 %v15895_v25, %v16646_v5 }
 0x1e3   :  { %22720 = vst [vmem:[#allocation19_spill] sm:$0xff] %v16601_v54  ;;  %v1438_v3 = vmax.f32 %v16601_v54, 0.0  ;;  %22726 = vst [vmem:[#allocation25_spill] sm:$0xff] %v16632_v23  ;;  %v16637_v26 = vmul.f32 %v16503_v20, %v1433_v27  ;;  %v16661_v24 = vpack.i.bf16 %v16632_v23, %v16629_v19  ;;  %v16683_v42 = vpack.i.bf16 %v16646_v5, %v16632_v23 }
 0x1e4   :  { %13340 = vrot.lane.b32.xlu1 %v16531_v4, %s15959_s22  ;;  %v16649_v9 = vmul.f32 %v16509_v18, %v1437_v7 }
 0x1e5   :  { %13400 = vrot.lane.b32.xlu0 %v16535_v32, %s15959_s22  ;;  %22727 = vst [vmem:[#allocation26_spill] sm:$0xff] %v16637_v26  ;;  %v16643_v39 = vmul.f32 %v16513_v2, %v1438_v3  ;;  %v16675_v21 = vpack.i.bf16 %v16637_v26, %v16626_v13  ;;  %v16875_v45 = vpack.i.bf16 %v15894_v47, %v16637_v26 }
 0x1e6   :  { %22731 = vst [vmem:[#allocation30_spill] sm:$0xff] %v16649_v9  ;;  %v16691_v43 = vpack.i.bf16 %v16649_v9, %v16629_v19  ;;  %v16845_v48 = vpack.i.bf16 %v16649_v9, %v15892_v15 }
 0x1e7   :  { %22729 = vst [vmem:[#allocation28_spill] sm:$0xff] %v16643_v39  ;;  %v16669_v14 = vpack.i.bf16 %v16640_v12, %v16643_v39  ;;  %v16697_v0 = vpack.i.bf16 %v16643_v39, %v16649_v9 }
 0x1e8   :  { %13345 = vrot.lane.b32.xlu1 %v16531_v4, %s22469_s23 }
 0x1e9   :  { %13405 = vrot.lane.b32.xlu0 %v16535_v32, %s22469_s23 }
 0x1ec   :  { %13350 = vrot.lane.b32.xlu1 %v16531_v4, %s22465_s9 }
 0x1ed   :  { %13410 = vrot.lane.b32.xlu0 %v16535_v32, %s22465_s9 }
 0x1f0   :  { %13355 = vrot.lane.b32.xlu1 %v16531_v4, %s22463_s15 }
 0x1f1   :  { %13415 = vrot.lane.b32.xlu0 %v16535_v32, %s22463_s15 }
 0x1f4   :  { %13360 = vrot.lane.b32.xlu1 %v16531_v4, %s15947_s30 }
 0x1f5   :  { %13420 = vrot.lane.b32.xlu0 %v16535_v32, %s15947_s30 }
 0x1f8   :  { %13365 = vrot.lane.b32.xlu1 %v16531_v4, %s15948_s12 }
 0x1f9   :  { %13425 = vrot.lane.b32.xlu0 %v16535_v32, %s15948_s12 }
 0x1fc   :  { %13370 = vrot.lane.b32.xlu1 %v16531_v4, %s15949_s13 }
 0x1fd   :  { %13430 = vrot.lane.b32.xlu0 %v16535_v32, %s15949_s13 }
 0x200   :  { %13375 = vrot.lane.b32.xlu1 %v16531_v4, %s15963_s16 }
 0x201   :  { %13435 = vrot.lane.b32.xlu0 %v16535_v32, %s15963_s16 }
 0x204   :  { %13380 = vrot.lane.b32.xlu1 %v16531_v4, %s15964_s17 }
 0x205   :  { %13440 = vrot.lane.b32.xlu0 %v16535_v32, %s15964_s17 }
 0x208   :  { %13385 = vrot.lane.b32.xlu1 %v16531_v4, %s15950_s14 }
 0x209   :  { %13445 = vrot.lane.b32.xlu0 %v16535_v32, %s15950_s14 }
 0x20c   :  { %13450 = vrot.lane.b32.xlu1 %v16665_v34, %s15951_s19 }
 0x20d   :  { %13515 = vrot.lane.b32.xlu0 %v16675_v21, %s15957_s20 }
 0x210   :  { %13455 = vrot.lane.b32.xlu1 %v13454_v28, %s15957_s20 }
 0x211   :  { %13520 = vrot.lane.b32.xlu0 %v16675_v21, %s15958_s21 }
 0x214   :  { %13460 = vrot.lane.b32.xlu1 %v13454_v28, %s15958_s21 }
 0x215   :  { %13525 = vrot.lane.b32.xlu0 %v16675_v21, %s15959_s22 }
 0x218   :  { %13465 = vrot.lane.b32.xlu1 %v13454_v28, %s15959_s22 }
 0x219   :  { %13530 = vrot.lane.b32.xlu0 %v16675_v21, %s22469_s23 }
 0x21c   :  { %13470 = vrot.lane.b32.xlu1 %v13454_v28, %s22469_s23 }
 0x21d   :  { %13535 = vrot.lane.b32.xlu0 %v16675_v21, %s22465_s9 }
 0x220   :  { %13475 = vrot.lane.b32.xlu1 %v13454_v28, %s22465_s9 }
 0x221   :  { %13540 = vrot.lane.b32.xlu0 %v16675_v21, %s22463_s15 }
 0x224   :  { %13480 = vrot.lane.b32.xlu1 %v13454_v28, %s22463_s15 }
 0x225   :  { %13545 = vrot.lane.b32.xlu0 %v16675_v21, %s15947_s30 }
 0x228   :  { %13485 = vrot.lane.b32.xlu1 %v13454_v28, %s15947_s30 }
 0x229   :  { %13550 = vrot.lane.b32.xlu0 %v16675_v21, %s15948_s12 }
 0x22c   :  { %13490 = vrot.lane.b32.xlu1 %v13454_v28, %s15948_s12 }
 0x22d   :  { %13555 = vrot.lane.b32.xlu0 %v16675_v21, %s15949_s13 }
 0x230   :  { %13495 = vrot.lane.b32.xlu1 %v13454_v28, %s15949_s13 }
 0x231   :  { %13560 = vrot.lane.b32.xlu0 %v16675_v21, %s15963_s16 }
 0x234   :  { %13500 = vrot.lane.b32.xlu1 %v13454_v28, %s15963_s16 }
 0x235   :  { %13565 = vrot.lane.b32.xlu0 %v16675_v21, %s15964_s17 }
 0x238   :  { %13505 = vrot.lane.b32.xlu1 %v13454_v28, %s15964_s17 }
 0x239   :  { %13570 = vrot.lane.b32.xlu0 %v16675_v21, %s15950_s14 }
 0x23c   :  { %13510 = vrot.lane.b32.xlu1 %v13454_v28, %s15950_s14 }
 0x23d   :  { %13635 = vrot.lane.b32.xlu0 %v16683_v42, %s15957_s20 }
 0x240   :  { %13575 = vrot.lane.b32.xlu1 %v13574_v51, %s15957_s20 }
 0x241   :  { %13640 = vrot.lane.b32.xlu0 %v16683_v42, %s15958_s21 }
 0x244   :  { %13580 = vrot.lane.b32.xlu1 %v13574_v51, %s15958_s21 }
 0x245   :  { %13645 = vrot.lane.b32.xlu0 %v16683_v42, %s15959_s22 }
 0x248   :  { %13585 = vrot.lane.b32.xlu1 %v13574_v51, %s15959_s22 }
 0x249   :  { %13650 = vrot.lane.b32.xlu0 %v16683_v42, %s22469_s23 }
 0x24c   :  { %13590 = vrot.lane.b32.xlu1 %v13574_v51, %s22469_s23 }
 0x24d   :  { %13655 = vrot.lane.b32.xlu0 %v16683_v42, %s22465_s9 }
 0x24e   :  { %v16783_v52 = vpop.permute.xlu1 %13330 }
 0x24f   :  { %v16785_v53 = vpop.permute.xlu0 %13390  ;;  %v13333_v54 = vunpack.i.h.bf16 %v16783_v52  ;;  %v13332_v58 = vunpack.i.l.bf16 %v16783_v52 }
 0x250   :  { %13595 = vrot.lane.b32.xlu1 %v13574_v51, %s22465_s9  ;;  %v13392_v56 = vunpack.i.l.bf16 %v16785_v53 }
 0x251   :  { %13660 = vrot.lane.b32.xlu0 %v16683_v42, %s22463_s15  ;;  %v1573_v25 = vsel %vm1572_vm9, %v13332_v58, %v13333_v54  ;;  %v13799_v58 = vpack.i.bf16 %v15896_v49, %v16640_v12 }
 0x252   :  { %v16790_v16 = vpop.permute.xlu1 %13335  ;;  %v1574_v52 = vsel %vm1572_vm9, %v13333_v54, %v13392_v56 }
 0x253   :  { %v16792_v22 = vpop.permute.xlu0 %13395 }
 0x254   :  { %13600 = vrot.lane.b32.xlu1 %v13574_v51, %s22463_s15 }
 0x255   :  { %13665 = vrot.lane.b32.xlu0 %v16683_v42, %s15947_s30 }
 0x256   :  { %v16797_v40 = vpop.permute.xlu1 %13340 }
 0x257   :  { %v16799_v46 = vpop.permute.xlu0 %13400 }
 0x258   :  { %13605 = vrot.lane.b32.xlu1 %v13574_v51, %s15947_s30 }
 0x259   :  { %13670 = vrot.lane.b32.xlu0 %v16683_v42, %s15948_s12 }
 0x25a   :  { %v16804_v57 = vpop.permute.xlu1 %13345 }
 0x25b   :  { %v16806_v63 = vpop.permute.xlu0 %13405 }
 0x25c   :  { %13610 = vrot.lane.b32.xlu1 %v13574_v51, %s15948_s12 }
 0x25d   :  { %13675 = vrot.lane.b32.xlu0 %v16683_v42, %s15949_s13 }
 0x25e   :  { %v16811_v62 = vpop.permute.xlu1 %13350 }
 0x25f   :  { %v16813_v27 = vpop.permute.xlu0 %13410 }
 0x260   :  { %13615 = vrot.lane.b32.xlu1 %v13574_v51, %s15949_s13  ;;  %v13412_v49 = vunpack.i.l.bf16 %v16813_v27 }
 0x261   :  { %13680 = vrot.lane.b32.xlu0 %v16683_v42, %s15963_s16 }
 0x262   :  { %v16818_v41 = vpop.permute.xlu1 %13355 }
 0x263   :  { %v16820_v3 = vpop.permute.xlu0 %13415 }
 0x264   :  { %13620 = vrot.lane.b32.xlu1 %v13574_v51, %s15963_s16 }
 0x265   :  { %13685 = vrot.lane.b32.xlu0 %v16683_v42, %s15964_s17 }
 0x266   :  { %v16825_v6 = vpop.permute.xlu1 %13360 }
 0x267   :  { %v16827_v7 = vpop.permute.xlu0 %13420 }
 0x268   :  { %13625 = vrot.lane.b32.xlu1 %v13574_v51, %s15964_s17 }
 0x269   :  { %13690 = vrot.lane.b32.xlu0 %v16683_v42, %s15950_s14 }
 0x26a   :  { %v16832_v50 = vpop.permute.xlu1 %13365 }
 0x26b   :  { %v16834_v28 = vpop.permute.xlu0 %13425 }
 0x26c   :  { %13630 = vrot.lane.b32.xlu1 %v13574_v51, %s15950_s14  ;;  %v16853_v51 = vpack.i.bf16 %v15893_v35, %v16519_v37 }
 0x26d   :  { %13755 = vrot.lane.b32.xlu0 %v16669_v14, %s15957_s20 }
 0x26e   :  { %v16839_v29 = vpop.permute.xlu1 %13370 }
 0x26f   :  { %v16847_v4 = vpop.permute.xlu0 %13430 }
 0x270   :  { %13695 = vrot.lane.b32.xlu1 %v16845_v48, %s15957_s20 }
 0x271   :  { %13760 = vrot.lane.b32.xlu0 %v16853_v51, %s15951_s19 }
 0x272   :  { %v16859_v17 = vpop.permute.xlu1 %13375 }
 0x273   :  { %v16861_v11 = vpop.permute.xlu0 %13435 }
 0x274   :  { %13700 = vrot.lane.b32.xlu1 %v16845_v48, %s15958_s21 }
 0x275   :  { %13770 = vrot.lane.b32.xlu0 %v16669_v14, %s15958_s21 }
 0x276   :  { %v16867_v15 = vpop.permute.xlu1 %13380 }
 0x277   :  { %v16869_v35 = vpop.permute.xlu0 %13440 }
 0x278   :  { %13705 = vrot.lane.b32.xlu1 %v16845_v48, %s15959_s22 }
 0x279   :  { %13775 = vrot.lane.b32.xlu0 %v16875_v45, %s15951_s19 }
 0x27a   :  { %v16881_v38 = vpop.permute.xlu1 %13385 }
 0x27b   :  { %22732 = vst [vmem:[#allocation31_spill] sm:$0xff] %v16881_v38  ;;  %v16883_v55 = vpop.permute.xlu0 %13445 }
 0x27c   :  { %13710 = vrot.lane.b32.xlu1 %v16845_v48, %s22469_s23 }
 0x27d   :  { %13785 = vrot.lane.b32.xlu0 %v16669_v14, %s15959_s22 }
 0x27e   :  { %v16889_v44 = vpop.permute.xlu1 %13450 }
 0x27f   :  { %22733 = vst [vmem:[#allocation32_spill] sm:$0xff] %v16889_v44  ;;  %v13516_v47 = vpop.permute.xlu0 %13515 }
 0x280   :  { %13715 = vrot.lane.b32.xlu1 %v16845_v48, %s22465_s9  ;;  %v13517_v8 = vunpack.i.l.bf16 %v13516_v47 }
 0x281   :  { %13790 = vrot.lane.b32.xlu0 %v16895_v60, %s15951_s19 }
 0x282   :  { %v13456_v30 = vpop.permute.xlu1 %13455 }
 0x283   :  { %v13458_v36 = vunpack.i.h.bf16 %v13456_v30  ;;  %v13457_v59 = vunpack.i.l.bf16 %v13456_v30  ;;  %v16904_v33 = vpop.permute.xlu0 %13520 }
 0x284   :  { %13720 = vrot.lane.b32.xlu1 %v16845_v48, %s22463_s15 }
 0x285   :  { %v1576_v20 = vsel %vm1572_vm9, %v13457_v59, %v13458_v36  ;;  %13795 = vrot.lane.b32.xlu0 %v16669_v14, %s22469_s23  ;;  %v1577_v2 = vsel %vm1572_vm9, %v13458_v36, %v13517_v8 }
 0x286   :  { %v16914_v18 = vpop.permute.xlu1 %13460  ;;  %v12037_v19 = vpack.c.bf16 %v1577_v2, %v1574_v52  ;;  %v12039_v30 = vpack.c.bf16 %v1576_v20, %v1573_v25  ;;  %v13518_v20 = vunpack.i.h.bf16 %v13516_v47  ;;  %v13413_v2 = vunpack.i.h.bf16 %v16813_v27 }
 0x287   :  { %v16916_v23 = vpop.permute.xlu0 %13525  ;;  %v22391_v47 = vunpack.i.h.bf16 %v16811_v62 }
 0x288   :  { %13725 = vrot.lane.b32.xlu1 %v16845_v48, %s15947_s30  ;;  %12038 = vmatprep.subr.bf16.mxu1 %v12037_v19  ;;  %v13393_v19 = vunpack.i.h.bf16 %v16785_v53  ;;  %v1578_v10 = vsel %vm1572_vm9, %v13517_v8, %v13518_v20  ;;  %v1979_v44 = vsel %vm22504_vm10, %v13412_v49, %v13413_v2 }
 0x289   :  { %13800 = vrot.lane.b32.xlu0 %v13799_v58, %s15951_s19  ;;  %12040 = vmatpush1.bf16.msra.mxu1 %v12039_v30  ;;  %v16959_v20 = vsel %vm22504_vm10, %v22391_v47, %v13412_v49 }
 0x28a   :  { %v16925_v59 = vpop.permute.xlu1 %13465  ;;  %v1575_v61 = vsel %vm1572_vm9, %v13392_v56, %v13393_v19  ;;  %22734 = vst [vmem:[#allocation33_spill] sm:$0xff] %v16959_v20  ;;  %v13403_v20 = vunpack.i.h.bf16 %v16799_v46 }
 0x28b   :  { %v16927_v36 = vpop.permute.xlu0 %13530  ;;  %v12239_v8 = vpack.c.bf16 %v1578_v10, %v1575_v61 }
 0x28c   :  { %13730 = vrot.lane.b32.xlu1 %v16845_v48, %s15948_s12 }
 0x28d   :  { %13810 = vrot.lane.b32.xlu0 %v16669_v14, %s22465_s9  ;;  %s22985_s9 = smov 38  }
 0x28e   :  { %v16935_v54 = vpop.permute.xlu1 %13470 }
 0x28f   :  { %v13536_v25 = vpop.permute.xlu0 %13535 }
 0x290   :  { %v13538_v52 = vunpack.i.h.bf16 %v13536_v25  ;;  %v13537_v30 = vunpack.i.l.bf16 %v13536_v25  ;;  %13735 = vrot.lane.b32.xlu1 %v16845_v48, %s15949_s13 }
 0x291   :  { %13815 = vrot.lane.b32.xlu0 %v16853_v51, %s22456_s10 }
 0x292   :  { %v16944_v27 = vpop.permute.xlu1 %13475  ;;  %v1982_v53 = vsel %vm22504_vm10, %v13537_v30, %v13538_v52 }
 0x293   :  { %v22390_v25 = vunpack.i.h.bf16 %v16944_v27  ;;  %v16950_v13 = vpop.permute.xlu0 %13540  ;;  %v12237_v37 = vpack.c.bf16 %v1982_v53, %v1979_v44 }
 0x294   :  { %13740 = vrot.lane.b32.xlu1 %v16845_v48, %s15963_s16 }
 0x295   :  { %13825 = vrot.lane.b32.xlu0 %v16669_v14, %s22463_s15  ;;  %12238 = vmatprep.subr.bf16.mxu0 %v12237_v37  ;;  %v16964_v56 = vsel %vm22504_vm10, %v22390_v25, %v13537_v30 }
 0x296   :  { %22735 = vst [vmem:[#allocation34_spill] sm:$0xff] %v16964_v56  ;;  %12240 = vmatpush3.bf16.msra.mxu0 %v12239_v8  ;;  %v16966_v44 = vpop.permute.xlu1 %13480  ;;  %v13402_v56 = vunpack.i.l.bf16 %v16799_v46 }
 0x297   :  { %v16970_v10 = vpop.permute.xlu0 %13545 }
 0x298   :  { %22736 = vst [vmem:[#allocation35_spill] sm:$0xff] %v16970_v10  ;;  %13745 = vrot.lane.b32.xlu1 %v16845_v48, %s15964_s17 }
 0x299   :  { %13830 = vrot.lane.b32.xlu0 %v16875_v45, %s22456_s10 }
 0x29a   :  { %v16976_v37 = vpop.permute.xlu1 %13485 }
 0x29b   :  { %22737 = vst [vmem:[#allocation36_spill] sm:$0xff] %v16976_v37  ;;  %v16978_v2 = vpop.permute.xlu0 %13550 }
 0x29c   :  { %22738 = vst [vmem:[#allocation37_spill] sm:$0xff] %v16978_v2  ;;  %13750 = vrot.lane.b32.xlu1 %v16845_v48, %s15950_s14  ;;  %v1481_v48 = vld [vmem:[%s22359_s5 + $0x8] sm:$0xff] }
 0x29d   :  { %13840 = vrot.lane.b32.xlu0 %v16669_v14, %s15947_s30  ;;  %4705 = vmatprep.mubr.f32.mxu0 %v1481_v48 }
 0x29e   :  { %v16984_v49 = vpop.permute.xlu1 %13490  ;;  %4349 = vmatprep.mubr.f32.mxu1 %v1481_v48 }
 0x29f   :  { %22739 = vst [vmem:[#allocation38_spill] sm:$0xff] %v16984_v49  ;;  %v16986_v19 = vpop.permute.xlu0 %13555 }
 0x2a0   :  { %22740 = vst [vmem:[#allocation39_spill] sm:$0xff] %v16986_v19  ;;  %13765 = vrot.lane.b32.xlu1 %v16657_v31, %s15951_s19  ;;  %v13407_v19 = vunpack.i.l.bf16 %v16806_v63 }
 0x2a1   :  { %13845 = vrot.lane.b32.xlu0 %v16895_v60, %s22456_s10 }
 0x2a2   :  { %v16992_v52 = vpop.permute.xlu1 %13495 }
 0x2a3   :  { %22741 = vst [vmem:[#allocation40_spill] sm:$0xff] %v16992_v52  ;;  %v16994_v30 = vpop.permute.xlu0 %13560  ;;  %v13398_v52 = vunpack.i.h.bf16 %v16792_v22 }
 0x2a4   :  { %22742 = vst [vmem:[#allocation41_spill] sm:$0xff] %v16994_v30  ;;  %13780 = vrot.lane.b32.xlu1 %v16661_v24, %s15951_s19 }
 0x2a5   :  { %13850 = vrot.lane.b32.xlu0 %v16669_v14, %s15948_s12 }
 0x2a6   :  { %v17003_v53 = vpop.permute.xlu1 %13500 }
 0x2a7   :  { %22743 = vst [vmem:[#allocation42_spill] sm:$0xff] %v17003_v53  ;;  %v17005_v8 = vpop.permute.xlu0 %13565 }
 0x2a8   :  { %22744 = vst [vmem:[#allocation43_spill] sm:$0xff] %v17005_v8  ;;  %13805 = vrot.lane.b32.xlu1 %v16665_v34, %s22456_s10 }
 0x2a9   :  { %13855 = vrot.lane.b32.xlu0 %v13799_v58, %s22456_s10 }
 0x2aa   :  { %v17010_v60 = vpop.permute.xlu1 %13505 }
 0x2ab   :  { %22745 = vst [vmem:[#allocation44_spill] sm:$0xff] %v17010_v60  ;;  %v17012_v61 = vpop.permute.xlu0 %13570 }
 0x2ac   :  { %22746 = vst [vmem:[#allocation45_spill] sm:$0xff] %v17012_v61  ;;  %13820 = vrot.lane.b32.xlu1 %v16657_v31, %s22456_s10 }
 0x2ad   :  { %13865 = vrot.lane.b32.xlu0 %v16669_v14, %s15949_s13 }
 0x2ae   :  { %v17018_v48 = vpop.permute.xlu1 %13510 }
 0x2af   :  { %22747 = vst [vmem:[#allocation46_spill] sm:$0xff] %v17018_v48  ;;  %v17020_v25 = vpop.permute.xlu0 %13635 }
 0x2b0   :  { %13835 = vrot.lane.b32.xlu1 %v16661_v24, %s22456_s10 }
 0x2b1   :  { %13870 = vrot.lane.b32.xlu0 %v16853_v51, %s15966_s18 }
 0x2b2   :  { %v17026_v58 = vpop.permute.xlu1 %13575 }
 0x2b3   :  { %v17028_v47 = vpop.permute.xlu0 %13640 }
 0x2b4   :  { %13860 = vrot.lane.b32.xlu1 %v16665_v34, %s15966_s18 }
 0x2b5   :  { %13880 = vrot.lane.b32.xlu0 %v16669_v14, %s15963_s16 }
 0x2b6   :  { %v17034_v48 = vpop.permute.xlu1 %13580 }
 0x2b7   :  { %v17036_v61 = vpop.permute.xlu0 %13645 }
 0x2b8   :  { %13875 = vrot.lane.b32.xlu1 %v16657_v31, %s15966_s18  ;;  %v22750_v31 = vpack.i.bf16 %v16649_v9, %v16640_v12 }
 0x2b9   :  { %13885 = vrot.lane.b32.xlu0 %v16875_v45, %s15966_s18 }
 0x2ba   :  { %v17042_v51 = vpop.permute.xlu1 %13585 }
 0x2bb   :  { %v17044_v26 = vpop.permute.xlu0 %13650 }
 0x2bc   :  { %22748 = vst [vmem:[#allocation47_spill] sm:$0xff] %v17044_v26  ;;  %13890 = vrot.lane.b32.xlu1 %v16661_v24, %s15966_s18  ;;  %v13427_v26 = vunpack.i.l.bf16 %v16834_v28 }
 0x2bd   :  { %13900 = vrot.lane.b32.xlu0 %v16669_v14, %s15964_s17 }
 0x2be   :  { %v17050_v34 = vpop.permute.xlu1 %13590 }
 0x2bf   :  { %v17052_v60 = vpop.permute.xlu0 %13655 }
 0x2c0   :  { %22749 = vst [vmem:[#allocation48_spill] sm:$0xff] %v17052_v60  ;;  %13895 = vrot.lane.b32.xlu1 %v22750_v31, %s15966_s18  ;;  %v13357_v60 = vunpack.i.l.bf16 %v16818_v41 }
 0x2c1   :  { %13905 = vrot.lane.b32.xlu0 %v16535_v32, %s15952_s24 }
 0x2c2   :  { %v17060_v45 = vpop.permute.xlu1 %13595 }
 0x2c3   :  { %22751 = vst [vmem:[#allocation49_spill] sm:$0xff] %v17060_v45  ;;  %v17062_v8 = vpop.permute.xlu0 %13660 }
 0x2c4   :  { %22752 = vst [vmem:[#allocation50_spill] sm:$0xff] %v17062_v8  ;;  %13910 = vrot.lane.b32.xlu1 %v16675_v21, %s15952_s24 }
 0x2c5   :  { %13915 = vrot.lane.b32.xlu0 %v16669_v14, %s15950_s14 }
 0x2c6   :  { %v17068_v24 = vpop.permute.xlu1 %13600 }
 0x2c7   :  { %22753 = vst [vmem:[#allocation51_spill] sm:$0xff] %v17068_v24  ;;  %v17070_v53 = vpop.permute.xlu0 %13665  ;;  %v13397_v24 = vunpack.i.l.bf16 %v16792_v22  ;;  %v13408_v22 = vunpack.i.h.bf16 %v16806_v63 }
 0x2c8   :  { %22754 = vst [vmem:[#allocation52_spill] sm:$0xff] %v17070_v53  ;;  %13925 = vrot.lane.b32.xlu1 %v16683_v42, %s15952_s24 }
 0x2c9   :  { %13920 = vrot.lane.b32.xlu0 %v16687_v1, %s15952_s24 }
 0x2ca   :  { %v17076_v31 = vpop.permute.xlu1 %13605 }
 0x2cb   :  { %22755 = vst [vmem:[#allocation53_spill] sm:$0xff] %v17076_v31  ;;  %v17078_v9 = vpop.permute.xlu0 %13670  ;;  %v13338_v31 = vunpack.i.h.bf16 %v16790_v16 }
 0x2cc   :  { %22756 = vst [vmem:[#allocation54_spill] sm:$0xff] %v17078_v9  ;;  %13930 = vrot.lane.b32.xlu1 %v16691_v43, %s15952_s24  ;;  %v13337_v9 = vunpack.i.l.bf16 %v16790_v16  ;;  %v13348_v16 = vunpack.i.h.bf16 %v16804_v57 }
 0x2cd   :  { %13935 = vrot.lane.b32.xlu0 %v16535_v32, %s15953_s25  ;;  %v17127_v45 = vsel %vm22497_vm11, %v13338_v31, %v13397_v24 }
 0x2ce   :  { %v17084_v12 = vpop.permute.xlu1 %13610 }
 0x2cf   :  { %22757 = vst [vmem:[#allocation55_spill] sm:$0xff] %v17084_v12  ;;  %v17086_v30 = vpop.permute.xlu0 %13675  ;;  %v13343_v12 = vunpack.i.h.bf16 %v16797_v40 }
 0x2d0   :  { %22758 = vst [vmem:[#allocation56_spill] sm:$0xff] %v17086_v30  ;;  %13940 = vrot.lane.b32.xlu1 %v16675_v21, %s15953_s25  ;;  %v13342_v30 = vunpack.i.l.bf16 %v16797_v40  ;;  %v17113_v40 = vsel %vm22497_vm11, %v13337_v9, %v13338_v31  ;;  %v13358_v9 = vunpack.i.h.bf16 %v16818_v41  ;;  %v13362_v31 = vunpack.i.l.bf16 %v16825_v6 }
 0x2d1   :  { %13945 = vrot.lane.b32.xlu0 %v16687_v1, %s15953_s25  ;;  %v17147_v41 = vsel %vm22489_vm12, %v13343_v12, %v13402_v56 }
 0x2d2   :  { %v17094_v53 = vpop.permute.xlu1 %13615  ;;  %v17121_v49 = vsel %vm22489_vm12, %v13342_v30, %v13343_v12  ;;  %v17136_v30 = vsel %vm22489_vm12, %v13402_v56, %v13403_v20  ;;  %v13422_v20 = vunpack.i.l.bf16 %v16827_v7  ;;  %v22766_v56 = vunpack.i.h.bf16 %v16811_v62 }
 0x2d3   :  { %22759 = vst [vmem:[#allocation57_spill] sm:$0xff] %v17094_v53  ;;  %v17100_v8 = vpop.permute.xlu0 %13680  ;;  %v13347_v53 = vunpack.i.l.bf16 %v16804_v57  ;;  %v13352_v57 = vunpack.i.l.bf16 %v16811_v62  ;;  %v17167_v10 = vsel %vm22458_vm14, %v13357_v60, %v13358_v9  ;;  %v13433_v62 = vunpack.i.h.bf16 %v16847_v4 }
 0x2d4   :  { %22760 = vst [vmem:[#allocation58_spill] sm:$0xff] %v17100_v8  ;;  %13950 = vrot.lane.b32.xlu1 %v16683_v42, %s15953_s25  ;;  %v17118_v8 = vsel %vm22497_vm11, %v13397_v24, %v13398_v52  ;;  %v13417_v52 = vunpack.i.l.bf16 %v16820_v3  ;;  %v17142_v24 = vsel %vm22510_vm13, %v13407_v19, %v13408_v22  ;;  %v13367_v22 = vunpack.i.l.bf16 %v16832_v50 }
 0x2d5   :  { %13965 = vrot.lane.b32.xlu0 %v16535_v32, %s15954_s28  ;;  %v17139_v2 = vsel %vm22510_vm13, %v13347_v53, %v13348_v16  ;;  %v13368_v53 = vunpack.i.h.bf16 %v16832_v50 }
 0x2d6   :  { %v17115_v46 = vpop.permute.xlu1 %13620  ;;  %22763 = vst [vmem:[#allocation61_spill] sm:$0xff] %v17139_v2  ;;  %v13428_v2 = vunpack.i.h.bf16 %v16834_v28  ;;  %v13373_v28 = vunpack.i.h.bf16 %v16839_v29 }
 0x2d7   :  { %22761 = vst [vmem:[#allocation59_spill] sm:$0xff] %v17115_v46  ;;  %v17124_v63 = vpop.permute.xlu0 %13685  ;;  %v13418_v46 = vunpack.i.h.bf16 %v16820_v3  ;;  %v13363_v3 = vunpack.i.h.bf16 %v16825_v6  ;;  %v17164_v6 = vsel %vm22504_vm10, %v13352_v57, %v22766_v56  ;;  %v13432_v57 = vunpack.i.l.bf16 %v16847_v4 }
 0x2d8   :  { %22762 = vst [vmem:[#allocation60_spill] sm:$0xff] %v17124_v63  ;;  %13955 = vrot.lane.b32.xlu1 %v16697_v0, %s15951_s19  ;;  %v13423_v63 = vunpack.i.h.bf16 %v16827_v7  ;;  %v17172_v7 = vsel %vm22510_vm13, %v13348_v16, %v13407_v19  ;;  %v13377_v16 = vunpack.i.l.bf16 %v16859_v17  ;;  %v17191_v56 = vsel %vm22458_vm14, %v13358_v9, %v13417_v52 }
 0x2d9   :  { %13980 = vrot.lane.b32.xlu0 %v16687_v1, %s15954_s28  ;;  %v17175_v50 = vsel %vm22458_vm14, %v13417_v52, %v13418_v46  ;;  %v17184_v60 = vsel %vm155_vm0, %v13362_v31, %v13363_v3  ;;  %v17202_v31 = vsel %vm155_vm0, %v13363_v3, %v13422_v20  ;;  %v17205_v19 = vsel %vm256_vm1, %v13427_v26, %v13428_v2 }
 0x2da   :  { %v17153_v37 = vpop.permute.xlu1 %13625  ;;  %22767 = vst [vmem:[#allocation64_spill] sm:$0xff] %v17184_v60  ;;  %v13438_v60 = vunpack.i.h.bf16 %v16861_v11  ;;  %v13463_v9 = vunpack.i.h.bf16 %v16914_v18  ;;  %v17213_v52 = vsel %vm256_vm1, %v13368_v53, %v13427_v26  ;;  %v17219_v3 = vsel %vm357_vm2, %v13432_v57, %v13433_v62 }
 0x2db   :  { %22764 = vst [vmem:[#allocation62_spill] sm:$0xff] %v17153_v37  ;;  %v17159_v12 = vpop.permute.xlu0 %13690  ;;  %v17199_v37 = vsel %vm155_vm0, %v13422_v20, %v13423_v63  ;;  %22770 = vst [vmem:[#allocation67_spill] sm:$0xff] %v17213_v52  ;;  %v13578_v2 = vunpack.i.h.bf16 %v17026_v58  ;;  %v13577_v20 = vunpack.i.l.bf16 %v17026_v58  ;;  %v22433_v26 = vunpack.i.l.bf16 %v16904_v33 }
 0x2dc   :  { %22765 = vst [vmem:[#allocation63_spill] sm:$0xff] %v17159_v12  ;;  %13960 = vrot.lane.b32.xlu1 %v16691_v43, %s15953_s25  ;;  %v13372_v12 = vunpack.i.l.bf16 %v16839_v29  ;;  %v17194_v29 = vsel %vm256_vm1, %v13367_v22, %v13368_v53  ;;  %22772 = vst [vmem:[#allocation69_spill] sm:$0xff] %v17219_v3  ;;  %v13462_v53 = vunpack.i.l.bf16 %v16914_v18  ;;  %v22438_v62 = vunpack.i.l.bf16 %v17020_v25 }
 0x2dd   :  { %13995 = vrot.lane.b32.xlu0 %v16535_v32, %s15967_s26  ;;  %22769 = vst [vmem:[#allocation66_spill] sm:$0xff] %v17194_v29  ;;  %v1678_v18 = vsel %vm22497_vm11, %v13463_v9, %v22433_v26  ;;  %v13583_v26 = vunpack.i.h.bf16 %v17034_v48 }
 0x2de   :  { %v17188_v46 = vpop.permute.xlu1 %13630  ;;  %v17216_v63 = vsel %vm357_vm2, %v13372_v12, %v13373_v28  ;;  %v17233_v12 = vsel %vm357_vm2, %v13373_v28, %v13432_v57  ;;  %v1579_v28 = vsel %vm1572_vm9, %v13577_v20, %v13578_v2 }
 0x2df   :  { %22768 = vst [vmem:[#allocation65_spill] sm:$0xff] %v17188_v46  ;;  %v17196_v4 = vpop.permute.xlu0 %13755  ;;  %v13437_v46 = vunpack.i.l.bf16 %v16861_v11  ;;  %22771 = vst [vmem:[#allocation68_spill] sm:$0xff] %v17216_v63  ;;  %v22773_v11 = vunpack.i.h.bf16 %v16859_v17 }
 0x2e0   :  { %13970 = vrot.lane.b32.xlu1 %v16697_v0, %s22456_s10  ;;  %22775 = vst [vmem:[#allocation71_spill] sm:$0xff] %v17233_v12  ;;  %v22439_v58 = vunpack.i.l.bf16 %v17196_v4  ;;  %s22518_s10 = smov 86  }
 0x2e1   :  { %14005 = vrot.lane.b32.xlu0 %v16687_v1, %s15967_s26  ;;  %v17228_v0 = vsel %vm22471_vm15, %v13377_v16, %v22773_v11  ;;  %v17240_v52 = vsel %vm22471_vm15, %v13437_v46, %v13438_v60  ;;  %v13383_v16 = vunpack.i.h.bf16 %v16867_v15  ;;  %v13382_v11 = vunpack.i.l.bf16 %v16867_v15 }
 0x2e2   :  { %22774 = vst [vmem:[#allocation70_spill] sm:$0xff] %v17228_v0  ;;  %v13696_v22 = vpop.permute.xlu1 %13695  ;;  %22777 = vst [vmem:[#allocation73_spill] sm:$0xff] %v17240_v52  ;;  %v22778_v60 = vpack.i.bf16 %v16643_v39, %v16646_v5  ;;  %v1580_v15 = vsel %vm1572_vm9, %v13578_v2, %v22438_v62  ;;  %v13442_v52 = vunpack.i.l.bf16 %v16869_v35  ;;  %v1677_v39 = vsel %vm22497_vm11, %v13462_v53, %v13463_v9 }
 0x2e3   :  { %v13698_v63 = vunpack.i.h.bf16 %v13696_v22  ;;  %v13697_v3 = vunpack.i.l.bf16 %v13696_v22  ;;  %v17237_v29 = vpop.permute.xlu0 %13760  ;;  %v12045_v2 = vpack.c.bf16 %v1678_v18, %v17127_v45  ;;  %v13468_v62 = vunpack.i.h.bf16 %v16925_v59 }
 0x2e4   :  { %22776 = vst [vmem:[#allocation72_spill] sm:$0xff] %v17237_v29  ;;  %13975 = vrot.lane.b32.xlu1 %v16675_v21, %s15954_s28  ;;  %v13443_v29 = vunpack.i.h.bf16 %v16869_v35  ;;  %v13448_v35 = vunpack.i.h.bf16 %v16883_v55  ;;  %v13447_v9 = vunpack.i.l.bf16 %v16883_v55  ;;  %v13527_v53 = vunpack.i.l.bf16 %v16916_v23 }
 0x2e5   :  { %v1582_v57 = vsel %vm1572_vm9, %v13697_v3, %v13698_v63  ;;  %14020 = vrot.lane.b32.xlu0 %v22778_v60, %s15966_s18  ;;  %v1583_v22 = vsel %vm1572_vm9, %v13698_v63, %v22439_v58  ;;  %v22441_v63 = vunpack.i.l.bf16 %v17028_v47  ;;  %v22779_v45 = vunpack.i.h.bf16 %v16859_v17 }
 0x2e6   :  { %v13701_v20 = vpop.permute.xlu1 %13700  ;;  %v12041_v0 = vpack.c.bf16 %v1583_v22, %v1580_v15  ;;  %v12043_v3 = vpack.c.bf16 %v1582_v57, %v1579_v28  ;;  %v13467_v28 = vunpack.i.l.bf16 %v16925_v59  ;;  %v13523_v17 = vunpack.i.h.bf16 %v16904_v33 }
 0x2e7   :  { %v13703_v60 = vunpack.i.h.bf16 %v13701_v20  ;;  %v17265_v5 = vpop.permute.xlu0 %13770  ;;  %v13702_v58 = vunpack.i.l.bf16 %v13701_v20  ;;  %v17281_v18 = vsel %vm22471_vm15, %v22779_v45, %v13437_v46  ;;  %v1681_v15 = vsel %vm22497_vm11, %v13583_v26, %v22441_v63 }
 0x2e8   :  { %v22442_v12 = vunpack.i.l.bf16 %v17265_v5  ;;  %13985 = vrot.lane.b32.xlu1 %v16683_v42, %s15954_s28  ;;  %12042 = vmatprep.subr.bf16.mxu1 %v12041_v0  ;;  %22780 = vst [vmem:[#allocation74_spill] sm:$0xff] %v17281_v18  ;;  %v13582_v0 = vunpack.i.l.bf16 %v17034_v48  ;;  %v17292_v20 = vsel %vm22481_vm8, %v13382_v11, %v13383_v16  ;;  %v12047_v59 = vpack.c.bf16 %v1677_v39, %v17113_v40 }
 0x2e9   :  { %14025 = vrot.lane.b32.xlu0 %v16535_v32, %s15968_s27  ;;  %12044 = vmatpush1.bf16.msra.mxu1 %v12043_v3  ;;  %22781 = vst [vmem:[#allocation75_spill] sm:$0xff] %v17292_v20  ;;  %v17299_v3 = vsel %vm22481_vm8, %v13442_v52, %v13443_v29  ;;  %v1779_v45 = vsel %vm22489_vm12, %v13468_v62, %v13527_v53  ;;  %v22443_v63 = vunpack.i.h.bf16 %v16881_v38  ;;  %v13533_v39 = vunpack.i.h.bf16 %v16927_v36  ;;  %v22799_v38 = vld [vmem:[#allocation39_spill] sm:$0xff] }
 0x2ea   :  { %v13706_v57 = vpop.permute.xlu1 %13705  ;;  %12046 = vmatprep.subr.bf16.mxu1 %v12045_v2  ;;  %v1684_v22 = vsel %vm22497_vm11, %v13703_v60, %v22442_v12  ;;  %22783 = vst [vmem:[#allocation77_spill] sm:$0xff] %v17299_v3  ;;  %v1683_v2 = vsel %vm22497_vm11, %v13702_v58, %v13703_v60  ;;  %v17306_v11 = vsel %vm22481_vm8, %v13383_v16, %v13442_v52  ;;  %v13528_v12 = vunpack.i.h.bf16 %v16916_v23 }
 0x2eb   :  { %v17295_v46 = vpop.permute.xlu0 %13775  ;;  %v12049_v48 = vpack.c.bf16 %v1684_v22, %v1681_v15  ;;  %22784 = vst [vmem:[#allocation78_spill] sm:$0xff] %v17306_v11  ;;  %v13532_v40 = vunpack.i.l.bf16 %v16927_v36  ;;  %v17317_v29 = vsel %vm458_vm3, %v13447_v9, %v13448_v35  ;;  %v1778_v52 = vsel %vm22489_vm12, %v13467_v28, %v13468_v62 }
 0x2ec   :  { %22782 = vst [vmem:[#allocation76_spill] sm:$0xff] %v17295_v46  ;;  %13990 = vrot.lane.b32.xlu1 %v16691_v43, %s15954_s28  ;;  %22785 = vst [vmem:[#allocation79_spill] sm:$0xff] %v17317_v29  ;;  %v1680_v58 = vsel %vm22497_vm11, %v13582_v0, %v13583_v26  ;;  %v13588_v16 = vunpack.i.h.bf16 %v17042_v51  ;;  %v22786_v36 = vunpack.i.l.bf16 %v16904_v33  ;;  %v13473_v15 = vunpack.i.h.bf16 %v16935_v54 }
 0x2ed   :  { %14035 = vrot.lane.b32.xlu0 %v16669_v14, %s15952_s24  ;;  %12048 = vmatpush1.bf16.msra.mxu1 %v12047_v59  ;;  %v12051_v35 = vpack.c.bf16 %v1683_v2, %v1680_v58  ;;  %v12053_v59 = vpack.c.bf16 %v1779_v45, %v17147_v41  ;;  %v22445_v62 = vunpack.i.l.bf16 %v17036_v61  ;;  %v13708_v26 = vunpack.i.h.bf16 %v13706_v57 }
 0x2ee   :  { %v17322_v23 = vpop.permute.xlu1 %13710  ;;  %12050 = vmatprep.subr.bf16.mxu1 %v12049_v48  ;;  %v17327_v60 = vsel %vm22497_vm11, %v22786_v36, %v13523_v17  ;;  %v13707_v28 = vunpack.i.l.bf16 %v13706_v57  ;;  %v17338_v33 = vsel %vm22489_vm12, %v13527_v53, %v13528_v12  ;;  %v17341_v17 = vsel %vm22510_vm13, %v13532_v40, %v13533_v39  ;;  %v22794_v36 = vld [vmem:[#allocation37_spill] sm:$0xff] }
 0x2ef   :  { %v17330_v22 = vpop.permute.xlu0 %13785  ;;  %v13472_v48 = vunpack.i.l.bf16 %v16935_v54  ;;  %v12055_v41 = vpack.c.bf16 %v1778_v52, %v17121_v49  ;;  %v13477_v57 = vunpack.i.l.bf16 %v16944_v27  ;;  %v13587_v2 = vunpack.i.l.bf16 %v17042_v51 }
 0x2f0   :  { %v22444_v0 = vunpack.i.l.bf16 %v17330_v22  ;;  %14000 = vrot.lane.b32.xlu1 %v16675_v21, %s15967_s26  ;;  %v1782_v12 = vsel %vm22489_vm12, %v13588_v16, %v22445_v62  ;;  %v13543_v53 = vunpack.i.h.bf16 %v16950_v13  ;;  %v13542_v39 = vunpack.i.l.bf16 %v16950_v13 }
 0x2f1   :  { %14040 = vrot.lane.b32.xlu0 %v16687_v1, %s15968_s27  ;;  %12052 = vmatpush1.bf16.msra.mxu1 %v12051_v35  ;;  %v1880_v51 = vsel %vm22510_vm13, %v13473_v15, %v13532_v40  ;;  %v1784_v58 = vsel %vm22489_vm12, %v13707_v28, %v13708_v26  ;;  %v17374_v13 = vsel %vm458_vm3, %v22443_v63, %v13447_v9  ;;  %v22789_v55 = vunpack.i.h.bf16 %v16944_v27 }
 0x2f2   :  { %v17349_v45 = vpop.permute.xlu1 %13715  ;;  %12054 = vmatprep.subr.bf16.mxu1 %v12053_v59  ;;  %v1785_v54 = vsel %vm22489_vm12, %v13708_v26, %v22444_v0  ;;  %22788 = vst [vmem:[#allocation81_spill] sm:$0xff] %v17374_v13  ;;  %v1879_v40 = vsel %vm22510_vm13, %v13472_v48, %v13473_v15  ;;  %v13483_v59 = vunpack.i.h.bf16 %v16966_v44  ;;  %v13482_v26 = vunpack.i.l.bf16 %v16966_v44  ;;  %v22793_v0 = vld [vmem:[#allocation61_spill] sm:$0xff]  ;;  %v22798_v13 = vld [vmem:[#allocation38_spill] sm:$0xff] }
 0x2f3   :  { %v17359_v49 = vpop.permute.xlu0 %13790  ;;  %v12057_v52 = vpack.c.bf16 %v1785_v54, %v1782_v12  ;;  %v17386_v12 = vsel %vm22504_vm10, %v13477_v57, %v22789_v55  ;;  %v1781_v9 = vsel %vm22489_vm12, %v13587_v2, %v13588_v16  ;;  %v13593_v15 = vunpack.i.h.bf16 %v17050_v34  ;;  %v22790_v54 = vld [vmem:[#allocation35_spill] sm:$0xff] }
 0x2f4   :  { %22787 = vst [vmem:[#allocation80_spill] sm:$0xff] %v17359_v49  ;;  %14010 = vrot.lane.b32.xlu1 %v16683_v42, %s15967_s26  ;;  %v12061_v44 = vpack.c.bf16 %v1880_v51, %v17172_v7  ;;  %v13548_v63 = vunpack.i.h.bf16 %v22790_v54  ;;  %v12059_v28 = vpack.c.bf16 %v1784_v58, %v1781_v9  ;;  %v17398_v27 = vsel %vm22458_vm14, %v13542_v39, %v13543_v53  ;;  %v22791_v57 = vld [vmem:[#allocation47_spill] sm:$0xff]  ;;  %v22792_v51 = vld [vmem:[#allocation36_spill] sm:$0xff] }
 0x2f5   :  { %14055 = vrot.lane.b32.xlu0 %v16669_v14, %s15953_s25  ;;  %12056 = vmatpush1.bf16.msra.mxu1 %v12055_v41  ;;  %v13547_v41 = vunpack.i.l.bf16 %v22790_v54  ;;  %v22446_v55 = vunpack.i.l.bf16 %v22791_v57  ;;  %v13713_v16 = vunpack.i.h.bf16 %v17322_v23  ;;  %v13712_v2 = vunpack.i.l.bf16 %v17322_v23 }
 0x2f6   :  { %v17390_v48 = vpop.permute.xlu1 %13720  ;;  %12058 = vmatprep.subr.bf16.mxu1 %v12057_v52  ;;  %v17407_v7 = vsel %vm22458_vm14, %v13482_v26, %v13483_v59  ;;  %v13488_v54 = vunpack.i.h.bf16 %v22792_v51  ;;  %v13487_v58 = vunpack.i.l.bf16 %v22792_v51  ;;  %v17414_v53 = vsel %vm22458_vm14, %v13483_v59, %v13542_v39 }
 0x2f7   :  { %v17395_v35 = vpop.permute.xlu0 %13795  ;;  %v13592_v23 = vunpack.i.l.bf16 %v17050_v34  ;;  %v12063_v62 = vpack.c.bf16 %v1879_v40, %v22793_v0  ;;  %v1883_v26 = vsel %vm22510_vm13, %v13593_v15, %v22446_v55  ;;  %v13552_v39 = vunpack.i.l.bf16 %v22794_v36 }
 0x2f8   :  { %v22447_v52 = vunpack.i.l.bf16 %v17395_v35  ;;  %14015 = vrot.lane.b32.xlu1 %v16691_v43, %s15967_s26  ;;  %v1885_v0 = vsel %vm22510_vm13, %v13712_v2, %v13713_v16  ;;  %v22796_v2 = vld [vmem:[#allocation48_spill] sm:$0xff]  ;;  %v13493_v29 = vunpack.i.h.bf16 %v22798_v13  ;;  %v22800_v49 = vunpack.i.l.bf16 %v17196_v4 }
 0x2f9   :  { %14060 = vrot.lane.b32.xlu0 %v16669_v14, %s15954_s28  ;;  %12060 = vmatpush1.bf16.msra.mxu1 %v12059_v28  ;;  %v13553_v28 = vunpack.i.h.bf16 %v22794_v36  ;;  %v13657_v36 = vunpack.i.l.bf16 %v22796_v2 }
 0x2fa   :  { %v17417_v9 = vpop.permute.xlu1 %13725  ;;  %12062 = vmatprep.subr.bf16.mxu1 %v12061_v44  ;;  %v1886_v51 = vsel %vm22510_vm13, %v13713_v16, %v22447_v52  ;;  %v12071_v44 = vpack.c.bf16 %v17386_v12, %v17164_v6  ;;  %v17442_v52 = vsel %vm155_vm0, %v13487_v58, %v13488_v54  ;;  %v17448_v6 = vsel %vm155_vm0, %v13547_v41, %v13548_v63  ;;  %v22797_v58 = vld [vmem:[#allocation49_spill] sm:$0xff] }
 0x2fb   :  { %v17428_v59 = vpop.permute.xlu0 %13800  ;;  %v12065_v34 = vpack.c.bf16 %v1886_v51, %v1883_v26  ;;  %v13758_v26 = vunpack.i.h.bf16 %v17196_v4  ;;  %v17451_v12 = vsel %vm155_vm0, %v13488_v54, %v13547_v41  ;;  %v1882_v16 = vsel %vm22510_vm13, %v13592_v23, %v13593_v15 }
 0x2fc   :  { %22795 = vst [vmem:[#allocation35_spill] sm:$0xff] %v17428_v59  ;;  %14030 = vrot.lane.b32.xlu1 %v16675_v21, %s15968_s27  ;;  %v13658_v51 = vunpack.i.h.bf16 %v22796_v2  ;;  %v13598_v55 = vunpack.i.h.bf16 %v22797_v58  ;;  %v12067_v20 = vpack.c.bf16 %v1885_v0, %v1882_v16  ;;  %v17462_v41 = vsel %vm256_vm1, %v13552_v39, %v13553_v28  ;;  %v22802_v16 = vld [vmem:[#allocation34_spill] sm:$0xff] }
 0x2fd   :  { %14065 = vrot.lane.b32.xlu0 %v16669_v14, %s15967_s26  ;;  %12064 = vmatpush1.bf16.msra.mxu1 %v12063_v62  ;;  %v13638_v62 = vunpack.i.h.bf16 %v17020_v25  ;;  %v13492_v15 = vunpack.i.l.bf16 %v22798_v13  ;;  %v13718_v54 = vunpack.i.h.bf16 %v17349_v45  ;;  %v1584_v0 = vsel %vm1572_vm9, %v22800_v49, %v13758_v26 }
 0x2fe   :  { %v17457_v40 = vpop.permute.xlu1 %13730  ;;  %12066 = vmatprep.subr.bf16.mxu1 %v12065_v34  ;;  %v13558_v34 = vunpack.i.h.bf16 %v22799_v38  ;;  %v13717_v28 = vunpack.i.l.bf16 %v17349_v45  ;;  %v1985_v3 = vsel %vm22504_vm10, %v13657_v36, %v13658_v51  ;;  %v1984_v4 = vsel %vm22504_vm10, %v13598_v55, %v13657_v36 }
 0x2ff   :  { %v13811_v63 = vpop.permute.xlu0 %13810  ;;  %v22805_v45 = vunpack.i.l.bf16 %v17020_v25  ;;  %v12253_v51 = vpack.c.bf16 %v17448_v6, %v17199_v37  ;;  %v17498_v25 = vsel %vm256_vm1, %v13493_v29, %v13552_v39 }
 0x300   :  { %v13813_v23 = vunpack.i.h.bf16 %v13811_v63  ;;  %v13812_v2 = vunpack.i.l.bf16 %v13811_v63  ;;  %14045 = vrot.lane.b32.xlu1 %v16683_v42, %s15968_s27  ;;  %v22803_v63 = vld [vmem:[#allocation33_spill] sm:$0xff] }
 0x301   :  { %14070 = vrot.lane.b32.xlu0 %v16669_v14, %s15968_s27  ;;  %12068 = vmatpush1.bf16.msra.mxu1 %v12067_v20  ;;  %v22804_v59 = vpack.c.bf16 %v22802_v16, %v22803_v63  ;;  %v1581_v26 = vsel %vm1572_vm9, %v22805_v45, %v13638_v62  ;;  %v13597_v20 = vunpack.i.l.bf16 %v22797_v58  ;;  %v22806_v62 = vld [vmem:[#allocation50_spill] sm:$0xff]  ;;  %v22808_v63 = vld [vmem:[#allocation64_spill] sm:$0xff]  ;;  %v22811_v45 = vld [vmem:[#allocation67_spill] sm:$0xff] }
 0x302   :  { %v17476_v13 = vpop.permute.xlu1 %13735  ;;  %v1988_v11 = vsel %vm22504_vm10, %v13812_v2, %v13813_v23  ;;  %v1987_v49 = vsel %vm22504_vm10, %v13718_v54, %v13812_v2  ;;  %v13663_v23 = vunpack.i.h.bf16 %v22806_v62  ;;  %v13662_v58 = vunpack.i.l.bf16 %v22806_v62 }
 0x303   :  { %22801 = vst [vmem:[#allocation47_spill] sm:$0xff] %v17476_v13  ;;  %12070 = vmatprep.subr.bf16.mxu1 %v22804_v59  ;;  %v17489_v46 = vpop.permute.xlu0 %13815  ;;  %v12241_v13 = vpack.c.bf16 %v1988_v11, %v1985_v3  ;;  %v12073_v18 = vpack.c.bf16 %v1987_v49, %v1984_v4  ;;  %v12243_v59 = vpack.c.bf16 %v1584_v0, %v1581_v26  ;;  %v13773_v3 = vunpack.i.h.bf16 %v17265_v5  ;;  %v22807_v0 = vld [vmem:[#allocation51_spill] sm:$0xff]  ;;  %v22818_v26 = vld [vmem:[#allocation41_spill] sm:$0xff] }
 0x304   :  { %14050 = vrot.lane.b32.xlu1 %v16691_v43, %s15968_s27  ;;  %v1986_v11 = vsel %vm22504_vm10, %v13717_v28, %v13718_v54  ;;  %v17507_v2 = vsel %vm256_vm1, %v13492_v15, %v13493_v29  ;;  %v13603_v16 = vunpack.i.h.bf16 %v22807_v0  ;;  %v22809_v28 = vunpack.i.l.bf16 %v22799_v38 }
 0x305   :  { %12242 = vmatprep.subr.bf16.mxu0 %v12241_v13  ;;  %14075 = vrot.lane.b32.xlu0 %v16535_v32, %s22524_s29  ;;  %v13643_v29 = vunpack.i.h.bf16 %v17028_v47  ;;  %v1983_v15 = vsel %vm22504_vm10, %v13597_v20, %v13598_v55  ;;  %v22810_v49 = vpack.c.bf16 %v17398_v27, %v17175_v50  ;;  %v13722_v55 = vunpack.i.l.bf16 %v17390_v48  ;;  %v22813_v27 = vld [vmem:[#allocation66_spill] sm:$0xff] }
 0x306   :  { %12072 = vmatpush1.bf16.msra.mxu1 %v12071_v44  ;;  %12244 = vmatpush3.bf16.msra.mxu0 %v12243_v59  ;;  %v17510_v39 = vpop.permute.xlu1 %13740  ;;  %v17519_v13 = vsel %vm357_vm2, %v22809_v28, %v13558_v34  ;;  %v13723_v59 = vunpack.i.h.bf16 %v17390_v48  ;;  %v12075_v34 = vpack.c.bf16 %v1986_v11, %v1983_v15  ;;  %v22812_v28 = vunpack.i.l.bf16 %v17265_v5 }
 0x307   :  { %12074 = vmatprep.subr.bf16.mxu1 %v12073_v18  ;;  %v13826_v44 = vpop.permute.xlu0 %13825  ;;  %12246 = vmatprep.subr.bf16.mxu0 %v22810_v49  ;;  %v2086_v50 = vsel %vm22458_vm14, %v13662_v58, %v13663_v23  ;;  %v22814_v49 = vld [vmem:[#allocation40_spill] sm:$0xff]  ;;  %v22815_v11 = vpack.c.bf16 %v17327_v60, %v17118_v8  ;;  %v2085_v48 = vsel %vm22458_vm14, %v13603_v16, %v13662_v58  ;;  %v22816_v23 = vunpack.i.l.bf16 %v17028_v47 }
 0x308   :  { %v13828_v62 = vunpack.i.h.bf16 %v13826_v44  ;;  %v13827_v54 = vunpack.i.l.bf16 %v13826_v44  ;;  %14080 = vrot.lane.b32.xlu1 %v16675_v21, %s22524_s29  ;;  %v1685_v18 = vsel %vm22497_vm11, %v22812_v28, %v13773_v3  ;;  %v13498_v44 = vunpack.i.h.bf16 %v22814_v49 }
 0x309   :  { %14085 = vrot.lane.b32.xlu0 %v16687_v1, %s22524_s29  ;;  %v1682_v28 = vsel %vm22497_vm11, %v22816_v23, %v13643_v29  ;;  %v13602_v20 = vunpack.i.l.bf16 %v22807_v0  ;;  %v13563_v58 = vunpack.i.h.bf16 %v22818_v26  ;;  %v22819_v29 = vld [vmem:[#allocation52_spill] sm:$0xff]  ;;  %vm22517_vm11 = vcmask 719872  }
 0x30a   :  { %12076 = vmatpush1.bf16.msra.mxu1 %v12075_v34  ;;  %12248 = vmatpush3.bf16.msra.mxu0 %v22815_v11  ;;  %v17544_v5 = vpop.permute.xlu1 %13745  ;;  %v2089_v3 = vsel %vm22458_vm14, %v13827_v54, %v13828_v62  ;;  %v2088_v15 = vsel %vm22458_vm14, %v13723_v59, %v13827_v54  ;;  %v22817_v34 = vpack.c.bf16 %v17414_v53, %v17191_v56  ;;  %v13497_v62 = vunpack.i.l.bf16 %v22814_v49 }
 0x30b   :  { %v17556_v8 = vpop.permute.xlu0 %13830  ;;  %v12249_v60 = vpack.c.bf16 %v2089_v3, %v2086_v50  ;;  %v12081_v11 = vpack.c.bf16 %v2088_v15, %v2085_v48  ;;  %v13648_v54 = vunpack.i.h.bf16 %v17036_v61  ;;  %v12251_v47 = vpack.c.bf16 %v1685_v18, %v1682_v28  ;;  %v22820_v3 = vld [vmem:[#allocation42_spill] sm:$0xff]  ;;  %v22821_v15 = vld [vmem:[#allocation53_spill] sm:$0xff] }
 0x30c   :  { %12078 = vmatprep.subr.bf16.mxu1 %v22817_v34  ;;  %14090 = vrot.lane.b32.xlu1 %v16683_v42, %s22524_s29  ;;  %v13668_v0 = vunpack.i.h.bf16 %v22819_v29  ;;  %v13667_v23 = vunpack.i.l.bf16 %v22819_v29  ;;  %v13788_v56 = vunpack.i.h.bf16 %v17330_v22  ;;  %v2087_v53 = vsel %vm22458_vm14, %v13722_v55, %v13723_v59  ;;  %v22824_v55 = vld [vmem:[#allocation43_spill] sm:$0xff] }
 0x30d   :  { %12250 = vmatprep.subr.bf16.mxu0 %v12249_v60  ;;  %14095 = vrot.lane.b32.xlu0 %v16669_v14, %s22524_s29  ;;  %v13562_v50 = vunpack.i.l.bf16 %v22818_v26  ;;  %v13503_v48 = vunpack.i.h.bf16 %v22820_v3  ;;  %v13608_v34 = vunpack.i.h.bf16 %v22821_v15  ;;  %v22822_v18 = vpack.c.bf16 %v17407_v7, %v17167_v10 }
 0x30e   :  { %12252 = vmatpush3.bf16.msra.mxu0 %v12251_v47  ;;  %v17575_v28 = vpop.permute.xlu1 %13750  ;;  %v22823_v29 = vunpack.i.l.bf16 %v22799_v38  ;;  %v13502_v26 = vunpack.i.l.bf16 %v22820_v3  ;;  %v13568_v60 = vunpack.i.h.bf16 %v22824_v55  ;;  %v22460_v4 = vunpack.i.l.bf16 %v22824_v55 }
 0x30f   :  { %12080 = vmatpush1.bf16.msra.mxu1 %v22822_v18  ;;  %v2084_v36 = vsel %vm22458_vm14, %v13602_v20, %v13603_v16  ;;  %v13841_v10 = vpop.permute.xlu0 %13840  ;;  %12254 = vmatprep.subr.bf16.mxu0 %v12253_v51  ;;  %v13728_v38 = vunpack.i.h.bf16 %v17417_v9  ;;  %v22825_v18 = vunpack.i.l.bf16 %v17036_v61  ;;  %v22826_v16 = vunpack.i.l.bf16 %v17330_v22 }
 0x310   :  { %v17582_v59 = vsel %vm357_vm2, %v13498_v44, %v22823_v29  ;;  %12082 = vmatprep.subr.bf16.mxu1 %v12081_v11  ;;  %v13843_v7 = vunpack.i.h.bf16 %v13841_v10  ;;  %v13842_v47 = vunpack.i.l.bf16 %v13841_v10  ;;  %14100 = vrot.lane.b32.xlu1 %v16691_v43, %s22524_s29  ;;  %v12083_v3 = vpack.c.bf16 %v2087_v53, %v2084_v36 }
 0x311   :  { %v1783_v29 = vsel %vm22489_vm12, %v22825_v18, %v13648_v54  ;;  %v1786_v20 = vsel %vm22489_vm12, %v22826_v16, %v13788_v56  ;;  %v13727_v11 = vunpack.i.l.bf16 %v17417_v9  ;;  %14105 = vrot.lane.b32.xlu0 %v16535_v32, %s22522_s8  ;;  %v2186_v37 = vsel %vm155_vm0, %v13667_v23, %v13668_v0  ;;  %v22828_v54 = vld [vmem:[#allocation54_spill] sm:$0xff]  ;;  %v22832_v18 = vld [vmem:[#allocation44_spill] sm:$0xff] }
 0x312   :  { %v13607_v6 = vunpack.i.l.bf16 %v22821_v15  ;;  %v22827_v61 = vpack.c.bf16 %v17338_v33, %v17136_v30  ;;  %v17608_v51 = vpop.permute.xlu1 %13765  ;;  %v2189_v22 = vsel %vm155_vm0, %v13842_v47, %v13843_v7  ;;  %v2185_v36 = vsel %vm155_vm0, %v13608_v34, %v13667_v23 }
 0x313   :  { %12084 = vmatpush1.bf16.msra.mxu1 %v12083_v3  ;;  %v2188_v9 = vsel %vm155_vm0, %v13728_v38, %v13842_v47  ;;  %v13673_v56 = vunpack.i.h.bf16 %v22828_v54  ;;  %v13672_v53 = vunpack.i.l.bf16 %v22828_v54  ;;  %v22829_v0 = vpack.c.bf16 %v17451_v12, %v17202_v31  ;;  %v17618_v15 = vpop.permute.xlu0 %13845  ;;  %v22830_v47 = vld [vmem:[#allocation69_spill] sm:$0xff] }
 0x314   :  { %12256 = vmatpush3.bf16.msra.mxu0 %v22827_v61  ;;  %v12257_v30 = vpack.c.bf16 %v2189_v22, %v2186_v37  ;;  %v12089_v33 = vpack.c.bf16 %v2188_v9, %v2185_v36  ;;  %v17623_v10 = vsel %vm357_vm2, %v13497_v62, %v13498_v44  ;;  %v17626_v23 = vsel %vm22471_vm15, %v13562_v50, %v13563_v58  ;;  %v22831_v44 = vld [vmem:[#allocation71_spill] sm:$0xff] }
 0x315   :  { %12086 = vmatprep.subr.bf16.mxu1 %v22829_v0  ;;  %14110 = vrot.lane.b32.xlu1 %v16675_v21, %s22522_s8  ;;  %v12259_v7 = vpack.c.bf16 %v1786_v20, %v1783_v29  ;;  %v12271_v31 = vpack.c.bf16 %v17519_v13, %v22830_v47  ;;  %v17633_v12 = vsel %vm22471_vm15, %v13502_v26, %v13503_v48  ;;  %v13798_v3 = vunpack.i.h.bf16 %v17395_v35  ;;  %v22833_v26 = vld [vmem:[#allocation55_spill] sm:$0xff]  ;;  %v22836_v0 = vld [vmem:[#allocation56_spill] sm:$0xff]  ;;  %v22859_v47 = vld [vmem:[#allocation29_spill] sm:$0xff] }
 0x316   :  { %v2187_v49 = vsel %vm155_vm0, %v13727_v11, %v13728_v38  ;;  %12258 = vmatprep.subr.bf16.mxu0 %v12257_v30  ;;  %14115 = vrot.lane.b32.xlu0 %v16687_v1, %s22522_s8  ;;  %v12101_v62 = vpack.c.bf16 %v17582_v59, %v22831_v44  ;;  %v17644_v58 = vsel %vm22481_vm8, %v22460_v4, %v13568_v60  ;;  %v22459_v29 = vunpack.i.h.bf16 %v22832_v18  ;;  %v17651_v38 = vpop.permute.xlu1 %13780  ;;  %v22855_v4 = vld [vmem:[#allocation35_spill] sm:$0xff] }
 0x317   :  { %v13613_v16 = vunpack.i.h.bf16 %v22833_v26  ;;  %v22834_v20 = vpack.c.bf16 %v17442_v52, %v22808_v63  ;;  %v17654_v11 = vsel %vm22471_vm15, %v13503_v48, %v13562_v50  ;;  %v13507_v37 = vunpack.i.l.bf16 %v22832_v18  ;;  %v13851_v22 = vpop.permute.xlu0 %13850  ;;  %v22858_v13 = vld [vmem:[#allocation27_spill] sm:$0xff] }
 0x318   :  { %12260 = vmatpush3.bf16.msra.mxu0 %v12259_v7  ;;  %v13653_v61 = vunpack.i.h.bf16 %v22791_v57  ;;  %v2184_v60 = vsel %vm155_vm0, %v13607_v6, %v13608_v34  ;;  %v22835_v36 = vpack.c.bf16 %v17462_v41, %v17205_v19  ;;  %v2286_v52 = vsel %vm256_vm1, %v13672_v53, %v13673_v56 }
 0x319   :  { %12088 = vmatpush1.bf16.msra.mxu1 %v22834_v20  ;;  %v13733_v63 = vunpack.i.h.bf16 %v17457_v40  ;;  %v13853_v9 = vunpack.i.h.bf16 %v13851_v22  ;;  %v13852_v54 = vunpack.i.l.bf16 %v13851_v22  ;;  %14120 = vrot.lane.b32.xlu1 %v16683_v42, %s22522_s8  ;;  %v12091_v50 = vpack.c.bf16 %v2187_v49, %v2184_v60  ;;  %v22841_v60 = vld [vmem:[#allocation68_spill] sm:$0xff] }
 0x31a   :  { %12090 = vmatprep.subr.bf16.mxu1 %v12089_v33  ;;  %12262 = vmatprep.subr.bf16.mxu0 %v22835_v36  ;;  %v13612_v48 = vunpack.i.l.bf16 %v22833_v26  ;;  %v13678_v34 = vunpack.i.h.bf16 %v22836_v0  ;;  %v22837_v6 = vunpack.i.l.bf16 %v17395_v35  ;;  %v13732_v19 = vunpack.i.l.bf16 %v17457_v40  ;;  %v17678_v33 = vpop.permute.xlu1 %13805  ;;  %v22842_v36 = vld [vmem:[#allocation73_spill] sm:$0xff] }
 0x31b   :  { %14125 = vrot.lane.b32.xlu0 %v16669_v14, %s22522_s8  ;;  %v13677_v41 = vunpack.i.l.bf16 %v22836_v0  ;;  %v22838_v56 = vpack.c.bf16 %v17341_v17, %v17142_v24  ;;  %v2289_v7 = vsel %vm256_vm1, %v13852_v54, %v13853_v9  ;;  %v2285_v35 = vsel %vm256_vm1, %v13613_v16, %v13672_v53  ;;  %v17689_v20 = vpop.permute.xlu0 %13855  ;;  %v22843_v9 = vld [vmem:[#allocation74_spill] sm:$0xff] }
 0x31c   :  { %v1887_v30 = vsel %vm22510_vm13, %v22837_v6, %v13798_v3  ;;  %v2288_v3 = vsel %vm256_vm1, %v13733_v63, %v13852_v54  ;;  %v22839_v40 = vunpack.i.l.bf16 %v22791_v57  ;;  %v22840_v26 = vpack.c.bf16 %v17498_v25, %v22811_v45  ;;  %v22844_v54 = vld [vmem:[#allocation70_spill] sm:$0xff]  ;;  %v22845_v45 = vld [vmem:[#allocation76_spill] sm:$0xff] }
 0x31d   :  { %12092 = vmatpush1.bf16.msra.mxu1 %v12091_v50  ;;  %12264 = vmatpush3.bf16.msra.mxu0 %v22838_v56  ;;  %v12265_v24 = vpack.c.bf16 %v2289_v7, %v2286_v52  ;;  %v12097_v17 = vpack.c.bf16 %v2288_v3, %v2285_v35  ;;  %v13778_v50 = vunpack.i.h.bf16 %v22845_v45  ;;  %v22461_v52 = vunpack.i.l.bf16 %v22845_v45  ;;  %v22850_v56 = vld [vmem:[#allocation26_spill] sm:$0xff] }
 0x31e   :  { %v1884_v49 = vsel %vm22510_vm13, %v22839_v40, %v13653_v61  ;;  %12094 = vmatprep.subr.bf16.mxu1 %v22840_v26  ;;  %14130 = vrot.lane.b32.xlu1 %v16691_v43, %s22522_s8  ;;  %v2287_v6 = vsel %vm256_vm1, %v13732_v19, %v13733_v63  ;;  %v17711_v7 = vsel %vm22481_vm8, %v13507_v37, %v22459_v29  ;;  %v17720_v19 = vpop.permute.xlu1 %13820  ;;  %v1480_v40 = vld [vmem:[%s22359_s5] sm:$0xff]  ;;  %vm22475_vm14 = vcmask 1031168   ;;  %v17759_v29 = vld [vmem:[%s22359_s5 + $0x38] sm:$0xff] }
 0x31f   :  { %v12267_v53 = vpack.c.bf16 %v1887_v30, %v1884_v49  ;;  %12266 = vmatprep.subr.bf16.mxu0 %v12265_v24  ;;  %14135 = vrot.lane.b32.xlu0 %v16535_v32, %s22520_s11  ;;  %v22846_v30 = vld [vmem:[#allocation77_spill] sm:$0xff]  ;;  %v2284_v35 = vsel %vm256_vm1, %v13612_v48, %v13613_v16  ;;  %v2386_v3 = vsel %vm357_vm2, %v13677_v41, %v13678_v34  ;;  %v22849_v16 = vld [vmem:[#allocation72_spill] sm:$0xff]  ;;  %v13866_v34 = vpop.permute.xlu0 %13865  ;;  %vm22590_vm12 = vcmask 728064  }
 0x320   :  { %v22847_v63 = vpack.c.bf16 %v17507_v2, %v22813_v27  ;;  %v22848_v49 = vld [vmem:[#allocation57_spill] sm:$0xff]  ;;  %v13763_v48 = vunpack.i.h.bf16 %v22849_v16  ;;  %v22851_v2 = vld [vmem:[#allocation10_spill] sm:$0xff]  ;;  %v13868_v25 = vunpack.i.h.bf16 %v13866_v34  ;;  %v13867_v61 = vunpack.i.l.bf16 %v13866_v34 }
 0x321   :  { %12268 = vmatpush3.bf16.msra.mxu0 %v12267_v53  ;;  %v13618_v37 = vunpack.i.h.bf16 %v22848_v49  ;;  %v13617_v26 = vunpack.i.l.bf16 %v22848_v49  ;;  %v22852_v27 = vpack.c.bf16 %v22850_v56, %v22851_v2  ;;  %v22853_v53 = vld [vmem:[#allocation47_spill] sm:$0xff]  ;;  %v12099_v57 = vpack.c.bf16 %v2287_v6, %v2284_v35  ;;  %v22854_v49 = vld [vmem:[#allocation58_spill] sm:$0xff]  ;;  %v17743_v56 = vld [vmem:[%s22359_s5 + $0x40] sm:$0xff] }
 0x322   :  { %12096 = vmatpush1.bf16.msra.mxu1 %v22847_v63  ;;  %v13738_v63 = vunpack.i.h.bf16 %v22853_v53  ;;  %14140 = vrot.lane.b32.xlu1 %v16675_v21, %s22520_s11  ;;  %v13683_v22 = vunpack.i.h.bf16 %v22854_v49  ;;  %v2809_v34 = vsel %vm583_vm4, %v22461_v52, %v13778_v50  ;;  %v13737_v35 = vunpack.i.l.bf16 %v22853_v53  ;;  %v22857_v52 = vld [vmem:[#allocation80_spill] sm:$0xff] }
 0x323   :  { %12098 = vmatprep.subr.bf16.mxu1 %v12097_v17  ;;  %12270 = vmatprep.subr.bf16.mxu0 %v22852_v27  ;;  %v13803_v17 = vunpack.i.h.bf16 %v22855_v4  ;;  %v2389_v2 = vsel %vm357_vm2, %v13867_v61, %v13868_v25  ;;  %v17754_v27 = vpop.permute.xlu1 %13835  ;;  %v13793_v6 = vunpack.i.h.bf16 %v22857_v52  ;;  %v22468_v53 = vunpack.i.l.bf16 %v22857_v52 }
 0x324   :  { %4706 = vmatmul.mubr.f32.vlgmr.msra.gmra.mrb[8].mxu0 %v1480_v40  ;;  %14145 = vrot.lane.b32.xlu0 %v16687_v1, %s22520_s11  ;;  %22856 = vst [vmem:[#allocation36_spill] sm:$0xff] %v17754_v27  ;;  %v2388_v50 = vsel %vm357_vm2, %v13738_v63, %v13867_v61  ;;  %v12275_v25 = vpack.c.bf16 %v2389_v2, %v2386_v3  ;;  %v22861_v61 = vld [vmem:[#allocation45_spill] sm:$0xff]  ;;  %v22862_v44 = vunpack.i.l.bf16 %v22849_v16  ;;  %v22864_v3 = vunpack.i.h.bf16 %v22832_v18  ;;  %v22873_v18 = vld [vmem:[#allocation78_spill] sm:$0xff] }
 0x325   :  { %12272 = vmatpush3.bf16.msra.mxu0 %v12271_v31  ;;  %v22860_v31 = vpack.c.bf16 %v22858_v13, %v22859_v47  ;;  %v2385_v24 = vsel %vm357_vm2, %v13618_v37, %v13677_v41  ;;  %v13573_v27 = vunpack.i.h.bf16 %v22861_v61  ;;  %4710 = vmatprep.mubr.f32.mxu0 %v17743_v56  ;;  %v22863_v13 = vunpack.i.l.bf16 %v22824_v55  ;;  %v17798_v55 = vld [vmem:[%s22359_s5 + $0x78] sm:$0xff] }
 0x326   :  { %12100 = vmatpush1.bf16.msra.mxu1 %v12099_v57  ;;  %v17767_v57 = vpop.permute.xlu0 %13870  ;;  %14150 = vrot.lane.b32.xlu1 %v16683_v42, %s22520_s11  ;;  %v12105_v59 = vpack.c.bf16 %v2388_v50, %v2385_v24  ;;  %v2384_v41 = vsel %vm357_vm2, %v13617_v26, %v13618_v37  ;;  %v13833_v2 = vunpack.i.h.bf16 %v17556_v8  ;;  %v22467_v47 = vunpack.i.l.bf16 %v17556_v8 }
 0x327   :  { %12102 = vmatprep.subr.bf16.mxu1 %v12101_v62  ;;  %12274 = vmatprep.subr.bf16.mxu0 %v22860_v31  ;;  %v2806_v62 = vsel %vm583_vm4, %v22862_v44, %v13763_v48  ;;  %v17787_v0 = vsel %vm22481_vm8, %v22864_v3, %v22863_v13  ;;  %v22865_v48 = vunpack.i.l.bf16 %v22854_v49  ;;  %v2387_v26 = vsel %vm357_vm2, %v13737_v35, %v13738_v63  ;;  %v17805_v50 = vpop.permute.xlu1 %13860 }
 0x328   :  { %4711 = vmatmul.mubr.f32.gmra.mrb[10].mxu0 %v17759_v29  ;;  %14155 = vrot.lane.b32.xlu0 %v16669_v14, %s22520_s11  ;;  %v12277_v24 = vpack.c.bf16 %v2809_v34, %v2806_v62  ;;  %v17810_v34 = vld [vmem:[%s22359_s5 + $0x70] sm:$0xff]  ;;  %v22866_v31 = vunpack.i.l.bf16 %v22855_v4  ;;  %v22867_v62 = vld [vmem:[#allocation59_spill] sm:$0xff]  ;;  %v2812_v35 = vsel %vm583_vm4, %v22468_v53, %v13793_v6  ;;  %v22872_v53 = vpack.c.bf16 %v17654_v11, %v22843_v9 }
 0x329   :  { %v2487_v37 = vsel %vm22471_vm15, %v22865_v48, %v13683_v22  ;;  %4350 = vmatmul.mubr.f32.vlgmr.msra.gmra.mrb[12].mxu1 %v1480_v40  ;;  %12276 = vmatpush3.bf16.msra.mxu0 %v12275_v25  ;;  %v13623_v13 = vunpack.i.h.bf16 %v22867_v62  ;;  %v13622_v3 = vunpack.i.l.bf16 %v22867_v62  ;;  %v13818_v22 = vunpack.i.h.bf16 %v17489_v46  ;;  %v17834_v6 = vld [vmem:[%s22359_s5 + $0xb0] sm:$0xff] }
 0x32a   :  { %v2815_v44 = vsel %vm583_vm4, %v22866_v31, %v13803_v17  ;;  %v22868_v40 = vpack.c.bf16 %v17623_v10, %v22841_v60  ;;  %v13881_v63 = vpop.permute.xlu0 %13880  ;;  %12278 = vmatprep.subr.bf16.mxu0 %v12277_v24  ;;  %v13817_v25 = vunpack.i.l.bf16 %v17489_v46  ;;  %v13743_v17 = vunpack.i.h.bf16 %v17510_v39  ;;  %4715 = vmatprep.mubr.f32.mxu0 %v17798_v55  ;;  %v15897_v9 = vld [vmem:[%s22354_s2 + $0x70] sm:$0xff] }
 0x32b   :  { %v13883_v48 = vunpack.i.h.bf16 %v13881_v63  ;;  %v13882_v31 = vunpack.i.l.bf16 %v13881_v63  ;;  %v13742_v62 = vunpack.i.l.bf16 %v17510_v39  ;;  %14160 = vrot.lane.b32.xlu1 %v16691_v43, %s22520_s11  ;;  %v12107_v10 = vpack.c.bf16 %v2387_v26, %v2384_v41  ;;  %v17847_v26 = vpop.permute.xlu1 %13875  ;;  %4355 = vmatprep.mubr.f32.mxu1 %v17743_v56 }
 0x32c   :  { %12104 = vmatpush1.bf16.msra.mxu1 %v22868_v40  ;;  %4716 = vmatmul.mubr.f32.gmra.mrb[12].mxu0 %v17810_v34  ;;  %v12281_v60 = vpack.c.bf16 %v2815_v44, %v2812_v35  ;;  %v13858_v24 = vunpack.i.h.bf16 %v17689_v20  ;;  %v13857_v39 = vunpack.i.l.bf16 %v17689_v20  ;;  %v22869_v41 = vpack.c.bf16 %v17626_v23, %v22842_v36 }
 0x32d   :  { %12106 = vmatprep.subr.bf16.mxu1 %v12105_v59  ;;  %v2910_v59 = vsel %vm22475_vm14, %v22467_v47, %v13833_v2  ;;  %v2490_v40 = vsel %vm22471_vm15, %v13882_v31, %v13883_v48  ;;  %14165 = vrot.lane.b32.xlu0 %v16535_v32, %s22518_s10  ;;  %v17852_v2 = vld [vmem:[%s22359_s5 + $0xa8] sm:$0xff]  ;;  %v2489_v44 = vsel %vm22471_vm15, %v13743_v17, %v13882_v31  ;;  %v13848_v63 = vunpack.i.h.bf16 %v17618_v15 }
 0x32e   :  { %12280 = vmatpush3.bf16.msra.mxu0 %v22869_v41  ;;  %v13847_v35 = vunpack.i.l.bf16 %v17618_v15  ;;  %v17857_v48 = vpop.permute.xlu0 %13885  ;;  %v12283_v32 = vpack.c.bf16 %v2490_v40, %v2487_v37  ;;  %v22870_v23 = vunpack.i.l.bf16 %v22854_v49  ;;  %v22871_v41 = vld [vmem:[#allocation46_spill] sm:$0xff]  ;;  %4720 = vmatprep.mubr.f32.mxu0 %v17834_v6  ;;  %v12117_v37 = vpack.c.bf16 %v17787_v0, %v22873_v18 }
 0x32f   :  { %12282 = vmatprep.subr.bf16.mxu0 %v12281_v60  ;;  %v13513_v47 = vunpack.i.h.bf16 %v22871_v41  ;;  %v22874_v60 = vld [vmem:[#allocation60_spill] sm:$0xff]  ;;  %14170 = vrot.lane.b32.xlu1 %v16675_v21, %s22518_s10  ;;  %v2488_v0 = vsel %vm22471_vm15, %v13742_v62, %v13743_v17  ;;  %v13888_v18 = vunpack.i.h.bf16 %v17857_v48  ;;  %v17890_v21 = vpop.permute.xlu1 %13890  ;;  %v13748_v17 = vunpack.i.h.bf16 %v17544_v5 }
 0x330   :  { %12108 = vmatpush1.bf16.msra.mxu1 %v12107_v10  ;;  %v2486_v36 = vsel %vm22471_vm15, %v13623_v13, %v22870_v23  ;;  %v2907_v10 = vsel %vm22475_vm14, %v13817_v25, %v13818_v22  ;;  %v13688_v49 = vunpack.i.h.bf16 %v22874_v60  ;;  %v13687_v40 = vunpack.i.l.bf16 %v22874_v60  ;;  %4721 = vmatmul.mubr.f32.gmra.mrb[14].mxu0 %v17852_v2 }
 0x331   :  { %12110 = vmatprep.subr.bf16.mxu1 %v22872_v53  ;;  %v12113_v31 = vpack.c.bf16 %v2489_v44, %v2486_v36  ;;  %v12285_v11 = vpack.c.bf16 %v2910_v59, %v2907_v10  ;;  %v15898_v53 = vld [vmem:[%s22354_s2 + $0x98] sm:$0xff]  ;;  %v13887_v44 = vunpack.i.l.bf16 %v17857_v48  ;;  %14175 = vrot.lane.b32.xlu0 %v16687_v1, %s22518_s10  ;;  %v2916_v59 = vsel %vm22475_vm14, %v13857_v39, %v13858_v24  ;;  %v22875_v36 = vld [vmem:[#allocation62_spill] sm:$0xff] }
 0x332   :  { %v17883_v22 = vpack.i.bf16 %v15898_v53, %v15897_v9  ;;  %12284 = vmatpush3.bf16.msra.mxu0 %v12283_v32  ;;  %v2485_v23 = vsel %vm22471_vm15, %v13622_v3, %v13623_v13  ;;  %v13628_v10 = vunpack.i.h.bf16 %v22875_v36  ;;  %v22876_v62 = vpack.c.bf16 %v17633_v12, %v22844_v54  ;;  %v13901_v60 = vpop.permute.xlu0 %13900  ;;  %4356 = vmatmul.mubr.f32.gmra.mrb[14].mxu1 %v17759_v29 }
 0x333   :  { %12286 = vmatprep.subr.bf16.mxu0 %v12285_v11  ;;  %v2913_v1 = vsel %vm22475_vm14, %v13847_v35, %v13848_v63  ;;  %v13873_v32 = vunpack.i.h.bf16 %v17767_v57  ;;  %v13872_v24 = vunpack.i.l.bf16 %v17767_v57  ;;  %v13903_v13 = vunpack.i.h.bf16 %v13901_v60  ;;  %4361 = vmatprep.mubr.f32.mxu1 %v17798_v55  ;;  %v22882_v55 = vld [vmem:[#allocation63_spill] sm:$0xff] }
 0x334   :  { %12112 = vmatpush1.bf16.msra.mxu1 %v22876_v62  ;;  %v13902_v3 = vunpack.i.l.bf16 %v13901_v60  ;;  %v2588_v9 = vsel %vm22481_vm8, %v13687_v40, %v13688_v49  ;;  %vm3005_vm15 = vcmask 900096   ;;  %14180 = vrot.lane.b32.xlu1 %v17883_v22, %s15966_s18  ;;  %v12115_v12 = vpack.c.bf16 %v2488_v0, %v2485_v23  ;;  %v22880_v60 = vld [vmem:[#allocation31_spill] sm:$0xff] }
 0x335   :  { %12114 = vmatprep.subr.bf16.mxu1 %v12113_v31  ;;  %v12289_v54 = vpack.c.bf16 %v2916_v59, %v2913_v1  ;;  %v13747_v63 = vunpack.i.l.bf16 %v17544_v5  ;;  %14185 = vrot.lane.b32.xlu0 %v16683_v42, %s22518_s10  ;;  %v22877_v56 = vpack.c.bf16 %v17644_v58, %v22846_v30  ;;  %v17918_v31 = vpop.permute.xlu1 %13895  ;;  %v3011_v53 = vsel %vm3005_vm15, %v13887_v44, %v13888_v18 }
 0x336   :  { %v2591_v11 = vsel %vm22481_vm8, %v13902_v3, %v13903_v13  ;;  %v2590_v49 = vsel %vm22481_vm8, %v13748_v17, %v13902_v3  ;;  %v22878_v5 = vunpack.i.l.bf16 %v22861_v61  ;;  %v13512_v42 = vunpack.i.l.bf16 %v22871_v41  ;;  %v17930_v0 = vpop.permute.xlu0 %13905  ;;  %v15900_v61 = vld [vmem:[%s22354_s2 + $0x48] sm:$0xff]  ;;  %4362 = vmatmul.mubr.f32.gmra.mrb[16].mxu1 %v17810_v34 }
 0x337   :  { %12288 = vmatpush3.bf16.msra.mxu0 %v22877_v56  ;;  %v12291_v58 = vpack.c.bf16 %v2591_v11, %v2588_v9  ;;  %v2587_v30 = vsel %vm22481_vm8, %v13628_v10, %v13687_v40  ;;  %v13627_v59 = vunpack.i.l.bf16 %v22875_v36  ;;  %v3008_v18 = vsel %vm3005_vm15, %v13872_v24, %v13873_v32  ;;  %v22881_v40 = vld [vmem:[#allocation75_spill] sm:$0xff]  ;;  %v15899_v32 = vld [vmem:[%s22354_s2 + $0x20] sm:$0xff]  ;;  %4367 = vmatprep.mubr.f32.mxu1 %v17834_v6 }
 0x338   :  { %v2685_v29 = vsel %vm458_vm3, %v22878_v5, %v13573_v27  ;;  %12116 = vmatpush1.bf16.msra.mxu1 %v12115_v12  ;;  %12290 = vmatprep.subr.bf16.mxu0 %v12289_v54  ;;  %v12121_v23 = vpack.c.bf16 %v2590_v49, %v2587_v30  ;;  %v22879_v62 = vmov %v22878_v5  ;;  %v13387_v1 = vunpack.i.l.bf16 %v22880_v60  ;;  %v22883_v54 = vld [vmem:[#allocation65_spill] sm:$0xff]  ;;  %v22884_v56 = vld [vmem:[#allocation79_spill] sm:$0xff] }
 0x339   :  { %12118 = vmatprep.subr.bf16.mxu1 %v12117_v37  ;;  %v2684_v27 = vsel %vm458_vm3, %v13513_v47, %v22879_v62  ;;  %14190 = vrot.lane.b32.xlu1 %v16669_v14, %s22518_s10  ;;  %v12119_v37 = vpack.c.bf16 %v17711_v7, %v22881_v40  ;;  %v12293_v36 = vpack.c.bf16 %v3011_v53, %v3008_v18  ;;  %v13693_v3 = vunpack.i.h.bf16 %v22882_v55  ;;  %v17962_v7 = vpop.permute.xlu1 %13910  ;;  %v22885_v53 = vld [vmem:[#allocation81_spill] sm:$0xff] }
 0x33a   :  { %v17954_v13 = vpack.i.bf16 %v15900_v61, %v15899_v32  ;;  %v13692_v14 = vunpack.i.l.bf16 %v22882_v55  ;;  %v2589_v9 = vsel %vm22481_vm8, %v13747_v63, %v13748_v17  ;;  %14195 = vrot.lane.b32.xlu0 %v16691_v43, %s22518_s10  ;;  %v2683_v12 = vsel %vm458_vm3, %v13512_v42, %v13513_v47  ;;  %v13916_v34 = vpop.permute.xlu0 %13915  ;;  %v1483_v47 = vld [vmem:[%s22359_s5 + $0x18] sm:$0xff]  ;;  %4368 = vmatmul.mubr.f32.gmra.mrb[18].mxu1 %v17852_v2 }
 0x33b   :  { %12292 = vmatpush3.bf16.msra.mxu0 %v12291_v58  ;;  %v13633_v11 = vunpack.i.h.bf16 %v22883_v54  ;;  %v12295_v49 = vpack.c.bf16 %v2685_v29, %v22884_v56  ;;  %v12125_v5 = vpack.c.bf16 %v2684_v27, %v22885_v53  ;;  %v2586_v17 = vsel %vm22481_vm8, %v13627_v59, %v13628_v10  ;;  %4438 = vmatprep.mubr.f32.mxu1 %v1483_v47  ;;  %v22891_v53 = vld [vmem:[#allocation22_spill] sm:$0xff] }
 0x33c   :  { %12120 = vmatpush1.bf16.msra.mxu1 %v12119_v37  ;;  %12294 = vmatprep.subr.bf16.mxu0 %v12293_v36  ;;  %v13753_v43 = vunpack.i.h.bf16 %v17575_v28  ;;  %v13918_v63 = vunpack.i.h.bf16 %v13916_v34  ;;  %v13917_v58 = vunpack.i.l.bf16 %v13916_v34  ;;  %v12123_v41 = vpack.c.bf16 %v2589_v9, %v2586_v17  ;;  %v22888_v9 = vld [vmem:[#allocation12_spill] sm:$0xff] }
 0x33d   :  { %12122 = vmatprep.subr.bf16.mxu1 %v12121_v23  ;;  %14200 = vrot.lane.b32.xlu1 %v17954_v13, %s15968_s27  ;;  %v17980_v29 = vsel %vm458_vm3, %v13692_v14, %v13693_v3  ;;  %v13752_v10 = vunpack.i.l.bf16 %v17575_v28  ;;  %v17988_v6 = vpop.permute.xlu1 %13925  ;;  %v2687_v2 = vsel %vm458_vm3, %v13633_v11, %v13692_v14  ;;  %v22886_v23 = vunpack.i.h.bf16 %v22880_v60  ;;  %v22887_v14 = vld [vmem:[#allocation23_spill] sm:$0xff]  ;;  %v22890_v34 = vld [vmem:[#allocation32_spill] sm:$0xff] }
 0x33e   :  { %v17984_v42 = vsel %vm458_vm3, %v13917_v58, %v13918_v63  ;;  %14205 = vrot.lane.b32.xlu0 %v17954_v13, %s15952_s24  ;;  %v2690_v30 = vsel %vm458_vm3, %v13753_v43, %v13917_v58  ;;  %v17991_v59 = vpop.permute.xlu0 %13920  ;;  %v13632_v62 = vunpack.i.l.bf16 %v22883_v54  ;;  %4790 = vmatprep.mubr.f32.mxu0 %v1483_v47  ;;  %v13768_v55 = vunpack.i.h.bf16 %v17608_v51  ;;  %v22895_v47 = vld [vmem:[#allocation28_spill] sm:$0xff] }
 0x33f   :  { %12296 = vmatpush3.bf16.msra.mxu0 %v12295_v49  ;;  %v2680_v18 = vsel %vm458_vm3, %v13387_v1, %v22886_v23  ;;  %v12129_v27 = vpack.c.bf16 %v2690_v30, %v2687_v2  ;;  %v2689_v37 = vsel %vm458_vm3, %v13752_v10, %v13753_v43  ;;  %v13767_v54 = vunpack.i.l.bf16 %v17608_v51 }
 0x340   :  { %12124 = vmatpush1.bf16.msra.mxu1 %v12123_v41  ;;  %v12127_v40 = vpack.c.bf16 %v2683_v12, %v2680_v18  ;;  %v2686_v1 = vsel %vm458_vm3, %v13632_v62, %v13633_v11  ;;  %v22889_v12 = vpack.c.bf16 %v22887_v14, %v22888_v9  ;;  %v13453_v56 = vunpack.i.h.bf16 %v22890_v34  ;;  %v22896_v41 = vld [vmem:[#allocation25_spill] sm:$0xff] }
 0x341   :  { %12126 = vmatprep.subr.bf16.mxu1 %v12125_v5  ;;  %14210 = vrot.lane.b32.xlu1 %v17883_v22, %s15968_s27  ;;  %v18005_v36 = vpop.permute.xlu1 %13930  ;;  %v12131_v32 = vpack.c.bf16 %v2689_v37, %v2686_v1  ;;  %v13452_v49 = vunpack.i.l.bf16 %v22890_v34  ;;  %v22892_v5 = vld [vmem:[#allocation11_spill] sm:$0xff]  ;;  %v22894_v51 = vunpack.i.l.bf16 %v22845_v45  ;;  %v13783_v58 = vunpack.i.h.bf16 %v17651_v38  ;;  %v22899_v37 = vld [vmem:[#allocation30_spill] sm:$0xff]  ;;  %v22900_v1 = vld [vmem:[#allocation24_spill] sm:$0xff] }
 0x342   :  { %14215 = vrot.lane.b32.xlu0 %v17883_v22, %s15952_s24  ;;  %v18007_v60 = vpop.permute.xlu0 %13935  ;;  %v22893_v17 = vpack.c.bf16 %v22891_v53, %v22892_v5  ;;  %v22897_v10 = vpack.c.bf16 %v22895_v47, %v22896_v41  ;;  %v2807_v30 = vsel %vm583_vm4, %v13767_v54, %v13768_v55  ;;  %v22898_v2 = vunpack.i.l.bf16 %v22849_v16 }
 0x343   :  { %v2808_v63 = vsel %vm583_vm4, %v13768_v55, %v22894_v51  ;;  %v13782_v18 = vunpack.i.l.bf16 %v17651_v38  ;;  %v22902_v38 = vunpack.i.l.bf16 %v22857_v52  ;;  %v13808_v54 = vunpack.i.h.bf16 %v17678_v33 }
 0x344   :  { %12128 = vmatpush1.bf16.msra.mxu1 %v12127_v40  ;;  %v2805_v23 = vsel %vm583_vm4, %v13453_v56, %v22898_v2  ;;  %v13823_v40 = vunpack.i.h.bf16 %v17720_v19  ;;  %v13822_v34 = vunpack.i.l.bf16 %v17720_v19  ;;  %v13807_v51 = vunpack.i.l.bf16 %v17678_v33 }
 0x345   :  { %12130 = vmatprep.subr.bf16.mxu1 %v12129_v27  ;;  %14220 = vrot.lane.b32.xlu1 %v17954_v13, %s22524_s29  ;;  %v18014_v61 = vpop.permute.xlu1 %13940  ;;  %v12141_v62 = vpack.c.bf16 %v2808_v63, %v2805_v23  ;;  %v2804_v27 = vsel %vm583_vm4, %v13452_v49, %v13453_v56  ;;  %v22903_v49 = vunpack.i.l.bf16 %v22855_v4  ;;  %v2810_v5 = vsel %vm583_vm4, %v13782_v18, %v13783_v58 }
 0x346   :  { %14225 = vrot.lane.b32.xlu0 %v17954_v13, %s15953_s25  ;;  %v18017_v3 = vpop.permute.xlu0 %13945  ;;  %v12143_v9 = vpack.c.bf16 %v2807_v30, %v2804_v27  ;;  %v22904_v47 = vunpack.i.l.bf16 %v17556_v8  ;;  %v2908_v41 = vsel %vm22475_vm14, %v13822_v34, %v13823_v40  ;;  %v2906_v33 = vsel %vm22475_vm14, %v13808_v54, %v13817_v25 }
 0x347   :  { %v2905_v23 = vsel %vm22475_vm14, %v13807_v51, %v13808_v54  ;;  %v13878_v18 = vunpack.i.h.bf16 %v17847_v26  ;;  %v13863_v25 = vunpack.i.h.bf16 %v17805_v50  ;;  %v13898_v51 = vunpack.i.h.bf16 %v17918_v31 }
 0x348   :  { %12132 = vmatpush1.bf16.msra.mxu1 %v12131_v32  ;;  %v22901_v32 = vpack.c.bf16 %v22899_v37, %v22900_v1  ;;  %v2909_v4 = vsel %vm22475_vm14, %v13823_v40, %v22904_v47  ;;  %v12151_v46 = vpack.c.bf16 %v2908_v41, %v2905_v23  ;;  %v22490_v47 = vunpack.i.h.bf16 %v17930_v0 }
 0x349   :  { %12134 = vmatprep.subr.bf16.mxu1 %v22889_v12  ;;  %14230 = vrot.lane.b32.xlu1 %v17883_v22, %s22524_s29  ;;  %v18027_v11 = vpop.permute.xlu1 %13950  ;;  %v2811_v12 = vsel %vm583_vm4, %v13783_v58, %v22902_v38  ;;  %v22905_v58 = vld [vmem:[#allocation36_spill] sm:$0xff]  ;;  %v12149_v2 = vpack.c.bf16 %v2909_v4, %v2906_v33  ;;  %v13862_v38 = vunpack.i.l.bf16 %v17805_v50  ;;  %v3010_v20 = vsel %vm3005_vm15, %v13878_v18, %v13887_v44  ;;  %s23029_s29 = smov 89  }
 0x34a   :  { %14235 = vrot.lane.b32.xlu0 %v17883_v22, %s15953_s25  ;;  %v18034_v43 = vpop.permute.xlu0 %13965  ;;  %v13837_v30 = vunpack.i.l.bf16 %v22905_v58  ;;  %v3007_v50 = vsel %vm3005_vm15, %v13863_v25, %v13872_v24  ;;  %v22487_v24 = vunpack.i.h.bf16 %v17962_v7  ;;  %v13907_v4 = vunpack.i.l.bf16 %v17930_v0 }
 0x34b   :  { %v12157_v34 = vpack.c.bf16 %v3010_v20, %v3007_v50  ;;  %v13933_v50 = vunpack.i.h.bf16 %v18005_v36  ;;  %vm22514_vm8 = vcmask 736256   ;;  %vm22516_vm10 = vcmask 711680  }
 0x34c   :  { %12136 = vmatpush1.bf16.msra.mxu1 %v22893_v17  ;;  %vm22515_vm13 = vcmask 703488  }
 0x34d   :  { %12138 = vmatprep.subr.bf16.mxu1 %v22897_v10  ;;  %14240 = vrot.lane.b32.xlu1 %v17954_v13, %s22522_s8  ;;  %v13956_v45 = vpop.permute.xlu1 %13955  ;;  %v13838_v10 = vunpack.i.h.bf16 %v22905_v58  ;;  %v13923_v58 = vunpack.i.h.bf16 %v17991_v59 }
 0x34e   :  { %14245 = vrot.lane.b32.xlu0 %v17954_v13, %s15954_s28  ;;  %v13958_v55 = vunpack.i.h.bf16 %v13956_v45  ;;  %v13957_v14 = vunpack.i.l.bf16 %v13956_v45  ;;  %v18057_v16 = vpop.permute.xlu0 %13980 }
 0x34f   :  { %v2912_v37 = vsel %vm22475_vm14, %v13838_v10, %v13847_v35 }
 0x350   :  { %12140 = vmatpush1.bf16.msra.mxu1 %v22901_v32  ;;  %v2813_v56 = vsel %vm583_vm4, %v13957_v14, %v13958_v55  ;;  %v2814_v53 = vsel %vm583_vm4, %v13958_v55, %v22903_v49  ;;  %v2911_v32 = vsel %vm22475_vm14, %v13837_v30, %v13838_v10  ;;  %v13877_v55 = vunpack.i.l.bf16 %v17847_v26 }
 0x351   :  { %12142 = vmatprep.subr.bf16.mxu1 %v12141_v62  ;;  %14250 = vrot.lane.b32.xlu1 %v17883_v22, %s22522_s8  ;;  %v18073_v52 = vpop.permute.xlu1 %13960  ;;  %v12145_v17 = vpack.c.bf16 %v2814_v53, %v2811_v12  ;;  %v12147_v63 = vpack.c.bf16 %v2813_v56, %v2810_v5  ;;  %v22495_v26 = vunpack.i.l.bf16 %v17918_v31  ;;  %v11319_v56 = vld [vmem:[%s22356_s6 + $0x20] sm:$0xff]  ;;  %v13912_v49 = vunpack.i.l.bf16 %v17962_v7  ;;  %v11320_v53 = vld [vmem:[%s22356_s6 + $0x28] sm:$0xff]  ;;  %s23033_s8 = smov 88  }
 0x352   :  { %14255 = vrot.lane.b32.xlu0 %v17883_v22, %s15954_s28  ;;  %v18076_v19 = vpop.permute.xlu0 %13995  ;;  %v3009_v48 = vsel %vm3005_vm15, %v13877_v55, %v13878_v18  ;;  %v3006_v5 = vsel %vm3005_vm15, %v13862_v38, %v13863_v25  ;;  %v13922_v10 = vunpack.i.l.bf16 %v17991_v59  ;;  %v11322_v59 = vld [vmem:[%s22356_s6 + $0x38] sm:$0xff]  ;;  %v22478_v38 = vunpack.i.h.bf16 %v18014_v61 }
 0x353   :  { %v12159_v41 = vpack.c.bf16 %v3009_v48, %v3006_v5  ;;  %v3110_v18 = vsel %vm684_vm5, %v13912_v49, %v22487_v24  ;;  %v13932_v48 = vunpack.i.l.bf16 %v18005_v36  ;;  %v13947_v5 = vunpack.i.l.bf16 %v18017_v3 }
 0x354   :  { %12144 = vmatpush1.bf16.msra.mxu1 %v12143_v9 }
 0x355   :  { %12146 = vmatprep.subr.bf16.mxu1 %v12145_v17  ;;  %14260 = vrot.lane.b32.xlu1 %v17954_v13, %s22520_s11  ;;  %v13971_v8 = vpop.permute.xlu1 %13970  ;;  %v13892_v17 = vunpack.i.l.bf16 %v17890_v21 }
 0x356   :  { %14265 = vrot.lane.b32.xlu0 %v17954_v13, %s15967_s26  ;;  %v13973_v45 = vunpack.i.h.bf16 %v13971_v8  ;;  %v13972_v62 = vunpack.i.l.bf16 %v13971_v8  ;;  %v18093_v27 = vpop.permute.xlu0 %14005  ;;  %v22486_v8 = vunpack.i.h.bf16 %v17988_v6 }
 0x358   :  { %12148 = vmatpush1.bf16.msra.mxu1 %v12147_v63  ;;  %v2914_v40 = vsel %vm22475_vm14, %v13972_v62, %v13973_v45  ;;  %v2915_v1 = vsel %vm22475_vm14, %v13973_v45, %v13857_v39  ;;  %v13893_v39 = vunpack.i.h.bf16 %v17890_v21  ;;  %v11321_v21 = vld [vmem:[%s22356_s6 + $0x30] sm:$0xff]  ;;  %vm22597_vm14 = vcmask 867328  }
 0x359   :  { %12150 = vmatprep.subr.bf16.mxu1 %v12149_v2  ;;  %14270 = vrot.lane.b32.xlu1 %v17883_v22, %s22520_s11  ;;  %v18109_v14 = vpop.permute.xlu1 %13975  ;;  %v12153_v9 = vpack.c.bf16 %v2915_v1, %v2912_v37  ;;  %v12155_v35 = vpack.c.bf16 %v2914_v40, %v2911_v32  ;;  %v13927_v2 = vunpack.i.l.bf16 %v17988_v6  ;;  %v3107_v40 = vsel %vm684_vm5, %v13907_v4, %v22490_v47 }
 0x35a   :  { %14275 = vrot.lane.b32.xlu0 %v17883_v22, %s15967_s26  ;;  %v18112_v15 = vpop.permute.xlu0 %14020  ;;  %v3012_v45 = vsel %vm3005_vm15, %v13892_v17, %v13893_v39  ;;  %v3106_v37 = vsel %vm684_vm5, %v13922_v10, %v13907_v4  ;;  %v3109_v1 = vsel %vm684_vm5, %v13923_v58, %v13912_v49  ;;  %v12165_v55 = vpack.c.bf16 %v3110_v18, %v3107_v40 }
 0x35b   :  { %v14023_v12 = vunpack.i.h.bf16 %v18112_v15  ;;  %v22496_v54 = vunpack.i.l.bf16 %v18112_v15  ;;  %v12167_v49 = vpack.c.bf16 %v3109_v1, %v3106_v37  ;;  %v3112_v58 = vsel %vm684_vm5, %v13932_v48, %v13927_v2 }
 0x35c   :  { %12152 = vmatpush1.bf16.msra.mxu1 %v12151_v46  ;;  %v22472_v37 = vunpack.i.h.bf16 %v18109_v14  ;;  %v13977_v1 = vunpack.i.l.bf16 %v18109_v14 }
 0x35d   :  { %12154 = vmatprep.subr.bf16.mxu1 %v12153_v9  ;;  %14280 = vrot.lane.b32.xlu1 %v17954_v13, %s22518_s10  ;;  %v18129_v44 = vpop.permute.xlu1 %13985  ;;  %v3013_v13 = vsel %vm3005_vm15, %v13893_v39, %v22496_v54  ;;  %v3016_v57 = vsel %vm3005_vm15, %v14023_v12, %v22495_v26  ;;  %v3015_v33 = vsel %vm3005_vm15, %v13898_v51, %v14023_v12  ;;  %v18190_v39 = vld [vmem:[%s22359_s5 + $0x10] sm:$0xff]  ;;  %v22474_v51 = vunpack.i.h.bf16 %v18027_v11 }
 0x35e   :  { %14285 = vrot.lane.b32.xlu0 %v17883_v22, %s22518_s10  ;;  %v18142_v22 = vpop.permute.xlu0 %14025  ;;  %v12161_v63 = vpack.c.bf16 %v3016_v57, %v3013_v13  ;;  %v12163_v25 = vpack.c.bf16 %v3015_v33, %v3012_v45  ;;  %v3113_v12 = vsel %vm684_vm5, %v13927_v2, %v22486_v8  ;;  %v22479_v13 = vunpack.i.h.bf16 %v18007_v60 }
 0x35f   :  { %v13937_v57 = vunpack.i.l.bf16 %v18007_v60 }
 0x360   :  { %12156 = vmatpush1.bf16.msra.mxu1 %v12155_v35  ;;  %v13942_v35 = vunpack.i.l.bf16 %v18014_v61 }
 0x361   :  { %12158 = vmatprep.subr.bf16.mxu1 %v12157_v34  ;;  %4255 = vperm.xlu1 %13328, %v11319_v56   ;;  %v18155_v30 = vpop.permute.xlu1 %13990  ;;  %v18200_v56 = vld [vmem:[%s22359_s5 + $0x50] sm:$0xff]  ;;  %v3207_v18 = vsel %vm785_vm6, %v13937_v57, %v22479_v13  ;;  %v3206_v45 = vsel %vm785_vm6, %v13947_v5, %v13937_v57  ;;  %v22477_v57 = vunpack.i.h.bf16 %v18034_v43 }
 0x362   :  { %4260 = vperm.xlu0 %13327, %v11320_v53   ;;  %v18162_v23 = vpop.permute.xlu0 %14035  ;;  %v13948_v53 = vunpack.i.h.bf16 %v18017_v3  ;;  %v18221_v3 = vld [vmem:[%s22359_s5 + $0x48] sm:$0xff] }
 0x363   :  { %v22480_v62 = vunpack.i.h.bf16 %v18162_v23  ;;  %v14037_v46 = vunpack.i.l.bf16 %v18162_v23 }
 0x364   :  { %12160 = vmatpush1.bf16.msra.mxu1 %v12159_v41  ;;  %v3210_v41 = vsel %vm785_vm6, %v13942_v35, %v22478_v38  ;;  %v14007_v38 = vunpack.i.l.bf16 %v18093_v27 }
 0x365   :  { %12162 = vmatprep.subr.bf16.mxu1 %v12161_v63  ;;  %4265 = vperm.xlu1 %13328, %v11321_v21   ;;  %v18178_v32 = vpop.permute.xlu1 %14000  ;;  %v3116_v9 = vsel %vm684_vm5, %v14037_v46, %v22480_v62  ;;  %v3115_v17 = vsel %vm684_vm5, %v13933_v50, %v14037_v46  ;;  %v13952_v63 = vunpack.i.l.bf16 %v18027_v11  ;;  %v18229_v21 = vld [vmem:[%s22359_s5 + $0x88] sm:$0xff]  ;;  %v3209_v46 = vsel %vm785_vm6, %v13948_v53, %v13942_v35  ;;  %v18253_v35 = vld [vmem:[%s22359_s5 + $0x80] sm:$0xff] }
 0x366   :  { %4270 = vperm.xlu0 %13327, %v11322_v59   ;;  %v18185_v20 = vpop.permute.xlu0 %14040  ;;  %v12169_v34 = vpack.c.bf16 %v3116_v9, %v3113_v12  ;;  %v12171_v59 = vpack.c.bf16 %v3115_v17, %v3112_v58  ;;  %v13963_v12 = vunpack.i.h.bf16 %v18073_v52  ;;  %v13962_v50 = vunpack.i.l.bf16 %v18073_v52 }
 0x367   :  { %v3213_v9 = vsel %vm785_vm6, %v13952_v63, %v22474_v51  ;;  %v12175_v53 = vpack.c.bf16 %v3209_v46, %v3206_v45  ;;  %v13982_v52 = vunpack.i.l.bf16 %v18057_v16  ;;  %v13983_v45 = vunpack.i.h.bf16 %v18057_v16 }
 0x368   :  { %12164 = vmatpush1.bf16.msra.mxu1 %v12163_v25  ;;  %v12173_v25 = vpack.c.bf16 %v3210_v41, %v3207_v18  ;;  %v3310_v18 = vsel %vm22598_vm7, %v13977_v1, %v22472_v37  ;;  %v3212_v46 = vsel %vm785_vm6, %v13962_v50, %v13952_v63 }
 0x369   :  { %12166 = vmatprep.subr.bf16.mxu1 %v12165_v55  ;;  %v18208_v36 = vpop.permute.xlu1 %14010  ;;  %v3309_v37 = vsel %vm22598_vm7, %v13983_v45, %v13977_v1  ;;  %v22483_v1 = vunpack.i.h.bf16 %v18076_v19  ;;  %v13993_v45 = vunpack.i.h.bf16 %v18155_v30 }
 0x36a   :  { %22906 = vst [vmem:[#allocation61_spill] sm:$0xff] %v18208_v36  ;;  %v18212_v4 = vpop.permute.xlu0 %14055 }
 0x36b   :  { %4439 = vmatmul.mubr.f32.vlgmr.msra.gmra.mrb[12].mxu1 %v18190_v39  ;;  %v22473_v10 = vunpack.i.h.bf16 %v18212_v4  ;;  %v14057_v33 = vunpack.i.l.bf16 %v18212_v4 }
 0x36c   :  { %12168 = vmatpush1.bf16.msra.mxu1 %v12167_v49  ;;  %4444 = vmatprep.mubr.f32.mxu1 %v18200_v56  ;;  %v13967_v49 = vunpack.i.l.bf16 %v18034_v43 }
 0x36d   :  { %12170 = vmatprep.subr.bf16.mxu1 %v12169_v34  ;;  %v18236_v2 = vpop.permute.xlu1 %14015  ;;  %v3216_v40 = vsel %vm785_vm6, %v14057_v33, %v22473_v10  ;;  %v18260_v34 = vld [vmem:[%s22359_s5 + $0xc0] sm:$0xff]  ;;  %v3215_v5 = vsel %vm785_vm6, %v13963_v12, %v14057_v33  ;;  %v18280_v33 = vld [vmem:[%s22359_s5 + $0xb8] sm:$0xff]  ;;  %v14002_v10 = vunpack.i.l.bf16 %v18178_v32 }
 0x36e   :  { %v18244_v55 = vpop.permute.xlu0 %14060  ;;  %v12177_v48 = vpack.c.bf16 %v3216_v40, %v3213_v9  ;;  %v22484_v40 = vunpack.i.h.bf16 %v18129_v44  ;;  %v13987_v9 = vunpack.i.l.bf16 %v18129_v44  ;;  %v12179_v12 = vpack.c.bf16 %v3215_v5, %v3212_v46 }
 0x36f   :  { %4445 = vmatmul.mubr.f32.gmra.mrb[14].mxu1 %v18221_v3  ;;  %v22476_v41 = vunpack.i.h.bf16 %v18244_v55  ;;  %v14062_v58 = vunpack.i.l.bf16 %v18244_v55  ;;  %v3306_v50 = vsel %vm22598_vm7, %v13982_v52, %v13967_v49 }
 0x370   :  { %12172 = vmatpush1.bf16.msra.mxu1 %v12171_v59  ;;  %4450 = vmatprep.mubr.f32.mxu1 %v18229_v21  ;;  %v12183_v52 = vpack.c.bf16 %v3309_v37, %v3306_v50  ;;  %v3313_v46 = vsel %vm22598_vm7, %v13987_v9, %v22484_v40  ;;  %v14027_v40 = vunpack.i.l.bf16 %v18142_v22 }
 0x371   :  { %12174 = vmatprep.subr.bf16.mxu1 %v12173_v25  ;;  %v18265_v17 = vpop.permute.xlu1 %14030  ;;  %v18287_v25 = vld [vmem:[%s22359_s5 + $0x28] sm:$0xff]  ;;  %v3316_v5 = vsel %vm22598_vm7, %v14062_v58, %v22476_v41 }
 0x372   :  { %v18271_v59 = vpop.permute.xlu0 %14065 }
 0x373   :  { %4451 = vmatmul.mubr.f32.gmra.mrb[16].mxu1 %v18253_v35  ;;  %22907 = vst [vmem:[#allocation37_spill] sm:$0xff] %v18271_v59  ;;  %v22485_v13 = vunpack.i.h.bf16 %v18271_v59  ;;  %v14067_v62 = vunpack.i.l.bf16 %v18271_v59 }
 0x374   :  { %12176 = vmatpush1.bf16.msra.mxu1 %v12175_v53  ;;  %4456 = vmatprep.mubr.f32.mxu1 %v18260_v34  ;;  %v3307_v53 = vsel %vm22598_vm7, %v13967_v49, %v22477_v57  ;;  %v13992_v49 = vunpack.i.l.bf16 %v18155_v30  ;;  %v12185_v57 = vpack.c.bf16 %v3316_v5, %v3313_v46  ;;  %v14012_v5 = vunpack.i.l.bf16 %v18208_v36 }
 0x375   :  { %12178 = vmatprep.subr.bf16.mxu1 %v12177_v48  ;;  %v18295_v16 = vpop.permute.xlu1 %14045  ;;  %v12181_v63 = vpack.c.bf16 %v3310_v18, %v3307_v53  ;;  %v22482_v48 = vunpack.i.h.bf16 %v18178_v32  ;;  %v13997_v18 = vunpack.i.l.bf16 %v18076_v19  ;;  %v3315_v53 = vsel %vm22598_vm7, %v13993_v45, %v14062_v58 }
 0x376   :  { %v18301_v51 = vpop.permute.xlu0 %14070  ;;  %v22488_v58 = vunpack.i.h.bf16 %v18208_v36  ;;  %v22491_v45 = vunpack.i.h.bf16 %v18265_v17 }
 0x377   :  { %4457 = vmatmul.mubr.f32.gmra.mrb[18].mxu1 %v18280_v33  ;;  %v3411_v37 = vsel %vm22597_vm14, %v14002_v10, %v22482_v48  ;;  %v22492_v8 = vunpack.i.h.bf16 %v18301_v51 }
 0x378   :  { %12180 = vmatpush1.bf16.msra.mxu1 %v12179_v12  ;;  %4527 = vmatprep.mubr.f32.mxu1 %v18287_v25  ;;  %v14008_v12 = vunpack.i.h.bf16 %v18093_v27  ;;  %v3408_v27 = vsel %vm22597_vm14, %v13997_v18, %v22483_v1  ;;  %v3417_v1 = vsel %vm22597_vm14, %v14067_v62, %v22485_v13  ;;  %v14047_v13 = vunpack.i.l.bf16 %v18295_v16 }
 0x379   :  { %12182 = vmatprep.subr.bf16.mxu1 %v12181_v63  ;;  %v14051_v41 = vpop.permute.xlu1 %14050  ;;  %v3312_v63 = vsel %vm22598_vm7, %v13992_v49, %v13987_v9  ;;  %v12189_v9 = vpack.c.bf16 %v3411_v37, %v3408_v27  ;;  %v22494_v49 = vunpack.i.h.bf16 %v18142_v22  ;;  %v3414_v27 = vsel %vm22597_vm14, %v14012_v5, %v22488_v58 }
 0x37a   :  { %v18319_v30 = vpop.permute.xlu0 %14075  ;;  %v3410_v50 = vsel %vm22597_vm14, %v14008_v12, %v14002_v10  ;;  %v12187_v46 = vpack.c.bf16 %v3315_v53, %v3312_v63  ;;  %v3407_v10 = vsel %vm22597_vm14, %v14007_v38, %v13997_v18  ;;  %v14042_v53 = vunpack.i.l.bf16 %v18185_v20 }
 0x37b   :  { %v14017_v63 = vunpack.i.l.bf16 %v18236_v2  ;;  %v12191_v37 = vpack.c.bf16 %v3410_v50, %v3407_v10  ;;  %v22493_v18 = vunpack.i.h.bf16 %v18295_v16  ;;  %v12193_v50 = vpack.c.bf16 %v3417_v1, %v3414_v27 }
 0x37c   :  { %12184 = vmatpush1.bf16.msra.mxu1 %v12183_v52  ;;  %v14032_v52 = vunpack.i.l.bf16 %v18265_v17  ;;  %v14053_v10 = vunpack.i.h.bf16 %v14051_v41  ;;  %v3509_v47 = vsel %vm22514_vm8, %v14027_v40, %v22494_v49 }
 0x37d   :  { %12186 = vmatprep.subr.bf16.mxu1 %v12185_v57  ;;  %v18333_v48 = vpop.permute.xlu1 %14080  ;;  %v14018_v57 = vunpack.i.h.bf16 %v18236_v2  ;;  %v14072_v2 = vunpack.i.l.bf16 %v18301_v51  ;;  %v3413_v58 = vsel %vm22597_vm14, %v14017_v63, %v14012_v5  ;;  %v3515_v5 = vsel %vm22514_vm8, %v14047_v13, %v22493_v18 }
 0x37e   :  { %v14086_v12 = vpop.permute.xlu0 %14085 }
 0x37f   :  { %v3416_v38 = vsel %vm22597_vm14, %v14018_v57, %v14067_v62  ;;  %v14043_v62 = vunpack.i.h.bf16 %v18185_v20  ;;  %v14052_v57 = vunpack.i.l.bf16 %v14051_v41  ;;  %v22502_v20 = vunpack.i.h.bf16 %v18319_v30 }
 0x380   :  { %12188 = vmatpush1.bf16.msra.mxu1 %v12187_v46  ;;  %v3512_v46 = vsel %vm22514_vm8, %v14032_v52, %v22491_v45  ;;  %v3508_v45 = vsel %vm22514_vm8, %v14042_v53, %v14027_v40  ;;  %v12195_v1 = vpack.c.bf16 %v3416_v38, %v3413_v58  ;;  %v14077_v41 = vunpack.i.l.bf16 %v18319_v30 }
 0x381   :  { %12190 = vmatprep.subr.bf16.mxu1 %v12189_v9  ;;  %v18355_v9 = vpop.permute.xlu1 %14090  ;;  %v3511_v28 = vsel %vm22514_vm8, %v14043_v62, %v14032_v52  ;;  %v12197_v27 = vpack.c.bf16 %v3512_v46, %v3509_v47  ;;  %v3518_v63 = vsel %vm22514_vm8, %v14072_v2, %v22492_v8  ;;  %v3514_v40 = vsel %vm22514_vm8, %v14052_v57, %v14047_v13 }
 0x382   :  { %v18358_v24 = vpop.permute.xlu0 %14095  ;;  %v22499_v58 = vunpack.i.h.bf16 %v18333_v48  ;;  %v14082_v47 = vunpack.i.l.bf16 %v18333_v48  ;;  %v14088_v53 = vunpack.i.h.bf16 %v14086_v12  ;;  %v14087_v38 = vunpack.i.l.bf16 %v14086_v12 }
 0x383   :  { %v22498_v46 = vunpack.i.h.bf16 %v18355_v9  ;;  %v14092_v62 = vunpack.i.l.bf16 %v18355_v9  ;;  %v22500_v8 = vunpack.i.h.bf16 %v18358_v24  ;;  %v12201_v57 = vpack.c.bf16 %v3518_v63, %v3515_v5 }
 0x384   :  { %12192 = vmatpush1.bf16.msra.mxu1 %v12191_v37  ;;  %v3610_v12 = vsel %vm22590_vm12, %v14077_v41, %v22502_v20  ;;  %v3613_v49 = vsel %vm22590_vm12, %v14082_v47, %v22499_v58  ;;  %v3612_v26 = vsel %vm22590_vm12, %v14088_v53, %v14082_v47 }
 0x385   :  { %12194 = vmatprep.subr.bf16.mxu1 %v12193_v50  ;;  %v14101_v37 = vpop.permute.xlu1 %14100  ;;  %v3517_v50 = vsel %vm22514_vm8, %v14053_v10, %v14072_v2  ;;  %v14097_v2 = vunpack.i.l.bf16 %v18358_v24  ;;  %v12199_v10 = vpack.c.bf16 %v3511_v28, %v3508_v45  ;;  %v3616_v28 = vsel %vm22590_vm12, %v14092_v62, %v22498_v46 }
 0x386   :  { %v18378_v52 = vpop.permute.xlu0 %14105  ;;  %v14103_v54 = vunpack.i.h.bf16 %v14101_v37  ;;  %v14102_v45 = vunpack.i.l.bf16 %v14101_v37 }
 0x387   :  { %v22503_v37 = vunpack.i.h.bf16 %v18378_v52 }
 0x388   :  { %12196 = vmatpush1.bf16.msra.mxu1 %v12195_v1  ;;  %v12203_v1 = vpack.c.bf16 %v3517_v50, %v3514_v40  ;;  %v3619_v50 = vsel %vm22590_vm12, %v14097_v2, %v22500_v8  ;;  %v3615_v46 = vsel %vm22590_vm12, %v14102_v45, %v14092_v62 }
 0x389   :  { %12198 = vmatprep.subr.bf16.mxu1 %v12197_v27  ;;  %v18384_v13 = vpop.permute.xlu1 %14110  ;;  %v3609_v27 = vsel %vm22590_vm12, %v14087_v38, %v14077_v41  ;;  %v12205_v41 = vpack.c.bf16 %v3613_v49, %v3610_v12  ;;  %v3618_v38 = vsel %vm22590_vm12, %v14103_v54, %v14097_v2 }
 0x38a   :  { %v14116_v18 = vpop.permute.xlu0 %14115  ;;  %v22501_v5 = vunpack.i.h.bf16 %v18384_v13  ;;  %v14112_v63 = vunpack.i.l.bf16 %v18384_v13  ;;  %v12207_v53 = vpack.c.bf16 %v3612_v26, %v3609_v27  ;;  %v12211_v45 = vpack.c.bf16 %v3618_v38, %v3615_v46 }
 0x38b   :  { %v14118_v58 = vunpack.i.h.bf16 %v14116_v18  ;;  %v14117_v8 = vunpack.i.l.bf16 %v14116_v18 }
 0x38c   :  { %12200 = vmatpush1.bf16.msra.mxu1 %v12199_v10  ;;  %v14107_v10 = vunpack.i.l.bf16 %v18378_v52  ;;  %v3714_v49 = vsel %vm22517_vm11, %v14112_v63, %v22501_v5 }
 0x38d   :  { %12202 = vmatprep.subr.bf16.mxu1 %v12201_v57  ;;  %v18402_v40 = vpop.permute.xlu1 %14120  ;;  %v12209_v57 = vpack.c.bf16 %v3619_v50, %v3616_v28  ;;  %v3713_v28 = vsel %vm22517_vm11, %v14118_v58, %v14112_v63 }
 0x38e   :  { %v18404_v47 = vpop.permute.xlu0 %14125  ;;  %v14122_v26 = vunpack.i.l.bf16 %v18402_v40  ;;  %v3711_v18 = vsel %vm22517_vm11, %v14107_v10, %v22503_v37  ;;  %v3710_v62 = vsel %vm22517_vm11, %v14117_v8, %v14107_v10 }
 0x38f   :  { %v22505_v54 = vunpack.i.h.bf16 %v18404_v47  ;;  %v14127_v2 = vunpack.i.l.bf16 %v18404_v47  ;;  %v12213_v50 = vpack.c.bf16 %v3714_v49, %v3711_v18  ;;  %v12215_v38 = vpack.c.bf16 %v3713_v28, %v3710_v62 }
 0x390   :  { %12204 = vmatpush1.bf16.msra.mxu1 %v12203_v1  ;;  %v22506_v1 = vunpack.i.h.bf16 %v18402_v40 }
 0x391   :  { %12206 = vmatprep.subr.bf16.mxu1 %v12205_v41  ;;  %v14131_v12 = vpop.permute.xlu1 %14130 }
 0x392   :  { %v18417_v27 = vpop.permute.xlu0 %14135  ;;  %v14133_v41 = vunpack.i.h.bf16 %v14131_v12  ;;  %v14132_v5 = vunpack.i.l.bf16 %v14131_v12 }
 0x393   :  { %v14137_v63 = vunpack.i.l.bf16 %v18417_v27  ;;  %v22909_v28 = vunpack.i.h.bf16 %v18417_v27 }
 0x394   :  { %12208 = vmatpush1.bf16.msra.mxu1 %v12207_v53  ;;  %v3717_v53 = vsel %vm22517_vm11, %v14122_v26, %v22506_v1  ;;  %v3719_v49 = vsel %vm22517_vm11, %v14133_v41, %v14127_v2  ;;  %v3716_v12 = vsel %vm22517_vm11, %v14132_v5, %v14122_v26 }
 0x395   :  { %12210 = vmatprep.subr.bf16.mxu1 %v12209_v57  ;;  %v18424_v20 = vpop.permute.xlu1 %14140  ;;  %v3720_v57 = vsel %vm22517_vm11, %v14127_v2, %v22505_v54  ;;  %v12219_v26 = vpack.c.bf16 %v3719_v49, %v3716_v12  ;;  %v3812_v41 = vsel %vm22516_vm10, %v14137_v63, %v22909_v28 }
 0x396   :  { %v14142_v8 = vunpack.i.l.bf16 %v18424_v20  ;;  %v14146_v58 = vpop.permute.xlu0 %14145  ;;  %v12217_v10 = vpack.c.bf16 %v3720_v57, %v3717_v53  ;;  %v22908_v46 = vunpack.i.h.bf16 %v18424_v20 }
 0x397   :  { %v14148_v18 = vunpack.i.h.bf16 %v14146_v58  ;;  %v14147_v54 = vunpack.i.l.bf16 %v14146_v58 }
 0x398   :  { %12212 = vmatpush1.bf16.msra.mxu1 %v12211_v45  ;;  %v3815_v62 = vsel %vm22516_vm10, %v14142_v8, %v22908_v46 }
 0x399   :  { %12214 = vmatprep.subr.bf16.mxu1 %v12213_v50  ;;  %v18438_v45 = vpop.permute.xlu1 %14150  ;;  %v3811_v57 = vsel %vm22516_vm10, %v14147_v54, %v14137_v63  ;;  %v3814_v58 = vsel %vm22516_vm10, %v14148_v18, %v14142_v8 }
 0x39a   :  { %v22509_v1 = vunpack.i.h.bf16 %v18438_v45  ;;  %v14152_v50 = vunpack.i.l.bf16 %v18438_v45  ;;  %v18442_v37 = vpop.permute.xlu0 %14155  ;;  %v12223_v36 = vpack.c.bf16 %v3814_v58, %v3811_v57 }
 0x39b   :  { %v14158_v2 = vunpack.i.h.bf16 %v18442_v37  ;;  %v14157_v5 = vunpack.i.l.bf16 %v18442_v37 }
 0x39c   :  { %12216 = vmatpush1.bf16.msra.mxu1 %v12215_v38  ;;  %v3818_v53 = vsel %vm22516_vm10, %v14152_v50, %v22509_v1  ;;  %v12221_v38 = vpack.c.bf16 %v3815_v62, %v3812_v41 }
 0x39d   :  { %12218 = vmatprep.subr.bf16.mxu1 %v12217_v10  ;;  %v3821_v46 = vsel %vm22516_vm10, %v14157_v5, %v14158_v2  ;;  %v14161_v10 = vpop.permute.xlu1 %14160 }
 0x39e   :  { %v14163_v49 = vunpack.i.h.bf16 %v14161_v10  ;;  %v14162_v12 = vunpack.i.l.bf16 %v14161_v10  ;;  %v12225_v28 = vpack.c.bf16 %v3821_v46, %v3818_v53  ;;  %v18481_v46 = vld [vmem:[%s22359_s5 + $0x20] sm:$0xff] }
 0x39f   :  { %v18460_v59 = vpop.permute.xlu0 %14165 }
 0x3a0   :  { %12220 = vmatpush1.bf16.msra.mxu1 %v12219_v26  ;;  %v3820_v1 = vsel %vm22516_vm10, %v14163_v49, %v14157_v5  ;;  %v3817_v54 = vsel %vm22516_vm10, %v14162_v12, %v14152_v50  ;;  %v14168_v8 = vunpack.i.h.bf16 %v18460_v59  ;;  %v14167_v63 = vunpack.i.l.bf16 %v18460_v59 }
 0x3a1   :  { %12222 = vmatprep.subr.bf16.mxu1 %v12221_v38  ;;  %v18466_v18 = vpop.permute.xlu1 %14170  ;;  %v12227_v62 = vpack.c.bf16 %v3820_v1, %v3817_v54 }
 0x3a2   :  { %v22512_v26 = vunpack.i.h.bf16 %v18466_v18  ;;  %v14172_v41 = vunpack.i.l.bf16 %v18466_v18  ;;  %v3913_v50 = vsel %vm22515_vm13, %v14167_v63, %v14168_v8 }
 0x3a3   :  { %v14176_v53 = vpop.permute.xlu0 %14175 }
 0x3a4   :  { %12224 = vmatpush1.bf16.msra.mxu1 %v12223_v36  ;;  %v14178_v57 = vunpack.i.h.bf16 %v14176_v53  ;;  %v14177_v58 = vunpack.i.l.bf16 %v14176_v53  ;;  %v3916_v36 = vsel %vm22515_vm13, %v14172_v41, %v22512_v26  ;;  %v18488_v53 = vld [vmem:[%s22359_s5 + $0x60] sm:$0xff] }
 0x3a5   :  { %12226 = vmatprep.subr.bf16.mxu1 %v12225_v28  ;;  %v12229_v10 = vpack.c.bf16 %v3916_v36, %v3913_v50 }
 0x3a6   :  { %v3912_v5 = vsel %vm22515_vm13, %v14177_v58, %v14167_v63  ;;  %v3915_v1 = vsel %vm22515_vm13, %v14178_v57, %v14172_v41  ;;  %v14181_v38 = vpop.permute.xlu1 %14180  ;;  %v22910_v41 = vunpack.i.l.bf16 %v18112_v15  ;;  %v22911_v58 = vunpack.i.l.bf16 %v17918_v31  ;;  %v18512_v31 = vld [vmem:[%s22359_s5 + $0x98] sm:$0xff] }
 0x3a7   :  { %v14183_v49 = vunpack.i.h.bf16 %v14181_v38  ;;  %v14182_v12 = vunpack.i.l.bf16 %v14181_v38  ;;  %v18483_v28 = vpop.permute.xlu0 %14185  ;;  %v12231_v54 = vpack.c.bf16 %v3915_v1, %v3912_v5  ;;  %v18505_v5 = vld [vmem:[%s22359_s5 + $0x58] sm:$0xff] }
 0x3a8   :  { %12228 = vmatpush1.bf16.msra.mxu1 %v12227_v62  ;;  %v22511_v63 = vunpack.i.h.bf16 %v18483_v28  ;;  %v14187_v62 = vunpack.i.l.bf16 %v18483_v28 }
 0x3a9   :  { %12230 = vmatprep.subr.bf16.mxu1 %v12229_v10  ;;  %v3014_v57 = vsel %vm3005_vm15, %v22910_v41, %v14182_v12  ;;  %v3017_v50 = vsel %vm3005_vm15, %v22911_v58, %v14183_v49 }
 0x3aa   :  { %v12297_v1 = vpack.c.bf16 %v3017_v50, %v3014_v57  ;;  %v3919_v41 = vsel %vm22515_vm13, %v14187_v62, %v22511_v63 }
 0x3ab   :  { %4528 = vmatmul.mubr.f32.vlgmr.msra.gmra.mrb[12].mxu1 %v18481_v46  ;;  %v18499_v36 = vpop.permute.xlu1 %14190 }
 0x3ac   :  { %12232 = vmatpush1.bf16.msra.mxu1 %v12231_v54  ;;  %4533 = vmatprep.mubr.f32.mxu1 %v18488_v53  ;;  %v22513_v38 = vunpack.i.h.bf16 %v18499_v36  ;;  %v14192_v15 = vunpack.i.l.bf16 %v18499_v36  ;;  %v14196_v10 = vpop.permute.xlu0 %14195  ;;  %v22912_v54 = vpack.c.bf16 %v17984_v42, %v17980_v29  ;;  %v18530_v29 = vld [vmem:[%s22359_s5 + $0x90] sm:$0xff] }
 0x3ad   :  { %v14198_v49 = vunpack.i.h.bf16 %v14196_v10  ;;  %v14197_v12 = vunpack.i.l.bf16 %v14196_v10  ;;  %12298 = vmatprep.subr.bf16.mxu0 %v12297_v1 }
 0x3ae   :  { %12300 = vmatpush3.bf16.msra.mxu0 %v22912_v54  ;;  %v3922_v57 = vsel %vm22515_vm13, %v14192_v15, %v22513_v38  ;;  %v18535_v38 = vld [vmem:[%s22359_s5 + $0xd0] sm:$0xff] }
 0x3af   :  { %4534 = vmatmul.mubr.f32.gmra.mrb[14].mxu1 %v18505_v5  ;;  %v3918_v58 = vsel %vm22515_vm13, %v14197_v12, %v14187_v62  ;;  %v3921_v50 = vsel %vm22515_vm13, %v14198_v49, %v14192_v15  ;;  %v14201_v10 = vpop.permute.xlu1 %14200  ;;  %v12233_v42 = vpack.c.bf16 %v3922_v57, %v3919_v41  ;;  %v22913_v49 = vunpack.i.h.bf16 %v18142_v22  ;;  %v18556_v22 = vld [vmem:[%s22359_s5 + $0xc8] sm:$0xff] }
 0x3b0   :  { %4539 = vmatprep.mubr.f32.mxu1 %v18512_v31  ;;  %v14203_v1 = vunpack.i.h.bf16 %v14201_v10  ;;  %v14202_v54 = vunpack.i.l.bf16 %v14201_v10  ;;  %v14206_v63 = vpop.permute.xlu0 %14205  ;;  %v12235_v26 = vpack.c.bf16 %v3921_v50, %v3918_v58  ;;  %v22914_v41 = vunpack.i.h.bf16 %v18265_v17 }
 0x3b1   :  { %v14208_v62 = vunpack.i.h.bf16 %v14206_v63  ;;  %v14207_v15 = vunpack.i.l.bf16 %v14206_v63  ;;  %12234 = vmatprep.subr.bf16.mxu1 %v12233_v42  ;;  %4791 = vmatmul.mubr.f32.vlgmr.msra.gmra.mrb[16].mxu0 %v18190_v39  ;;  %v22915_v58 = vunpack.i.h.bf16 %v17930_v0  ;;  %v22916_v63 = vunpack.i.h.bf16 %v17962_v7 }
 0x3b2   :  { %4795 = vmatprep.mubr.f32.mxu0 %v18200_v56  ;;  %v3510_v12 = vsel %vm22514_vm8, %v22913_v49, %v14202_v54  ;;  %v3513_v57 = vsel %vm22514_vm8, %v22914_v41, %v14203_v1  ;;  %12236 = vmatpush1.bf16.msra.mxu1 %v12235_v26  ;;  %v22917_v7 = vunpack.i.h.bf16 %v18295_v16  ;;  %v18577_v16 = vld [vmem:[%s22359_s5 + $0x30] sm:$0xff] }
 0x3b3   :  { %4540 = vmatmul.mubr.f32.gmra.mrb[16].mxu1 %v18530_v29  ;;  %v3108_v50 = vsel %vm684_vm5, %v22915_v58, %v14207_v15  ;;  %v3111_v39 = vsel %vm684_vm5, %v22916_v63, %v14208_v62  ;;  %v14211_v10 = vpop.permute.xlu1 %14210  ;;  %v12301_v56 = vpack.c.bf16 %v3513_v57, %v3510_v12  ;;  %v22918_v62 = vunpack.i.h.bf16 %v18301_v51 }
 0x3b4   :  { %4545 = vmatprep.mubr.f32.mxu1 %v18535_v38  ;;  %v14213_v17 = vunpack.i.h.bf16 %v14211_v10  ;;  %v14212_v42 = vunpack.i.l.bf16 %v14211_v10  ;;  %v14216_v1 = vpop.permute.xlu0 %14215  ;;  %v12303_v0 = vpack.c.bf16 %v3111_v39, %v3108_v50  ;;  %v22919_v12 = vunpack.i.h.bf16 %v17988_v6 }
 0x3b5   :  { %v14218_v54 = vunpack.i.h.bf16 %v14216_v1  ;;  %v14217_v15 = vunpack.i.l.bf16 %v14216_v1  ;;  %4796 = vmatmul.mubr.f32.gmra.mrb[18].mxu0 %v18221_v3  ;;  %12302 = vmatprep.subr.bf16.mxu0 %v12301_v56  ;;  %v22920_v57 = vunpack.i.h.bf16 %v18162_v23  ;;  %v22921_v50 = vmov 0.0  }
 0x3b6   :  { %12304 = vmatpush3.bf16.msra.mxu0 %v12303_v0  ;;  %v3516_v26 = vsel %vm22514_vm8, %v22917_v7, %v14212_v42  ;;  %v3519_v49 = vsel %vm22514_vm8, %v22918_v62, %v14213_v17  ;;  %4800 = vmatprep.mubr.f32.mxu0 %v18229_v21  ;;  %vm22922_vm8 = vcmask 261120   ;;  %v22923_v23 = vunpack.i.h.bf16 %v18319_v30  ;;  %v18599_v30 = vld [vmem:[%s22359_s5 + $0x68] sm:$0xff] }
 0x3b7   :  { %4546 = vmatmul.mubr.f32.gmra.mrb[18].mxu1 %v18556_v22  ;;  %v3114_v41 = vsel %vm684_vm5, %v22919_v12, %v14217_v15  ;;  %v3117_v3 = vsel %vm684_vm5, %v22920_v57, %v14218_v54  ;;  %v14221_v58 = vpop.permute.xlu1 %14220  ;;  %v12305_v51 = vpack.c.bf16 %v3519_v49, %v3516_v26  ;;  %v22924_v42 = vunpack.i.h.bf16 %v18333_v48 }
 0x3b8   :  { %4616 = vmatprep.mubr.f32.mxu1 %v22921_v50  ;;  %v14223_v63 = vunpack.i.h.bf16 %v14221_v58  ;;  %v14222_v39 = vunpack.i.l.bf16 %v14221_v58  ;;  %v14226_v6 = vpop.permute.xlu0 %14225  ;;  %v12307_v10 = vpack.c.bf16 %v3117_v3, %v3114_v41  ;;  %v22925_v0 = vunpack.i.h.bf16 %v18007_v60 }
 0x3b9   :  { %v14228_v56 = vunpack.i.h.bf16 %v14226_v6  ;;  %v14227_v17 = vunpack.i.l.bf16 %v14226_v6  ;;  %4801 = vmatmul.mubr.f32.gmra.mrb[20].mxu0 %v18253_v35  ;;  %12306 = vmatprep.subr.bf16.mxu0 %v12305_v51  ;;  %v22926_v15 = vunpack.i.h.bf16 %v18014_v61  ;;  %v22927_v61 = vunpack.i.h.bf16 %v18355_v9  ;;  %v18620_v9 = vld [vmem:[%s22359_s5 + $0xa0] sm:$0xff] }
 0x3ba   :  { %12308 = vmatpush3.bf16.msra.mxu0 %v12307_v10  ;;  %v3611_v21 = vsel %vm22590_vm12, %v22923_v23, %v14222_v39  ;;  %v3614_v1 = vsel %vm22590_vm12, %v22924_v42, %v14223_v63  ;;  %4805 = vmatprep.mubr.f32.mxu0 %v18260_v34  ;;  %v22928_v57 = vunpack.i.h.bf16 %v18358_v24  ;;  %v22929_v58 = vunpack.i.h.bf16 %v18027_v11 }
 0x3bb   :  { %11323 = vmatmul.mubr.msk.f32.vlgmr.msra.gmra.mrb[12].mxu1 %vm22922_vm8, %v18577_v16  ;;  %v3208_v54 = vsel %vm785_vm6, %v22925_v0, %v14227_v17  ;;  %v3211_v35 = vsel %vm785_vm6, %v22926_v15, %v14228_v56  ;;  %v14231_v7 = vpop.permute.xlu1 %14230  ;;  %v12309_v48 = vpack.c.bf16 %v3614_v1, %v3611_v21  ;;  %v22930_v63 = vunpack.i.h.bf16 %v18212_v4 }
 0x3bc   :  { %4622 = vmatprep.mubr.f32.mxu1 %v22921_v50  ;;  %v14233_v26 = vunpack.i.h.bf16 %v14231_v7  ;;  %v14232_v62 = vunpack.i.l.bf16 %v14231_v7  ;;  %v14236_v60 = vpop.permute.xlu0 %14235  ;;  %v12311_v49 = vpack.c.bf16 %v3211_v35, %v3208_v54  ;;  %v22931_v4 = vunpack.i.h.bf16 %v18378_v52  ;;  %v18641_v52 = vld [vmem:[%s22359_s5 + $0xd8] sm:$0xff] }
 0x3bd   :  { %v14238_v12 = vunpack.i.h.bf16 %v14236_v60  ;;  %v14237_v41 = vunpack.i.l.bf16 %v14236_v60  ;;  %4806 = vmatmul.mubr.f32.gmra.mrb[22].mxu0 %v18280_v33  ;;  %12310 = vmatprep.subr.bf16.mxu0 %v12309_v48  ;;  %v22932_v42 = vunpack.i.h.bf16 %v18384_v13  ;;  %v22934_v54 = vunpack.i.h.bf16 %v18109_v14 }
 0x3be   :  { %12312 = vmatpush3.bf16.msra.mxu0 %v12311_v49  ;;  %v3617_v34 = vsel %vm22590_vm12, %v22927_v61, %v14232_v62  ;;  %v3620_v3 = vsel %vm22590_vm12, %v22928_v57, %v14233_v26  ;;  %4875 = vmatprep.mubr.f32.mxu0 %v18287_v25  ;;  %v22933_v25 = vunpack.i.h.bf16 %v18034_v43  ;;  %v22935_v14 = vunpack.i.h.bf16 %v18402_v40 }
 0x3bf   :  { %11324 = vmatmul.mubr.msk.f32.gmra.mrb[14].mxu1 %vm22922_vm8, %v18599_v30  ;;  %v3214_v51 = vsel %vm785_vm6, %v22929_v58, %v14237_v41  ;;  %v3217_v33 = vsel %vm785_vm6, %v22930_v63, %v14238_v12  ;;  %v14241_v39 = vpop.permute.xlu1 %14240  ;;  %v12313_v6 = vpack.c.bf16 %v3620_v3, %v3617_v34  ;;  %v22936_v12 = vunpack.i.h.bf16 %v18404_v47 }
 0x3c0   :  { %4628 = vmatprep.mubr.f32.mxu1 %v22921_v50  ;;  %v14243_v24 = vunpack.i.h.bf16 %v14241_v39  ;;  %v14242_v10 = vunpack.i.l.bf16 %v14241_v39  ;;  %v14246_v11 = vpop.permute.xlu0 %14245  ;;  %v12315_v56 = vpack.c.bf16 %v3217_v33, %v3214_v51  ;;  %v22937_v61 = vunpack.i.h.bf16 %v18129_v44 }
 0x3c1   :  { %v14248_v17 = vunpack.i.h.bf16 %v14246_v11  ;;  %v14247_v23 = vunpack.i.l.bf16 %v14246_v11  ;;  %12314 = vmatprep.subr.bf16.mxu0 %v12313_v6  ;;  %v22938_v57 = vunpack.i.h.bf16 %v18244_v55  ;;  %v22939_v47 = vunpack.i.h.bf16 %v18417_v27 }
 0x3c2   :  { %12316 = vmatpush3.bf16.msra.mxu0 %v12315_v56  ;;  %v3712_v21 = vsel %vm22517_vm11, %v22931_v4, %v14242_v10  ;;  %v3715_v1 = vsel %vm22517_vm11, %v22932_v42, %v14243_v24  ;;  %v22940_v10 = vunpack.i.h.bf16 %v18424_v20  ;;  %v22941_v11 = vunpack.i.h.bf16 %v18076_v19 }
 0x3c3   :  { %11325 = vmatmul.mubr.msk.f32.gmra.mrb[16].mxu1 %vm22922_vm8, %v18620_v9  ;;  %v3308_v0 = vsel %vm22598_vm7, %v22933_v25, %v14247_v23  ;;  %v3311_v15 = vsel %vm22598_vm7, %v22934_v54, %v14248_v17  ;;  %v14251_v35 = vpop.permute.xlu1 %14250  ;;  %v12317_v7 = vpack.c.bf16 %v3715_v1, %v3712_v21  ;;  %v22942_v17 = vunpack.i.h.bf16 %v18178_v32 }
 0x3c4   :  { %4634 = vmatprep.mubr.f32.mxu1 %v22921_v50  ;;  %v14253_v13 = vunpack.i.h.bf16 %v14251_v35  ;;  %v14252_v48 = vunpack.i.l.bf16 %v14251_v35  ;;  %v14256_v26 = vpop.permute.xlu0 %14255  ;;  %v12319_v62 = vpack.c.bf16 %v3311_v15, %v3308_v0  ;;  %v22943_v20 = vunpack.i.h.bf16 %v18438_v45  ;;  %v22944_v15 = vld [vmem:[#allocation61_spill] sm:$0xff] }
 0x3c5   :  { %v14258_v43 = vunpack.i.h.bf16 %v14256_v26  ;;  %v14257_v60 = vunpack.i.l.bf16 %v14256_v26  ;;  %12318 = vmatprep.subr.bf16.mxu0 %v12317_v7  ;;  %v22945_v35 = vunpack.i.h.bf16 %v22944_v15 }
 0x3c6   :  { %12320 = vmatpush3.bf16.msra.mxu0 %v12319_v62  ;;  %v3718_v49 = vsel %vm22517_vm11, %v22935_v14, %v14252_v48  ;;  %v3721_v41 = vsel %vm22517_vm11, %v22936_v12, %v14253_v13  ;;  %v22946_v13 = vld [vmem:[#allocation37_spill] sm:$0xff]  ;;  %vm22953_vm11 = vmmov %vm22922_vm8 }
 0x3c7   :  { %11326 = vmatmul.mubr.msk.f32.gmra.mrb[18].mxu1 %vm22922_vm8, %v18641_v52  ;;  %v3314_v34 = vsel %vm22598_vm7, %v22937_v61, %v14257_v60  ;;  %v3317_v3 = vsel %vm22598_vm7, %v22938_v57, %v14258_v43  ;;  %v14261_v58 = vpop.permute.xlu1 %14260  ;;  %v12321_v51 = vpack.c.bf16 %v3721_v41, %v3718_v49  ;;  %v22947_v48 = vunpack.i.h.bf16 %v22946_v13 }
 0x3c8   :  { %v14263_v63 = vunpack.i.h.bf16 %v14261_v58  ;;  %v14262_v33 = vunpack.i.l.bf16 %v14261_v58  ;;  %v14266_v39 = vpop.permute.xlu0 %14265  ;;  %v12323_v40 = vpack.c.bf16 %v3317_v3, %v3314_v34  ;;  %v22949_v57 = vunpack.i.h.bf16 %v18483_v28 }
 0x3c9   :  { %v14268_v6 = vunpack.i.h.bf16 %v14266_v39  ;;  %v14267_v24 = vunpack.i.l.bf16 %v14266_v39  ;;  %12322 = vmatprep.subr.bf16.mxu0 %v12321_v51  ;;  %v22950_v58 = vunpack.i.h.bf16 %v18499_v36 }
 0x3ca   :  { %12324 = vmatpush3.bf16.msra.mxu0 %v12323_v40  ;;  %v3813_v44 = vsel %vm22516_vm10, %v22939_v47, %v14262_v33  ;;  %v3816_v55 = vsel %vm22516_vm10, %v22940_v10, %v14263_v63 }
 0x3cb   :  { %v3409_v56 = vsel %vm22597_vm14, %v22941_v11, %v14267_v24  ;;  %v3412_v23 = vsel %vm22597_vm14, %v22942_v17, %v14268_v6  ;;  %v14271_v4 = vpop.permute.xlu1 %14270  ;;  %v12325_v21 = vpack.c.bf16 %v3816_v55, %v3813_v44 }
 0x3cc   :  { %v14273_v42 = vunpack.i.h.bf16 %v14271_v4  ;;  %v14272_v1 = vunpack.i.l.bf16 %v14271_v4  ;;  %v14276_v25 = vpop.permute.xlu0 %14275  ;;  %v12327_v27 = vpack.c.bf16 %v3412_v23, %v3409_v56 }
 0x3cd   :  { %v14278_v0 = vunpack.i.h.bf16 %v14276_v25  ;;  %v14277_v54 = vunpack.i.l.bf16 %v14276_v25  ;;  %12326 = vmatprep.subr.bf16.mxu0 %v12325_v21 }
 0x3ce   :  { %12328 = vmatpush3.bf16.msra.mxu0 %v12327_v27  ;;  %v3819_v19 = vsel %vm22516_vm10, %v22943_v20, %v14272_v1  ;;  %v3822_v32 = vsel %vm22516_vm10, %v14158_v2, %v14273_v42  ;;  %v22948_v2 = vunpack.i.h.bf16 %v18466_v18  ;;  %vm22952_vm10 = vmmov %vm22922_vm8  ;;  %v15901_v27 = vld [vmem:[%s22357_s0] sm:$0xff] }
 0x3cf   :  { %v3415_v7 = vsel %vm22597_vm14, %v22945_v35, %v14277_v54  ;;  %v3418_v26 = vsel %vm22597_vm14, %v22947_v48, %v14278_v0  ;;  %v14281_v62 = vpop.permute.xlu1 %14280  ;;  %v12329_v43 = vpack.c.bf16 %v3822_v32, %v3819_v19  ;;  %v15902_v19 = vld [vmem:[%s22357_s0 + $0x8] sm:$0xff]  ;;  %vm23069_vm14 = vcmask 310272  }
 0x3d0   :  { %v14283_v60 = vunpack.i.h.bf16 %v14281_v62  ;;  %v14282_v14 = vunpack.i.l.bf16 %v14281_v62  ;;  %v14286_v49 = vpop.permute.xlu0 %14285  ;;  %v12331_v45 = vpack.c.bf16 %v3418_v26, %v3415_v7 }
 0x3d1   :  { %v14288_v12 = vunpack.i.h.bf16 %v14286_v49  ;;  %v14287_v41 = vunpack.i.l.bf16 %v14286_v49  ;;  %12330 = vmatprep.subr.bf16.mxu0 %v12329_v43 }
 0x3d2   :  { %12332 = vmatpush3.bf16.msra.mxu0 %v12331_v45  ;;  %v3914_v37 = vsel %vm22515_vm13, %v14168_v8, %v14282_v14  ;;  %v3917_v61 = vsel %vm22515_vm13, %v22948_v2, %v14283_v60  ;;  %v22954_v14 = vld [vmem:[#allocation7_spill] sm:$0xff] }
 0x3d3   :  { %v12333_v34 = vpack.c.bf16 %v3917_v61, %v3914_v37  ;;  %v3920_v3 = vsel %vm22515_vm13, %v22949_v57, %v14287_v41  ;;  %v3923_v51 = vsel %vm22515_vm13, %v22950_v58, %v14288_v12  ;;  %vm22951_vm13 = vmmov %vm22922_vm8  ;;  %v15903_v45 = vld [vmem:[%s22357_s0 + $0x18] sm:$0xff]  ;;  %v22955_v37 = vld [vmem:[#allocation9_spill] sm:$0xff] }
 0x3d4   :  { %v12337_v63 = vpack.c.bf16 %v3923_v51, %v3920_v3  ;;  %v15904_v61 = vld [vmem:[%s22357_s0 + $0x20] sm:$0xff] }
 0x3d5   :  { %4876 = vmatmul.mubr.f32.vlgmr.msra.gmra.mrb[24].mxu0 %v18481_v46  ;;  %12334 = vmatprep.subr.bf16.mxu0 %v12333_v34 }
 0x3d6   :  { %12336 = vmatpush3.bf16.msra.mxu0 %v12333_v34  ;;  %4880 = vmatprep.mubr.f32.mxu0 %v18488_v53 }
 0x3d7   :  { %12338 = vmatprep.subr.bf16.mxu0 %v12337_v63 }
 0x3d9   :  { %4881 = vmatmul.mubr.f32.gmra.mrb[26].mxu0 %v18505_v5 }
 0x3da   :  { %12340 = vmatpush3.bf16.msra.mxu0 %v12337_v63  ;;  %4885 = vmatprep.mubr.f32.mxu0 %v18512_v31 }
 0x3dd   :  { %4886 = vmatmul.mubr.f32.gmra.mrb[28].mxu0 %v18530_v29 }
 0x3de   :  { %4890 = vmatprep.mubr.f32.mxu0 %v18535_v38 }
 0x3e1   :  { %4891 = vmatmul.mubr.f32.gmra.mrb[30].mxu0 %v18556_v22  ;;  %v4261_v6 = vpop.permute.xlu0 %4260 }
 0x3e2   :  { %11877 = vmatprep.mubr.msk.f32.mxu0 %vm22922_vm8, %v18577_v16 }
 0x3e5   :  { %11878 = vmatmul.mubr.msk.f32.vlgmr.msra.gmra.mrb[32].mxu0 %vm22951_vm13, %v18599_v30  ;;  %v4256_v30 = vpop.permute.xlu1 %4255  ;;  %v4271_v25 = vpop.permute.xlu0 %4270  ;;  %vm22967_vm13 = vmmov %vm22922_vm8 }
 0x3e6   :  { %11880 = vmatprep.mubr.msk.f32.mxu0 %vm22952_vm10, %v18620_v9  ;;  %vm22957_vm10 = vmmov %vm22922_vm8 }
 0x3e9   :  { %11881 = vmatmul.mubr.msk.f32.gmra.mrb[34].mxu0 %vm22953_vm11, %v18641_v52  ;;  %v4266_v10 = vpop.permute.xlu1 %4265  ;;  %vm22961_vm11 = vmmov %vm22922_vm8 }
 0x3f7   :  { %v11503_v59 = vpop.f32.mrb[8].mxu0 }
 0x3f8   :  { %v11504_v8 = vpop.f32.mrb[9].mxu0 }
 0x3f9   :  { %v11505_v18 = vadd.f32 %v11504_v8, %v11503_v59 }
 0x3fb   :  { %v11506_v46 = vpop.f32.mrb[10].mxu0  ;;  %v4708_v39 = vadd.f32 %v11505_v18, %v4256_v30 }
 0x3fc   :  { %v11507_v28 = vpop.f32.mrb[11].mxu0 }
 0x3fd   :  { %v11508_v53 = vadd.f32 %v11507_v28, %v11506_v46  ;;  %v15905_v46 = vld [vmem:[%s22357_s0 + $0x30] sm:$0xff] }
 0x3ff   :  { %v11509_v36 = vpop.f32.mrb[12].mxu0  ;;  %v4713_v47 = vadd.f32 %v11508_v53, %v4261_v6 }
 0x400   :  { %v11510_v5 = vpop.f32.mrb[13].mxu0 }
 0x401   :  { %v11511_v38 = vadd.f32 %v11510_v5, %v11509_v36  ;;  %v15906_v36 = vld [vmem:[%s22357_s0 + $0x38] sm:$0xff] }
 0x403   :  { %v11512_v31 = vpop.f32.mrb[14].mxu0  ;;  %v4718_v23 = vadd.f32 %v11511_v38, %v4266_v10 }
 0x404   :  { %v11513_v29 = vpop.f32.mrb[15].mxu0 }
 0x405   :  { %v11514_v22 = vadd.f32 %v11513_v29, %v11512_v31 }
 0x407   :  { %v4723_v7 = vadd.f32 %v11514_v22, %v4271_v25 }
 0x484   :  { %v11547_v16 = vpop.f32.mrb[16].mxu0 }
 0x485   :  { %v11548_v33 = vpop.f32.mrb[17].mxu0 }
 0x486   :  { %v11549_v9 = vadd.f32 %v11548_v33, %v11547_v16 }
 0x488   :  { %v18708_v40 = vadd.f32 %v11549_v9, %v4708_v39  ;;  %v11550_v52 = vpop.f32.mrb[18].mxu0  ;;  %v15907_v9 = vld [vmem:[%s22357_s0 + $0x48] sm:$0xff] }
 0x489   :  { %v11551_v24 = vpop.f32.mrb[19].mxu0 }
 0x48a   :  { %v11552_v44 = vadd.f32 %v11551_v24, %v11550_v52 }
 0x48c   :  { %v18710_v55 = vadd.f32 %v11552_v44, %v4713_v47  ;;  %v11553_v11 = vpop.f32.mrb[20].mxu0  ;;  %v15908_v47 = vld [vmem:[%s22357_s0 + $0x50] sm:$0xff] }
 0x48d   :  { %v11554_v17 = vpop.f32.mrb[21].mxu0 }
 0x48e   :  { %v4618_v56 = vpop.f32.mrb[12].mxu1  ;;  %v11555_v42 = vadd.f32 %v11554_v17, %v11553_v11 }
 0x48f   :  { %v12877_v4 = vadd.f32 %v4618_v56, %v4256_v30  ;;  %v4620_v21 = vpop.f32.mrb[13].mxu1 }
 0x490   :  { %v12878_v1 = vadd.f32 %v4620_v21, %v4256_v30  ;;  %v18715_v54 = vadd.f32 %v11555_v42, %v4718_v23  ;;  %v11556_v20 = vpop.f32.mrb[22].mxu0 }
 0x491   :  { %v4981_v0 = vadd.f32 %v15901_v27, %v12877_v4  ;;  %v11557_v35 = vpop.f32.mrb[23].mxu0 }
 0x492   :  { %v4982_v32 = vadd.f32 %v15902_v19, %v12878_v1  ;;  %v4624_v15 = vpop.f32.mrb[14].mxu1  ;;  %v11558_v62 = vadd.f32 %v11557_v35, %v11556_v20 }
 0x493   :  { %v4993_v13 = vmax.f32 %v4981_v0, 0.0  ;;  %v12879_v48 = vadd.f32 %v4624_v15, %v4261_v6  ;;  %v4626_v26 = vpop.f32.mrb[15].mxu1 }
 0x494   :  { %v4994_v43 = vmax.f32 %v4982_v32, 0.0  ;;  %v12880_v60 = vadd.f32 %v4626_v26, %v4261_v6  ;;  %v4808_v41 = vadd.f32 %v11558_v62, %v4723_v7 }
 0x495   :  { %v18721_v49 = vmul.f32 %v4993_v13, %v22954_v14  ;;  %v4984_v12 = vadd.f32 %v15903_v45, %v12879_v48 }
 0x496   :  { %v18727_v2 = vmul.f32 %v4994_v43, %v22955_v37  ;;  %v4985_v34 = vadd.f32 %v15904_v61, %v12880_v60  ;;  %v4630_v57 = vpop.f32.mrb[16].mxu1 }
 0x497   :  { %v4996_v3 = vmax.f32 %v4984_v12, 0.0  ;;  %v12881_v58 = vadd.f32 %v4630_v57, %v4266_v10  ;;  %v4632_v51 = vpop.f32.mrb[17].mxu1 }
 0x498   :  { %v4997_v63 = vmax.f32 %v4985_v34, 0.0  ;;  %v12882_v59 = vadd.f32 %v4632_v51, %v4266_v10  ;;  %v14394_v8 = vpack.i.bf16 %v18727_v2, %v18721_v49 }
 0x499   :  { %v18735_v18 = vmul.f32 %v4996_v3, %v22954_v14  ;;  %v4987_v28 = vadd.f32 %v15905_v46, %v12881_v58 }
 0x49a   :  { %v18741_v53 = vmul.f32 %v4997_v63, %v22955_v37  ;;  %v4988_v5 = vadd.f32 %v15906_v36, %v12882_v59  ;;  %v4636_v38 = vpop.f32.mrb[18].mxu1 }
 0x49b   :  { %v4999_v31 = vmax.f32 %v4987_v28, 0.0  ;;  %v12883_v29 = vadd.f32 %v4636_v38, %v4271_v25  ;;  %v4638_v22 = vpop.f32.mrb[19].mxu1  ;;  %v18758_v6 = vpack.i.bf16 %v18735_v18, %v18721_v49  ;;  %v12375_v23 = vpack.c.bf16 %v18735_v18, %v18721_v49 }
 0x49c   :  { %v5000_v16 = vmax.f32 %v4988_v5, 0.0  ;;  %v12884_v30 = vadd.f32 %v4638_v22, %v4271_v25  ;;  %v18748_v33 = vpack.i.bf16 %v18741_v53, %v18735_v18  ;;  %v12373_v17 = vpack.c.bf16 %v18741_v53, %v18727_v2 }
 0x49d   :  { %v18751_v39 = vmul.f32 %v4999_v31, %v22954_v14  ;;  %v4990_v52 = vadd.f32 %v15907_v9, %v12883_v29  ;;  %v15911_v29 = vld [vmem:[%s22357_s0 + $0x58] sm:$0xff] }
 0x49e   :  { %v18761_v24 = vmul.f32 %v5000_v16, %v22955_v37  ;;  %v4991_v44 = vadd.f32 %v15908_v47, %v12884_v30  ;;  %v15912_v30 = vld [vmem:[%s22357_s0 + $0x40] sm:$0xff] }
 0x49f   :  { %v5002_v10 = vmax.f32 %v4990_v52, 0.0  ;;  %v15913_v52 = vld [vmem:[%s22354_s2] sm:$0xff] }
 0x4a0   :  { %v5003_v11 = vmax.f32 %v4991_v44, 0.0  ;;  %v14414_v56 = vpack.i.bf16 %v18761_v24, %v18751_v39  ;;  %v14294_v47 = vpack.i.bf16 %v18721_v49, %v15913_v52 }
 0x4a1   :  { %v18773_v4 = vmul.f32 %v5002_v10, %v22954_v14  ;;  %v15914_v10 = vld [vmem:[%s22354_s2 + $0x78] sm:$0xff] }
 0x4a2   :  { %v18776_v21 = vmul.f32 %v5003_v11, %v22955_v37 }
 0x4a3   :  { %v14384_v42 = vpack.i.bf16 %v18773_v4, %v18761_v24  ;;  %v18782_v1 = vpack.i.bf16 %v18773_v4, %v18751_v39  ;;  %v12379_v0 = vpack.c.bf16 %v18773_v4, %v18751_v39 }
 0x4a4   :  { %v14439_v25 = vpack.i.bf16 %v18776_v21, %v18773_v4  ;;  %v12377_v27 = vpack.c.bf16 %v18776_v21, %v18761_v24 }
 0x4a8   :  { %v11591_v20 = vpop.f32.mrb[24].mxu0 }
 0x4a9   :  { %v11592_v19 = vpop.f32.mrb[25].mxu0 }
 0x4aa   :  { %v11593_v32 = vadd.f32 %v11592_v19, %v11591_v20 }
 0x4ac   :  { %v11594_v15 = vpop.f32.mrb[26].mxu0  ;;  %v4878_v35 = vadd.f32 %v11593_v32, %v18708_v40  ;;  %v15909_v40 = vld [vmem:[%s22357_s0 + $0x28] sm:$0xff] }
 0x4ad   :  { %v11595_v7 = vpop.f32.mrb[27].mxu0 }
 0x4ae   :  { %v11596_v13 = vadd.f32 %v11595_v7, %v11594_v15 }
 0x4b0   :  { %v11597_v48 = vpop.f32.mrb[28].mxu0  ;;  %v4883_v26 = vadd.f32 %v11596_v13, %v18710_v55  ;;  %v15910_v55 = vld [vmem:[%s22357_s0 + $0x10] sm:$0xff]  ;;  %s22987_s0 = smov 22  }
 0x4b1   :  { %v11598_v62 = vpop.f32.mrb[29].mxu0 }
 0x4b2   :  { %v11599_v43 = vadd.f32 %v11598_v62, %v11597_v48 }
 0x4b4   :  { %v11600_v60 = vpop.f32.mrb[30].mxu0  ;;  %v4888_v45 = vadd.f32 %v11599_v43, %v18715_v54 }
 0x4b5   :  { %v11601_v12 = vpop.f32.mrb[31].mxu0 }
 0x4b6   :  { %v11602_v61 = vadd.f32 %v11601_v12, %v11600_v60  ;;  %v15915_v60 = vld [vmem:[%s22354_s2 + $0x28] sm:$0xff] }
 0x4b7   :  { %v14359_v12 = vpack.i.bf16 %v18751_v39, %v15915_v60 }
 0x4b8   :  { %v11879_v34 = vpop.f32.mrb[32].mxu0  ;;  %v4893_v57 = vadd.f32 %v11602_v61, %v4808_v41  ;;  %v22956_v41 = vld [vmem:[#allocation4_spill] sm:$0xff]  ;;  %v15916_v61 = vld [vmem:[%s22354_s2 + $0x50] sm:$0xff] }
 0x4b9   :  { %v4968_v3 = vadd.f32 %v11879_v34, %v4883_v26  ;;  %v4962_v58 = vpop.f32.mrb[33].mxu0  ;;  %v14349_v34 = vpack.i.bf16 %v18751_v39, %v15916_v61 }
 0x4ba   :  { %v4963_v51 = vadd.f32 %v4962_v58, %v4878_v35  ;;  %v14424_v58 = vpack.i.bf16 %v15916_v61, %v18776_v21 }
 0x4bb   :  { %v4986_v63 = vadd.f32 %v15909_v40, %v4968_v3  ;;  %v18896_v3 = vpack.i.bf16 %v15915_v60, %v15913_v52 }
 0x4bc   :  { %v4983_v59 = vadd.f32 %v15910_v55, %v4963_v51  ;;  %v11882_v46 = vpop.f32.mrb[34].mxu0  ;;  %v15920_v51 = vld [vmem:[%s22354_s2 + $0x98] sm:$0xff] }
 0x4bd   :  { %v4998_v28 = vmax.f32 %v4986_v63, 0.0  ;;  %v4978_v54 = vadd.f32 %v11882_v46, %v4893_v57  ;;  %v4972_v36 = vpop.f32.mrb[35].mxu0  ;;  %v14374_v57 = vpack.i.bf16 %v18773_v4, %v15914_v10 }
 0x4be   :  { %v4995_v5 = vmax.f32 %v4983_v59, 0.0  ;;  %v4973_v38 = vadd.f32 %v4972_v36, %v4888_v45  ;;  %v14324_v45 = vpack.i.bf16 %v18735_v18, %v15915_v60 }
 0x4bf   :  { %v18800_v31 = vmul.f32 %v4998_v28, %v22956_v41  ;;  %v4992_v22 = vadd.f32 %v15911_v29, %v4978_v54  ;;  %v11343_v54 = vld [vmem:[%s22356_s6 + $0x40] sm:$0xff] }
 0x4c0   :  { %v18806_v16 = vmul.f32 %v4995_v5, %v22956_v41  ;;  %v4989_v9 = vadd.f32 %v15912_v30, %v4973_v38 }
 0x4c1   :  { %v5004_v44 = vmax.f32 %v4992_v22, 0.0  ;;  %v14289_v11 = vpack.i.bf16 %v18800_v31, %v15914_v10  ;;  %v18821_v20 = vpack.i.bf16 %v18800_v31, %v18741_v53 }
 0x4c2   :  { %v5001_v19 = vmax.f32 %v4989_v9, 0.0  ;;  %v12413_v32 = vpack.c.bf16 %v18800_v31, %v18806_v16  ;;  %v18827_v15 = vpack.i.bf16 %v18806_v16, %v18727_v2  ;;  %v14584_v62 = vpack.i.bf16 %v18800_v31, %v18806_v16  ;;  %v11344_v31 = vld [vmem:[%s22356_s6 + $0x48] sm:$0xff] }
 0x4c3   :  { %v18830_v35 = vmul.f32 %v5004_v44, %v22956_v41  ;;  %14290 = vrot.lane.b32.xlu1 %v14289_v11, %s15949_s13  ;;  %v11345_v44 = vld [vmem:[%s22356_s6 + $0x50] sm:$0xff] }
 0x4c4   :  { %v18834_v7 = vmul.f32 %v5001_v19, %v22956_v41  ;;  %12414 = vmatprep.subr.bf16.mxu1 %v12413_v32  ;;  %14310 = vrot.lane.b32.xlu0 %v18827_v15, %s15947_s30  ;;  %v11346_v19 = vld [vmem:[%s22356_s6 + $0x58] sm:$0xff] }
 0x4c5   :  { %v18840_v13 = vpack.i.bf16 %v18830_v35, %v18776_v21 }
 0x4c6   :  { %v18844_v48 = vpack.i.bf16 %v18834_v7, %v18761_v24  ;;  %v18851_v26 = vpack.i.bf16 %v18830_v35, %v18834_v7  ;;  %v12417_v43 = vpack.c.bf16 %v18830_v35, %v18834_v7 }
 0x4c7   :  { %14295 = vrot.lane.b32.xlu1 %v14294_v47, %s15947_s30 }
 0x4c8   :  { %14315 = vrot.lane.b32.xlu0 %v18827_v15, %s15948_s12 }
 0x4cb   :  { %14300 = vrot.lane.b32.xlu1 %v14294_v47, %s15948_s12 }
 0x4cc   :  { %14320 = vrot.lane.b32.xlu0 %v18827_v15, %s15949_s13 }
 0x4cf   :  { %14305 = vrot.lane.b32.xlu1 %v14294_v47, %s15949_s13 }
 0x4d0   :  { %14335 = vrot.lane.b32.xlu0 %v18821_v20, %s15947_s30 }
 0x4d3   :  { %14325 = vrot.lane.b32.xlu1 %v14324_v45, %s15947_s30 }
 0x4d4   :  { %14340 = vrot.lane.b32.xlu0 %v18821_v20, %s15948_s12 }
 0x4d7   :  { %14330 = vrot.lane.b32.xlu1 %v14324_v45, %s15948_s12 }
 0x4d8   :  { %14360 = vrot.lane.b32.xlu0 %v14359_v12, %s15949_s13 }
 0x4db   :  { %14345 = vrot.lane.b32.xlu1 %v18748_v33, %s15949_s13 }
 0x4dc   :  { %14365 = vrot.lane.b32.xlu0 %v18844_v48, %s15947_s30 }
 0x4df   :  { %14350 = vrot.lane.b32.xlu1 %v14349_v34, %s15947_s30 }
 0x4e0   :  { %14370 = vrot.lane.b32.xlu0 %v18844_v48, %s15948_s12 }
 0x4e3   :  { %14355 = vrot.lane.b32.xlu1 %v14349_v34, %s15948_s12 }
 0x4e4   :  { %14390 = vrot.lane.b32.xlu0 %v18840_v13, %s15947_s30 }
 0x4e7   :  { %14375 = vrot.lane.b32.xlu1 %v14374_v57, %s15947_s30 }
 0x4e8   :  { %14395 = vrot.lane.b32.xlu0 %v14394_v8, %s15950_s14  ;;  %v18912_v8 = vpack.i.bf16 %v15914_v10, %v15916_v61 }
 0x4eb   :  { %14380 = vrot.lane.b32.xlu1 %v14374_v57, %s15948_s12 }
 0x4ec   :  { %14405 = vrot.lane.b32.xlu0 %v18840_v13, %s15948_s12 }
 0x4ef   :  { %14385 = vrot.lane.b32.xlu1 %v14384_v42, %s15949_s13  ;;  %v15918_v42 = vld [vmem:[%s22354_s2 + $0x48] sm:$0xff] }
 0x4f0   :  { %14410 = vrot.lane.b32.xlu0 %v18896_v3, %s15950_s14 }
 0x4f3   :  { %14400 = vrot.lane.b32.xlu1 %v18748_v33, %s15950_s14  ;;  %v11332_v33 = vld [vmem:[%s22355_s4 + $0x68] sm:$0xff] }
 0x4f4   :  { %14425 = vrot.lane.b32.xlu0 %v14424_v58, %s15949_s13  ;;  %6075 = vmatprep.mubr.f32.mxu0 %v11332_v33 }
 0x4f5   :  { %6253 = vmatprep.mubr.f32.mxu1 %v11332_v33 }
 0x4f7   :  { %14415 = vrot.lane.b32.xlu1 %v14414_v56, %s15950_s14  ;;  %v15917_v56 = vld [vmem:[%s22354_s2 + $0x20] sm:$0xff] }
 0x4f8   :  { %14430 = vrot.lane.b32.xlu0 %v18827_v15, %s15951_s19 }
 0x4fb   :  { %14420 = vrot.lane.b32.xlu1 %v18912_v8, %s15950_s14 }
 0x4fc   :  { %14440 = vrot.lane.b32.xlu0 %v14439_v25, %s15950_s14  ;;  %v14554_v25 = vpack.i.bf16 %v15918_v42, %v15917_v56 }
 0x4ff   :  { %14435 = vrot.lane.b32.xlu1 %v18821_v20, %s15951_s19 }
 0x500   :  { %14445 = vrot.lane.b32.xlu0 %v18758_v6, %s15951_s19 }
 0x503   :  { %14450 = vrot.lane.b32.xlu1 %v18844_v48, %s15951_s19 }
 0x504   :  { %14460 = vrot.lane.b32.xlu0 %v18827_v15, %s15952_s24 }
 0x507   :  { %14455 = vrot.lane.b32.xlu1 %v18782_v1, %s15951_s19 }
 0x508   :  { %14470 = vrot.lane.b32.xlu0 %v18758_v6, %s15952_s24 }
 0x50b   :  { %14465 = vrot.lane.b32.xlu1 %v18821_v20, %s15952_s24 }
 0x50c   :  { %14485 = vrot.lane.b32.xlu0 %v18840_v13, %s15951_s19 }
 0x50f   :  { %14475 = vrot.lane.b32.xlu1 %v18844_v48, %s15952_s24 }
 0x510   :  { %14490 = vrot.lane.b32.xlu0 %v18827_v15, %s15953_s25 }
 0x513   :  { %14480 = vrot.lane.b32.xlu1 %v18782_v1, %s15952_s24 }
 0x514   :  { %14500 = vrot.lane.b32.xlu0 %v18840_v13, %s15952_s24 }
 0x517   :  { %14495 = vrot.lane.b32.xlu1 %v18821_v20, %s15953_s25 }
 0x518   :  { %14505 = vrot.lane.b32.xlu0 %v18758_v6, %s15953_s25 }
 0x51b   :  { %14510 = vrot.lane.b32.xlu1 %v18844_v48, %s15953_s25 }
 0x51c   :  { %14515 = vrot.lane.b32.xlu0 %v18840_v13, %s15953_s25 }
 0x51f   :  { %14520 = vrot.lane.b32.xlu1 %v18782_v1, %s15953_s25 }
 0x520   :  { %14525 = vrot.lane.b32.xlu0 %v18827_v15, %s15954_s28 }
 0x523   :  { %14530 = vrot.lane.b32.xlu1 %v18821_v20, %s15954_s28 }
 0x524   :  { %14535 = vrot.lane.b32.xlu0 %v18758_v6, %s15954_s28  ;;  %v15919_v6 = vld [vmem:[%s22354_s2 + $0x70] sm:$0xff] }
 0x525   :  { %v14559_v40 = vpack.i.bf16 %v15920_v51, %v15919_v6 }
 0x527   :  { %14540 = vrot.lane.b32.xlu1 %v18844_v48, %s15954_s28 }
 0x528   :  { %14545 = vrot.lane.b32.xlu0 %v18840_v13, %s15954_s28 }
 0x52b   :  { %14550 = vrot.lane.b32.xlu1 %v18782_v1, %s15954_s28 }
 0x52c   :  { %14555 = vrot.lane.b32.xlu0 %v14554_v25, %s15951_s19 }
 0x52f   :  { %14560 = vrot.lane.b32.xlu1 %v14559_v40, %s15951_s19 }
 0x530   :  { %14565 = vrot.lane.b32.xlu0 %v14554_v25, %s15952_s24 }
 0x533   :  { %14570 = vrot.lane.b32.xlu1 %v14559_v40, %s15952_s24 }
 0x534   :  { %14575 = vrot.lane.b32.xlu0 %v18851_v26, %s15949_s13 }
 0x535   :  { %v18989_v1 = vpop.permute.xlu1 %14290 }
 0x536   :  { %v14311_v63 = vpop.permute.xlu0 %14310  ;;  %v14293_v7 = vunpack.i.h.bf16 %v18989_v1 }
 0x537   :  { %14580 = vrot.lane.b32.xlu1 %v14554_v25, %s15953_s25  ;;  %v14313_v36 = vunpack.i.h.bf16 %v14311_v63  ;;  %v14312_v5 = vunpack.i.l.bf16 %v14311_v63 }
 0x538   :  { %14585 = vrot.lane.b32.xlu0 %v14584_v62, %s15950_s14 }
 0x539   :  { %v14296_v55 = vpop.permute.xlu1 %14295  ;;  %v5108_v10 = vsel %vm155_vm0, %v14312_v5, %v14313_v36 }
 0x53a   :  { %v18996_v59 = vpop.permute.xlu0 %14315  ;;  %v14298_v29 = vunpack.i.h.bf16 %v14296_v55  ;;  %v14297_v22 = vunpack.i.l.bf16 %v14296_v55 }
 0x53b   :  { %14590 = vrot.lane.b32.xlu1 %v14559_v40, %s15953_s25  ;;  %v14318_v30 = vunpack.i.h.bf16 %v18996_v59  ;;  %v14317_v9 = vunpack.i.l.bf16 %v18996_v59 }
 0x53c   :  { %14595 = vrot.lane.b32.xlu0 %v18851_v26, %s15950_s14  ;;  %v5106_v32 = vsel %vm155_vm0, %v14297_v22, %v14298_v29  ;;  %v5107_v12 = vsel %vm155_vm0, %v14298_v29, %v14312_v5 }
 0x53d   :  { %v19001_v46 = vpop.permute.xlu1 %14300  ;;  %v19029_v62 = vsel %vm256_vm1, %v14317_v9, %v14318_v30 }
 0x53e   :  { %v19003_v28 = vpop.permute.xlu0 %14320 }
 0x53f   :  { %14600 = vrot.lane.b32.xlu1 %v14554_v25, %s15954_s28  ;;  %v14323_v6 = vunpack.i.h.bf16 %v19003_v28  ;;  %v14322_v51 = vunpack.i.l.bf16 %v19003_v28 }
 0x540   :  { %14605 = vrot.lane.b32.xlu0 %v14559_v40, %s15954_s28 }
 0x541   :  { %v19010_v38 = vpop.permute.xlu1 %14305  ;;  %v19059_v63 = vsel %vm357_vm2, %v14322_v51, %v14323_v6 }
 0x542   :  { %v14336_v16 = vpop.permute.xlu0 %14335 }
 0x543   :  { %v14338_v52 = vunpack.i.h.bf16 %v14336_v16  ;;  %v14337_v47 = vunpack.i.l.bf16 %v14336_v16  ;;  %5981 = vperm.xlu1 %13328, %v11343_v54  }
 0x544   :  { %5986 = vperm.xlu0 %13327, %v11344_v31  }
 0x545   :  { %v5111_v11 = vsel %vm155_vm0, %v14337_v47, %v14338_v52  ;;  %v14326_v20 = vpop.permute.xlu1 %14325 }
 0x546   :  { %v14328_v15 = vunpack.i.h.bf16 %v14326_v20  ;;  %v14327_v13 = vunpack.i.l.bf16 %v14326_v20  ;;  %v14341_v48 = vpop.permute.xlu0 %14340  ;;  %v12415_v26 = vpack.c.bf16 %v5111_v11, %v5108_v10  ;;  %v14303_v10 = vunpack.i.h.bf16 %v19001_v46 }
 0x547   :  { %v14343_v60 = vunpack.i.h.bf16 %v14341_v48  ;;  %v14342_v45 = vunpack.i.l.bf16 %v14341_v48  ;;  %5991 = vperm.xlu1 %13328, %v11345_v44  }
 0x548   :  { %v5109_v61 = vsel %vm155_vm0, %v14327_v13, %v14328_v15  ;;  %12416 = vmatpush3.bf16.msra.mxu1 %v12415_v26  ;;  %5996 = vperm.xlu0 %13327, %v11346_v19   ;;  %v5110_v34 = vsel %vm155_vm0, %v14328_v15, %v14337_v47  ;;  %v14302_v26 = vunpack.i.l.bf16 %v19001_v46  ;;  %v5207_v46 = vsel %vm256_vm1, %v14303_v10, %v14317_v9 }
 0x549   :  { %v19035_v57 = vsel %vm256_vm1, %v14342_v45, %v14343_v60  ;;  %12418 = vmatprep.subr.bf16.mxu1 %v12417_v43  ;;  %v14331_v58 = vpop.permute.xlu1 %14330  ;;  %v12341_v33 = vpack.c.bf16 %v5110_v34, %v5107_v12  ;;  %v12343_v56 = vpack.c.bf16 %v5109_v61, %v5106_v32 }
 0x54a   :  { %v19040_v42 = vpop.permute.xlu0 %14360  ;;  %v12423_v25 = vpack.c.bf16 %v19035_v57, %v19029_v62  ;;  %v14333_v16 = vunpack.i.h.bf16 %v14331_v58  ;;  %v14332_v32 = vunpack.i.l.bf16 %v14331_v58 }
 0x54b   :  { %12342 = vmatprep.subr.bf16.mxu0 %v12341_v33  ;;  %14615 = vrot.lane.b32.xlu1 %v18912_v8, %s15948_s12 }
 0x54c   :  { %12344 = vmatpush1.bf16.msra.mxu0 %v12343_v56  ;;  %14610 = vrot.lane.b32.xlu0 %v18896_v3, %s15948_s12  ;;  %v5210_v61 = vsel %vm256_vm1, %v14333_v16, %v14342_v45 }
 0x54d   :  { %v19050_v35 = vpop.permute.xlu1 %14345 }
 0x54e   :  { %v14348_v43 = vunpack.i.h.bf16 %v19050_v35  ;;  %v14366_v40 = vpop.permute.xlu0 %14365 }
 0x54f   :  { %14625 = vrot.lane.b32.xlu1 %v18912_v8, %s15949_s13  ;;  %v14368_v8 = vunpack.i.h.bf16 %v14366_v40  ;;  %v14367_v31 = vunpack.i.l.bf16 %v14366_v40 }
 0x550   :  { %v19064_v55 = vsel %vm357_vm2, %v14348_v43, %v14293_v7  ;;  %14620 = vrot.lane.b32.xlu0 %v18896_v3, %s15949_s13 }
 0x551   :  { %v14351_v54 = vpop.permute.xlu1 %14350  ;;  %v5114_v11 = vsel %vm155_vm0, %v14367_v31, %v14368_v8 }
 0x552   :  { %v14371_v5 = vpop.permute.xlu0 %14370  ;;  %v14353_v47 = vunpack.i.h.bf16 %v14351_v54  ;;  %v14352_v44 = vunpack.i.l.bf16 %v14351_v54 }
 0x553   :  { %v14373_v60 = vunpack.i.h.bf16 %v14371_v5  ;;  %v14372_v12 = vunpack.i.l.bf16 %v14371_v5  ;;  %v5209_v5 = vsel %vm256_vm1, %v14332_v32, %v14333_v16 }
 0x554   :  { %14630 = vrot.lane.b32.xlu0 %v18896_v3, %s15963_s16  ;;  %v5112_v34 = vsel %vm155_vm0, %v14352_v44, %v14353_v47  ;;  %v5113_v56 = vsel %vm155_vm0, %v14353_v47, %v14367_v31  ;;  %v14308_v47 = vunpack.i.h.bf16 %v19010_v38 }
 0x555   :  { %v14356_v29 = vpop.permute.xlu1 %14355 }
 0x556   :  { %v14391_v22 = vpop.permute.xlu0 %14390  ;;  %v14358_v6 = vunpack.i.h.bf16 %v14356_v29  ;;  %v14357_v59 = vunpack.i.l.bf16 %v14356_v29 }
 0x557   :  { %v14393_v30 = vunpack.i.h.bf16 %v14391_v22  ;;  %v14392_v52 = vunpack.i.l.bf16 %v14391_v22  ;;  %v12349_v22 = vpack.c.bf16 %v5210_v61, %v5207_v46  ;;  %v14362_v61 = vunpack.i.l.bf16 %v19040_v42 }
 0x559   :  { %v5117_v20 = vsel %vm155_vm0, %v14392_v52, %v14393_v30  ;;  %v14376_v19 = vpop.permute.xlu1 %14375  ;;  %v14347_v30 = vunpack.i.l.bf16 %v19050_v35  ;;  %v5307_v35 = vsel %vm357_vm2, %v14308_v47, %v14322_v51 }
 0x55a   :  { %v14378_v15 = vunpack.i.h.bf16 %v14376_v19  ;;  %v14377_v13 = vunpack.i.l.bf16 %v14376_v19  ;;  %v19075_v3 = vpop.permute.xlu0 %14395  ;;  %v12419_v48 = vpack.c.bf16 %v5117_v20, %v5114_v11  ;;  %v19091_v20 = vsel %vm256_vm1, %v14372_v12, %v14373_v60 }
 0x55b   :  { %v5213_v19 = vsel %vm256_vm1, %v14358_v6, %v14372_v12  ;;  %v5310_v29 = vsel %vm357_vm2, %v14347_v30, %v14348_v43  ;;  %v14307_v60 = vunpack.i.l.bf16 %v19010_v38  ;;  %v14363_v12 = vunpack.i.h.bf16 %v19040_v42 }
 0x55c   :  { %v5115_v33 = vsel %vm155_vm0, %v14377_v13, %v14378_v15  ;;  %12420 = vmatpush3.bf16.msra.mxu1 %v12419_v48  ;;  %v5116_v58 = vsel %vm155_vm0, %v14378_v15, %v14392_v52  ;;  %v5206_v52 = vsel %vm256_vm1, %v14302_v26, %v14303_v10  ;;  %v5309_v43 = vsel %vm357_vm2, %v14362_v61, %v14347_v30 }
 0x55d   :  { %v14381_v7 = vpop.permute.xlu1 %14380  ;;  %v12345_v40 = vpack.c.bf16 %v5116_v58, %v5113_v56  ;;  %v12347_v54 = vpack.c.bf16 %v5115_v33, %v5112_v34  ;;  %v12351_v13 = vpack.c.bf16 %v5209_v5, %v5206_v52  ;;  %v5212_v34 = vsel %vm256_vm1, %v14357_v59, %v14358_v6 }
 0x55e   :  { %v14383_v45 = vunpack.i.h.bf16 %v14381_v7  ;;  %v14406_v8 = vpop.permute.xlu0 %14405  ;;  %v14382_v44 = vunpack.i.l.bf16 %v14381_v7  ;;  %v22533_v28 = vunpack.i.h.bf16 %v19075_v3  ;;  %v14397_v51 = vunpack.i.l.bf16 %v19075_v3 }
 0x55f   :  { %v14408_v11 = vunpack.i.h.bf16 %v14406_v8  ;;  %v14407_v31 = vunpack.i.l.bf16 %v14406_v8  ;;  %12346 = vmatprep.subr.bf16.mxu0 %v12345_v40  ;;  %v12357_v40 = vpack.c.bf16 %v5310_v29, %v5307_v35  ;;  %v5306_v5 = vsel %vm357_vm2, %v14307_v60, %v14308_v47 }
 0x560   :  { %12348 = vmatpush1.bf16.msra.mxu0 %v12347_v54  ;;  %v5215_v26 = vsel %vm256_vm1, %v14382_v44, %v14383_v45  ;;  %v14292_v52 = vunpack.i.l.bf16 %v18989_v1 }
 0x561   :  { %v19094_v9 = vsel %vm256_vm1, %v14407_v31, %v14408_v11  ;;  %v19096_v16 = vpop.permute.xlu1 %14385  ;;  %12350 = vmatprep.subr.bf16.mxu0 %v12349_v22  ;;  %v5216_v32 = vsel %vm256_vm1, %v14383_v45, %v14407_v31  ;;  %v12355_v7 = vpack.c.bf16 %v5215_v26, %v5212_v34  ;;  %v12359_v11 = vpack.c.bf16 %v5309_v43, %v5306_v5 }
 0x562   :  { %v14411_v15 = vpop.permute.xlu0 %14410  ;;  %v12353_v10 = vpack.c.bf16 %v5216_v32, %v5213_v19  ;;  %v12427_v48 = vpack.c.bf16 %v19094_v9, %v19091_v20  ;;  %v14387_v33 = vunpack.i.l.bf16 %v19096_v16  ;;  %v14388_v38 = vunpack.i.h.bf16 %v19096_v16 }
 0x563   :  { %v14413_v30 = vunpack.i.h.bf16 %v14411_v15  ;;  %v5407_v19 = vsel %vm458_vm3, %v14397_v51, %v22533_v28  ;;  %v22958_v16 = vpack.c.bf16 %v19064_v55, %v19059_v63 }
 0x564   :  { %12352 = vmatpush1.bf16.msra.mxu0 %v12351_v13  ;;  %v5313_v8 = vsel %vm357_vm2, %v14363_v12, %v14387_v33  ;;  %v5315_v32 = vsel %vm357_vm2, %v14292_v52, %v14388_v38  ;;  %v14412_v13 = vunpack.i.l.bf16 %v14411_v15 }
 0x565   :  { %v19111_v56 = vpop.permute.xlu1 %14400  ;;  %12354 = vmatprep.subr.bf16.mxu0 %v12353_v10 }
 0x566   :  { %v19118_v58 = vpop.permute.xlu0 %14425  ;;  %v22530_v42 = vunpack.i.h.bf16 %v19111_v56  ;;  %v14402_v6 = vunpack.i.l.bf16 %v19111_v56  ;;  %v5406_v15 = vsel %vm458_vm3, %v14412_v13, %v14397_v51  ;;  %v22963_v55 = vunpack.i.h.bf16 %v19111_v56 }
 0x567   :  { %v14428_v54 = vunpack.i.h.bf16 %v19118_v58  ;;  %v14427_v46 = vunpack.i.l.bf16 %v19118_v58 }
 0x568   :  { %12356 = vmatpush1.bf16.msra.mxu0 %v12355_v7  ;;  %v5410_v59 = vsel %vm458_vm3, %v14402_v6, %v22530_v42  ;;  %v5409_v1 = vsel %vm458_vm3, %v14413_v30, %v14402_v6 }
 0x569   :  { %v19127_v45 = vpop.permute.xlu1 %14415  ;;  %12358 = vmatprep.subr.bf16.mxu0 %v12357_v40  ;;  %v5316_v22 = vsel %vm357_vm2, %v14388_v38, %v14427_v46  ;;  %v5312_v47 = vsel %vm357_vm2, %v14428_v54, %v14363_v12  ;;  %v12365_v12 = vpack.c.bf16 %v5410_v59, %v5407_v19  ;;  %v12367_v5 = vpack.c.bf16 %v5409_v1, %v5406_v15 }
 0x56a   :  { %v19135_v44 = vpop.permute.xlu0 %14430  ;;  %v12361_v31 = vpack.c.bf16 %v5316_v22, %v5313_v8  ;;  %v22527_v10 = vunpack.i.h.bf16 %v19127_v45  ;;  %v14417_v26 = vunpack.i.l.bf16 %v19127_v45  ;;  %v12363_v61 = vpack.c.bf16 %v5315_v32, %v5312_v47 }
 0x56b   :  { %v14433_v59 = vunpack.i.h.bf16 %v19135_v44  ;;  %v14432_v19 = vunpack.i.l.bf16 %v19135_v44 }
 0x56c   :  { %12360 = vmatpush1.bf16.msra.mxu0 %v12359_v11  ;;  %v5413_v40 = vsel %vm458_vm3, %v14417_v26, %v22527_v10 }
 0x56d   :  { %v14421_v29 = vpop.permute.xlu1 %14420  ;;  %12362 = vmatprep.subr.bf16.mxu0 %v12361_v31  ;;  %v5531_v2 = vsel %vm583_vm4, %v14432_v19, %v14433_v59 }
 0x56e   :  { %v19149_v60 = vpop.permute.xlu0 %14440  ;;  %v14423_v34 = vunpack.i.h.bf16 %v14421_v29  ;;  %v14422_v35 = vunpack.i.l.bf16 %v14421_v29 }
 0x56f   :  { %v22526_v43 = vunpack.i.h.bf16 %v19149_v60  ;;  %v14442_v7 = vunpack.i.l.bf16 %v19149_v60 }
 0x570   :  { %12364 = vmatpush1.bf16.msra.mxu0 %v12363_v61  ;;  %v5412_v22 = vsel %vm458_vm3, %v14422_v35, %v14417_v26 }
 0x571   :  { %v19154_v38 = vpop.permute.xlu1 %14435  ;;  %12366 = vmatprep.subr.bf16.mxu0 %v12365_v12  ;;  %v5416_v6 = vsel %vm458_vm3, %v14442_v7, %v22526_v43  ;;  %v5415_v30 = vsel %vm458_vm3, %v14423_v34, %v14442_v7 }
 0x572   :  { %v14446_v54 = vpop.permute.xlu0 %14445  ;;  %v12369_v8 = vpack.c.bf16 %v5416_v6, %v5413_v40  ;;  %v12371_v31 = vpack.c.bf16 %v5415_v30, %v5412_v22  ;;  %v14438_v52 = vunpack.i.h.bf16 %v19154_v38  ;;  %v14437_v47 = vunpack.i.l.bf16 %v19154_v38 }
 0x573   :  { %v14448_v13 = vunpack.i.h.bf16 %v14446_v54  ;;  %v14447_v26 = vunpack.i.l.bf16 %v14446_v54 }
 0x574   :  { %12368 = vmatpush1.bf16.msra.mxu0 %v12367_v5  ;;  %v5534_v1 = vsel %vm583_vm4, %v14437_v47, %v14438_v52 }
 0x575   :  { %v19164_v51 = vpop.permute.xlu1 %14450  ;;  %12370 = vmatprep.subr.bf16.mxu0 %v12369_v8  ;;  %v5530_v53 = vsel %vm583_vm4, %v14447_v26, %v14432_v19  ;;  %v12381_v18 = vpack.c.bf16 %v5534_v1, %v5531_v2 }
 0x576   :  { %v19166_v11 = vpop.permute.xlu0 %14460  ;;  %v14453_v61 = vunpack.i.h.bf16 %v19164_v51  ;;  %v14452_v12 = vunpack.i.l.bf16 %v19164_v51 }
 0x577   :  { %v14463_v21 = vunpack.i.h.bf16 %v19166_v11 }
 0x578   :  { %12372 = vmatpush1.bf16.msra.mxu0 %v12371_v31  ;;  %v5537_v54 = vsel %vm583_vm4, %v14452_v12, %v14453_v61 }
 0x579   :  { %v14456_v32 = vpop.permute.xlu1 %14455  ;;  %12374 = vmatprep.subr.bf16.mxu0 %v12373_v17  ;;  %v5533_v17 = vsel %vm583_vm4, %v14448_v13, %v14437_v47 }
 0x57a   :  { %v14471_v29 = vpop.permute.xlu0 %14470  ;;  %v14458_v15 = vunpack.i.h.bf16 %v14456_v32  ;;  %v14457_v40 = vunpack.i.l.bf16 %v14456_v32  ;;  %v12383_v22 = vpack.c.bf16 %v5533_v17, %v5530_v53 }
 0x57b   :  { %v14472_v31 = vunpack.i.l.bf16 %v14471_v29 }
 0x57c   :  { %12376 = vmatpush1.bf16.msra.mxu0 %v12375_v23  ;;  %v5536_v47 = vsel %vm583_vm4, %v14457_v40, %v14452_v12 }
 0x57d   :  { %v19183_v34 = vpop.permute.xlu1 %14465  ;;  %12378 = vmatprep.subr.bf16.mxu0 %v12377_v27  ;;  %v14462_v27 = vunpack.i.l.bf16 %v19166_v11 }
 0x57e   :  { %v19193_v49 = vpop.permute.xlu0 %14485  ;;  %v14468_v23 = vunpack.i.h.bf16 %v19183_v34  ;;  %v14467_v35 = vunpack.i.l.bf16 %v19183_v34 }
 0x57f   :  { %v14488_v7 = vunpack.i.h.bf16 %v19193_v49  ;;  %v14487_v24 = vunpack.i.l.bf16 %v19193_v49  ;;  %v5631_v26 = vsel %vm684_vm5, %v14462_v27, %v14463_v21 }
 0x580   :  { %12380 = vmatpush1.bf16.msra.mxu0 %v12379_v0  ;;  %v5634_v4 = vsel %vm684_vm5, %v14467_v35, %v14468_v23  ;;  %v14473_v0 = vunpack.i.h.bf16 %v14471_v29 }
 0x581   :  { %v19204_v6 = vpop.permute.xlu1 %14475  ;;  %12382 = vmatprep.subr.bf16.mxu0 %v12381_v18  ;;  %v5540_v5 = vsel %vm583_vm4, %v14487_v24, %v14488_v7  ;;  %v5539_v39 = vsel %vm583_vm4, %v14458_v15, %v14487_v24  ;;  %v12389_v17 = vpack.c.bf16 %v5634_v4, %v5631_v26  ;;  %v5630_v15 = vsel %vm684_vm5, %v14472_v31, %v14462_v27 }
 0x582   :  { %v19212_v8 = vpop.permute.xlu0 %14490  ;;  %v12385_v30 = vpack.c.bf16 %v5540_v5, %v5537_v54  ;;  %v14478_v19 = vunpack.i.h.bf16 %v19204_v6  ;;  %v14477_v32 = vunpack.i.l.bf16 %v19204_v6  ;;  %v5633_v1 = vsel %vm684_vm5, %v14473_v0, %v14467_v35 }
 0x583   :  { %v12387_v53 = vpack.c.bf16 %v5539_v39, %v5536_v47  ;;  %v22537_v40 = vunpack.i.h.bf16 %v19212_v8  ;;  %v14492_v54 = vunpack.i.l.bf16 %v19212_v8  ;;  %v12391_v4 = vpack.c.bf16 %v5633_v1, %v5630_v15 }
 0x584   :  { %12384 = vmatpush1.bf16.msra.mxu0 %v12383_v22  ;;  %v5637_v35 = vsel %vm684_vm5, %v14477_v32, %v14478_v19 }
 0x585   :  { %v14481_v13 = vpop.permute.xlu1 %14480  ;;  %12386 = vmatprep.subr.bf16.mxu0 %v12385_v30  ;;  %v5731_v43 = vsel %vm785_vm6, %v14492_v54, %v22537_v40 }
 0x586   :  { %v19225_v2 = vpop.permute.xlu0 %14500  ;;  %v14483_v29 = vunpack.i.h.bf16 %v14481_v13  ;;  %v14482_v18 = vunpack.i.l.bf16 %v14481_v13 }
 0x587   :  { %v14503_v12 = vunpack.i.h.bf16 %v19225_v2  ;;  %v14502_v24 = vunpack.i.l.bf16 %v19225_v2 }
 0x588   :  { %12388 = vmatpush1.bf16.msra.mxu0 %v12387_v53  ;;  %v5636_v31 = vsel %vm684_vm5, %v14482_v18, %v14477_v32 }
 0x589   :  { %v19232_v5 = vpop.permute.xlu1 %14495  ;;  %12390 = vmatprep.subr.bf16.mxu0 %v12389_v17  ;;  %v5640_v22 = vsel %vm684_vm5, %v14502_v24, %v14503_v12  ;;  %v5639_v47 = vsel %vm684_vm5, %v14483_v29, %v14502_v24 }
 0x58a   :  { %v22535_v30 = vunpack.i.h.bf16 %v19232_v5  ;;  %v14497_v27 = vunpack.i.l.bf16 %v19232_v5  ;;  %v14506_v39 = vpop.permute.xlu0 %14505  ;;  %v12393_v0 = vpack.c.bf16 %v5640_v22, %v5637_v35  ;;  %v12395_v24 = vpack.c.bf16 %v5639_v47, %v5636_v31 }
 0x58b   :  { %v14508_v13 = vunpack.i.h.bf16 %v14506_v39  ;;  %v14507_v26 = vunpack.i.l.bf16 %v14506_v39 }
 0x58c   :  { %12392 = vmatpush1.bf16.msra.mxu0 %v12391_v4  ;;  %v5734_v53 = vsel %vm785_vm6, %v14497_v27, %v22535_v30 }
 0x58d   :  { %v19247_v17 = vpop.permute.xlu1 %14510  ;;  %12394 = vmatprep.subr.bf16.mxu0 %v12393_v0  ;;  %v5730_v1 = vsel %vm785_vm6, %v14507_v26, %v14492_v54  ;;  %v5733_v15 = vsel %vm785_vm6, %v14508_v13, %v14497_v27  ;;  %v12397_v39 = vpack.c.bf16 %v5734_v53, %v5731_v43 }
 0x58e   :  { %v22528_v32 = vunpack.i.h.bf16 %v19247_v17  ;;  %v14512_v29 = vunpack.i.l.bf16 %v19247_v17  ;;  %v19255_v18 = vpop.permute.xlu0 %14515  ;;  %v12399_v27 = vpack.c.bf16 %v5733_v15, %v5730_v1 }
 0x58f   :  { %v22529_v35 = vunpack.i.h.bf16 %v19255_v18  ;;  %v14517_v22 = vunpack.i.l.bf16 %v19255_v18 }
 0x590   :  { %12396 = vmatpush1.bf16.msra.mxu0 %v12395_v24  ;;  %v5737_v4 = vsel %vm785_vm6, %v14512_v29, %v22528_v32 }
 0x591   :  { %v14521_v54 = vpop.permute.xlu1 %14520  ;;  %12398 = vmatprep.subr.bf16.mxu0 %v12397_v39  ;;  %v5740_v0 = vsel %vm785_vm6, %v14517_v22, %v22529_v35 }
 0x592   :  { %v14523_v26 = vunpack.i.h.bf16 %v14521_v54  ;;  %v14522_v31 = vunpack.i.l.bf16 %v14521_v54  ;;  %v19266_v47 = vpop.permute.xlu0 %14525  ;;  %v12401_v13 = vpack.c.bf16 %v5740_v0, %v5737_v4 }
 0x593   :  { %v22532_v53 = vunpack.i.h.bf16 %v19266_v47  ;;  %v14527_v24 = vunpack.i.l.bf16 %v19266_v47 }
 0x594   :  { %v5739_v10 = vsel %vm785_vm6, %v14523_v26, %v14517_v22  ;;  %v5736_v43 = vsel %vm785_vm6, %v14522_v31, %v14512_v29  ;;  %12400 = vmatpush1.bf16.msra.mxu0 %v12399_v27  ;;  %v19279_v29 = vld [vmem:[%s22355_s4 + $0x60] sm:$0xff] }
 0x595   :  { %v19272_v39 = vpop.permute.xlu1 %14530  ;;  %12402 = vmatprep.subr.bf16.mxu0 %v12401_v13  ;;  %v12403_v32 = vpack.c.bf16 %v5739_v10, %v5736_v43  ;;  %v5831_v22 = vsel %vm22598_vm7, %v14527_v24, %v22532_v53 }
 0x596   :  { %v22531_v35 = vunpack.i.h.bf16 %v19272_v39  ;;  %v14532_v54 = vunpack.i.l.bf16 %v19272_v39  ;;  %v14536_v42 = vpop.permute.xlu0 %14535 }
 0x597   :  { %v14538_v1 = vunpack.i.h.bf16 %v14536_v42  ;;  %v14537_v15 = vunpack.i.l.bf16 %v14536_v42 }
 0x598   :  { %12404 = vmatpush1.bf16.msra.mxu0 %v12403_v32  ;;  %v5834_v10 = vsel %vm22598_vm7, %v14532_v54, %v22531_v35  ;;  %v19294_v32 = vld [vmem:[%s22355_s4 + $0x80] sm:$0xff] }
 0x599   :  { %v5830_v4 = vsel %vm22598_vm7, %v14537_v15, %v14527_v24  ;;  %v5833_v0 = vsel %vm22598_vm7, %v14538_v1, %v14532_v54  ;;  %v19289_v26 = vpop.permute.xlu1 %14540  ;;  %v12405_v42 = vpack.c.bf16 %v5834_v10, %v5831_v22  ;;  %v19307_v54 = vld [vmem:[%s22355_s4 + $0x78] sm:$0xff] }
 0x59a   :  { %v22534_v31 = vunpack.i.h.bf16 %v19289_v26  ;;  %v14542_v27 = vunpack.i.l.bf16 %v19289_v26  ;;  %v19298_v13 = vpop.permute.xlu0 %14545  ;;  %v12407_v43 = vpack.c.bf16 %v5833_v0, %v5830_v4  ;;  %v19318_v10 = vld [vmem:[%s22355_s4 + $0x98] sm:$0xff] }
 0x59b   :  { %v22536_v35 = vunpack.i.h.bf16 %v19298_v13  ;;  %v14547_v24 = vunpack.i.l.bf16 %v19298_v13  ;;  %6076 = vmatmul.mubr.f32.vlgmr.msra.gmra.mrb[36].mxu0 %v19279_v29  ;;  %12406 = vmatprep.subr.bf16.mxu0 %v12405_v42 }
 0x59c   :  { %12408 = vmatpush1.bf16.msra.mxu0 %v12407_v43  ;;  %6081 = vmatprep.mubr.f32.mxu0 %v19294_v32  ;;  %v5837_v1 = vsel %vm22598_vm7, %v14542_v27, %v22534_v31 }
 0x59d   :  { %v14551_v15 = vpop.permute.xlu1 %14550  ;;  %v5840_v22 = vsel %vm22598_vm7, %v14547_v24, %v22536_v35  ;;  %v19327_v35 = vld [vmem:[%s22355_s4 + $0x90] sm:$0xff] }
 0x59e   :  { %v14553_v4 = vunpack.i.h.bf16 %v14551_v15  ;;  %v14552_v0 = vunpack.i.l.bf16 %v14551_v15  ;;  %v14556_v42 = vpop.permute.xlu0 %14555  ;;  %v12409_v43 = vpack.c.bf16 %v5840_v22, %v5837_v1 }
 0x59f   :  { %v14558_v53 = vunpack.i.h.bf16 %v14556_v42  ;;  %v14557_v28 = vunpack.i.l.bf16 %v14556_v42  ;;  %6082 = vmatmul.mubr.f32.gmra.mrb[38].mxu0 %v19307_v54  ;;  %v19338_v42 = vld [vmem:[%s22355_s4 + $0xb0] sm:$0xff] }
 0x5a0   :  { %v5839_v31 = vsel %vm22598_vm7, %v14553_v4, %v14547_v24  ;;  %v5836_v30 = vsel %vm22598_vm7, %v14552_v0, %v14542_v27  ;;  %12410 = vmatprep.subr.bf16.mxu0 %v12409_v43  ;;  %6087 = vmatprep.mubr.f32.mxu0 %v19318_v10 }
 0x5a1   :  { %v14561_v40 = vpop.permute.xlu1 %14560  ;;  %v12411_v15 = vpack.c.bf16 %v5839_v31, %v5836_v30  ;;  %v5532_v1 = vsel %vm583_vm4, %v14433_v59, %v14557_v28  ;;  %v5535_v24 = vsel %vm583_vm4, %v14438_v52, %v14558_v53  ;;  %v19344_v28 = vld [vmem:[%s22355_s4 + $0xa8] sm:$0xff] }
 0x5a2   :  { %v14563_v22 = vunpack.i.h.bf16 %v14561_v40  ;;  %v14562_v27 = vunpack.i.l.bf16 %v14561_v40  ;;  %v14566_v4 = vpop.permute.xlu0 %14565  ;;  %v12421_v0 = vpack.c.bf16 %v5535_v24, %v5532_v1 }
 0x5a3   :  { %v14568_v43 = vunpack.i.h.bf16 %v14566_v4  ;;  %v14567_v36 = vunpack.i.l.bf16 %v14566_v4  ;;  %6088 = vmatmul.mubr.f32.gmra.mrb[40].mxu0 %v19327_v35  ;;  %v22962_v4 = vunpack.i.h.bf16 %v19075_v3 }
 0x5a4   :  { %12412 = vmatpush1.bf16.msra.mxu0 %v12411_v15  ;;  %12422 = vmatprep.subr.bf16.mxu1 %v12421_v0  ;;  %v5538_v44 = vsel %vm583_vm4, %v14453_v61, %v14562_v27  ;;  %v5541_v38 = vsel %vm583_vm4, %v14488_v7, %v14563_v22 }
 0x5a5   :  { %v14571_v52 = vpop.permute.xlu1 %14570  ;;  %12424 = vmatpush3.bf16.msra.mxu1 %v12423_v25  ;;  %6093 = vmatprep.mubr.f32.mxu0 %v19338_v42  ;;  %v12425_v59 = vpack.c.bf16 %v5541_v38, %v5538_v44  ;;  %v5632_v40 = vsel %vm684_vm5, %v14463_v21, %v14567_v36  ;;  %v5635_v51 = vsel %vm684_vm5, %v14468_v23, %v14568_v43  ;;  %v19367_v25 = vld [vmem:[%s22355_s4 + $0x70] sm:$0xff]  ;;  %v11339_v43 = vld [vmem:[%s22355_s4 + $0xa0] sm:$0xff]  ;;  %v22964_v38 = vunpack.i.h.bf16 %v19247_v17 }
 0x5a6   :  { %v14573_v61 = vunpack.i.h.bf16 %v14571_v52  ;;  %v14572_v49 = vunpack.i.l.bf16 %v14571_v52  ;;  %v14576_v30 = vpop.permute.xlu0 %14575  ;;  %v12429_v57 = vpack.c.bf16 %v5635_v51, %v5632_v40  ;;  %v22965_v52 = vunpack.i.h.bf16 %v19255_v18 }
 0x5a7   :  { %v14577_v7 = vunpack.i.l.bf16 %v14576_v30  ;;  %6094 = vmatmul.mubr.f32.gmra.mrb[42].mxu0 %v19344_v28  ;;  %12426 = vmatprep.subr.bf16.mxu1 %v12425_v59  ;;  %v14578_v62 = vunpack.i.h.bf16 %v14576_v30  ;;  %v22968_v17 = vunpack.i.h.bf16 %v19149_v60  ;;  %v22971_v60 = vunpack.i.h.bf16 %v19289_v26 }
 0x5a8   :  { %6164 = vmatprep.mubr.f32.mxu0 %v22921_v50  ;;  %v5638_v11 = vsel %vm684_vm5, %v14478_v19, %v14572_v49  ;;  %v5641_v34 = vsel %vm684_vm5, %v14503_v12, %v14573_v61  ;;  %v11336_v19 = vld [vmem:[%s22355_s4 + $0x88] sm:$0xff]  ;;  %v22966_v61 = vunpack.i.h.bf16 %v19127_v45  ;;  %v22969_v45 = vunpack.i.h.bf16 %v19266_v47 }
 0x5a9   :  { %v14581_v36 = vpop.permute.xlu1 %14580  ;;  %12428 = vmatpush3.bf16.msra.mxu1 %v12427_v48  ;;  %v5314_v31 = vsel %vm357_vm2, %v14387_v33, %v14577_v7  ;;  %v5317_v20 = vsel %vm357_vm2, %v14427_v46, %v14578_v62  ;;  %v12433_v6 = vpack.c.bf16 %v5641_v34, %v5638_v11  ;;  %v22959_v33 = vunpack.i.h.bf16 %v19212_v8 }
 0x5aa   :  { %v14583_v23 = vunpack.i.h.bf16 %v14581_v36  ;;  %v14582_v21 = vunpack.i.l.bf16 %v14581_v36  ;;  %v14586_v53 = vpop.permute.xlu0 %14585  ;;  %12430 = vmatprep.subr.bf16.mxu1 %v12429_v57  ;;  %v22960_v46 = vunpack.i.h.bf16 %v19232_v5  ;;  %v12435_v27 = vpack.c.bf16 %v5317_v20, %v5314_v31  ;;  %v11342_v36 = vld [vmem:[%s22355_s4 + $0xb8] sm:$0xff] }
 0x5ab   :  { %11347 = vmatmul.mubr.msk.f32.vlgmr.msra.gmra.mrb[36].mxu0 %vm22957_vm10, %v19367_v25  ;;  %v14588_v9 = vunpack.i.h.bf16 %v14586_v53  ;;  %v14587_v48 = vunpack.i.l.bf16 %v14586_v53  ;;  %v22970_v34 = vunpack.i.h.bf16 %v19272_v39  ;;  %v22972_v31 = vunpack.i.h.bf16 %v19298_v13  ;;  %vm22973_vm10 = vmmov %vm22922_vm8  ;;  %v19455_v39 = vld [vmem:[%s22354_s2 + $0x50] sm:$0xff] }
 0x5ac   :  { %6170 = vmatprep.mubr.f32.mxu0 %v22921_v50  ;;  %v5732_v58 = vsel %vm785_vm6, %v22959_v33, %v14582_v21  ;;  %v5735_v12 = vsel %vm785_vm6, %v22960_v46, %v14583_v23 }
 0x5ad   :  { %v14591_v2 = vpop.permute.xlu1 %14590  ;;  %12432 = vmatpush3.bf16.msra.mxu1 %v22958_v16  ;;  %v5408_v63 = vsel %vm458_vm3, %v22962_v4, %v14587_v48  ;;  %v5411_v8 = vsel %vm458_vm3, %v22963_v55, %v14588_v9  ;;  %v12437_v5 = vpack.c.bf16 %v5735_v12, %v5732_v58 }
 0x5ae   :  { %v14593_v15 = vunpack.i.h.bf16 %v14591_v2  ;;  %v14592_v1 = vunpack.i.l.bf16 %v14591_v2  ;;  %v14596_v24 = vpop.permute.xlu0 %14595  ;;  %12434 = vmatprep.subr.bf16.mxu1 %v12433_v6  ;;  %v12439_v62 = vpack.c.bf16 %v5411_v8, %v5408_v63 }
 0x5af   :  { %v14597_v22 = vunpack.i.l.bf16 %v14596_v24  ;;  %11348 = vmatmul.mubr.msk.f32.gmra.mrb[38].mxu0 %vm22961_vm11, %v11336_v19  ;;  %v14598_v0 = vunpack.i.h.bf16 %v14596_v24  ;;  %vm22974_vm11 = vmmov %vm22922_vm8 }
 0x5b0   :  { %6176 = vmatprep.mubr.f32.mxu0 %v22921_v50  ;;  %v5738_v3 = vsel %vm785_vm6, %v22964_v38, %v14592_v1  ;;  %v5741_v56 = vsel %vm785_vm6, %v22965_v52, %v14593_v15 }
 0x5b1   :  { %v14601_v44 = vpop.permute.xlu1 %14600  ;;  %12436 = vmatpush3.bf16.msra.mxu1 %v12435_v27  ;;  %v5414_v49 = vsel %vm458_vm3, %v22966_v61, %v14597_v22  ;;  %v5417_v57 = vsel %vm458_vm3, %v22968_v17, %v14598_v0  ;;  %v12441_v18 = vpack.c.bf16 %v5741_v56, %v5738_v3 }
 0x5b2   :  { %v14603_v59 = vunpack.i.h.bf16 %v14601_v44  ;;  %v14602_v40 = vunpack.i.l.bf16 %v14601_v44  ;;  %v14606_v51 = vpop.permute.xlu0 %14605  ;;  %12438 = vmatprep.subr.bf16.mxu1 %v12437_v5  ;;  %v12443_v47 = vpack.c.bf16 %v5417_v57, %v5414_v49 }
 0x5b3   :  { %v14608_v30 = vunpack.i.h.bf16 %v14606_v51  ;;  %v14607_v7 = vunpack.i.l.bf16 %v14606_v51  ;;  %11349 = vmatmul.mubr.msk.f32.gmra.mrb[40].mxu0 %vm22967_vm13, %v11339_v43  ;;  %vm22975_vm13 = vmmov %vm22922_vm8 }
 0x5b4   :  { %6182 = vmatprep.mubr.f32.mxu0 %v22921_v50  ;;  %v5832_v11 = vsel %vm22598_vm7, %v22969_v45, %v14602_v40  ;;  %v5835_v23 = vsel %vm22598_vm7, %v22970_v34, %v14603_v59 }
 0x5b5   :  { %12440 = vmatpush3.bf16.msra.mxu1 %v12439_v62  ;;  %v12445_v21 = vpack.c.bf16 %v5835_v23, %v5832_v11  ;;  %v5838_v53 = vsel %vm22598_vm7, %v22971_v60, %v14607_v7  ;;  %v5841_v20 = vsel %vm22598_vm7, %v22972_v31, %v14608_v30 }
 0x5b6   :  { %12442 = vmatprep.subr.bf16.mxu1 %v12441_v18  ;;  %v12449_v9 = vpack.c.bf16 %v5841_v20, %v5838_v53 }
 0x5b7   :  { %11350 = vmatmul.mubr.msk.f32.gmra.mrb[42].mxu0 %vm22922_vm8, %v11342_v36  ;;  %12446 = vmatprep.subr.bf16.mxu0 %v12445_v21 }
 0x5b8   :  { %12448 = vmatpush3.bf16.msra.mxu0 %v12445_v21  ;;  %11891 = vmatprep.mubr.msk.f32.mxu0 %vm22973_vm10, %v19367_v25  ;;  %vm23017_vm10 = vcmask 318464  }
 0x5b9   :  { %12444 = vmatpush3.bf16.msra.mxu1 %v12443_v47  ;;  %12450 = vmatprep.subr.bf16.mxu0 %v12449_v9 }
 0x5bc   :  { %6254 = vmatmul.mubr.f32.vlgmr.msra.gmra.mrb[20].mxu1 %v19279_v29  ;;  %12452 = vmatpush3.bf16.msra.mxu0 %v12449_v9  ;;  %v19460_v29 = vld [vmem:[%s22354_s2 + $0x78] sm:$0xff] }
 0x5bd   :  { %6258 = vmatprep.mubr.f32.mxu1 %v19294_v32  ;;  %v19464_v26 = vpack.i.bf16 %v19460_v29, %v19455_v39  ;;  %v15924_v32 = vld [vmem:[%s22354_s2] sm:$0xff] }
 0x5bf   :  { %11892 = vmatmul.mubr.msk.f32.vlgmr.msra.gmra.mrb[44].mxu0 %vm22974_vm11, %v11336_v19  ;;  %14635 = vrot.lane.b32.xlu1 %v19464_v26, %s15963_s16  ;;  %vm23019_vm11 = vmmov %vm23017_vm10 }
 0x5c0   :  { %6259 = vmatmul.mubr.f32.gmra.mrb[22].mxu1 %v19307_v54  ;;  %11894 = vmatprep.mubr.msk.f32.mxu0 %vm22975_vm13, %v11339_v43  ;;  %vm23021_vm13 = vcmask 310272  }
 0x5c1   :  { %6263 = vmatprep.mubr.f32.mxu1 %v19318_v10 }
 0x5c2   :  { %v5982_v54 = vpop.permute.xlu1 %5981 }
 0x5c3   :  { %11895 = vmatmul.mubr.msk.f32.gmra.mrb[46].mxu0 %vm22922_vm8, %v11342_v36  ;;  %14645 = vrot.lane.b32.xlu1 %v19464_v26, %s15964_s17  ;;  %v5987_v6 = vpop.permute.xlu0 %5986  ;;  %vm23023_vm8 = vmmov %vm23021_vm13 }
 0x5c4   :  { %6264 = vmatmul.mubr.f32.gmra.mrb[24].mxu1 %v19327_v35  ;;  %v19469_v35 = vld [vmem:[%s22354_s2 + $0x28] sm:$0xff] }
 0x5c5   :  { %6268 = vmatprep.mubr.f32.mxu1 %v19338_v42  ;;  %v14639_v13 = vpack.i.bf16 %v19469_v35, %v15924_v32 }
 0x5c6   :  { %v19490_v24 = vpop.permute.xlu1 %5991 }
 0x5c7   :  { %14640 = vrot.lane.b32.xlu0 %v14639_v13, %s15964_s17  ;;  %v5997_v44 = vpop.permute.xlu0 %5996 }
 0x5c8   :  { %6269 = vmatmul.mubr.f32.gmra.mrb[26].mxu1 %v19344_v28 }
 0x5cb   :  { %14650 = vrot.lane.b32.xlu0 %v14639_v13, %s15950_s14 }
 0x67e   :  { %v6166_v10 = vpop.f32.mrb[36].mxu0 }
 0x67f   :  { %v12885_v42 = vadd.f32 %v6166_v10, %v5982_v54  ;;  %v6168_v28 = vpop.f32.mrb[37].mxu0 }
 0x680   :  { %v12886_v25 = vadd.f32 %v6168_v28, %v5982_v54 }
 0x681   :  { %v6359_v48 = vmax.f32 %v12885_v42, 0.0 }
 0x682   :  { %v6360_v19 = vmax.f32 %v12886_v25, 0.0  ;;  %v6172_v2 = vpop.f32.mrb[38].mxu0 }
 0x683   :  { %v19482_v16 = vmul.f32 %v6359_v48, %v22954_v14  ;;  %v12887_v33 = vadd.f32 %v6172_v2, %v5987_v6  ;;  %v6174_v58 = vpop.f32.mrb[39].mxu0 }
 0x684   :  { %v19485_v46 = vmul.f32 %v6360_v19, %v22955_v37  ;;  %v12888_v12 = vadd.f32 %v6174_v58, %v5987_v6 }
 0x685   :  { %22976 = vst [vmem:[#allocation48_spill] sm:$0xff] %v19482_v16  ;;  %v6362_v15 = vmax.f32 %v12887_v33, 0.0  ;;  %v19488_v1 = vpack.i.bf16 %v19482_v16, %v15924_v32 }
 0x686   :  { %22977 = vst [vmem:[#allocation49_spill] sm:$0xff] %v19485_v46  ;;  %v6363_v22 = vmax.f32 %v12888_v12, 0.0  ;;  %v6178_v27 = vpop.f32.mrb[40].mxu0  ;;  %v14689_v4 = vpack.i.bf16 %v19485_v46, %v19482_v16 }
 0x687   :  { %v12889_v63 = vadd.f32 %v6178_v27, %v19490_v24  ;;  %v6180_v55 = vpop.f32.mrb[41].mxu0  ;;  %14655 = vrot.lane.b32.xlu1 %v19488_v1, %s15957_s20  ;;  %v19498_v8 = vmul.f32 %v6362_v15, %v22954_v14 }
 0x688   :  { %v19501_v0 = vmul.f32 %v6363_v22, %v22955_v37  ;;  %v12890_v5 = vadd.f32 %v6180_v55, %v19490_v24  ;;  %14690 = vrot.lane.b32.xlu0 %v14689_v4, %s15948_s12 }
 0x689   :  { %22978 = vst [vmem:[#allocation38_spill] sm:$0xff] %v19498_v8  ;;  %v6365_v43 = vmax.f32 %v12889_v63, 0.0  ;;  %v14714_v60 = vpack.i.bf16 %v19498_v8, %v19469_v35  ;;  %v19546_v13 = vpack.i.bf16 %v19498_v8, %v19482_v16 }
 0x68a   :  { %22979 = vst [vmem:[#allocation39_spill] sm:$0xff] %v19501_v0  ;;  %v6366_v38 = vmax.f32 %v12890_v5, 0.0  ;;  %v6184_v3 = vpop.f32.mrb[42].mxu0  ;;  %v19516_v61 = vpack.i.bf16 %v19501_v0, %v19498_v8 }
 0x68b   :  { %v19506_v52 = vmul.f32 %v6365_v43, %v22954_v14  ;;  %v12891_v56 = vadd.f32 %v6184_v3, %v5997_v44  ;;  %v6186_v59 = vpop.f32.mrb[43].mxu0  ;;  %14660 = vrot.lane.b32.xlu1 %v19488_v1, %s15958_s21 }
 0x68c   :  { %v19511_v40 = vmul.f32 %v6366_v38, %v22955_v37  ;;  %v12892_v51 = vadd.f32 %v6186_v59, %v5997_v44  ;;  %14695 = vrot.lane.b32.xlu0 %v14689_v4, %s15949_s13 }
 0x68d   :  { %22980 = vst [vmem:[#allocation34_spill] sm:$0xff] %v19506_v52  ;;  %v6368_v49 = vmax.f32 %v12891_v56, 0.0  ;;  %v14804_v9 = vpack.i.bf16 %v19506_v52, %v19469_v35 }
 0x68e   :  { %22981 = vst [vmem:[#allocation33_spill] sm:$0xff] %v19511_v40  ;;  %v6369_v30 = vmax.f32 %v12892_v51, 0.0  ;;  %v19529_v18 = vpack.i.bf16 %v19511_v40, %v19506_v52 }
 0x68f   :  { %v19519_v7 = vmul.f32 %v6368_v49, %v22954_v14  ;;  %v11643_v62 = vpop.f32.mrb[20].mxu1  ;;  %14665 = vrot.lane.b32.xlu1 %v19488_v1, %s15959_s22  ;;  %v11356_v49 = vld [vmem:[%s22359_s5 + $0xe8] sm:$0xff] }
 0x690   :  { %v19524_v17 = vmul.f32 %v6369_v30, %v22955_v37  ;;  %v11644_v57 = vpop.f32.mrb[21].mxu1  ;;  %14700 = vrot.lane.b32.xlu0 %v14689_v4, %s15963_s16  ;;  %9249 = vmatprep.mubr.f32.mxu0 %v11356_v49 }
 0x691   :  { %22982 = vst [vmem:[#allocation50_spill] sm:$0xff] %v19519_v7  ;;  %v11645_v36 = vadd.f32 %v11644_v57, %v11643_v62  ;;  %v19552_v10 = vpack.i.bf16 %v19519_v7, %v19506_v52  ;;  %9605 = vmatprep.mubr.f32.mxu1 %v11356_v49 }
 0x692   :  { %22983 = vst [vmem:[#allocation51_spill] sm:$0xff] %v19524_v17  ;;  %v11893_v45 = vpop.f32.mrb[44].mxu0  ;;  %v19533_v11 = vpack.i.bf16 %v19524_v17, %v19519_v7  ;;  %v14869_v47 = vpack.i.bf16 %v19455_v39, %v19524_v17 }
 0x693   :  { %v11646_v34 = vpop.f32.mrb[22].mxu1  ;;  %14670 = vrot.lane.b32.xlu1 %v19488_v1, %s22984_s3  ;;  %v6256_v23 = vadd.f32 %v11645_v36, %v5982_v54  ;;  %v6340_v21 = vpop.f32.mrb[45].mxu0  ;;  %v14864_v54 = vpack.i.bf16 %v19519_v7, %v19511_v40 }
 0x694   :  { %v11647_v53 = vpop.f32.mrb[23].mxu1  ;;  %14705 = vrot.lane.b32.xlu0 %v14689_v4, %s15964_s17 }
 0x695   :  { %v11648_v31 = vadd.f32 %v11647_v53, %v11646_v34  ;;  %v6341_v20 = vadd.f32 %v6340_v21, %v6256_v23  ;;  %v14774_v34 = vpack.i.bf16 %v19506_v52, %v19455_v39  ;;  %v19670_v39 = vpop.permute.xlu1 %14615 }
 0x696   :  { %v11896_v32 = vpop.f32.mrb[46].mxu0  ;;  %22994 = vst [vmem:[#allocation53_spill] sm:$0xff] %v19670_v39 }
 0x697   :  { %v6261_v42 = vadd.f32 %v11648_v31, %v5987_v6  ;;  %v6361_v28 = vmax.f32 %v6341_v20, 0.0  ;;  %v11649_v25 = vpop.f32.mrb[24].mxu1  ;;  %14675 = vrot.lane.b32.xlu1 %v19488_v1, %s22985_s9  ;;  %v6350_v35 = vpop.f32.mrb[47].mxu0 }
 0x698   :  { %v11650_v48 = vpop.f32.mrb[25].mxu1  ;;  %14710 = vrot.lane.b32.xlu0 %v14689_v4, %s15950_s14 }
 0x699   :  { %v6346_v19 = vadd.f32 %v11893_v45, %v6261_v42  ;;  %v19558_v2 = vmul.f32 %v6361_v28, %v22956_v41  ;;  %v11651_v33 = vadd.f32 %v11650_v48, %v11649_v25  ;;  %v19678_v21 = vpop.permute.xlu1 %14625  ;;  %v14834_v28 = vpack.i.bf16 %v19519_v7, %v19460_v29 }
 0x69a   :  { %22996 = vst [vmem:[#allocation54_spill] sm:$0xff] %v19678_v21 }
 0x69b   :  { %22986 = vst [vmem:[#allocation64_spill] sm:$0xff] %v19558_v2  ;;  %v6364_v58 = vmax.f32 %v6346_v19, 0.0  ;;  %v11652_v12 = vpop.f32.mrb[26].mxu1  ;;  %14680 = vrot.lane.b32.xlu1 %v19488_v1, %s22987_s0  ;;  %v6266_v6 = vadd.f32 %v11651_v33, %v19490_v24  ;;  %v19565_v15 = vpack.i.bf16 %v19558_v2, %v19485_v46 }
 0x69c   :  { %v11653_v22 = vpop.f32.mrb[27].mxu1  ;;  %14805 = vrot.lane.b32.xlu0 %v14804_v9, %s15947_s30 }
 0x69d   :  { %v19569_v27 = vmul.f32 %v6364_v58, %v22956_v41  ;;  %v11654_v4 = vadd.f32 %v11653_v22, %v11652_v12  ;;  %v6351_v63 = vadd.f32 %v6350_v35, %v6266_v6  ;;  %v19688_v53 = vpop.permute.xlu1 %14635 }
 0x69e   :  { %22998 = vst [vmem:[#allocation71_spill] sm:$0xff] %v19688_v53 }
 0x69f   :  { %22988 = vst [vmem:[#allocation67_spill] sm:$0xff] %v19569_v27  ;;  %v6271_v55 = vadd.f32 %v11654_v4, %v5997_v44  ;;  %v6367_v5 = vmax.f32 %v6351_v63, 0.0  ;;  %14685 = vrot.lane.b32.xlu1 %v19488_v1, %s15947_s30  ;;  %v19575_v24 = vpack.i.bf16 %v19569_v27, %v19501_v0  ;;  %v19593_v56 = vpack.i.bf16 %v19569_v27, %v19558_v2 }
 0x6a0   :  { %14870 = vrot.lane.b32.xlu0 %v14869_v47, %s15947_s30 }
 0x6a1   :  { %v6356_v43 = vadd.f32 %v11896_v32, %v6271_v55  ;;  %v19579_v38 = vmul.f32 %v6367_v5, %v22956_v41  ;;  %22991 = vst [vmem:[#allocation41_spill] sm:$0xff] %v19593_v56  ;;  %v19698_v20 = vpop.permute.xlu1 %14645  ;;  %v14924_v5 = vpack.i.bf16 %v19569_v27, %v19460_v29 }
 0x6a2   :  { %23000 = vst [vmem:[#allocation55_spill] sm:$0xff] %v19698_v20 }
 0x6a3   :  { %22989 = vst [vmem:[#allocation66_spill] sm:$0xff] %v19579_v38  ;;  %v6370_v3 = vmax.f32 %v6356_v43, 0.0  ;;  %14715 = vrot.lane.b32.xlu1 %v14714_v60, %s15957_s20  ;;  %v19584_v44 = vpack.i.bf16 %v19579_v38, %v19511_v40 }
 0x6a4   :  { %14875 = vrot.lane.b32.xlu0 %v19533_v11, %s15948_s12 }
 0x6a5   :  { %v19589_v1 = vmul.f32 %v6370_v3, %v22956_v41 }
 0x6a7   :  { %22990 = vst [vmem:[#allocation40_spill] sm:$0xff] %v19589_v1  ;;  %14720 = vrot.lane.b32.xlu1 %v14714_v60, %s15958_s21  ;;  %v19598_v59 = vpack.i.bf16 %v19589_v1, %v19524_v17  ;;  %v19610_v51 = vpack.i.bf16 %v19589_v1, %v19579_v38 }
 0x6a8   :  { %14880 = vrot.lane.b32.xlu0 %v19533_v11, %s15949_s13 }
 0x6a9   :  { %22992 = vst [vmem:[#allocation52_spill] sm:$0xff] %v19610_v51  ;;  %v15925_v51 = vld [vmem:[%s22354_s2 + $0x20] sm:$0xff] }
 0x6ab   :  { %14725 = vrot.lane.b32.xlu1 %v14714_v60, %s15959_s22 }
 0x6ac   :  { %14885 = vrot.lane.b32.xlu0 %v19533_v11, %s15963_s16 }
 0x6af   :  { %14730 = vrot.lane.b32.xlu1 %v14714_v60, %s22984_s3 }
 0x6b0   :  { %14890 = vrot.lane.b32.xlu0 %v19533_v11, %s15964_s17 }
 0x6b3   :  { %14735 = vrot.lane.b32.xlu1 %v14714_v60, %s22985_s9 }
 0x6b4   :  { %14895 = vrot.lane.b32.xlu0 %v19575_v24, %s15957_s20 }
 0x6b7   :  { %14740 = vrot.lane.b32.xlu1 %v14714_v60, %s22987_s0 }
 0x6b8   :  { %14900 = vrot.lane.b32.xlu0 %v19575_v24, %s15958_s21 }
 0x6bb   :  { %14745 = vrot.lane.b32.xlu1 %v19516_v61, %s15947_s30 }
 0x6bc   :  { %14905 = vrot.lane.b32.xlu0 %v19575_v24, %s15959_s22 }
 0x6bf   :  { %14750 = vrot.lane.b32.xlu1 %v19516_v61, %s15948_s12 }
 0x6c0   :  { %14910 = vrot.lane.b32.xlu0 %v19575_v24, %s22984_s3 }
 0x6c3   :  { %14755 = vrot.lane.b32.xlu1 %v19516_v61, %s15949_s13 }
 0x6c4   :  { %14915 = vrot.lane.b32.xlu0 %v19575_v24, %s22985_s9 }
 0x6c7   :  { %14760 = vrot.lane.b32.xlu1 %v19516_v61, %s15963_s16 }
 0x6c8   :  { %14920 = vrot.lane.b32.xlu0 %v19575_v24, %s22987_s0 }
 0x6cb   :  { %14765 = vrot.lane.b32.xlu1 %v19516_v61, %s15964_s17 }
 0x6cc   :  { %14930 = vrot.lane.b32.xlu0 %v19565_v15, %s15957_s20 }
 0x6cf   :  { %14770 = vrot.lane.b32.xlu1 %v19516_v61, %s15950_s14  ;;  %v19665_v61 = vpop.permute.xlu0 %14610 }
 0x6d0   :  { %14935 = vrot.lane.b32.xlu0 %v19565_v15, %s15958_s21  ;;  %22993 = vst [vmem:[#allocation42_spill] sm:$0xff] %v19665_v61 }
 0x6d3   :  { %14775 = vrot.lane.b32.xlu1 %v14774_v34, %s15957_s20  ;;  %v19672_v23 = vpop.permute.xlu0 %14620 }
 0x6d4   :  { %14940 = vrot.lane.b32.xlu0 %v19565_v15, %s15959_s22  ;;  %22995 = vst [vmem:[#allocation43_spill] sm:$0xff] %v19672_v23 }
 0x6d7   :  { %14780 = vrot.lane.b32.xlu1 %v14774_v34, %s15958_s21  ;;  %v19682_v60 = vpop.permute.xlu0 %14630 }
 0x6d8   :  { %14945 = vrot.lane.b32.xlu0 %v19565_v15, %s22984_s3  ;;  %22997 = vst [vmem:[#allocation69_spill] sm:$0xff] %v19682_v60 }
 0x6db   :  { %14785 = vrot.lane.b32.xlu1 %v14774_v34, %s15959_s22  ;;  %v19690_v31 = vpop.permute.xlu0 %14640 }
 0x6dc   :  { %14950 = vrot.lane.b32.xlu0 %v19565_v15, %s22985_s9  ;;  %22999 = vst [vmem:[#allocation44_spill] sm:$0xff] %v19690_v31 }
 0x6df   :  { %14790 = vrot.lane.b32.xlu1 %v14774_v34, %s22984_s3  ;;  %v19702_v9 = vpop.permute.xlu0 %14650 }
 0x6e0   :  { %14955 = vrot.lane.b32.xlu0 %v19565_v15, %s22987_s0  ;;  %23001 = vst [vmem:[#allocation56_spill] sm:$0xff] %v19702_v9 }
 0x6e3   :  { %14795 = vrot.lane.b32.xlu1 %v14774_v34, %s22985_s9 }
 0x6e4   :  { %14960 = vrot.lane.b32.xlu0 %v19565_v15, %s15947_s30 }
 0x6e7   :  { %14800 = vrot.lane.b32.xlu1 %v14774_v34, %s22987_s0 }
 0x6e8   :  { %14965 = vrot.lane.b32.xlu0 %v19598_v59, %s15957_s20 }
 0x6eb   :  { %14810 = vrot.lane.b32.xlu1 %v19529_v18, %s15948_s12 }
 0x6ec   :  { %14970 = vrot.lane.b32.xlu0 %v19598_v59, %s15958_s21 }
 0x6ef   :  { %14815 = vrot.lane.b32.xlu1 %v19529_v18, %s15949_s13 }
 0x6f0   :  { %14975 = vrot.lane.b32.xlu0 %v19598_v59, %s15959_s22 }
 0x6f3   :  { %14820 = vrot.lane.b32.xlu1 %v19529_v18, %s15963_s16 }
 0x6f4   :  { %14980 = vrot.lane.b32.xlu0 %v19598_v59, %s22984_s3 }
 0x6f7   :  { %14825 = vrot.lane.b32.xlu1 %v19529_v18, %s15964_s17 }
 0x6f8   :  { %14985 = vrot.lane.b32.xlu0 %v19598_v59, %s22985_s9 }
 0x6f9   :  { %v19708_v47 = vpop.permute.xlu1 %14655 }
 0x6fa   :  { %v19710_v32 = vpop.permute.xlu0 %14690  ;;  %v14658_v27 = vunpack.i.h.bf16 %v19708_v47  ;;  %v14657_v52 = vunpack.i.l.bf16 %v19708_v47 }
 0x6fb   :  { %23002 = vst [vmem:[#allocation68_spill] sm:$0xff] %v19710_v32  ;;  %14830 = vrot.lane.b32.xlu1 %v19529_v18, %s15950_s14 }
 0x6fc   :  { %14990 = vrot.lane.b32.xlu0 %v19598_v59, %s22987_s0  ;;  %v6488_v46 = vsel %vm1572_vm9, %v14657_v52, %v14658_v27 }
 0x6fd   :  { %v19716_v42 = vpop.permute.xlu1 %14660 }
 0x6fe   :  { %v19720_v25 = vpop.permute.xlu0 %14695  ;;  %v14662_v60 = vunpack.i.l.bf16 %v19716_v42 }
 0x6ff   :  { %23003 = vst [vmem:[#allocation73_spill] sm:$0xff] %v19720_v25  ;;  %14835 = vrot.lane.b32.xlu1 %v14834_v28, %s15957_s20 }
 0x700   :  { %14995 = vrot.lane.b32.xlu0 %v19584_v44, %s15957_s20  ;;  %s23011_s20 = smov 126  }
 0x701   :  { %v19725_v35 = vpop.permute.xlu1 %14665 }
 0x702   :  { %v19727_v48 = vpop.permute.xlu0 %14700 }
 0x703   :  { %23004 = vst [vmem:[#allocation74_spill] sm:$0xff] %v19727_v48  ;;  %14840 = vrot.lane.b32.xlu1 %v14834_v28, %s15958_s21 }
 0x704   :  { %15000 = vrot.lane.b32.xlu0 %v19533_v11, %s15950_s14 }
 0x705   :  { %v19732_v18 = vpop.permute.xlu1 %14670 }
 0x706   :  { %v19734_v19 = vpop.permute.xlu0 %14705  ;;  %v14672_v39 = vunpack.i.l.bf16 %v19732_v18 }
 0x707   :  { %23005 = vst [vmem:[#allocation70_spill] sm:$0xff] %v19734_v19  ;;  %14845 = vrot.lane.b32.xlu1 %v14834_v28, %s15959_s22 }
 0x708   :  { %15010 = vrot.lane.b32.xlu0 %v19584_v44, %s15958_s21  ;;  %s23161_s21 = smov 86  }
 0x709   :  { %v19739_v33 = vpop.permute.xlu1 %14675 }
 0x70a   :  { %v19741_v58 = vpop.permute.xlu0 %14710 }
 0x70b   :  { %23006 = vst [vmem:[#allocation76_spill] sm:$0xff] %v19741_v58  ;;  %14850 = vrot.lane.b32.xlu1 %v14834_v28, %s22984_s3 }
 0x70c   :  { %15015 = vrot.lane.b32.xlu0 %v19565_v15, %s15951_s19 }
 0x70d   :  { %v19746_v12 = vpop.permute.xlu1 %14680 }
 0x70e   :  { %v19748_v11 = vpop.permute.xlu0 %14805 }
 0x70f   :  { %14855 = vrot.lane.b32.xlu1 %v14834_v28, %s22985_s9 }
 0x710   :  { %15025 = vrot.lane.b32.xlu0 %v19584_v44, %s15959_s22  ;;  %s23077_s22 = smov 87  }
 0x711   :  { %v19753_v6 = vpop.permute.xlu1 %14685 }
 0x712   :  { %v19755_v22 = vpop.permute.xlu0 %14870 }
 0x713   :  { %14860 = vrot.lane.b32.xlu1 %v14834_v28, %s22987_s0 }
 0x714   :  { %15030 = vrot.lane.b32.xlu0 %v19546_v13, %s15951_s19 }
 0x715   :  { %v14716_v4 = vpop.permute.xlu1 %14715 }
 0x716   :  { %v19760_v63 = vpop.permute.xlu0 %14875  ;;  %v14718_v38 = vunpack.i.h.bf16 %v14716_v4  ;;  %v14717_v1 = vunpack.i.l.bf16 %v14716_v4 }
 0x717   :  { %23007 = vst [vmem:[#allocation77_spill] sm:$0xff] %v19760_v63  ;;  %14865 = vrot.lane.b32.xlu1 %v14864_v54, %s15947_s30 }
 0x718   :  { %15035 = vrot.lane.b32.xlu0 %v19584_v44, %s22984_s3  ;;  %v6491_v17 = vsel %vm1572_vm9, %v14717_v1, %v14718_v38 }
 0x719   :  { %v19768_v55 = vpop.permute.xlu1 %14720  ;;  %v12455_v9 = vpack.c.bf16 %v6491_v17, %v6488_v46 }
 0x71a   :  { %v19772_v43 = vpop.permute.xlu0 %14880  ;;  %v14723_v48 = vunpack.i.h.bf16 %v19768_v55 }
 0x71b   :  { %23008 = vst [vmem:[#allocation57_spill] sm:$0xff] %v19772_v43  ;;  %14925 = vrot.lane.b32.xlu1 %v14924_v5, %s15947_s30 }
 0x71c   :  { %15040 = vrot.lane.b32.xlu0 %v19598_v59, %s15951_s19 }
 0x71d   :  { %v19777_v3 = vpop.permute.xlu1 %14725 }
 0x71e   :  { %v19779_v34 = vpop.permute.xlu0 %14885 }
 0x71f   :  { %23009 = vst [vmem:[#allocation72_spill] sm:$0xff] %v19779_v34  ;;  %15005 = vrot.lane.b32.xlu1 %v19464_v26, %s15950_s14  ;;  %v14663_v34 = vunpack.i.h.bf16 %v19716_v42 }
 0x720   :  { %15050 = vrot.lane.b32.xlu0 %v19584_v44, %s22985_s9 }
 0x721   :  { %v19785_v54 = vpop.permute.xlu1 %14730 }
 0x722   :  { %v19787_v29 = vpop.permute.xlu0 %14890 }
 0x723   :  { %23010 = vst [vmem:[#allocation26_spill] sm:$0xff] %v19787_v29  ;;  %15020 = vrot.lane.b32.xlu1 %v19575_v24, %s15951_s19 }
 0x724   :  { %15055 = vrot.lane.b32.xlu0 %v19565_v15, %s23011_s20 }
 0x725   :  { %v19793_v28 = vpop.permute.xlu1 %14735 }
 0x726   :  { %v19795_v5 = vpop.permute.xlu0 %14895 }
 0x727   :  { %15045 = vrot.lane.b32.xlu1 %v19552_v10, %s15951_s19  ;;  %v14897_v49 = vunpack.i.l.bf16 %v19795_v5 }
 0x728   :  { %15065 = vrot.lane.b32.xlu0 %v19584_v44, %s22987_s0 }
 0x729   :  { %v19801_v26 = vpop.permute.xlu1 %14740  ;;  %v6492_v8 = vsel %vm1572_vm9, %v14718_v38, %v14897_v49 }
 0x72a   :  { %v19803_v45 = vpop.permute.xlu0 %14900 }
 0x72b   :  { %15060 = vrot.lane.b32.xlu1 %v19575_v24, %s23011_s20 }
 0x72c   :  { %15070 = vrot.lane.b32.xlu0 %v19546_v13, %s23011_s20 }
 0x72d   :  { %v19809_v36 = vpop.permute.xlu1 %14745 }
 0x72e   :  { %v19811_v57 = vpop.permute.xlu0 %14905 }
 0x72f   :  { %15080 = vrot.lane.b32.xlu1 %v19552_v10, %s23011_s20 }
 0x730   :  { %15075 = vrot.lane.b32.xlu0 %v19598_v59, %s23011_s20 }
 0x731   :  { %v19817_v62 = vpop.permute.xlu1 %14750 }
 0x732   :  { %23012 = vst [vmem:[#allocation10_spill] sm:$0xff] %v19817_v62  ;;  %v19819_v30 = vpop.permute.xlu0 %14910 }
 0x733   :  { %15090 = vrot.lane.b32.xlu1 %v19575_v24, %s15966_s18 }
 0x734   :  { %15085 = vrot.lane.b32.xlu0 %v19565_v15, %s15966_s18 }
 0x735   :  { %v19828_v41 = vpop.permute.xlu1 %14755 }
 0x736   :  { %23013 = vst [vmem:[#allocation47_spill] sm:$0xff] %v19828_v41  ;;  %v19830_v37 = vpop.permute.xlu0 %14915  ;;  %v14722_v41 = vunpack.i.l.bf16 %v19768_v55 }
 0x737   :  { %15105 = vrot.lane.b32.xlu1 %v19552_v10, %s15966_s18  ;;  %v23022_v19 = vunpack.i.l.bf16 %v19830_v37 }
 0x738   :  { %15095 = vrot.lane.b32.xlu0 %v19546_v13, %s15966_s18 }
 0x739   :  { %v19836_v14 = vpop.permute.xlu1 %14760 }
 0x73a   :  { %23014 = vst [vmem:[#allocation58_spill] sm:$0xff] %v19836_v14  ;;  %v19838_v50 = vpop.permute.xlu0 %14920 }
 0x73b   :  { %15115 = vrot.lane.b32.xlu1 %v19575_v24, %s15952_s24 }
 0x73c   :  { %15100 = vrot.lane.b32.xlu0 %v19598_v59, %s15966_s18 }
 0x73d   :  { %v19845_v2 = vpop.permute.xlu1 %14765 }
 0x73e   :  { %23015 = vst [vmem:[#allocation35_spill] sm:$0xff] %v19845_v2  ;;  %v14931_v7 = vpop.permute.xlu0 %14930 }
 0x73f   :  { %v14932_v40 = vunpack.i.l.bf16 %v14931_v7  ;;  %15130 = vrot.lane.b32.xlu1 %v19552_v10, %s15952_s24  ;;  %v14933_v38 = vunpack.i.h.bf16 %v14931_v7  ;;  %v14898_v7 = vunpack.i.h.bf16 %v19795_v5 }
 0x740   :  { %15110 = vrot.lane.b32.xlu0 %v19565_v15, %s15952_s24 }
 0x741   :  { %v19854_v4 = vpop.permute.xlu1 %14770  ;;  %v6489_v16 = vsel %vm1572_vm9, %v14658_v27, %v14932_v40  ;;  %v6490_v20 = vsel %vm1572_vm9, %v14932_v40, %v14933_v38 }
 0x742   :  { %23016 = vst [vmem:[#allocation80_spill] sm:$0xff] %v19854_v4  ;;  %v19859_v0 = vpop.permute.xlu0 %14935  ;;  %v12453_v47 = vpack.c.bf16 %v6492_v8, %v6489_v16  ;;  %v14913_v16 = vunpack.i.h.bf16 %v19819_v30  ;;  %v22561_v8 = vunpack.i.l.bf16 %v19819_v30 }
 0x743   :  { %15140 = vrot.lane.b32.xlu1 %v19575_v24, %s15953_s25  ;;  %v23035_v55 = vunpack.i.l.bf16 %v19859_v0 }
 0x744   :  { %15120 = vrot.lane.b32.xlu0 %v19546_v13, %s15952_s24  ;;  %12454 = vmatprep.subr.bf16.mxu0 %v12453_v47  ;;  %v14918_v47 = vunpack.i.h.bf16 %v19830_v37 }
 0x745   :  { %v19865_v1 = vpop.permute.xlu1 %14775  ;;  %12456 = vmatpush1.bf16.msra.mxu0 %v12455_v9  ;;  %v19888_v9 = vsel %vm23017_vm10, %v22561_v8, %v14913_v16  ;;  %vm23032_vm10 = vcmask 334848  }
 0x746   :  { %v19867_v58 = vpop.permute.xlu0 %14940  ;;  %23018 = vst [vmem:[#allocation27_spill] sm:$0xff] %v19888_v9  ;;  %v14777_v14 = vunpack.i.l.bf16 %v19865_v1  ;;  %v6588_v25 = vsel %vm23032_vm10, %v14662_v60, %v14663_v34 }
 0x747   :  { %15155 = vrot.lane.b32.xlu1 %v19552_v10, %s15953_s25 }
 0x748   :  { %15125 = vrot.lane.b32.xlu0 %v19598_v59, %s15952_s24 }
 0x749   :  { %v19875_v46 = vpop.permute.xlu1 %14780 }
 0x74a   :  { %v19877_v52 = vpop.permute.xlu0 %14945 }
 0x74b   :  { %v14948_v17 = vunpack.i.h.bf16 %v19877_v52  ;;  %v22562_v27 = vunpack.i.l.bf16 %v19877_v52  ;;  %15165 = vrot.lane.b32.xlu1 %v19575_v24, %s15954_s28 }
 0x74c   :  { %15135 = vrot.lane.b32.xlu0 %v19565_v15, %s15953_s25 }
 0x74d   :  { %v19895_v4 = vsel %vm23019_vm11, %v22562_v27, %v14948_v17  ;;  %v19897_v29 = vpop.permute.xlu1 %14785  ;;  %v6893_v27 = vsel %vm23023_vm8, %v23022_v19, %v14918_v47  ;;  %vm23036_vm11 = vmmov %vm23032_vm10 }
 0x74e   :  { %23020 = vst [vmem:[#allocation29_spill] sm:$0xff] %v19895_v4  ;;  %v19900_v31 = vpop.permute.xlu0 %14950  ;;  %v6493_v4 = vsel %vm1572_vm9, %v14897_v49, %v14898_v7  ;;  %vm23041_vm8 = vmmov %vm23032_vm10 }
 0x74f   :  { %v14953_v16 = vunpack.i.h.bf16 %v19900_v31  ;;  %v22566_v8 = vunpack.i.l.bf16 %v19900_v31  ;;  %15180 = vrot.lane.b32.xlu1 %v19552_v10, %s15954_s28  ;;  %v12655_v40 = vpack.c.bf16 %v6493_v4, %v6490_v20  ;;  %vm23042_vm10 = vmmov %vm23041_vm8 }
 0x750   :  { %15145 = vrot.lane.b32.xlu0 %v19546_v13, %s15953_s25 }
 0x751   :  { %v19911_v17 = vpop.permute.xlu1 %14790  ;;  %v6890_v5 = vsel %vm23021_vm13, %v22566_v8, %v14953_v16  ;;  %vm23038_vm13 = vcmask 326656  }
 0x752   :  { %v19920_v9 = vpop.permute.xlu0 %14955  ;;  %v12653_v53 = vpack.c.bf16 %v6893_v27, %v6890_v5 }
 0x753   :  { %15190 = vrot.lane.b32.xlu1 %v19575_v24, %s15967_s26 }
 0x754   :  { %15150 = vrot.lane.b32.xlu0 %v19598_v59, %s15953_s25  ;;  %12654 = vmatprep.subr.bf16.mxu1 %v12653_v53 }
 0x755   :  { %12656 = vmatpush3.bf16.msra.mxu1 %v12655_v40  ;;  %v19926_v38 = vpop.permute.xlu1 %14795 }
 0x756   :  { %v19928_v16 = vpop.permute.xlu0 %14960 }
 0x757   :  { %15205 = vrot.lane.b32.xlu1 %v19552_v10, %s15967_s26 }
 0x758   :  { %15160 = vrot.lane.b32.xlu0 %v19565_v15, %s15954_s28 }
 0x759   :  { %v19934_v19 = vpop.permute.xlu1 %14800 }
 0x75a   :  { %23024 = vst [vmem:[#allocation45_spill] sm:$0xff] %v19934_v19  ;;  %v19936_v49 = vpop.permute.xlu0 %14965 }
 0x75b   :  { %15215 = vrot.lane.b32.xlu1 %v19575_v24, %s15968_s27  ;;  %v22586_v43 = vunpack.i.l.bf16 %v19936_v49 }
 0x75c   :  { %15170 = vrot.lane.b32.xlu0 %v19546_v13, %s15954_s28 }
 0x75d   :  { %v19942_v53 = vpop.permute.xlu1 %14810 }
 0x75e   :  { %23025 = vst [vmem:[#allocation59_spill] sm:$0xff] %v19942_v53  ;;  %v19944_v20 = vpop.permute.xlu0 %14970  ;;  %v23037_v53 = vunpack.i.h.bf16 %v19725_v35 }
 0x75f   :  { %23026 = vst [vmem:[#allocation46_spill] sm:$0xff] %v19944_v20  ;;  %15225 = vrot.lane.b32.xlu1 %v19598_v59, %s15968_s27 }
 0x760   :  { %15175 = vrot.lane.b32.xlu0 %v19598_v59, %s15954_s28 }
 0x761   :  { %v19950_v4 = vpop.permute.xlu1 %14815 }
 0x762   :  { %23027 = vst [vmem:[#allocation78_spill] sm:$0xff] %v19950_v4  ;;  %v19952_v27 = vpop.permute.xlu0 %14975 }
 0x763   :  { %15235 = vrot.lane.b32.xlu1 %v19593_v56, %s15948_s12 }
 0x764   :  { %15185 = vrot.lane.b32.xlu0 %v19565_v15, %s15967_s26 }
 0x765   :  { %v19958_v47 = vpop.permute.xlu1 %14820 }
 0x766   :  { %23028 = vst [vmem:[#allocation60_spill] sm:$0xff] %v19958_v47  ;;  %v19960_v7 = vpop.permute.xlu0 %14980  ;;  %v14667_v47 = vunpack.i.l.bf16 %v19725_v35 }
 0x767   :  { %15245 = vrot.lane.b32.xlu1 %v19575_v24, %s23029_s29 }
 0x768   :  { %15195 = vrot.lane.b32.xlu0 %v19546_v13, %s15967_s26  ;;  %v20016_v32 = vsel %vm23038_vm13, %v14667_v47, %v23037_v53  ;;  %v14677_v53 = vunpack.i.l.bf16 %v19739_v33  ;;  %v6591_v47 = vsel %vm23042_vm10, %v14722_v41, %v14723_v48  ;;  %v14728_v41 = vunpack.i.h.bf16 %v19777_v3 }
 0x769   :  { %v19966_v5 = vpop.permute.xlu1 %14825  ;;  %vm23046_vm13 = vcmask 310272   ;;  %vm23048_vm10 = vcmask 179200  }
 0x76a   :  { %23030 = vst [vmem:[#allocation62_spill] sm:$0xff] %v19966_v5  ;;  %v19968_v40 = vpop.permute.xlu0 %14985 }
 0x76b   :  { %15255 = vrot.lane.b32.xlu1 %v19598_v59, %s23029_s29 }
 0x76c   :  { %15200 = vrot.lane.b32.xlu0 %v19598_v59, %s15967_s26 }
 0x76d   :  { %v19974_v8 = vpop.permute.xlu1 %14830 }
 0x76e   :  { %23031 = vst [vmem:[#allocation31_spill] sm:$0xff] %v19974_v8  ;;  %v19976_v2 = vpop.permute.xlu0 %14990  ;;  %v14778_v8 = vunpack.i.h.bf16 %v19865_v1 }
 0x76f   :  { %15265 = vrot.lane.b32.xlu1 %v19584_v44, %s15951_s19 }
 0x770   :  { %15210 = vrot.lane.b32.xlu0 %v19565_v15, %s15968_s27 }
 0x771   :  { %v14836_v21 = vpop.permute.xlu1 %14835 }
 0x772   :  { %v14838_v42 = vunpack.i.h.bf16 %v14836_v21  ;;  %v14837_v23 = vunpack.i.l.bf16 %v14836_v21  ;;  %v19990_v4 = vpop.permute.xlu0 %14995 }
 0x773   :  { %15270 = vrot.lane.b32.xlu1 %v19565_v15, %s23033_s8  ;;  %v23034_v63 = vunpack.i.l.bf16 %v19990_v4 }
 0x774   :  { %v6497_v1 = vsel %vm1572_vm9, %v14837_v23, %v14838_v42  ;;  %15220 = vrot.lane.b32.xlu0 %v19546_v13, %s15968_s27  ;;  %v6498_v21 = vsel %vm1572_vm9, %v14838_v42, %v22586_v43  ;;  %v6589_v23 = vsel %vm23036_vm11, %v14663_v34, %v23035_v55  ;;  %v6494_v42 = vsel %vm1572_vm9, %v14777_v14, %v14778_v8 }
 0x775   :  { %v14841_v5 = vpop.permute.xlu1 %14840  ;;  %v6495_v61 = vsel %vm1572_vm9, %v14778_v8, %v23034_v63  ;;  %v15926_v63 = vld [vmem:[%s22354_s2 + $0x48] sm:$0xff]  ;;  %v12459_v14 = vpack.c.bf16 %v6497_v1, %v6494_v42  ;;  %vm23044_vm11 = vcmask 318464   ;;  %v14682_v42 = vunpack.i.l.bf16 %v19746_v12 }
 0x776   :  { %v20019_v43 = vpop.permute.xlu0 %15000  ;;  %v12457_v60 = vpack.c.bf16 %v6498_v21, %v6495_v61  ;;  %v20027_v62 = vpack.i.bf16 %v15926_v63, %v15925_v51  ;;  %v23040_v61 = vunpack.i.l.bf16 %v19803_v45  ;;  %v14843_v21 = vunpack.i.h.bf16 %v14841_v5 }
 0x777   :  { %23039 = vst [vmem:[#allocation75_spill] sm:$0xff] %v20019_v43  ;;  %15280 = vrot.lane.b32.xlu1 %v19584_v44, %s23011_s20  ;;  %v14842_v55 = vunpack.i.l.bf16 %v14841_v5  ;;  %v23043_v63 = vunpack.i.h.bf16 %v19732_v18  ;;  %v14783_v5 = vunpack.i.h.bf16 %v19875_v46 }
 0x778   :  { %v6592_v8 = vsel %vm23041_vm8, %v14723_v48, %v23040_v61  ;;  %15230 = vrot.lane.b32.xlu0 %v19552_v10, %s15968_s27  ;;  %12458 = vmatprep.subr.bf16.mxu0 %v12457_v60  ;;  %v14727_v48 = vunpack.i.l.bf16 %v19777_v3  ;;  %v14782_v60 = vunpack.i.l.bf16 %v19875_v46  ;;  %v23045_v61 = vunpack.i.h.bf16 %v19739_v33 }
 0x779   :  { %v12461_v51 = vpack.c.bf16 %v6592_v8, %v6589_v23  ;;  %v20042_v34 = vsel %vm23044_vm11, %v14672_v39, %v23043_v63  ;;  %v20047_v43 = vpop.permute.xlu1 %14845  ;;  %12460 = vmatpush1.bf16.msra.mxu0 %v12459_v14  ;;  %v12463_v14 = vpack.c.bf16 %v6591_v47, %v6588_v25  ;;  %v23047_v39 = vunpack.i.h.bf16 %v19746_v12  ;;  %vm23049_vm11 = vmmov %vm23041_vm8 }
 0x77a   :  { %v20053_v23 = vpop.permute.xlu0 %15010  ;;  %v20063_v3 = vsel %vm23046_vm13, %v14677_v53, %v23045_v61  ;;  %v23050_v47 = vunpack.i.l.bf16 %v19944_v20  ;;  %vm23051_vm13 = vmmov %vm23041_vm8  ;;  %v23053_v46 = vunpack.i.h.bf16 %v19725_v35  ;;  %v14733_v20 = vunpack.i.h.bf16 %v19785_v54 }
 0x77b   :  { %12462 = vmatprep.subr.bf16.mxu0 %v12461_v51  ;;  %v22594_v63 = vunpack.i.l.bf16 %v20053_v23  ;;  %15285 = vrot.lane.b32.xlu1 %v19593_v56, %s15949_s13  ;;  %v6597_v51 = vsel %vm23041_vm8, %v14842_v55, %v14843_v21  ;;  %v20073_v8 = vsel %vm23048_vm10, %v14682_v42, %v23047_v39  ;;  %v23052_v55 = vunpack.i.l.bf16 %v19867_v58  ;;  %vm23056_vm12 = vmmov %vm23049_vm11 }
 0x77c   :  { %15240 = vrot.lane.b32.xlu0 %v19565_v15, %s23029_s29  ;;  %v6598_v61 = vsel %vm23051_vm13, %v14843_v21, %v23050_v47  ;;  %vm23054_vm8 = vcmask 326656   ;;  %v23058_v35 = vunpack.i.l.bf16 %v19811_v57  ;;  %v14732_v47 = vunpack.i.l.bf16 %v19785_v54 }
 0x77d   :  { %v20075_v25 = vpop.permute.xlu1 %14850  ;;  %12464 = vmatpush1.bf16.msra.mxu0 %v12463_v14  ;;  %v6595_v53 = vsel %vm23049_vm11, %v14783_v5, %v22594_v63  ;;  %v6689_v1 = vsel %vm23054_vm8, %v23053_v46, %v23052_v55  ;;  %vm23055_vm10 = vmmov %vm23054_vm8  ;;  %v6594_v14 = vsel %vm23056_vm12, %v14782_v60, %v14783_v5  ;;  %v14847_v5 = vunpack.i.l.bf16 %v20047_v43 }
 0x77e   :  { %v6691_v39 = vsel %vm23055_vm10, %v14727_v48, %v14728_v41  ;;  %v20091_v56 = vpop.permute.xlu0 %15015  ;;  %v12465_v19 = vpack.c.bf16 %v6598_v61, %v6595_v53  ;;  %v12467_v21 = vpack.c.bf16 %v6597_v51, %v6594_v14  ;;  %vm23059_vm11 = vmmov %vm23054_vm8  ;;  %v14848_v48 = vunpack.i.h.bf16 %v20047_v43 }
 0x77f   :  { %23057 = vst [vmem:[#allocation63_spill] sm:$0xff] %v20091_v56  ;;  %15305 = vrot.lane.b32.xlu1 %v19584_v44, %s15966_s18  ;;  %v6692_v46 = vsel %vm23059_vm11, %v14728_v41, %v23058_v35  ;;  %v14978_v61 = vunpack.i.h.bf16 %v19952_v27  ;;  %v14977_v51 = vunpack.i.l.bf16 %v19952_v27  ;;  %v12471_v54 = vpack.c.bf16 %v6691_v39, %v20016_v32  ;;  %vm23061_vm13 = vmmov %vm23054_vm8 }
 0x780   :  { %15250 = vrot.lane.b32.xlu0 %v19546_v13, %s23029_s29  ;;  %12466 = vmatprep.subr.bf16.mxu0 %v12465_v19  ;;  %v12469_v60 = vpack.c.bf16 %v6692_v46, %v6689_v1  ;;  %v14738_v41 = vunpack.i.h.bf16 %v19793_v28  ;;  %v14737_v43 = vunpack.i.l.bf16 %v19793_v28  ;;  %v14788_v14 = vunpack.i.h.bf16 %v19897_v29  ;;  %vm23065_vm11 = vmmov %vm23055_vm10 }
 0x781   :  { %v20108_v55 = vpop.permute.xlu1 %14855  ;;  %12468 = vmatpush1.bf16.msra.mxu0 %v12467_v21  ;;  %v14787_v19 = vunpack.i.l.bf16 %v19897_v29  ;;  %v14742_v46 = vunpack.i.l.bf16 %v19801_v26  ;;  %vm23060_vm12 = vcmask 318464   ;;  %v14903_v39 = vunpack.i.h.bf16 %v19803_v45  ;;  %vm23070_vm7 = vmmov %vm23055_vm10 }
 0x782   :  { %v15026_v1 = vpop.permute.xlu0 %15025  ;;  %12470 = vmatprep.subr.bf16.mxu0 %v12469_v60  ;;  %v6791_v32 = vsel %vm23060_vm12, %v14732_v47, %v14733_v20  ;;  %v6697_v28 = vsel %vm23061_vm13, %v14847_v5, %v14848_v48  ;;  %v23062_v29 = vunpack.i.l.bf16 %v19877_v52  ;;  %v23063_v21 = vunpack.i.h.bf16 %v19732_v18  ;;  %vm23064_vm8 = vmmov %vm23060_vm12 }
 0x783   :  { %v15028_v27 = vunpack.i.h.bf16 %v15026_v1  ;;  %v15027_v63 = vunpack.i.l.bf16 %v15026_v1  ;;  %15310 = vrot.lane.b32.xlu1 %v20027_v62, %s15951_s19  ;;  %v20130_v1 = vsel %vm23055_vm10, %v14977_v51, %v14978_v61  ;;  %vm23067_vm12 = vmmov %vm23055_vm10  ;;  %v20140_v35 = vsel %vm23069_vm14, %v14737_v43, %v14738_v41 }
 0x784   :  { %15260 = vrot.lane.b32.xlu0 %v19552_v10, %s23029_s29  ;;  %v6789_v60 = vsel %vm23064_vm8, %v23063_v21, %v23062_v29  ;;  %vm23068_vm13 = vmmov %vm23055_vm10  ;;  %v6694_v18 = vsel %vm23070_vm7, %v14787_v19, %v14788_v14  ;;  %vm23072_vm8 = vcmask 179200   ;;  %vm23074_vm14 = vcmask 318464   ;;  %v15927_v19 = vld [vmem:[%s22354_s2 + $0x70] sm:$0xff] }
 0x785   :  { %v20133_v53 = vsel %vm23065_vm11, %v15027_v63, %v15028_v27  ;;  %v20135_v47 = vpop.permute.xlu1 %14860  ;;  %12472 = vmatpush1.bf16.msra.mxu0 %v12471_v54  ;;  %v6695_v5 = vsel %vm23067_vm12, %v14788_v14, %v15027_v63  ;;  %v6698_v42 = vsel %vm23068_vm13, %v14848_v48, %v14977_v51  ;;  %v23071_v27 = vunpack.i.h.bf16 %v19801_v26  ;;  %vm23080_vm11 = vmmov %vm23074_vm14 }
 0x786   :  { %23066 = vst [vmem:[#allocation65_spill] sm:$0xff] %v20133_v53  ;;  %v20143_v52 = vpop.permute.xlu0 %15030  ;;  %v12473_v29 = vpack.c.bf16 %v6698_v42, %v6695_v5  ;;  %v12475_v63 = vpack.c.bf16 %v6697_v28, %v6694_v18  ;;  %v23073_v48 = vunpack.i.l.bf16 %v19819_v30  ;;  %v12479_v54 = vpack.c.bf16 %v6791_v32, %v20042_v34  ;;  %v15928_v30 = vld [vmem:[%s22354_s2 + $0x98] sm:$0xff]  ;;  %vm23084_vm13 = vmmov %vm23080_vm11 }
 0x787   :  { %v20150_v21 = vsel %vm23072_vm8, %v14742_v46, %v23071_v27  ;;  %15320 = vrot.lane.b32.xlu1 %v19584_v44, %s15952_s24  ;;  %v14853_v42 = vunpack.i.h.bf16 %v20075_v25  ;;  %v14852_v43 = vunpack.i.l.bf16 %v20075_v25  ;;  %v23075_v34 = vunpack.i.l.bf16 %v19803_v45  ;;  %vm23086_vm8 = vmmov %vm23080_vm11 }
 0x788   :  { %v6792_v51 = vsel %vm23074_vm14, %v14733_v20, %v23073_v48  ;;  %15275 = vrot.lane.b32.xlu0 %v19575_v24, %s23033_s8  ;;  %12474 = vmatprep.subr.bf16.mxu0 %v12473_v29  ;;  %v20168_v20 = vpack.i.bf16 %v15928_v30, %v15927_v19  ;;  %vm23076_vm7 = vcmask 334848   ;;  %v14983_v25 = vunpack.i.h.bf16 %v19960_v7  ;;  %vm23088_vm14 = vmmov %vm23086_vm8 }
 0x789   :  { %v12477_v14 = vpack.c.bf16 %v6792_v51, %v6789_v60  ;;  %v20173_v46 = vsel %vm23076_vm7, %v23075_v34, %v14903_v39  ;;  %v14982_v32 = vunpack.i.l.bf16 %v19960_v7  ;;  %v20177_v28 = vpop.permute.xlu1 %14865  ;;  %12476 = vmatpush1.bf16.msra.mxu0 %v12475_v63  ;;  %v12487_v60 = vpack.c.bf16 %v20140_v35, %v20063_v3  ;;  %vm23089_vm7 = vmmov %vm23086_vm8 }
 0x78a   :  { %v14748_v5 = vunpack.i.h.bf16 %v19809_v36  ;;  %v14793_v18 = vunpack.i.h.bf16 %v19911_v17  ;;  %v14792_v29 = vunpack.i.l.bf16 %v19911_v17  ;;  %v15036_v45 = vpop.permute.xlu0 %15035  ;;  %v22599_v27 = vunpack.i.l.bf16 %v19809_v36 }
 0x78b   :  { %12478 = vmatprep.subr.bf16.mxu0 %v12477_v14  ;;  %v15038_v7 = vunpack.i.h.bf16 %v15036_v45  ;;  %v15037_v48 = vunpack.i.l.bf16 %v15036_v45  ;;  %15325 = vrot.lane.b32.xlu1 %v19575_v24, %s23077_s22  ;;  %v23078_v63 = vunpack.i.l.bf16 %v19830_v37  ;;  %vm23079_vm10 = vcmask 310272  }
 0x78c   :  { %v14923_v19 = vunpack.i.h.bf16 %v19838_v50  ;;  %v14957_v17 = vunpack.i.l.bf16 %v19920_v9  ;;  %v6797_v14 = vsel %vm23080_vm11, %v14852_v43, %v14853_v42  ;;  %15290 = vrot.lane.b32.xlu0 %v19546_v13, %s23033_s8  ;;  %v23081_v30 = vunpack.i.l.bf16 %v19900_v31  ;;  %vm23083_vm12 = vmmov %vm23079_vm10 }
 0x78d   :  { %v6892_v51 = vsel %vm23079_vm10, %v14738_v41, %v23078_v63  ;;  %v23082_v34 = vunpack.i.h.bf16 %v19739_v33  ;;  %v20203_v61 = vsel %vm23084_vm13, %v14982_v32, %v14983_v25  ;;  %v20206_v37 = vsel %vm23086_vm8, %v15037_v48, %v15038_v7  ;;  %v20208_v41 = vpop.permute.xlu1 %14925  ;;  %12480 = vmatpush1.bf16.msra.mxu0 %v12479_v54  ;;  %vm23090_vm10 = vmmov %vm23089_vm7 }
 0x78e   :  { %23085 = vst [vmem:[#allocation79_spill] sm:$0xff] %v20203_v61  ;;  %23087 = vst [vmem:[#allocation81_spill] sm:$0xff] %v20206_v37  ;;  %v6795_v43 = vsel %vm23088_vm14, %v14793_v18, %v15037_v48  ;;  %v6798_v63 = vsel %vm23089_vm7, %v14853_v42, %v14982_v32  ;;  %v14922_v39 = vunpack.i.l.bf16 %v19838_v50  ;;  %v6794_v31 = vsel %vm23090_vm10, %v14792_v29, %v14793_v18  ;;  %v20214_v33 = vpop.permute.xlu0 %15040 }
 0x78f   :  { %v6889_v45 = vsel %vm23083_vm12, %v23082_v34, %v23081_v30  ;;  %v12481_v30 = vpack.c.bf16 %v6798_v63, %v6795_v43  ;;  %v14938_v7 = vunpack.i.h.bf16 %v19859_v0  ;;  %v14958_v34 = vunpack.i.h.bf16 %v19920_v9  ;;  %15335 = vrot.lane.b32.xlu1 %v19584_v44, %s15953_s25 }
 0x790   :  { %v12483_v54 = vpack.c.bf16 %v6797_v14, %v6794_v31  ;;  %v12485_v48 = vpack.c.bf16 %v6892_v51, %v6889_v45  ;;  %v14988_v42 = vunpack.i.h.bf16 %v19968_v40  ;;  %v14987_v50 = vunpack.i.l.bf16 %v19968_v40  ;;  %15295 = vrot.lane.b32.xlu0 %v19598_v59, %s23033_s8 }
 0x791   :  { %v14858_v32 = vunpack.i.h.bf16 %v20108_v55  ;;  %v14857_v18 = vunpack.i.l.bf16 %v20108_v55  ;;  %12482 = vmatprep.subr.bf16.mxu0 %v12481_v30  ;;  %v23091_v9 = vunpack.i.l.bf16 %v19748_v11  ;;  %v14998_v14 = vunpack.i.h.bf16 %v19990_v4  ;;  %v20237_v40 = vpop.permute.xlu1 %15005 }
 0x792   :  { %12484 = vmatpush1.bf16.msra.mxu0 %v12483_v54  ;;  %v23092_v55 = vunpack.i.h.bf16 %v19746_v12  ;;  %vm23093_vm11 = vcmask 179200   ;;  %v14798_v43 = vunpack.i.h.bf16 %v19926_v38  ;;  %v14797_v63 = vunpack.i.l.bf16 %v19926_v38  ;;  %v15051_v31 = vpop.permute.xlu0 %15050 }
 0x793   :  { %v20233_v29 = vsel %vm155_vm0, %v23091_v9, %v22599_v27  ;;  %12486 = vmatprep.subr.bf16.mxu0 %v12485_v48  ;;  %v23094_v30 = vunpack.i.h.bf16 %v19801_v26  ;;  %vm23095_vm12 = vmmov %vm23093_vm11  ;;  %v23097_v51 = vunpack.i.l.bf16 %v19859_v0  ;;  %vm23098_vm8 = vcmask 334848   ;;  %15340 = vrot.lane.b32.xlu1 %v19546_v13, %s23077_s22 }
 0x794   :  { %v6989_v45 = vsel %vm23093_vm11, %v23092_v55, %v14957_v17  ;;  %vm23096_vm13 = vmmov %vm23093_vm11  ;;  %v14968_v12 = vunpack.i.h.bf16 %v19936_v49  ;;  %v15053_v55 = vunpack.i.h.bf16 %v15051_v31  ;;  %v15052_v27 = vunpack.i.l.bf16 %v15051_v31  ;;  %15300 = vrot.lane.b32.xlu0 %v19552_v10, %s23033_s8 }
 0x795   :  { %v6992_v9 = vsel %vm23095_vm12, %v23094_v30, %v14922_v39  ;;  %v6993_v25 = vsel %vm23096_vm13, %v14922_v39, %v14923_v19  ;;  %v20251_v54 = vsel %vm23098_vm8, %v23097_v51, %v14938_v7  ;;  %vm23099_vm14 = vcmask 310272   ;;  %vm23101_vm10 = vmmov %vm23093_vm11  ;;  %v20264_v48 = vpop.permute.xlu1 %15020 }
 0x796   :  { %v6897_v38 = vsel %vm23099_vm14, %v14857_v18, %v14858_v32  ;;  %vm23100_vm7 = vmmov %vm23099_vm14  ;;  %v12493_v39 = vpack.c.bf16 %v6992_v9, %v6989_v45  ;;  %v6990_v0 = vsel %vm23101_vm10, %v14957_v17, %v14958_v34  ;;  %v23102_v19 = vunpack.i.l.bf16 %v19990_v4  ;;  %23103 = vst [vmem:[#allocation23_spill] sm:$0xff] %v20264_v48  ;;  %12488 = vmatpush1.bf16.msra.mxu0 %v12487_v60  ;;  %v20274_v34 = vpop.permute.xlu0 %15055 }
 0x797   :  { %v6899_v26 = vsel %vm23100_vm7, %v14987_v50, %v14988_v42  ;;  %vm23104_vm11 = vmmov %vm23100_vm7  ;;  %v14962_v17 = vunpack.i.l.bf16 %v19928_v16  ;;  %v23108_v45 = vunpack.i.l.bf16 %v19936_v49  ;;  %v14993_v3 = vunpack.i.h.bf16 %v19976_v2  ;;  %15345 = vrot.lane.b32.xlu1 %v19584_v44, %s15954_s28 }
 0x798   :  { %v6496_v7 = vsel %vm1572_vm9, %v23102_v19, %v14998_v14  ;;  %v6895_v18 = vsel %vm23104_vm11, %v14798_v43, %v15052_v27  ;;  %vm23105_vm12 = vmmov %vm23100_vm7  ;;  %v14992_v35 = vunpack.i.l.bf16 %v19976_v2  ;;  %15315 = vrot.lane.b32.xlu0 %v19565_v15, %s23077_s22  ;;  %v12661_v2 = vpack.c.bf16 %v6993_v25, %v6990_v0  ;;  %v23111_v25 = vld [vmem:[#allocation46_spill] sm:$0xff] }
 0x799   :  { %v6898_v51 = vsel %vm23105_vm12, %v14858_v32, %v14987_v50  ;;  %vm23106_vm13 = vmmov %vm23100_vm7  ;;  %v6499_v30 = vsel %vm1572_vm9, %v23108_v45, %v14968_v12  ;;  %v14863_v50 = vunpack.i.h.bf16 %v20135_v47  ;;  %v14862_v32 = vunpack.i.l.bf16 %v20135_v47 }
 0x79a   :  { %v6896_v31 = vsel %vm23106_vm13, %v15052_v27, %v15053_v55  ;;  %vm23107_vm8 = vmmov %vm23100_vm7  ;;  %v12489_v4 = vpack.c.bf16 %v6898_v51, %v6895_v18  ;;  %v15013_v27 = vunpack.i.h.bf16 %v20053_v23  ;;  %v12659_v49 = vpack.c.bf16 %v6499_v30, %v6496_v7  ;;  %v15066_v18 = vpop.permute.xlu0 %15065 }
 0x79b   :  { %v6894_v42 = vsel %vm23107_vm8, %v14797_v63, %v14798_v43  ;;  %v12657_v14 = vpack.c.bf16 %v6899_v26, %v6896_v31  ;;  %v14943_v43 = vunpack.i.h.bf16 %v19867_v58  ;;  %v20289_v63 = vpop.permute.xlu1 %15045  ;;  %v12663_v9 = vpack.c.bf16 %v20173_v46, %v20251_v54  ;;  %15350 = vrot.lane.b32.xlu1 %v19584_v44, %s15967_s26  ;;  %vm23115_vm14 = vmmov %vm23101_vm10 }
 0x79c   :  { %v12491_v60 = vpack.c.bf16 %v6897_v38, %v6894_v42  ;;  %12490 = vmatprep.subr.bf16.mxu0 %v12489_v4  ;;  %v23109_v12 = vunpack.i.l.bf16 %v19809_v36  ;;  %v14963_v55 = vunpack.i.h.bf16 %v19928_v16  ;;  %v23110_v38 = vld [vmem:[#allocation45_spill] sm:$0xff]  ;;  %v14928_v7 = vunpack.i.h.bf16 %v20208_v41  ;;  %vm23117_vm7 = vmmov %vm23101_vm10  ;;  %v23131_v16 = vld [vmem:[#allocation68_spill] sm:$0xff] }
 0x79d   :  { %12658 = vmatprep.subr.bf16.mxu1 %v12657_v14  ;;  %v14803_v26 = vunpack.i.h.bf16 %v23110_v38  ;;  %v14802_v19 = vunpack.i.l.bf16 %v23110_v38  ;;  %v14973_v0 = vunpack.i.h.bf16 %v23111_v25  ;;  %v15068_v46 = vunpack.i.h.bf16 %v15066_v18  ;;  %v23116_v14 = vld [vmem:[#allocation41_spill] sm:$0xff]  ;;  %vm23118_vm10 = vmmov %vm23117_vm7 }
 0x79e   :  { %12492 = vmatpush1.bf16.msra.mxu0 %v12491_v60  ;;  %v7092_v47 = vsel %vm155_vm0, %v23109_v12, %v14748_v5  ;;  %12660 = vmatpush3.bf16.msra.mxu1 %v12659_v49  ;;  %v15067_v54 = vunpack.i.l.bf16 %v15066_v18  ;;  %v23112_v51 = vunpack.i.h.bf16 %v19753_v6  ;;  %v23113_v42 = vunpack.i.l.bf16 %v20053_v23  ;;  %vm23121_vm11 = vmmov %vm23117_vm7  ;;  %v23124_v18 = vld [vmem:[#allocation10_spill] sm:$0xff] }
 0x79f   :  { %12494 = vmatprep.subr.bf16.mxu0 %v12493_v39  ;;  %12662 = vmatprep.subr.bf16.mxu1 %v12661_v2  ;;  %vm23114_vm9 = vcmask 334848   ;;  %v6997_v39 = vsel %vm23115_vm14, %v14862_v32, %v14863_v50  ;;  %v6998_v45 = vsel %vm23117_vm7, %v14863_v50, %v14992_v35  ;;  %v6999_v30 = vsel %vm23118_vm10, %v14992_v35, %v14993_v3  ;;  %v20320_v2 = vpop.permute.xlu1 %15060  ;;  %vm23122_vm12 = vmmov %vm23117_vm7  ;;  %v20328_v50 = vpop.permute.xlu0 %15070 }
 0x7a0   :  { %v7089_v31 = vsel %vm155_vm0, %v23112_v51, %v14962_v17  ;;  %v6596_v4 = vsel %vm23114_vm9, %v23113_v42, %v15013_v27  ;;  %15330 = vrot.lane.b32.xlu0 %v23116_v14, %s15963_s16  ;;  %v14868_v60 = vunpack.i.h.bf16 %v20177_v28  ;;  %v22603_v49 = vunpack.i.l.bf16 %v20177_v28  ;;  %23119 = vst [vmem:[#allocation12_spill] sm:$0xff] %v20320_v2  ;;  %vm23123_vm13 = vmmov %vm23117_vm7 }
 0x7a1   :  { %v23120_v23 = vpack.c.bf16 %v20150_v21, %v20073_v8  ;;  %v6995_v27 = vsel %vm23121_vm11, %v14803_v26, %v15067_v54  ;;  %v6996_v32 = vsel %vm23122_vm12, %v15067_v54, %v15068_v46  ;;  %v6994_v12 = vsel %vm23123_vm13, %v14802_v19, %v14803_v26 }
 0x7a2   :  { %12664 = vmatpush3.bf16.msra.mxu1 %v12663_v9  ;;  %v12497_v3 = vpack.c.bf16 %v6998_v45, %v6995_v27  ;;  %v12665_v35 = vpack.c.bf16 %v6999_v30, %v6996_v32  ;;  %v7093_v38 = vsel %vm155_vm0, %v14748_v5, %v14928_v7  ;;  %v22605_v51 = vunpack.i.h.bf16 %v23124_v18  ;;  %v23128_v9 = vld [vmem:[#allocation52_spill] sm:$0xff] }
 0x7a3   :  { %12496 = vmatpush1.bf16.msra.mxu0 %v23120_v23  ;;  %v23125_v8 = vunpack.i.l.bf16 %v19867_v58  ;;  %vm23126_vm8 = vcmask 326656   ;;  %v23127_v42 = vunpack.i.l.bf16 %v23111_v25  ;;  %15355 = vrot.lane.b32.xlu1 %v23128_v9, %s15947_s30  ;;  %v12499_v26 = vpack.c.bf16 %v6997_v39, %v6994_v12  ;;  %v20349_v7 = vpop.permute.xlu1 %15080  ;;  %v20367_v30 = vpop.permute.xlu0 %15075 }
 0x7a4   :  { %v14927_v19 = vunpack.i.l.bf16 %v20208_v41  ;;  %15360 = vrot.lane.b32.xlu0 %v19584_v44, %s15968_s27  ;;  %12498 = vmatprep.subr.bf16.mxu0 %v12497_v3  ;;  %v12501_v5 = vpack.c.bf16 %v7092_v47, %v7089_v31  ;;  %v7090_v58 = vsel %vm155_vm0, %v14962_v17, %v14963_v55  ;;  %v23129_v41 = vunpack.i.h.bf16 %v19748_v11  ;;  %vm23136_vm14 = vmmov %vm23126_vm8 }
 0x7a5   :  { %v6690_v21 = vsel %vm23126_vm8, %v23125_v8, %v14943_v43  ;;  %v6599_v46 = vsel %vm23114_vm9, %v23127_v42, %v14973_v0  ;;  %v14752_v43 = vunpack.i.l.bf16 %v23124_v18  ;;  %12666 = vmatprep.subr.bf16.mxu1 %v12665_v35  ;;  %v12669_v25 = vpack.c.bf16 %v7093_v38, %v7090_v58  ;;  %v23137_v38 = vld [vmem:[#allocation59_spill] sm:$0xff] }
 0x7a6   :  { %v12667_v36 = vpack.c.bf16 %v6599_v46, %v6596_v4  ;;  %v7095_v0 = vsel %vm155_vm0, %v23129_v41, %v22603_v49  ;;  %v23130_v54 = vunpack.i.l.bf16 %v19755_v22  ;;  %v22606_v31 = vunpack.i.h.bf16 %v23131_v16 }
 0x7a7   :  { %12500 = vmatpush1.bf16.msra.mxu0 %v12499_v26  ;;  %v14692_v17 = vunpack.i.l.bf16 %v23131_v16  ;;  %v23132_v55 = vunpack.i.h.bf16 %v19753_v6  ;;  %v23133_v4 = vunpack.i.l.bf16 %v19753_v6  ;;  %v14873_v45 = vunpack.i.h.bf16 %v19755_v22  ;;  %15370 = vrot.lane.b32.xlu1 %v23128_v9, %s15948_s12  ;;  %v23139_v26 = vld [vmem:[#allocation42_spill] sm:$0xff] }
 0x7a8   :  { %v7098_v47 = vsel %vm155_vm0, %v14868_v60, %v23130_v54  ;;  %12668 = vmatpush3.bf16.msra.mxu1 %v12667_v36  ;;  %12502 = vmatprep.subr.bf16.mxu0 %v12501_v5  ;;  %v23134_v23 = vunpack.i.h.bf16 %v19811_v57  ;;  %v23135_v27 = vunpack.i.l.bf16 %v19811_v57  ;;  %v7097_v12 = vsel %vm155_vm0, %v14927_v19, %v14868_v60  ;;  %v20382_v57 = vpop.permute.xlu1 %15090  ;;  %v23141_v5 = vld [vmem:[#allocation77_spill] sm:$0xff] }
 0x7a9   :  { %v7088_v39 = vsel %vm155_vm0, %v23133_v4, %v23132_v55  ;;  %12670 = vmatprep.subr.bf16.mxu1 %v12669_v25  ;;  %15365 = vrot.lane.b32.xlu0 %v20168_v20, %s15951_s19  ;;  %v12505_v35 = vpack.c.bf16 %v7098_v47, %v7095_v0  ;;  %v22602_v8 = vunpack.i.h.bf16 %v23137_v38  ;;  %v14812_v42 = vunpack.i.l.bf16 %v23137_v38  ;;  %23138 = vst [vmem:[#allocation32_spill] sm:$0xff] %v20382_v57  ;;  %v23142_v47 = vld [vmem:[#allocation47_spill] sm:$0xff] }
 0x7aa   :  { %v6693_v32 = vsel %vm23136_vm14, %v23135_v27, %v23134_v23  ;;  %v12503_v6 = vpack.c.bf16 %v20233_v29, %v7088_v39  ;;  %v7192_v46 = vsel %vm256_vm1, %v14752_v43, %v22605_v51  ;;  %v14613_v29 = vunpack.i.h.bf16 %v23139_v26  ;;  %v23143_v23 = vld [vmem:[#allocation53_spill] sm:$0xff] }
 0x7ab   :  { %v12671_v3 = vpack.c.bf16 %v6693_v32, %v6690_v21  ;;  %v23140_v60 = vmov %v23129_v41  ;;  %v20391_v21 = vpop.permute.xlu0 %15085  ;;  %v7189_v36 = vsel %vm256_vm1, %v14692_v17, %v22606_v31  ;;  %v22601_v58 = vunpack.i.h.bf16 %v23141_v5  ;;  %15390 = vrot.lane.b32.xlu1 %v20027_v62, %s23011_s20 }
 0x7ac   :  { %12504 = vmatpush1.bf16.msra.mxu0 %v12503_v6  ;;  %v7094_v19 = vsel %vm155_vm0, %v14873_v45, %v23140_v60  ;;  %v14877_v25 = vunpack.i.l.bf16 %v23141_v5  ;;  %v14612_v11 = vunpack.i.l.bf16 %v23139_v26  ;;  %v7191_v0 = vsel %vm256_vm1, %v14613_v29, %v14752_v43  ;;  %v20406_v39 = vpop.permute.xlu1 %15105  ;;  %v23144_v43 = vld [vmem:[#allocation73_spill] sm:$0xff]  ;;  %v23145_v60 = vld [vmem:[#allocation78_spill] sm:$0xff] }
 0x7ad   :  { %12672 = vmatpush3.bf16.msra.mxu1 %v12671_v3  ;;  %12506 = vmatprep.subr.bf16.mxu0 %v12505_v35  ;;  %v12507_v41 = vpack.c.bf16 %v7097_v12, %v7094_v19  ;;  %v12509_v54 = vpack.c.bf16 %v7192_v46, %v7189_v36  ;;  %v22600_v55 = vunpack.i.h.bf16 %v23142_v47  ;;  %v14757_v4 = vunpack.i.l.bf16 %v23142_v47 }
 0x7ae   :  { %15375 = vrot.lane.b32.xlu0 %v19584_v44, %s23029_s29  ;;  %v7195_v45 = vsel %vm256_vm1, %v14812_v42, %v22602_v8  ;;  %v14617_v27 = vunpack.i.l.bf16 %v23143_v23  ;;  %v7188_v32 = vsel %vm256_vm1, %v14612_v11, %v14692_v17  ;;  %v22604_v6 = vunpack.i.h.bf16 %v23144_v43 }
 0x7af   :  { %v20414_v12 = vpop.permute.xlu0 %15095  ;;  %v14697_v3 = vunpack.i.l.bf16 %v23144_v43  ;;  %15400 = vrot.lane.b32.xlu1 %v20168_v20, %s23011_s20  ;;  %v12511_v35 = vpack.c.bf16 %v7191_v0, %v7188_v32  ;;  %v7198_v46 = vsel %vm256_vm1, %v14877_v25, %v22601_v58  ;;  %v14618_v26 = vunpack.i.h.bf16 %v23143_v23  ;;  %v23147_v0 = vld [vmem:[#allocation43_spill] sm:$0xff] }
 0x7b0   :  { %12508 = vmatpush1.bf16.msra.mxu0 %v12507_v41  ;;  %v7194_v29 = vsel %vm256_vm1, %v14617_v27, %v14812_v42  ;;  %v12513_v17 = vpack.c.bf16 %v7198_v46, %v7195_v45  ;;  %v22607_v19 = vunpack.i.h.bf16 %v23145_v60  ;;  %v14817_v36 = vunpack.i.l.bf16 %v23145_v60  ;;  %v20428_v41 = vpop.permute.xlu1 %15115  ;;  %v23148_v27 = vld [vmem:[#allocation57_spill] sm:$0xff] }
 0x7b1   :  { %12510 = vmatprep.subr.bf16.mxu0 %v12509_v54  ;;  %23146 = vst [vmem:[#allocation22_spill] sm:$0xff] %v20428_v41  ;;  %v7292_v11 = vsel %vm357_vm2, %v14757_v4, %v22600_v55  ;;  %v14623_v54 = vunpack.i.h.bf16 %v23147_v0  ;;  %v7197_v23 = vsel %vm256_vm1, %v14618_v26, %v14877_v25  ;;  %v22610_v45 = vunpack.i.h.bf16 %v23148_v27  ;;  %v23149_v26 = vld [vmem:[#allocation58_spill] sm:$0xff] }
 0x7b2   :  { %15380 = vrot.lane.b32.xlu0 %v19598_v59, %s23077_s22  ;;  %v14882_v32 = vunpack.i.l.bf16 %v23148_v27  ;;  %v12515_v46 = vpack.c.bf16 %v7197_v23, %v7194_v29  ;;  %v14622_v55 = vunpack.i.l.bf16 %v23147_v0  ;;  %v14762_v8 = vunpack.i.l.bf16 %v23149_v26  ;;  %v11355_v29 = vld [vmem:[%s22359_s5 + $0xe0] sm:$0xff] }
 0x7b3   :  { %v20435_v42 = vpop.permute.xlu0 %15100  ;;  %15405 = vrot.lane.b32.xlu1 %v20027_v62, %s15966_s18  ;;  %v7291_v58 = vsel %vm357_vm2, %v14623_v54, %v14757_v4  ;;  %v7295_v0 = vsel %vm357_vm2, %v14817_v36, %v22607_v19  ;;  %v23150_v4 = vld [vmem:[#allocation54_spill] sm:$0xff]  ;;  %vm23155_vm7 = vcmask 146432   ;;  %vm23175_vm14 = vcmask 15360  }
 0x7b4   :  { %12512 = vmatpush1.bf16.msra.mxu0 %v12511_v35  ;;  %v7289_v35 = vsel %vm357_vm2, %v14697_v3, %v22604_v6  ;;  %v20450_v49 = vpop.permute.xlu1 %15130  ;;  %v14627_v54 = vunpack.i.l.bf16 %v23150_v4  ;;  %v7288_v23 = vsel %vm357_vm2, %v14622_v55, %v14697_v3  ;;  %v7298_v19 = vsel %vm357_vm2, %v14882_v32, %v22610_v45  ;;  %v23152_v6 = vld [vmem:[#allocation60_spill] sm:$0xff]  ;;  %vm23159_vm10 = vmmov %vm23155_vm7  ;;  %v23162_v45 = vld [vmem:[#allocation35_spill] sm:$0xff] }
 0x7b5   :  { %12514 = vmatprep.subr.bf16.mxu0 %v12513_v17  ;;  %v12517_v25 = vpack.c.bf16 %v7292_v11, %v7289_v35  ;;  %v11363_v35 = vld [vmem:[%s22359_s5 + $0x120] sm:$0xff]  ;;  %v12519_v31 = vpack.c.bf16 %v7291_v58, %v7288_v23  ;;  %v14628_v55 = vunpack.i.h.bf16 %v23150_v4  ;;  %v14822_v60 = vunpack.i.l.bf16 %v23152_v6  ;;  %v23156_v4 = vld [vmem:[#allocation69_spill] sm:$0xff]  ;;  %vm23160_vm11 = vmmov %vm23155_vm7 }
 0x7b6   :  { %15385 = vrot.lane.b32.xlu0 %v19552_v10, %s23077_s22  ;;  %v7294_v3 = vsel %vm357_vm2, %v14627_v54, %v14817_v36  ;;  %v23154_v58 = vunpack.i.h.bf16 %v23149_v26  ;;  %v11362_v36 = vld [vmem:[%s22359_s5 + $0x118] sm:$0xff]  ;;  %v14633_v54 = vunpack.i.h.bf16 %v23156_v4  ;;  %v14767_v61 = vunpack.i.l.bf16 %v23162_v45  ;;  %vm23164_vm12 = vmmov %vm23155_vm7 }
 0x7b7   :  { %v20460_v11 = vpop.permute.xlu0 %15110  ;;  %15415 = vrot.lane.b32.xlu1 %v19584_v44, %s23033_s8  ;;  %vm23166_vm13 = vmmov %vm23155_vm7 }
 0x7b8   :  { %12516 = vmatpush1.bf16.msra.mxu0 %v12515_v46  ;;  %v23151_v46 = vld [vmem:[#allocation74_spill] sm:$0xff]  ;;  %v20478_v37 = vpop.permute.xlu1 %15140  ;;  %v7392_v23 = vsel %vm23155_vm7, %v14762_v8, %v23154_v58  ;;  %vm23170_vm8 = vmmov %vm23155_vm7 }
 0x7b9   :  { %12518 = vmatprep.subr.bf16.mxu0 %v12517_v25  ;;  %v14702_v51 = vunpack.i.l.bf16 %v23151_v46  ;;  %v12521_v25 = vpack.c.bf16 %v7298_v19, %v7295_v0  ;;  %23153 = vst [vmem:[#allocation11_spill] sm:$0xff] %v20478_v37  ;;  %v7297_v19 = vsel %vm357_vm2, %v14628_v55, %v14882_v32  ;;  %v23157_v0 = vld [vmem:[#allocation72_spill] sm:$0xff]  ;;  %v23158_v17 = vunpack.i.h.bf16 %v23151_v46  ;;  %vm23171_vm9 = vmmov %vm23155_vm7 }
 0x7ba   :  { %15395 = vrot.lane.b32.xlu0 %v23116_v14, %s15964_s17  ;;  %v14887_v58 = vunpack.i.l.bf16 %v23157_v0  ;;  %v14632_v32 = vunpack.i.l.bf16 %v23156_v4  ;;  %v7391_v55 = vsel %vm23160_vm11, %v14633_v54, %v14762_v8  ;;  %v11369_v8 = vld [vmem:[%s22359_s5 + $0x150] sm:$0xff]  ;;  %v23165_v4 = vld [vmem:[#allocation71_spill] sm:$0xff] }
 0x7bb   :  { %9250 = vmatmul.mubr.f32.vlgmr.msra.gmra.mrb[48].mxu0 %v11355_v29  ;;  %v20488_v29 = vpop.permute.xlu0 %15120  ;;  %15420 = vrot.lane.b32.xlu1 %v23128_v9, %s15949_s13  ;;  %v7389_v27 = vsel %vm23159_vm10, %v14702_v51, %v23158_v17  ;;  %v23168_v54 = vld [vmem:[#allocation70_spill] sm:$0xff]  ;;  %vm23180_vm10 = vmmov %vm23175_vm14 }
 0x7bc   :  { %12520 = vmatpush1.bf16.msra.mxu0 %v12519_v31  ;;  %9255 = vmatprep.mubr.f32.mxu0 %v11363_v35  ;;  %v11370_v31 = vld [vmem:[%s22359_s5 + $0x158] sm:$0xff]  ;;  %v12523_v35 = vpack.c.bf16 %v7297_v19, %v7294_v3  ;;  %v20506_v47 = vpop.permute.xlu1 %15155  ;;  %v23163_v3 = vunpack.i.h.bf16 %v23152_v6  ;;  %v23172_v19 = vld [vmem:[#allocation62_spill] sm:$0xff]  ;;  %vm23181_vm11 = vmmov %vm23180_vm10 }
 0x7bd   :  { %12522 = vmatprep.subr.bf16.mxu0 %v12521_v25  ;;  %v12525_v25 = vpack.c.bf16 %v7392_v23, %v7389_v27  ;;  %v7388_v27 = vsel %vm23166_vm13, %v14632_v32, %v14702_v51  ;;  %v14638_v51 = vunpack.i.h.bf16 %v23165_v4  ;;  %v14827_v46 = vunpack.i.l.bf16 %v23172_v19  ;;  %vm23186_vm13 = vmmov %vm23180_vm10 }
 0x7be   :  { %15410 = vrot.lane.b32.xlu0 %v19565_v15, %s23161_s21  ;;  %v7395_v17 = vsel %vm23164_vm12, %v14822_v60, %v23163_v3  ;;  %v14637_v15 = vunpack.i.l.bf16 %v23165_v4  ;;  %v23169_v3 = vunpack.i.h.bf16 %v23157_v0  ;;  %v23176_v4 = vld [vmem:[#allocation44_spill] sm:$0xff]  ;;  %vm23184_vm12 = vmmov %vm23180_vm10 }
 0x7bf   :  { %9256 = vmatmul.mubr.f32.gmra.mrb[50].mxu0 %v11362_v36  ;;  %v20516_v23 = vpop.permute.xlu0 %15125  ;;  %v11377_v36 = vld [vmem:[%s22359_s5 + $0x190] sm:$0xff]  ;;  %15425 = vrot.lane.b32.xlu1 %v19584_v44, %s23077_s22 }
 0x7c0   :  { %12524 = vmatpush1.bf16.msra.mxu0 %v12523_v35  ;;  %9261 = vmatprep.mubr.f32.mxu0 %v11370_v31  ;;  %23167 = vst [vmem:[#allocation28_spill] sm:$0xff] %v20516_v23  ;;  %v14707_v35 = vunpack.i.l.bf16 %v23168_v54  ;;  %v12527_v31 = vpack.c.bf16 %v7391_v55, %v7388_v27  ;;  %v7398_v26 = vsel %vm23170_vm8, %v14887_v58, %v23169_v3  ;;  %v20534_v43 = vpop.permute.xlu1 %15165  ;;  %v23174_v55 = vunpack.i.h.bf16 %v23162_v45  ;;  %vm23189_vm8 = vmmov %vm23180_vm10 }
 0x7c1   :  { %12526 = vmatprep.subr.bf16.mxu0 %v12525_v25  ;;  %v7394_v32 = vsel %vm23171_vm9, %v14637_v15, %v14822_v60  ;;  %v12529_v25 = vpack.c.bf16 %v7398_v26, %v7395_v17  ;;  %23173 = vst [vmem:[#allocation25_spill] sm:$0xff] %v20534_v43  ;;  %v11376_v60 = vld [vmem:[%s22359_s5 + $0x188] sm:$0xff]  ;;  %v7397_v26 = vsel %vm23155_vm7, %v14638_v51, %v14887_v58  ;;  %v23178_v15 = vld [vmem:[#allocation26_spill] sm:$0xff]  ;;  %v14642_v58 = vunpack.i.l.bf16 %v23176_v4  ;;  %vm23190_vm9 = vmmov %vm23189_vm8 }
 0x7c2   :  { %15440 = vrot.lane.b32.xlu0 %v23116_v14, %s15950_s14  ;;  %v7492_v27 = vsel %vm23175_vm14, %v14767_v61, %v23174_v55  ;;  %v14643_v14 = vunpack.i.h.bf16 %v23176_v4  ;;  %v14892_v3 = vunpack.i.l.bf16 %v23178_v15  ;;  %v23179_v55 = vunpack.i.h.bf16 %v23168_v54  ;;  %v23185_v4 = vld [vmem:[#allocation55_spill] sm:$0xff]  ;;  %vm23195_vm14 = vmmov %vm23189_vm8 }
 0x7c3   :  { %9262 = vmatmul.mubr.f32.gmra.mrb[52].mxu0 %v11369_v8  ;;  %v20544_v17 = vpop.permute.xlu0 %15135  ;;  %v11358_v8 = vld [vmem:[%s22359_s5 + $0xf8] sm:$0xff]  ;;  %15430 = vrot.lane.b32.xlu1 %v23128_v9, %s15963_s16  ;;  %v23188_v45 = vunpack.i.h.bf16 %v23178_v15  ;;  %vm23218_vm7 = vcmask 1031168  }
 0x7c4   :  { %12528 = vmatpush1.bf16.msra.mxu0 %v12527_v31  ;;  %9267 = vmatprep.mubr.f32.mxu0 %v11377_v36  ;;  %23177 = vst [vmem:[#allocation30_spill] sm:$0xff] %v20544_v17  ;;  %v12531_v36 = vpack.c.bf16 %v7397_v26, %v7394_v32  ;;  %v7489_v6 = vsel %vm23180_vm10, %v14707_v35, %v23179_v55  ;;  %v23182_v31 = vld [vmem:[#allocation80_spill] sm:$0xff]  ;;  %v20562_v5 = vpop.permute.xlu1 %15180  ;;  %v23183_v32 = vunpack.i.h.bf16 %v23172_v19  ;;  %v14647_v55 = vunpack.i.l.bf16 %v23185_v4  ;;  %vm23222_vm10 = vmmov %vm23218_vm7 }
 0x7c5   :  { %12530 = vmatprep.subr.bf16.mxu0 %v12529_v25  ;;  %v7491_v51 = vsel %vm23181_vm11, %v14643_v14, %v14767_v61  ;;  %v12533_v25 = vpack.c.bf16 %v7492_v27, %v7489_v6  ;;  %v14772_v0 = vunpack.i.l.bf16 %v23182_v31  ;;  %v7488_v61 = vsel %vm23186_vm13, %v14642_v58, %v14707_v35  ;;  %v23187_v6 = vld [vmem:[#allocation76_spill] sm:$0xff]  ;;  %v23191_v58 = vld [vmem:[#allocation75_spill] sm:$0xff]  ;;  %vm23223_vm11 = vmmov %vm23218_vm7 }
 0x7c6   :  { %15450 = vrot.lane.b32.xlu0 %v20168_v20, %s15966_s18  ;;  %v7495_v26 = vsel %vm23184_vm12, %v14827_v46, %v23183_v32  ;;  %v7498_v32 = vsel %vm23189_vm8, %v14892_v3, %v23188_v45  ;;  %v7494_v19 = vsel %vm23190_vm9, %v14647_v55, %v14827_v46  ;;  %v15002_v27 = vunpack.i.l.bf16 %v23191_v58  ;;  %v23194_v45 = vld [vmem:[#allocation56_spill] sm:$0xff]  ;;  %vm23224_vm12 = vmmov %vm23218_vm7 }
 0x7c7   :  { %9268 = vmatmul.mubr.f32.gmra.mrb[54].mxu0 %v11376_v60  ;;  %v20569_v14 = vpop.permute.xlu0 %15145  ;;  %v14712_v60 = vunpack.i.l.bf16 %v23187_v6  ;;  %15435 = vrot.lane.b32.xlu1 %v19575_v24, %s23161_s21  ;;  %v12537_v35 = vpack.c.bf16 %v7498_v32, %v7495_v26  ;;  %v23193_v24 = vunpack.i.h.bf16 %v23182_v31  ;;  %v23197_v26 = vld [vmem:[#allocation31_spill] sm:$0xff]  ;;  %v23198_v31 = vunpack.i.h.bf16 %v23187_v6  ;;  %vm23225_vm13 = vmmov %vm23218_vm7 }
 0x7c8   :  { %12532 = vmatpush1.bf16.msra.mxu0 %v12531_v36  ;;  %9338 = vmatprep.mubr.f32.mxu0 %v11358_v8  ;;  %v12535_v36 = vpack.c.bf16 %v7491_v51, %v7488_v61  ;;  %v14648_v8 = vunpack.i.h.bf16 %v23185_v4  ;;  %v20584_v54 = vpop.permute.xlu1 %15190  ;;  %v14653_v61 = vunpack.i.h.bf16 %v23194_v45  ;;  %v14652_v4 = vunpack.i.l.bf16 %v23194_v45  ;;  %vm23226_vm8 = vmmov %vm23218_vm7 }
 0x7c9   :  { %12534 = vmatprep.subr.bf16.mxu0 %v12533_v25  ;;  %23192 = vst [vmem:[#allocation24_spill] sm:$0xff] %v20584_v54  ;;  %v7592_v51 = vsel %vm458_vm3, %v14772_v0, %v23193_v24  ;;  %v22625_v32 = vunpack.i.h.bf16 %v23197_v26  ;;  %v14832_v25 = vunpack.i.l.bf16 %v23197_v26  ;;  %v7589_v24 = vsel %vm458_vm3, %v14712_v60, %v23198_v31  ;;  %vm23227_vm9 = vmmov %vm23218_vm7 }
 0x7ca   :  { %15455 = vrot.lane.b32.xlu0 %v23128_v9, %s15964_s17  ;;  %v7497_v46 = vsel %vm23195_vm14, %v14648_v8, %v14892_v3  ;;  %v7591_v15 = vsel %vm458_vm3, %v14653_v61, %v14772_v0  ;;  %v15008_v45 = vunpack.i.h.bf16 %v20237_v40  ;;  %v15007_v3 = vunpack.i.l.bf16 %v20237_v40  ;;  %vm23228_vm14 = vmmov %vm23218_vm7 }
 0x7cb   :  { %v20592_v55 = vpop.permute.xlu0 %15150  ;;  %15445 = vrot.lane.b32.xlu1 %v19546_v13, %s23161_s21  ;;  %v12541_v8 = vpack.c.bf16 %v7592_v51, %v7589_v24  ;;  %v23199_v13 = vunpack.i.h.bf16 %v23191_v58  ;;  %v23203_v24 = vld [vmem:[#allocation49_spill] sm:$0xff] }
 0x7cc   :  { %12536 = vmatpush1.bf16.msra.mxu0 %v12535_v36  ;;  %23196 = vst [vmem:[#allocation36_spill] sm:$0xff] %v20592_v55  ;;  %v12539_v36 = vpack.c.bf16 %v7497_v46, %v7494_v19  ;;  %v7588_v46 = vsel %vm458_vm3, %v14652_v4, %v14712_v60  ;;  %v7597_v0 = vsel %vm458_vm3, %v15008_v45, %v15002_v27 }
 0x7cd   :  { %12538 = vmatprep.subr.bf16.mxu0 %v12537_v35  ;;  %v20606_v35 = vpop.permute.xlu1 %15205  ;;  %v7598_v19 = vsel %vm458_vm3, %v15002_v27, %v23199_v13  ;;  %v12543_v40 = vpack.c.bf16 %v7591_v15, %v7588_v46  ;;  %v7594_v51 = vsel %vm458_vm3, %v15007_v3, %v14832_v25  ;;  %v22626_v15 = vunpack.i.h.bf16 %v20264_v48  ;;  %v23205_v13 = vld [vmem:[#allocation38_spill] sm:$0xff] }
 0x7ce   :  { %15460 = vrot.lane.b32.xlu0 %v19598_v59, %s23161_s21  ;;  %v7595_v59 = vsel %vm458_vm3, %v14832_v25, %v22625_v32  ;;  %v15022_v27 = vunpack.i.l.bf16 %v20264_v48  ;;  %v22627_v3 = vunpack.i.h.bf16 %v20091_v56  ;;  %v23220_v48 = vunpack.i.h.bf16 %v20214_v33 }
 0x7cf   :  { %v20612_v31 = vpop.permute.xlu0 %15160  ;;  %15470 = vrot.lane.b32.xlu1 %v19584_v44, %s23161_s21  ;;  %v12545_v61 = vpack.c.bf16 %v7598_v19, %v7595_v59  ;;  %v12547_v44 = vpack.c.bf16 %v7597_v0, %v7594_v51  ;;  %v23206_v19 = vld [vmem:[#allocation48_spill] sm:$0xff]  ;;  %v15033_v59 = vunpack.i.h.bf16 %v20143_v52  ;;  %v15032_v0 = vunpack.i.l.bf16 %v20143_v52 }
 0x7d0   :  { %12540 = vmatpush1.bf16.msra.mxu0 %v12539_v36  ;;  %23200 = vst [vmem:[#allocation61_spill] sm:$0xff] %v20612_v31  ;;  %v23202_v36 = vld [vmem:[#allocation39_spill] sm:$0xff]  ;;  %v23207_v46 = vpack.c.bf16 %v23205_v13, %v23206_v19  ;;  %v23212_v19 = vld [vmem:[#allocation50_spill] sm:$0xff] }
 0x7d1   :  { %12542 = vmatprep.subr.bf16.mxu0 %v12541_v8  ;;  %v20623_v60 = vpop.permute.xlu1 %15215  ;;  %v23204_v45 = vpack.c.bf16 %v23202_v36, %v23203_v24 }
 0x7d2   :  { %15465 = vrot.lane.b32.xlu0 %v19552_v10, %s23161_s21 }
 0x7d3   :  { %v20625_v4 = vpop.permute.xlu0 %15170  ;;  %15475 = vrot.lane.b32.xlu1 %v23128_v9, %s15950_s14  ;;  %v15017_v9 = vunpack.i.l.bf16 %v20091_v56 }
 0x7d4   :  { %12544 = vmatpush1.bf16.msra.mxu0 %v12543_v40  ;;  %v7716_v40 = vsel %vm583_vm4, %v15022_v27, %v22626_v15 }
 0x7d5   :  { %12546 = vmatprep.subr.bf16.mxu0 %v12545_v61  ;;  %v20633_v25 = vpop.permute.xlu1 %15225  ;;  %v23209_v61 = vld [vmem:[#allocation51_spill] sm:$0xff]  ;;  %v7713_v24 = vsel %vm583_vm4, %v15017_v9, %v22627_v3 }
 0x7d6   :  { %15485 = vrot.lane.b32.xlu0 %v20027_v62, %s15952_s24  ;;  %v12557_v13 = vpack.c.bf16 %v7716_v40, %v7713_v24  ;;  %v15048_v24 = vunpack.i.h.bf16 %v20289_v63 }
 0x7d7   :  { %v20635_v10 = vpop.permute.xlu0 %15175  ;;  %15480 = vrot.lane.b32.xlu1 %v20027_v62, %s15968_s27 }
 0x7d8   :  { %12548 = vmatpush1.bf16.msra.mxu0 %v12547_v44  ;;  %23201 = vst [vmem:[#allocation37_spill] sm:$0xff] %v20635_v10  ;;  %v23210_v44 = vld [vmem:[#allocation33_spill] sm:$0xff] }
 0x7d9   :  { %12550 = vmatprep.subr.bf16.mxu0 %v23204_v45  ;;  %v20646_v8 = vpop.permute.xlu1 %15235  ;;  %v23211_v36 = vpack.c.bf16 %v23209_v61, %v23210_v44  ;;  %v7715_v45 = vsel %vm583_vm4, %v15033_v59, %v15022_v27  ;;  %v7712_v61 = vsel %vm583_vm4, %v15032_v0, %v15017_v9  ;;  %v15042_v0 = vunpack.i.l.bf16 %v20214_v33 }
 0x7da   :  { %15495 = vrot.lane.b32.xlu0 %v20168_v20, %s15952_s24 }
 0x7db   :  { %v20656_v51 = vpop.permute.xlu0 %15185  ;;  %15490 = vrot.lane.b32.xlu1 %v20168_v20, %s15968_s27  ;;  %v7721_v26 = vsel %vm583_vm4, %v15048_v24, %v15042_v0 }
 0x7dc   :  { %12552 = vmatpush1.bf16.msra.mxu0 %v23207_v46  ;;  %23208 = vst [vmem:[#allocation45_spill] sm:$0xff] %v20656_v51  ;;  %v23213_v46 = vld [vmem:[#allocation34_spill] sm:$0xff] }
 0x7dd   :  { %12554 = vmatprep.subr.bf16.mxu0 %v23211_v36  ;;  %v20669_v52 = vpop.permute.xlu1 %15245  ;;  %v23214_v32 = vpack.c.bf16 %v23212_v19, %v23213_v46  ;;  %v12559_v36 = vpack.c.bf16 %v7715_v45, %v7712_v61  ;;  %v15047_v19 = vunpack.i.l.bf16 %v20289_v63  ;;  %v15073_v61 = vunpack.i.h.bf16 %v20328_v50  ;;  %v15929_v45 = vld [vmem:[%s22354_s2 + $0x20] sm:$0xff]  ;;  %v15930_v63 = vld [vmem:[%s22354_s2 + $0x48] sm:$0xff] }
 0x7de   :  { %15505 = vrot.lane.b32.xlu0 %v20027_v62, %s15953_s25  ;;  %v20713_v59 = vpack.i.bf16 %v15930_v63, %v15929_v45  ;;  %v7722_v45 = vsel %vm583_vm4, %v15042_v0, %v23220_v48  ;;  %v15077_v48 = vunpack.i.l.bf16 %v20367_v30 }
 0x7df   :  { %v20675_v44 = vpop.permute.xlu0 %15195  ;;  %15500 = vrot.lane.b32.xlu1 %v20027_v62, %s23029_s29 }
 0x7e0   :  { %12556 = vmatpush1.bf16.msra.mxu0 %v23214_v32  ;;  %v15062_v32 = vunpack.i.l.bf16 %v20320_v2 }
 0x7e1   :  { %12558 = vmatprep.subr.bf16.mxu0 %v12557_v13  ;;  %v20681_v27 = vpop.permute.xlu1 %15255  ;;  %v15057_v13 = vunpack.i.l.bf16 %v20274_v34 }
 0x7e2   :  { %15515 = vrot.lane.b32.xlu0 %v20168_v20, %s15953_s25  ;;  %v7815_v38 = vsel %vm23224_vm12, %v15073_v61, %v15062_v32  ;;  %v15098_v61 = vunpack.i.h.bf16 %v20414_v12 }
 0x7e3   :  { %v20683_v40 = vpop.permute.xlu0 %15200  ;;  %15510 = vrot.lane.b32.xlu1 %v20168_v20, %s23029_s29 }
 0x7e4   :  { %12560 = vmatpush1.bf16.msra.mxu0 %v12559_v36  ;;  %23215 = vst [vmem:[#allocation46_spill] sm:$0xff] %v20683_v40  ;;  %v15072_v36 = vunpack.i.l.bf16 %v20328_v50  ;;  %v23217_v50 = vunpack.i.h.bf16 %v20320_v2 }
 0x7e5   :  { %v20697_v46 = vpop.permute.xlu1 %15265 }
 0x7e6   :  { %15525 = vrot.lane.b32.xlu0 %v20027_v62, %s15954_s28  ;;  %23216 = vst [vmem:[#allocation41_spill] sm:$0xff] %v20697_v46  ;;  %v15267_v3 = vunpack.i.l.bf16 %v20697_v46  ;;  %v7816_v15 = vsel %vm23218_vm7, %v15062_v32, %v23217_v50  ;;  %v23221_v50 = vunpack.i.h.bf16 %v20274_v34  ;;  %v15087_v32 = vunpack.i.l.bf16 %v20391_v21 }
 0x7e7   :  { %v20703_v9 = vpop.permute.xlu0 %15210  ;;  %15520 = vrot.lane.b32.xlu1 %v20027_v62, %s23033_s8  ;;  %v23219_v62 = vunpack.i.h.bf16 %v20697_v46  ;;  %v15083_v46 = vunpack.i.h.bf16 %v20349_v7  ;;  %vm23237_vm7 = vcmask 875520  }
 0x7e8   :  { %v7718_v58 = vsel %vm583_vm4, %v15047_v19, %v15267_v3  ;;  %v7813_v24 = vsel %vm23222_vm10, %v15057_v13, %v23221_v50  ;;  %v7812_v19 = vsel %vm23223_vm11, %v15072_v36, %v15057_v13  ;;  %v15097_v36 = vunpack.i.l.bf16 %v20414_v12  ;;  %vm23240_vm10 = vmmov %vm23237_vm7 }
 0x7e9   :  { %v7719_v6 = vsel %vm583_vm4, %v15267_v3, %v23219_v62  ;;  %v20728_v63 = vpop.permute.xlu1 %15270  ;;  %v12563_v56 = vpack.c.bf16 %v7721_v26, %v7718_v58  ;;  %v12565_v3 = vpack.c.bf16 %v7816_v15, %v7813_v24  ;;  %v22638_v62 = vunpack.i.h.bf16 %v20367_v30  ;;  %vm23243_vm11 = vmmov %vm23237_vm7 }
 0x7ea   :  { %15535 = vrot.lane.b32.xlu0 %v20168_v20, %s15954_s28  ;;  %v12561_v2 = vpack.c.bf16 %v7722_v45, %v7719_v6  ;;  %v22637_v6 = vunpack.i.h.bf16 %v20382_v57  ;;  %v15092_v58 = vunpack.i.l.bf16 %v20382_v57  ;;  %v22640_v26 = vunpack.i.h.bf16 %v20391_v21  ;;  %vm23244_vm12 = vmmov %vm23237_vm7 }
 0x7eb   :  { %v20736_v53 = vpop.permute.xlu0 %15220  ;;  %15530 = vrot.lane.b32.xlu1 %v20168_v20, %s23033_s8  ;;  %v15082_v15 = vunpack.i.l.bf16 %v20349_v7  ;;  %v12567_v13 = vpack.c.bf16 %v7815_v38, %v7812_v19  ;;  %v7821_v24 = vsel %vm23225_vm13, %v15083_v46, %v15077_v48  ;;  %v15102_v57 = vunpack.i.l.bf16 %v20435_v42 }
 0x7ec   :  { %12562 = vmatprep.subr.bf16.mxu0 %v12561_v2  ;;  %v7916_v7 = vsel %vm3005_vm15, %v15092_v58, %v22637_v6  ;;  %v7913_v46 = vsel %vm3005_vm15, %v15087_v32, %v22640_v26  ;;  %v7912_v6 = vsel %vm3005_vm15, %v15097_v36, %v15087_v32  ;;  %v15108_v26 = vunpack.i.h.bf16 %v20406_v39 }
 0x7ed   :  { %12564 = vmatpush1.bf16.msra.mxu0 %v12563_v56  ;;  %v20749_v0 = vpop.permute.xlu1 %15280  ;;  %v7822_v56 = vsel %vm23226_vm8, %v15077_v48, %v22638_v62  ;;  %v22645_v32 = vunpack.i.h.bf16 %v20428_v41  ;;  %vm23246_vm13 = vcmask 867328   ;;  %vm23247_vm8 = vmmov %vm23237_vm7 }
 0x7ee   :  { %15545 = vrot.lane.b32.xlu0 %v20713_v59, %s15967_s26  ;;  %12566 = vmatprep.subr.bf16.mxu0 %v12565_v3  ;;  %v22641_v2 = vunpack.i.h.bf16 %v20749_v0  ;;  %v15282_v45 = vunpack.i.l.bf16 %v20749_v0 }
 0x7ef   :  { %v20755_v50 = vpop.permute.xlu0 %15230  ;;  %15540 = vrot.lane.b32.xlu1 %v20713_v59, %s23077_s22 }
 0x7f0   :  { %v7818_v38 = vsel %vm23227_vm9, %v15082_v15, %v15282_v45  ;;  %v7819_v12 = vsel %vm23228_vm14, %v15282_v45, %v22641_v2  ;;  %v7915_v15 = vsel %vm3005_vm15, %v15098_v61, %v15092_v58  ;;  %v12573_v45 = vpack.c.bf16 %v7916_v7, %v7913_v46  ;;  %v11384_v7 = vld [vmem:[%s22356_s6 + $0x68] sm:$0xff]  ;;  %vm23249_vm9 = vmmov %vm23237_vm7 }
 0x7f1   :  { %12568 = vmatpush1.bf16.msra.mxu0 %v12567_v13  ;;  %v20775_v19 = vpop.permute.xlu1 %15285  ;;  %v12569_v3 = vpack.c.bf16 %v7822_v56, %v7819_v12  ;;  %v12571_v48 = vpack.c.bf16 %v7821_v24, %v7818_v38  ;;  %v22642_v13 = vunpack.i.h.bf16 %v20435_v42  ;;  %v22643_v56 = vunpack.i.h.bf16 %v20460_v11  ;;  %vm23251_vm14 = vmmov %vm23246_vm13 }
 0x7f2   :  { %15555 = vrot.lane.b32.xlu0 %v20168_v20, %s15967_s26  ;;  %v15112_v24 = vunpack.i.l.bf16 %v20460_v11  ;;  %v15107_v58 = vunpack.i.l.bf16 %v20406_v39  ;;  %v15117_v61 = vunpack.i.l.bf16 %v20428_v41  ;;  %v12575_v38 = vpack.c.bf16 %v7915_v15, %v7912_v6 }
 0x7f3   :  { %v20779_v62 = vpop.permute.xlu0 %15240  ;;  %15550 = vrot.lane.b32.xlu1 %v20168_v20, %s23077_s22  ;;  %12570 = vmatprep.subr.bf16.mxu0 %v12569_v3  ;;  %v15123_v12 = vunpack.i.h.bf16 %v20488_v29  ;;  %v15122_v46 = vunpack.i.l.bf16 %v20488_v29  ;;  %v11383_v29 = vld [vmem:[%s22356_s6 + $0x60] sm:$0xff] }
 0x7f5   :  { %12572 = vmatpush1.bf16.msra.mxu0 %v12571_v48  ;;  %v20793_v36 = vpop.permute.xlu1 %15305  ;;  %v7921_v48 = vsel %vm3005_vm15, %v15108_v26, %v15102_v57 }
 0x7f6   :  { %15565 = vrot.lane.b32.xlu0 %v20168_v20, %s23161_s21  ;;  %12574 = vmatprep.subr.bf16.mxu0 %v12573_v45  ;;  %v22644_v20 = vunpack.i.h.bf16 %v20793_v36  ;;  %v15307_v39 = vunpack.i.l.bf16 %v20793_v36  ;;  %v7922_v45 = vsel %vm3005_vm15, %v15102_v57, %v22642_v13  ;;  %v11386_v57 = vld [vmem:[%s22356_s6 + $0x78] sm:$0xff] }
 0x7f7   :  { %v20802_v3 = vpop.permute.xlu0 %15250  ;;  %15560 = vrot.lane.b32.xlu1 %v20713_v59, %s23161_s21  ;;  %v8013_v59 = vsel %vm684_vm5, %v15112_v24, %v22643_v56  ;;  %v22647_v56 = vunpack.i.h.bf16 %v20516_v23 }
 0x7f8   :  { %v7918_v6 = vsel %vm3005_vm15, %v15107_v58, %v15307_v39  ;;  %v7919_v15 = vsel %vm3005_vm15, %v15307_v39, %v22644_v20  ;;  %v8016_v39 = vsel %vm684_vm5, %v15117_v61, %v22645_v32  ;;  %v15127_v20 = vunpack.i.l.bf16 %v20516_v23 }
 0x7f9   :  { %12576 = vmatpush1.bf16.msra.mxu0 %v12575_v38  ;;  %v20820_v26 = vpop.permute.xlu1 %15310  ;;  %v12577_v2 = vpack.c.bf16 %v7922_v45, %v7919_v15  ;;  %v12579_v58 = vpack.c.bf16 %v7921_v48, %v7918_v6  ;;  %v8015_v38 = vsel %vm684_vm5, %v15123_v12, %v15117_v61  ;;  %v12581_v45 = vpack.c.bf16 %v8016_v39, %v8013_v59  ;;  %v11385_v12 = vld [vmem:[%s22356_s6 + $0x70] sm:$0xff] }
 0x7fa   :  { %9160 = vperm.xlu0 %13327, %v11384_v7   ;;  %v8012_v7 = vsel %vm684_vm5, %v15122_v46, %v15112_v24  ;;  %v15133_v15 = vunpack.i.h.bf16 %v20450_v49  ;;  %v15137_v24 = vunpack.i.l.bf16 %v20544_v17  ;;  %v20843_v61 = vld [vmem:[%s22359_s5 + $0xf0] sm:$0xff]  ;;  %v15142_v6 = vunpack.i.l.bf16 %v20478_v37 }
 0x7fb   :  { %v20827_v13 = vpop.permute.xlu0 %15260  ;;  %9155 = vperm.xlu1 %13328, %v11383_v29   ;;  %12578 = vmatprep.subr.bf16.mxu0 %v12577_v2  ;;  %v15132_v2 = vunpack.i.l.bf16 %v20450_v49  ;;  %v12583_v59 = vpack.c.bf16 %v8015_v38, %v8012_v7  ;;  %v15147_v39 = vunpack.i.l.bf16 %v20569_v14  ;;  %v8022_v7 = vsel %vm684_vm5, %v15127_v20, %v22647_v56 }
 0x7fc   :  { %v8021_v48 = vsel %vm684_vm5, %v15133_v15, %v15127_v20  ;;  %v20877_v15 = vld [vmem:[%s22359_s5 + $0x128] sm:$0xff] }
 0x7fd   :  { %12580 = vmatpush1.bf16.msra.mxu0 %v12579_v58  ;;  %v20848_v29 = vpop.permute.xlu1 %15320  ;;  %v15148_v58 = vunpack.i.h.bf16 %v20569_v14  ;;  %23231 = vst [vmem:[#allocation52_spill] sm:$0xff] %v20877_v15 }
 0x7fe   :  { %9170 = vperm.xlu0 %13327, %v11386_v57   ;;  %12582 = vmatprep.subr.bf16.mxu0 %v12581_v45  ;;  %v20853_v57 = vld [vmem:[%s22359_s5 + $0x130] sm:$0xff]  ;;  %v22648_v32 = vunpack.i.h.bf16 %v20848_v29  ;;  %v15322_v49 = vunpack.i.l.bf16 %v20848_v29  ;;  %v23230_v45 = vunpack.i.h.bf16 %v20544_v17 }
 0x7ff   :  { %23229 = vst [vmem:[#allocation10_spill] sm:$0xff] %v20853_v57  ;;  %v20859_v46 = vpop.permute.xlu0 %15275  ;;  %9165 = vperm.xlu1 %13328, %v11385_v12   ;;  %v15162_v12 = vunpack.i.l.bf16 %v20612_v31 }
 0x800   :  { %9339 = vmatmul.mubr.f32.vlgmr.msra.gmra.mrb[48].mxu0 %v20843_v61  ;;  %v8018_v38 = vsel %vm684_vm5, %v15132_v2, %v15322_v49  ;;  %v8019_v14 = vsel %vm684_vm5, %v15322_v49, %v22648_v32  ;;  %v8113_v41 = vsel %vm785_vm6, %v15137_v24, %v23230_v45  ;;  %v20886_v49 = vld [vmem:[%s22359_s5 + $0x168] sm:$0xff]  ;;  %v8112_v45 = vsel %vm785_vm6, %v15147_v39, %v15137_v24 }
 0x801   :  { %12584 = vmatpush1.bf16.msra.mxu0 %v12583_v59  ;;  %9344 = vmatprep.mubr.f32.mxu0 %v20853_v57  ;;  %v20881_v2 = vpop.permute.xlu1 %15325  ;;  %v12585_v59 = vpack.c.bf16 %v8022_v7, %v8019_v14  ;;  %v12587_v56 = vpack.c.bf16 %v8021_v48, %v8018_v38  ;;  %23232 = vst [vmem:[#allocation68_spill] sm:$0xff] %v20886_v49  ;;  %v23233_v57 = vunpack.i.h.bf16 %v20478_v37  ;;  %v15167_v7 = vunpack.i.l.bf16 %v20534_v43 }
 0x802   :  { %v8115_v32 = vsel %vm785_vm6, %v15148_v58, %v15142_v6  ;;  %v15152_v48 = vunpack.i.l.bf16 %v20592_v55  ;;  %v20904_v58 = vld [vmem:[%s22359_s5 + $0x160] sm:$0xff]  ;;  %v23236_v14 = vunpack.i.h.bf16 %v20612_v31  ;;  %v15172_v24 = vunpack.i.l.bf16 %v20625_v4 }
 0x803   :  { %v20890_v17 = vpop.permute.xlu0 %15290  ;;  %v8116_v20 = vsel %vm785_vm6, %v15142_v6, %v23233_v57  ;;  %12586 = vmatprep.subr.bf16.mxu0 %v12585_v59  ;;  %23234 = vst [vmem:[#allocation42_spill] sm:$0xff] %v20904_v58  ;;  %v15158_v6 = vunpack.i.h.bf16 %v20506_v47  ;;  %v15157_v57 = vunpack.i.l.bf16 %v20506_v47  ;;  %v15173_v59 = vunpack.i.h.bf16 %v20625_v4 }
 0x804   :  { %v12589_v38 = vpack.c.bf16 %v8116_v20, %v8113_v41  ;;  %9345 = vmatmul.mubr.f32.gmra.mrb[50].mxu0 %v20877_v15  ;;  %v12591_v41 = vpack.c.bf16 %v8115_v32, %v8112_v45  ;;  %v8213_v20 = vsel %vm23237_vm7, %v15162_v12, %v23236_v14  ;;  %v15192_v31 = vunpack.i.l.bf16 %v20584_v54  ;;  %vm23254_vm7 = vmmov %vm23246_vm13 }
 0x805   :  { %12588 = vmatpush1.bf16.msra.mxu0 %v12587_v56  ;;  %9350 = vmatprep.mubr.f32.mxu0 %v20886_v49  ;;  %v20908_v39 = vpop.permute.xlu1 %15335  ;;  %v20916_v56 = vld [vmem:[%s22359_s5 + $0x1a0] sm:$0xff]  ;;  %v8121_v45 = vsel %vm785_vm6, %v15158_v6, %v15152_v48  ;;  %v23241_v15 = vunpack.i.h.bf16 %v20592_v55  ;;  %v20942_v6 = vld [vmem:[%s22359_s5 + $0x198] sm:$0xff] }
 0x806   :  { %23235 = vst [vmem:[#allocation53_spill] sm:$0xff] %v20908_v39  ;;  %12590 = vmatprep.subr.bf16.mxu0 %v12589_v38  ;;  %23238 = vst [vmem:[#allocation43_spill] sm:$0xff] %v20916_v56  ;;  %v22658_v23 = vunpack.i.h.bf16 %v20908_v39  ;;  %v15337_v47 = vunpack.i.l.bf16 %v20908_v39  ;;  %v23239_v38 = vunpack.i.h.bf16 %v20534_v43  ;;  %v15238_v39 = vunpack.i.h.bf16 %v20646_v8 }
 0x807   :  { %v20922_v49 = vpop.permute.xlu0 %15295  ;;  %v8122_v32 = vsel %vm785_vm6, %v15152_v48, %v23241_v15  ;;  %v8212_v15 = vsel %vm23243_vm11, %v15172_v24, %v15162_v12  ;;  %v8215_v48 = vsel %vm23244_vm12, %v15173_v59, %v15167_v7  ;;  %v15182_v12 = vunpack.i.l.bf16 %v20562_v5  ;;  %vm23256_vm11 = vmmov %vm23247_vm8 }
 0x808   :  { %v8216_v14 = vsel %vm23240_vm10, %v15167_v7, %v23239_v38  ;;  %9351 = vmatmul.mubr.f32.gmra.mrb[52].mxu0 %v20904_v58  ;;  %v8118_v4 = vsel %vm785_vm6, %v15157_v57, %v15337_v47  ;;  %v8119_v37 = vsel %vm785_vm6, %v15337_v47, %v22658_v23  ;;  %v15183_v38 = vunpack.i.h.bf16 %v20562_v5  ;;  %v20950_v47 = vld [vmem:[%s22359_s5 + $0x108] sm:$0xff]  ;;  %vm23255_vm10 = vmmov %vm23254_vm7 }
 0x809   :  { %12592 = vmatpush1.bf16.msra.mxu0 %v12591_v41  ;;  %9356 = vmatprep.mubr.f32.mxu0 %v20916_v56  ;;  %v20945_v43 = vpop.permute.xlu1 %15340  ;;  %v12593_v57 = vpack.c.bf16 %v8122_v32, %v8119_v37  ;;  %v12595_v41 = vpack.c.bf16 %v8121_v45, %v8118_v4  ;;  %v12597_v58 = vpack.c.bf16 %v8216_v14, %v8213_v20  ;;  %v15177_v56 = vunpack.i.l.bf16 %v20635_v10  ;;  %vm23258_vm12 = vmmov %vm23247_vm8 }
 0x80a   :  { %23242 = vst [vmem:[#allocation54_spill] sm:$0xff] %v20950_v47  ;;  %v15237_v37 = vunpack.i.l.bf16 %v20646_v8  ;;  %v15187_v32 = vunpack.i.l.bf16 %v20656_v51  ;;  %v15198_v7 = vunpack.i.h.bf16 %v20675_v44  ;;  %v15197_v24 = vunpack.i.l.bf16 %v20675_v44 }
 0x80b   :  { %v20956_v55 = vpop.permute.xlu0 %15300  ;;  %12594 = vmatprep.subr.bf16.mxu0 %v12593_v57  ;;  %v23245_v59 = vunpack.i.h.bf16 %v20584_v54  ;;  %v15217_v14 = vunpack.i.l.bf16 %v20623_v60  ;;  %v8221_v44 = vsel %vm23247_vm8, %v15183_v38, %v15177_v56  ;;  %v12599_v23 = vpack.c.bf16 %v8215_v48, %v8212_v15 }
 0x80c   :  { %9357 = vmatmul.mubr.f32.gmra.mrb[54].mxu0 %v20942_v6  ;;  %v23248_v8 = vunpack.i.h.bf16 %v20635_v10  ;;  %v23250_v4 = vunpack.i.h.bf16 %v20656_v51  ;;  %v23253_v38 = vunpack.i.h.bf16 %v23124_v18  ;;  %v8312_v15 = vsel %vm23254_vm7, %v15197_v24, %v15187_v32 }
 0x80d   :  { %12596 = vmatpush1.bf16.msra.mxu0 %v12595_v41  ;;  %v8316_v45 = vsel %vm23246_vm13, %v15192_v31, %v23245_v59  ;;  %9427 = vmatprep.mubr.f32.mxu0 %v20950_v47  ;;  %v20974_v5 = vpop.permute.xlu1 %15345  ;;  %v23252_v47 = vunpack.i.h.bf16 %v23131_v16  ;;  %v8315_v48 = vsel %vm23255_vm10, %v15198_v7, %v15192_v31  ;;  %v15223_v7 = vunpack.i.h.bf16 %v20736_v53  ;;  %vm23260_vm13 = vmmov %vm23254_vm7 }
 0x80e   :  { %12598 = vmatprep.subr.bf16.mxu0 %v12597_v58  ;;  %v15347_v20 = vunpack.i.l.bf16 %v20974_v5  ;;  %v8222_v54 = vsel %vm23249_vm9, %v15177_v56, %v23248_v8  ;;  %v8313_v57 = vsel %vm23251_vm14, %v15187_v32, %v23250_v4  ;;  %v20995_v41 = vsel %vm256_vm1, %v23253_v38, %v15238_v39  ;;  %vm23267_vm14 = vmmov %vm23254_vm7 }
 0x80f   :  { %v20979_v59 = vpop.permute.xlu0 %15315  ;;  %v20990_v58 = vsel %vm256_vm1, %v23252_v47, %v15237_v37  ;;  %v23257_v8 = vunpack.i.h.bf16 %v20974_v5  ;;  %v15202_v47 = vunpack.i.l.bf16 %v20683_v40  ;;  %v15212_v32 = vunpack.i.l.bf16 %v20703_v9 }
 0x810   :  { %v8218_v56 = vsel %vm23256_vm11, %v15182_v12, %v15347_v20  ;;  %v15222_v24 = vunpack.i.l.bf16 %v20736_v53  ;;  %vm23262_vm8 = vcmask 736256   ;;  %v23263_v38 = vunpack.i.h.bf16 %v20633_v25 }
 0x811   :  { %12600 = vmatpush1.bf16.msra.mxu0 %v12599_v23  ;;  %v8219_v4 = vsel %vm23258_vm12, %v15347_v20, %v23257_v8  ;;  %v21005_v37 = vpop.permute.xlu1 %15350  ;;  %v12603_v39 = vpack.c.bf16 %v8221_v44, %v8218_v56  ;;  %v15208_v20 = vunpack.i.h.bf16 %v20606_v35  ;;  %v12605_v8 = vpack.c.bf16 %v8316_v45, %v8313_v57  ;;  %vm23265_vm9 = vmmov %vm23262_vm8 }
 0x812   :  { %23259 = vst [vmem:[#allocation69_spill] sm:$0xff] %v21005_v37  ;;  %v12601_v18 = vpack.c.bf16 %v8222_v54, %v8219_v4  ;;  %v22665_v31 = vunpack.i.h.bf16 %v21005_v37  ;;  %v15352_v23 = vunpack.i.l.bf16 %v21005_v37  ;;  %v15207_v54 = vunpack.i.l.bf16 %v20606_v35  ;;  %vm23269_vm7 = vmmov %vm23262_vm8 }
 0x813   :  { %v21011_v12 = vpop.permute.xlu0 %15330  ;;  %v23261_v56 = vunpack.i.h.bf16 %v20623_v60  ;;  %v23264_v16 = vunpack.i.l.bf16 %v20633_v25  ;;  %v12607_v57 = vpack.c.bf16 %v8315_v48, %v8312_v15  ;;  %v23266_v37 = vunpack.i.h.bf16 %v20683_v40  ;;  %vm23270_vm10 = vmmov %vm23269_vm7 }
 0x814   :  { %12602 = vmatprep.subr.bf16.mxu0 %v12601_v18  ;;  %v8319_v44 = vsel %vm23260_vm13, %v15352_v23, %v22665_v31  ;;  %v12677_v18 = vpack.c.bf16 %v20995_v41, %v20990_v58  ;;  %v8412_v35 = vsel %vm23270_vm10, %v15222_v24, %v15212_v32  ;;  %vm23271_vm11 = vmmov %vm23269_vm7  ;;  %v23274_v53 = vunpack.i.l.bf16 %v19755_v22 }
 0x815   :  { %12604 = vmatpush1.bf16.msra.mxu0 %v12603_v39  ;;  %v8416_v4 = vsel %vm23262_vm8, %v15217_v14, %v23261_v56  ;;  %v21028_v51 = vsel %vm23265_vm9, %v23264_v16, %v23263_v38  ;;  %v15356_v45 = vpop.permute.xlu1 %15355  ;;  %v8322_v10 = vsel %vm23267_vm14, %v15202_v47, %v23266_v37  ;;  %v23268_v16 = vunpack.i.h.bf16 %v20703_v9  ;;  %vm23272_vm12 = vmmov %vm23260_vm13 }
 0x816   :  { %12606 = vmatprep.subr.bf16.mxu0 %v12605_v8  ;;  %v15358_v39 = vunpack.i.h.bf16 %v15356_v45  ;;  %v15357_v31 = vunpack.i.l.bf16 %v15356_v45  ;;  %v8415_v8 = vsel %vm23271_vm11, %v15223_v7, %v15217_v14  ;;  %v8318_v15 = vsel %vm23272_vm12, %v15207_v54, %v15352_v23  ;;  %vm23275_vm13 = vmmov %vm23272_vm12 }
 0x817   :  { %v21034_v56 = vpop.permute.xlu0 %15360  ;;  %v8413_v38 = vsel %vm23269_vm7, %v15212_v32, %v23268_v16  ;;  %v12609_v48 = vpack.c.bf16 %v8322_v10, %v8319_v44  ;;  %v23273_v45 = vunpack.i.l.bf16 %v20177_v28  ;;  %v8321_v32 = vsel %vm23275_vm13, %v15208_v20, %v15202_v47  ;;  %vm23281_vm9 = vmmov %vm23269_vm7 }
 0x818   :  { %v22668_v41 = vunpack.i.h.bf16 %v21034_v56  ;;  %v15362_v58 = vunpack.i.l.bf16 %v21034_v56  ;;  %v7099_v16 = vsel %vm155_vm0, %v23274_v53, %v15358_v39  ;;  %v22669_v14 = vunpack.i.h.bf16 %v20779_v62  ;;  %vm23291_vm10 = vmmov %vm23269_vm7 }
 0x819   :  { %12608 = vmatpush1.bf16.msra.mxu0 %v12607_v57  ;;  %v7096_v37 = vsel %vm155_vm0, %v23273_v45, %v15357_v31  ;;  %v15371_v7 = vpop.permute.xlu1 %15370  ;;  %v23276_v23 = vunpack.i.h.bf16 %v20669_v52  ;;  %v23277_v24 = vunpack.i.l.bf16 %v20669_v52  ;;  %vm23278_vm8 = vcmask 728064   ;;  %v23279_v45 = vld [vmem:[#allocation65_spill] sm:$0xff] }
 0x81a   :  { %12610 = vmatprep.subr.bf16.mxu0 %v12609_v48  ;;  %v12673_v10 = vpack.c.bf16 %v7099_v16, %v7096_v37  ;;  %v15242_v28 = vunpack.i.l.bf16 %v20779_v62  ;;  %v15373_v31 = vunpack.i.h.bf16 %v15371_v7  ;;  %v15372_v22 = vunpack.i.l.bf16 %v15371_v7  ;;  %v23282_v7 = vld [vmem:[#allocation59_spill] sm:$0xff]  ;;  %vm23286_vm14 = vmmov %vm23278_vm8 }
 0x81b   :  { %v21060_v54 = vsel %vm23278_vm8, %v23277_v24, %v23276_v23  ;;  %v21063_v44 = vpop.permute.xlu0 %15365  ;;  %v12611_v53 = vpack.c.bf16 %v8321_v32, %v8318_v15  ;;  %v15257_v20 = vunpack.i.l.bf16 %v20681_v27  ;;  %v12613_v57 = vpack.c.bf16 %v8416_v4, %v8413_v38  ;;  %v23284_v23 = vld [vmem:[#allocation77_spill] sm:$0xff]  ;;  %vm23296_vm11 = vmmov %vm23278_vm8 }
 0x81c   :  { %12674 = vmatprep.subr.bf16.mxu1 %v12673_v10  ;;  %v12615_v39 = vpack.c.bf16 %v8415_v8, %v8412_v35  ;;  %v23280_v37 = vpack.c.bf16 %v20130_v1, %v23279_v45  ;;  %v8419_v16 = vsel %vm23281_vm9, %v15362_v58, %v22668_v41  ;;  %v23283_v15 = vunpack.i.h.bf16 %v23282_v7  ;;  %v23288_v41 = vld [vmem:[#allocation29_spill] sm:$0xff]  ;;  %vm23298_vm12 = vmmov %vm23278_vm8 }
 0x81d   :  { %12612 = vmatpush1.bf16.msra.mxu0 %v12611_v53  ;;  %v23285_v24 = vunpack.i.h.bf16 %v23284_v23  ;;  %v15233_v35 = vunpack.i.h.bf16 %v20755_v50  ;;  %v15232_v38 = vunpack.i.l.bf16 %v20755_v50  ;;  %v15288_v8 = vunpack.i.h.bf16 %v20775_v19  ;;  %v21084_v10 = vpop.permute.xlu1 %15390  ;;  %vm23306_vm13 = vmmov %vm23278_vm8 }
 0x81e   :  { %12676 = vmatpush3.bf16.msra.mxu1 %v23280_v37  ;;  %v7196_v32 = vsel %vm256_vm1, %v23283_v15, %v15372_v22  ;;  %v15287_v1 = vunpack.i.l.bf16 %v20775_v19  ;;  %12614 = vmatprep.subr.bf16.mxu0 %v12613_v57  ;;  %v15253_v53 = vunpack.i.h.bf16 %v20802_v3  ;;  %v15252_v22 = vunpack.i.l.bf16 %v20802_v3 }
 0x81f   :  { %v7199_v4 = vsel %vm256_vm1, %v23285_v24, %v15373_v31  ;;  %12678 = vmatprep.subr.bf16.mxu1 %v12677_v18  ;;  %v15313_v45 = vunpack.i.h.bf16 %v20820_v26  ;;  %v8513_v50 = vsel %vm23286_vm14, %v15242_v28, %v22669_v14  ;;  %v15312_v31 = vunpack.i.l.bf16 %v20820_v26  ;;  %v23287_v24 = vld [vmem:[#allocation27_spill] sm:$0xff] }
 0x820   :  { %v21089_v37 = vpop.permute.xlu0 %15375  ;;  %v8418_v19 = vsel %vm23269_vm7, %v15232_v38, %v15362_v58  ;;  %v12617_v7 = vpack.c.bf16 %v21028_v51, %v8419_v16  ;;  %v12681_v57 = vpack.c.bf16 %v7199_v4, %v7196_v32  ;;  %v15277_v15 = vunpack.i.l.bf16 %v20859_v46  ;;  %v23292_v16 = vld [vmem:[#allocation73_spill] sm:$0xff]  ;;  %v23294_v38 = vld [vmem:[#allocation47_spill] sm:$0xff]  ;;  %vm23315_vm7 = vmmov %vm23278_vm8 }
 0x821   :  { %v22670_v3 = vunpack.i.h.bf16 %v21089_v37  ;;  %v15377_v23 = vunpack.i.l.bf16 %v21089_v37  ;;  %12616 = vmatpush1.bf16.msra.mxu0 %v12615_v39  ;;  %v23289_v48 = vpack.c.bf16 %v23287_v24, %v23288_v41  ;;  %v15272_v26 = vunpack.i.l.bf16 %v20728_v63  ;;  %v21114_v47 = vpop.permute.xlu1 %15400 }
 0x822   :  { %v23290_v58 = vunpack.i.l.bf16 %v20633_v25  ;;  %v23293_v32 = vunpack.i.h.bf16 %v23292_v16  ;;  %v23295_v14 = vunpack.i.h.bf16 %v23294_v38  ;;  %12618 = vmatprep.subr.bf16.mxu0 %v12617_v7  ;;  %v8512_v41 = vsel %vm23296_vm11, %v15252_v22, %v15242_v28  ;;  %v23304_v38 = vld [vmem:[#allocation81_spill] sm:$0xff]  ;;  %vm23317_vm11 = vmmov %vm23315_vm7 }
 0x823   :  { %12680 = vmatpush3.bf16.msra.mxu1 %v23289_v48  ;;  %v23297_v39 = vunpack.i.l.bf16 %v20669_v52  ;;  %v12621_v16 = vpack.c.bf16 %v21060_v54, %v8513_v50  ;;  %v8519_v54 = vsel %vm23306_vm13, %v15377_v23, %v22670_v3  ;;  %v23307_v50 = vunpack.i.h.bf16 %v20681_v27 }
 0x824   :  { %v8421_v51 = vsel %vm23291_vm10, %v15233_v35, %v23290_v58  ;;  %v7290_v4 = vsel %vm357_vm2, %v23293_v32, %v15287_v1  ;;  %v7293_v18 = vsel %vm357_vm2, %v23295_v14, %v15288_v8  ;;  %12682 = vmatprep.subr.bf16.mxu1 %v12681_v57  ;;  %v15263_v35 = vunpack.i.h.bf16 %v20827_v13  ;;  %v21121_v24 = vpop.permute.xlu0 %15380  ;;  %v23299_v14 = vld [vmem:[#allocation63_spill] sm:$0xff] }
 0x825   :  { %v8515_v48 = vsel %vm23298_vm12, %v15253_v53, %v23297_v39  ;;  %v12619_v58 = vpack.c.bf16 %v8421_v51, %v8418_v19  ;;  %v15292_v1 = vunpack.i.l.bf16 %v20890_v17  ;;  %v23300_v8 = vunpack.i.h.bf16 %v23299_v14  ;;  %v23301_v57 = vld [vmem:[#allocation23_spill] sm:$0xff]  ;;  %v23311_v14 = vld [vmem:[#allocation64_spill] sm:$0xff] }
 0x826   :  { %v23302_v28 = vunpack.i.h.bf16 %v23301_v57  ;;  %v15293_v53 = vunpack.i.h.bf16 %v20890_v17  ;;  %v23303_v32 = vld [vmem:[#allocation79_spill] sm:$0xff]  ;;  %v23308_v51 = vunpack.i.h.bf16 %v20859_v46  ;;  %vm23309_vm9 = vcmask 719872   ;;  %v21149_v17 = vpop.permute.xlu1 %15405 }
 0x827   :  { %v21128_v7 = vsel %vm583_vm4, %v23300_v8, %v15312_v31  ;;  %12620 = vmatpush1.bf16.msra.mxu0 %v12619_v58  ;;  %v23305_v19 = vpack.c.bf16 %v23303_v32, %v23304_v38  ;;  %v8522_v31 = vsel %vm23278_vm8, %v15257_v20, %v23307_v50  ;;  %v15262_v39 = vunpack.i.l.bf16 %v20827_v13  ;;  %v23310_v58 = vld [vmem:[#allocation67_spill] sm:$0xff]  ;;  %vm23314_vm14 = vmmov %vm23309_vm9 }
 0x828   :  { %v21133_v22 = vsel %vm583_vm4, %v23302_v28, %v15313_v45  ;;  %v8616_v45 = vsel %vm23309_vm9, %v15277_v15, %v23308_v51  ;;  %12622 = vmatprep.subr.bf16.mxu0 %v12621_v16  ;;  %v23312_v8 = vpack.c.bf16 %v23310_v58, %v23311_v14  ;;  %v12623_v57 = vpack.c.bf16 %v8515_v48, %v8512_v41  ;;  %v21160_v13 = vpop.permute.xlu0 %15385  ;;  %vm23316_vm10 = vmmov %vm23309_vm9  ;;  %v23341_v16 = vld [vmem:[#allocation78_spill] sm:$0xff] }
 0x829   :  { %12684 = vmatpush3.bf16.msra.mxu1 %v23305_v19  ;;  %v12687_v28 = vpack.c.bf16 %v7293_v18, %v7290_v4  ;;  %v23313_v32 = vunpack.i.h.bf16 %v20728_v63  ;;  %v8521_v19 = vsel %vm23315_vm7, %v15263_v35, %v15257_v20  ;;  %v22671_v50 = vunpack.i.h.bf16 %v20881_v2  ;;  %v15931_v18 = vld [vmem:[%s22359_s5 + $0xe0] sm:$0xff]  ;;  %vm23318_vm12 = vmmov %vm23309_vm9 }
 0x82a   :  { %12686 = vmatprep.subr.bf16.mxu1 %v23312_v8  ;;  %v15327_v51 = vunpack.i.l.bf16 %v20881_v2  ;;  %v8612_v58 = vsel %vm23316_vm10, %v15292_v1, %v15272_v26  ;;  %v8518_v41 = vsel %vm23317_vm11, %v15262_v39, %v15377_v23  ;;  %v12625_v4 = vpack.c.bf16 %v8522_v31, %v8519_v54  ;;  %v21177_v54 = vpop.permute.xlu1 %15415  ;;  %vm23323_vm8 = vmmov %vm23309_vm9 }
 0x82b   :  { %v8613_v38 = vsel %vm23314_vm14, %v15272_v26, %v23313_v32  ;;  %v8615_v48 = vsel %vm23318_vm12, %v15293_v53, %v15277_v15  ;;  %v22672_v35 = vunpack.i.h.bf16 %v20922_v49  ;;  %v15297_v14 = vunpack.i.l.bf16 %v20922_v49  ;;  %12624 = vmatpush1.bf16.msra.mxu0 %v12623_v57  ;;  %v23319_v15 = vld [vmem:[#allocation40_spill] sm:$0xff]  ;;  %v23320_v53 = vld [vmem:[#allocation66_spill] sm:$0xff]  ;;  %vm23324_vm9 = vmmov %vm23323_vm8 }
 0x82c   :  { %9606 = vmatmul.mubr.f32.vlgmr.msra.gmra.mrb[28].mxu1 %v15931_v18  ;;  %v12629_v20 = vpack.c.bf16 %v8616_v45, %v8613_v38  ;;  %v15343_v8 = vunpack.i.h.bf16 %v20945_v43  ;;  %v15303_v26 = vunpack.i.h.bf16 %v20956_v55  ;;  %v22674_v23 = vunpack.i.h.bf16 %v20979_v59  ;;  %12626 = vmatprep.subr.bf16.mxu0 %v12625_v4  ;;  %v21185_v32 = vpop.permute.xlu0 %15395  ;;  %v15932_v38 = vld [vmem:[%s22359_s5 + $0x120] sm:$0xff]  ;;  %vm23326_vm7 = vmmov %vm23323_vm8 }
 0x82d   :  { %12688 = vmatpush3.bf16.msra.mxu1 %v12687_v28  ;;  %v15317_v1 = vunpack.i.l.bf16 %v20979_v59  ;;  %v15333_v39 = vunpack.i.h.bf16 %v21011_v12  ;;  %v23321_v31 = vpack.c.bf16 %v23319_v15, %v23320_v53  ;;  %v15332_v45 = vunpack.i.l.bf16 %v21011_v12  ;;  %9610 = vmatprep.mubr.f32.mxu1 %v15932_v38  ;;  %v15933_v12 = vld [vmem:[%s22359_s5 + $0x118] sm:$0xff] }
 0x82e   :  { %v22673_v57 = vunpack.i.h.bf16 %v21177_v54  ;;  %v15417_v28 = vunpack.i.l.bf16 %v21177_v54  ;;  %v12627_v18 = vpack.c.bf16 %v8521_v19, %v8518_v41  ;;  %v15342_v4 = vunpack.i.l.bf16 %v20945_v43  ;;  %v15934_v43 = vld [vmem:[%s22359_s5 + $0x158] sm:$0xff] }
 0x82f   :  { %12690 = vmatprep.subr.bf16.mxu1 %v23321_v31  ;;  %v15368_v3 = vunpack.i.h.bf16 %v21063_v44  ;;  %v15367_v15 = vunpack.i.l.bf16 %v21063_v44  ;;  %vm23322_vm13 = vcmask 711680   ;;  %v15302_v31 = vunpack.i.l.bf16 %v20956_v55 }
 0x830   :  { %9611 = vmatmul.mubr.f32.gmra.mrb[30].mxu1 %v15933_v12  ;;  %v8716_v53 = vsel %vm23322_vm13, %v15327_v51, %v22671_v50  ;;  %12628 = vmatpush1.bf16.msra.mxu0 %v12627_v18  ;;  %v12631_v19 = vpack.c.bf16 %v8615_v48, %v8612_v58  ;;  %v8619_v44 = vsel %vm23323_vm8, %v15417_v28, %v22673_v57  ;;  %vm23325_vm14 = vmmov %vm23322_vm13  ;;  %v15421_v12 = vpop.permute.xlu1 %15420  ;;  %v23329_v48 = vld [vmem:[#allocation74_spill] sm:$0xff]  ;;  %vm23331_vm12 = vcmask 146432  }
 0x831   :  { %9615 = vmatprep.mubr.f32.mxu1 %v15934_v43  ;;  %v8622_v41 = vsel %vm23324_vm9, %v15297_v14, %v22672_v35  ;;  %v21210_v38 = vsel %vm23325_vm14, %v15343_v8, %v15327_v51  ;;  %v8621_v55 = vsel %vm23326_vm7, %v15303_v26, %v15297_v14  ;;  %vm23327_vm10 = vmmov %vm23322_vm13  ;;  %12630 = vmatprep.subr.bf16.mxu0 %v12629_v20  ;;  %v23330_v43 = vunpack.i.h.bf16 %v23329_v48  ;;  %v23332_v35 = vld [vmem:[#allocation58_spill] sm:$0xff]  ;;  %v21227_v26 = vpop.permute.xlu0 %15410  ;;  %v23336_v48 = vld [vmem:[#allocation41_spill] sm:$0xff] }
 0x832   :  { %v21214_v18 = vsel %vm23327_vm10, %v15342_v4, %v15317_v1  ;;  %vm23328_vm11 = vmmov %vm23327_vm10  ;;  %v23333_v57 = vunpack.i.h.bf16 %v23332_v35  ;;  %v15423_v8 = vunpack.i.h.bf16 %v15421_v12  ;;  %v15422_v14 = vunpack.i.l.bf16 %v15421_v12  ;;  %v15935_v20 = vld [vmem:[%s22359_s5 + $0x150] sm:$0xff] }
 0x833   :  { %v8713_v58 = vsel %vm23328_vm11, %v15317_v1, %v22674_v23  ;;  %v21222_v50 = vsel %vm23331_vm12, %v23330_v43, %v15332_v45  ;;  %vm23334_vm13 = vmmov %vm23331_vm12  ;;  %v12633_v1 = vpack.c.bf16 %v8622_v41, %v8619_v44  ;;  %v23337_v23 = vunpack.i.h.bf16 %v23336_v48  ;;  %v23339_v43 = vld [vmem:[#allocation57_spill] sm:$0xff] }
 0x834   :  { %v7393_v51 = vsel %vm23334_vm13, %v23333_v57, %v15333_v39  ;;  %vm23335_vm8 = vmmov %vm23326_vm7  ;;  %9616 = vmatmul.mubr.f32.gmra.mrb[32].mxu1 %v15935_v20  ;;  %v23338_v35 = vunpack.i.h.bf16 %v20214_v33  ;;  %v15393_v57 = vunpack.i.h.bf16 %v21084_v10  ;;  %v15392_v12 = vunpack.i.l.bf16 %v21084_v10  ;;  %12632 = vmatpush1.bf16.msra.mxu0 %v12631_v19  ;;  %v15937_v48 = vld [vmem:[%s22359_s5 + $0x188] sm:$0xff] }
 0x835   :  { %v8618_v4 = vsel %vm23335_vm8, %v15302_v31, %v15417_v28  ;;  %v7720_v45 = vsel %vm583_vm4, %v23337_v23, %v15367_v15  ;;  %v23340_v28 = vunpack.i.h.bf16 %v23339_v43  ;;  %v23342_v40 = vunpack.i.h.bf16 %v23341_v16  ;;  %v15936_v23 = vld [vmem:[%s22359_s5 + $0x190] sm:$0xff]  ;;  %v21252_v15 = vpop.permute.xlu1 %15425  ;;  %12634 = vmatprep.subr.bf16.mxu0 %v12633_v1  ;;  %v21257_v19 = vpop.permute.xlu0 %15440  ;;  %vm23343_vm9 = vmmov %vm23327_vm10 }
 0x836   :  { %v7723_v39 = vsel %vm583_vm4, %v23338_v35, %v15368_v3  ;;  %9620 = vmatprep.mubr.f32.mxu1 %v15936_v23  ;;  %v15402_v33 = vunpack.i.l.bf16 %v21114_v47  ;;  %v15383_v3 = vunpack.i.h.bf16 %v21121_v24  ;;  %v12637_v41 = vpack.c.bf16 %v8716_v53, %v8713_v58  ;;  %vm23352_vm11 = vmmov %vm23343_vm9 }
 0x837   :  { %v7299_v31 = vsel %vm357_vm2, %v23340_v28, %v15423_v8  ;;  %v7296_v44 = vsel %vm357_vm2, %v23342_v40, %v15422_v14  ;;  %v15382_v8 = vunpack.i.l.bf16 %v21121_v24  ;;  %v15428_v16 = vunpack.i.h.bf16 %v21252_v15  ;;  %vm23353_vm12 = vmmov %vm23343_vm9 }
 0x838   :  { %v12691_v10 = vpack.c.bf16 %v7299_v31, %v7296_v44  ;;  %v15427_v40 = vunpack.i.l.bf16 %v21252_v15  ;;  %v12635_v14 = vpack.c.bf16 %v8621_v55, %v8618_v4  ;;  %v15403_v20 = vunpack.i.h.bf16 %v21114_v47  ;;  %9621 = vmatmul.mubr.f32.gmra.mrb[34].mxu1 %v15937_v48  ;;  %v23346_v4 = vld [vmem:[#allocation12_spill] sm:$0xff] }
 0x839   :  { %v12695_v1 = vpack.c.bf16 %v7393_v51, %v21222_v50  ;;  %v12639_v53 = vpack.c.bf16 %v21210_v38, %v21214_v18  ;;  %v12697_v58 = vpack.c.bf16 %v7723_v39, %v7720_v45  ;;  %v23344_v55 = vunpack.i.h.bf16 %v20274_v34  ;;  %v15431_v45 = vpop.permute.xlu1 %15430  ;;  %v21287_v44 = vpop.permute.xlu0 %15450 }
 0x83a   :  { %12692 = vmatpush3.bf16.msra.mxu1 %v12691_v10  ;;  %12636 = vmatpush1.bf16.msra.mxu0 %v12635_v14  ;;  %v8719_v35 = vsel %vm23343_vm9, %v15427_v40, %v15428_v16  ;;  %vm23345_vm14 = vcmask 1031168   ;;  %v23347_v43 = vunpack.i.h.bf16 %v23346_v4  ;;  %v15388_v50 = vunpack.i.h.bf16 %v21160_v13  ;;  %v23356_v14 = vld [vmem:[#allocation72_spill] sm:$0xff] }
 0x83b   :  { %v7814_v47 = vsel %vm23345_vm14, %v23344_v55, %v15392_v12  ;;  %vm23348_vm7 = vmmov %vm23345_vm14  ;;  %v15387_v51 = vunpack.i.l.bf16 %v21160_v13  ;;  %v15397_v38 = vunpack.i.l.bf16 %v21185_v32  ;;  %v23349_v18 = vpack.c.bf16 %v21133_v22, %v21128_v7  ;;  %12638 = vmatprep.subr.bf16.mxu0 %v12637_v41  ;;  %v15938_v7 = vld [vmem:[%s22359_s5 + $0xf8] sm:$0xff]  ;;  %v23359_v4 = vld [vmem:[#allocation60_spill] sm:$0xff] }
 0x83c   :  { %v7817_v28 = vsel %vm23348_vm7, %v23347_v43, %v15393_v57  ;;  %v23350_v34 = vunpack.i.h.bf16 %v20749_v0  ;;  %vm23351_vm10 = vmmov %vm23348_vm7  ;;  %v15398_v12 = vunpack.i.h.bf16 %v21185_v32  ;;  %v15433_v57 = vunpack.i.h.bf16 %v15431_v45  ;;  %9690 = vmatprep.mubr.f32.mxu1 %v15938_v7 }
 0x83d   :  { %12694 = vmatprep.subr.bf16.mxu1 %v23349_v18  ;;  %v15432_v31 = vunpack.i.l.bf16 %v15431_v45  ;;  %v8722_v13 = vsel %vm23352_vm11, %v15382_v8, %v15383_v3  ;;  %v15408_v0 = vunpack.i.h.bf16 %v21149_v17  ;;  %v8718_v22 = vsel %vm23353_vm12, %v15387_v51, %v15427_v40  ;;  %vm23355_vm13 = vmmov %vm23348_vm7  ;;  %v21313_v45 = vpop.permute.xlu1 %15435 }
 0x83e   :  { %v21284_v39 = vsel %vm23351_vm10, %v23350_v34, %v15402_v33  ;;  %v12641_v23 = vpack.c.bf16 %v8722_v13, %v8719_v35  ;;  %v23354_v32 = vunpack.i.h.bf16 %v20367_v30  ;;  %v15413_v10 = vunpack.i.h.bf16 %v21227_v26  ;;  %12696 = vmatpush3.bf16.msra.mxu1 %v12695_v1  ;;  %12640 = vmatpush1.bf16.msra.mxu0 %v12639_v53  ;;  %vm23362_vm14 = vmmov %vm23352_vm11  ;;  %v23363_v35 = vld [vmem:[#allocation70_spill] sm:$0xff] }
 0x83f   :  { %v15412_v41 = vunpack.i.l.bf16 %v21227_v26  ;;  %v23357_v48 = vunpack.i.h.bf16 %v23356_v14  ;;  %vm23358_vm8 = vcmask 146432   ;;  %v23360_v43 = vunpack.i.h.bf16 %v23359_v4  ;;  %12698 = vmatprep.subr.bf16.mxu1 %v12697_v58  ;;  %v21323_v58 = vld [vmem:[%s22359_s5 + $0x100] sm:$0xff] }
 0x840   :  { %v7823_v33 = vsel %vm23355_vm13, %v23354_v32, %v15403_v20  ;;  %vm23361_vm9 = vmmov %vm23358_vm8  ;;  %v15407_v40 = vunpack.i.l.bf16 %v21149_v17  ;;  %v8721_v30 = vsel %vm23362_vm14, %v15388_v50, %v15382_v8  ;;  %v23364_v20 = vunpack.i.h.bf16 %v23363_v35  ;;  %12642 = vmatprep.subr.bf16.mxu0 %v12641_v23  ;;  %v15456_v17 = vpop.permute.xlu0 %15455  ;;  %v21335_v14 = vld [vmem:[%s22359_s5 + $0x140] sm:$0xff] }
 0x841   :  { %v7399_v55 = vsel %vm23358_vm8, %v23357_v48, %v15433_v57  ;;  %v7396_v18 = vsel %vm23361_vm9, %v23360_v43, %v15432_v31  ;;  %vm23365_vm7 = vcmask 15360   ;;  %v23366_v57 = vld [vmem:[#allocation35_spill] sm:$0xff]  ;;  %v15438_v1 = vunpack.i.h.bf16 %v21313_v45  ;;  %v15446_v23 = vpop.permute.xlu1 %15445  ;;  %v23372_v4 = vld [vmem:[#allocation32_spill] sm:$0xff] }
 0x842   :  { %v7490_v51 = vsel %vm23365_vm7, %v23364_v20, %v15397_v38  ;;  %v12699_v34 = vpack.c.bf16 %v7399_v55, %v7396_v18  ;;  %v23367_v13 = vunpack.i.h.bf16 %v23366_v57  ;;  %vm23368_vm10 = vmmov %vm23365_vm7  ;;  %v15437_v53 = vunpack.i.l.bf16 %v21313_v45  ;;  %v23374_v57 = vld [vmem:[#allocation62_spill] sm:$0xff]  ;;  %v15940_v45 = vld [vmem:[%s22354_s2] sm:$0xff] }
 0x843   :  { %v12643_v31 = vpack.c.bf16 %v8721_v30, %v8718_v22  ;;  %v15458_v8 = vunpack.i.h.bf16 %v15456_v17  ;;  %v15457_v50 = vunpack.i.l.bf16 %v15456_v17  ;;  %v12701_v32 = vpack.c.bf16 %v7817_v28, %v7814_v47  ;;  %vm23376_vm13 = vmmov %vm23365_vm7 }
 0x844   :  { %v7493_v7 = vsel %vm23368_vm10, %v23367_v13, %v15398_v12  ;;  %12700 = vmatpush3.bf16.msra.mxu1 %v12699_v34  ;;  %vm23369_vm11 = vcmask 703488   ;;  %v12705_v22 = vpack.c.bf16 %v7823_v33, %v21284_v39  ;;  %v23371_v48 = vunpack.i.h.bf16 %v20391_v21  ;;  %v21345_v20 = vpop.permute.xlu0 %15460  ;;  %v23377_v13 = vld [vmem:[#allocation26_spill] sm:$0xff]  ;;  %vm23379_vm8 = vmmov %vm23365_vm7 }
 0x845   :  { %12644 = vmatpush1.bf16.msra.mxu0 %v12643_v31  ;;  %v8813_v38 = vsel %vm23369_vm11, %v15412_v41, %v15413_v10  ;;  %vm23370_vm12 = vmmov %vm23369_vm11  ;;  %12702 = vmatprep.subr.bf16.mxu1 %v12701_v32  ;;  %v12703_v28 = vpack.c.bf16 %v7493_v7, %v7490_v51  ;;  %v23373_v43 = vunpack.i.h.bf16 %v23372_v4  ;;  %v15443_v30 = vunpack.i.h.bf16 %v21257_v19  ;;  %v21376_v4 = vld [vmem:[%s22359_s5 + $0x178] sm:$0xff] }
 0x846   :  { %v8816_v12 = vsel %vm23370_vm12, %v15437_v53, %v15438_v1  ;;  %v7914_v55 = vsel %vm3005_vm15, %v23371_v48, %v15407_v40  ;;  %v15442_v39 = vunpack.i.l.bf16 %v21257_v19  ;;  %v15448_v33 = vunpack.i.h.bf16 %v15446_v23  ;;  %vm23380_vm9 = vmmov %vm23369_vm11 }
 0x847   :  { %v12645_v47 = vpack.c.bf16 %v8816_v12, %v8813_v38  ;;  %v7917_v18 = vsel %vm3005_vm15, %v23373_v43, %v15408_v0  ;;  %v15447_v35 = vunpack.i.l.bf16 %v15446_v23  ;;  %v15453_v51 = vunpack.i.h.bf16 %v21287_v44  ;;  %vm23381_vm14 = vmmov %vm23380_vm9  ;;  %v23384_v43 = vld [vmem:[#allocation80_spill] sm:$0xff] }
 0x848   :  { %v15452_v34 = vunpack.i.l.bf16 %v21287_v44  ;;  %v23375_v21 = vunpack.i.h.bf16 %v23374_v57  ;;  %v23378_v7 = vunpack.i.h.bf16 %v23377_v13  ;;  %9428 = vmatmul.mubr.f32.vlgmr.msra.gmra.mrb[48].mxu0 %v21323_v58  ;;  %v8815_v17 = vsel %vm23381_vm14, %v15448_v33, %v15437_v53  ;;  %12704 = vmatpush3.bf16.msra.mxu1 %v12703_v28  ;;  %v21364_v44 = vld [vmem:[%s22359_s5 + $0x138] sm:$0xff]  ;;  %v15466_v48 = vpop.permute.xlu0 %15465  ;;  %v21388_v57 = vld [vmem:[%s22359_s5 + $0x170] sm:$0xff]  ;;  %vm23387_vm7 = vmmov %vm23380_vm9 }
 0x849   :  { %12646 = vmatprep.subr.bf16.mxu0 %v12645_v47  ;;  %v8812_v19 = vsel %vm23380_vm9, %v15447_v35, %v15412_v41  ;;  %v15463_v31 = vunpack.i.h.bf16 %v21345_v20  ;;  %v15462_v32 = vunpack.i.l.bf16 %v21345_v20  ;;  %9433 = vmatprep.mubr.f32.mxu0 %v21335_v14  ;;  %v12709_v38 = vpack.c.bf16 %v7917_v18, %v7914_v55  ;;  %v23382_v41 = vld [vmem:[#allocation76_spill] sm:$0xff]  ;;  %vm23388_vm10 = vmmov %vm23387_vm7 }
 0x84a   :  { %v7496_v40 = vsel %vm23376_vm13, %v23375_v21, %v15457_v50  ;;  %v7499_v0 = vsel %vm23379_vm8, %v23378_v7, %v15458_v8  ;;  %v12647_v8 = vpack.c.bf16 %v8815_v17, %v8812_v19  ;;  %12706 = vmatprep.subr.bf16.mxu1 %v12705_v22  ;;  %v21366_v50 = vpop.permute.xlu1 %15470  ;;  %v23383_v12 = vunpack.i.h.bf16 %v23382_v41  ;;  %vm23390_vm11 = vmmov %vm23387_vm7 }
 0x84b   :  { %v12707_v23 = vpack.c.bf16 %v7499_v0, %v7496_v40  ;;  %v15473_v47 = vunpack.i.h.bf16 %v21366_v50  ;;  %v15472_v28 = vunpack.i.l.bf16 %v21366_v50  ;;  %v23385_v22 = vunpack.i.h.bf16 %v23384_v43  ;;  %vm23391_vm12 = vmmov %vm23387_vm7 }
 0x84c   :  { %v7590_v53 = vsel %vm458_vm3, %v23383_v12, %v15442_v39  ;;  %v15468_v55 = vunpack.i.h.bf16 %v15466_v48  ;;  %v15467_v18 = vunpack.i.l.bf16 %v15466_v48  ;;  %9434 = vmatmul.mubr.f32.gmra.mrb[50].mxu0 %v21364_v44  ;;  %v23386_v39 = vunpack.i.h.bf16 %v20793_v36  ;;  %v15486_v41 = vpop.permute.xlu0 %15485  ;;  %v23394_v48 = vld [vmem:[#allocation31_spill] sm:$0xff] }
 0x84d   :  { %v7593_v33 = vsel %vm458_vm3, %v23385_v22, %v15443_v30  ;;  %12648 = vmatpush1.bf16.msra.mxu0 %v12647_v8  ;;  %12708 = vmatpush3.bf16.msra.mxu1 %v12707_v23  ;;  %v8819_v21 = vsel %vm23387_vm7, %v15472_v28, %v15473_v47  ;;  %v8822_v30 = vsel %vm23388_vm10, %v15462_v32, %v15463_v31  ;;  %v23389_v40 = vunpack.i.h.bf16 %v20435_v42  ;;  %v21405_v42 = vld [vmem:[%s22359_s5 + $0x1b0] sm:$0xff] }
 0x84e   :  { %v7920_v35 = vsel %vm3005_vm15, %v23386_v39, %v15452_v34  ;;  %v8818_v34 = vsel %vm23390_vm11, %v15467_v18, %v15472_v28  ;;  %v8821_v13 = vsel %vm23391_vm12, %v15468_v55, %v15462_v32  ;;  %12710 = vmatprep.subr.bf16.mxu1 %v12709_v38  ;;  %v15476_v7 = vpop.permute.xlu1 %15475  ;;  %9439 = vmatprep.mubr.f32.mxu0 %v21376_v4  ;;  %v23392_v38 = vld [vmem:[#allocation75_spill] sm:$0xff]  ;;  %v23395_v43 = vunpack.i.h.bf16 %v23394_v48 }
 0x84f   :  { %v7923_v36 = vsel %vm3005_vm15, %v23389_v40, %v15453_v51  ;;  %v12649_v0 = vpack.c.bf16 %v8822_v30, %v8819_v21  ;;  %v12651_v19 = vpack.c.bf16 %v8821_v13, %v8818_v34  ;;  %v15478_v17 = vunpack.i.h.bf16 %v15476_v7  ;;  %v23397_v34 = vld [vmem:[#allocation22_spill] sm:$0xff] }
 0x850   :  { %v15477_v8 = vunpack.i.l.bf16 %v15476_v7  ;;  %v12711_v12 = vpack.c.bf16 %v7593_v33, %v7590_v53  ;;  %v15487_v51 = vunpack.i.l.bf16 %v15486_v41  ;;  %9440 = vmatmul.mubr.f32.gmra.mrb[52].mxu0 %v21388_v57  ;;  %v12713_v32 = vpack.c.bf16 %v7923_v36, %v7920_v35  ;;  %v21417_v53 = vld [vmem:[%s22359_s5 + $0x1a8] sm:$0xff]  ;;  %v15496_v21 = vpop.permute.xlu0 %15495 }
 0x851   :  { %12650 = vmatprep.subr.bf16.mxu0 %v12649_v0  ;;  %v23393_v23 = vunpack.i.h.bf16 %v23392_v38  ;;  %v15488_v55 = vunpack.i.h.bf16 %v15486_v41  ;;  %9445 = vmatprep.mubr.f32.mxu0 %v21405_v42  ;;  %v23396_v30 = vunpack.i.h.bf16 %v20460_v11  ;;  %v15497_v36 = vunpack.i.l.bf16 %v15496_v21 }
 0x852   :  { %v7596_v22 = vsel %vm458_vm3, %v23395_v43, %v15477_v8  ;;  %12712 = vmatpush3.bf16.msra.mxu1 %v12711_v12  ;;  %12652 = vmatpush1.bf16.msra.mxu0 %v12651_v19  ;;  %v15481_v18 = vpop.permute.xlu1 %15480  ;;  %v23398_v13 = vunpack.i.h.bf16 %v23397_v34  ;;  %v15498_v0 = vunpack.i.h.bf16 %v15496_v21  ;;  %v23399_v19 = vmov 0.0  }
 0x853   :  { %v7599_v28 = vsel %vm458_vm3, %v23393_v23, %v15478_v17  ;;  %12714 = vmatprep.subr.bf16.mxu1 %v12713_v32  ;;  %v15483_v39 = vunpack.i.h.bf16 %v15481_v18  ;;  %v15482_v35 = vunpack.i.l.bf16 %v15481_v18  ;;  %v8014_v40 = vsel %vm684_vm5, %v23396_v30, %v15487_v51  ;;  %v21431_v17 = vld [vmem:[%s22359_s5 + $0x110] sm:$0xff] }
 0x854   :  { %v12715_v33 = vpack.c.bf16 %v7599_v28, %v7596_v22  ;;  %9446 = vmatmul.mubr.f32.gmra.mrb[54].mxu0 %v21417_v53  ;;  %v8017_v7 = vsel %vm684_vm5, %v23398_v13, %v15488_v55  ;;  %v23400_v11 = vunpack.i.h.bf16 %v20703_v9  ;;  %vm23401_vm15 = vcmask 736256   ;;  %v15506_v28 = vpop.permute.xlu0 %15505  ;;  %v23406_v9 = vld [vmem:[#allocation28_spill] sm:$0xff] }
 0x855   :  { %9516 = vmatprep.mubr.f32.mxu0 %v23399_v19  ;;  %v23402_v41 = vunpack.i.h.bf16 %v20623_v60  ;;  %vm23403_vm13 = vmmov %vm23401_vm15  ;;  %v12719_v48 = vpack.c.bf16 %v8017_v7, %v8014_v40  ;;  %v23404_v43 = vunpack.i.h.bf16 %v20848_v29  ;;  %v15507_v55 = vunpack.i.l.bf16 %v15506_v28  ;;  %v21452_v29 = vld [vmem:[%s22359_s5 + $0x148] sm:$0xff] }
 0x856   :  { %12716 = vmatpush3.bf16.msra.mxu1 %v12715_v33  ;;  %v8414_v8 = vsel %vm23401_vm15, %v23400_v11, %v15482_v35  ;;  %v15491_v51 = vpop.permute.xlu1 %15490  ;;  %vm23405_vm8 = vcmask 261120   ;;  %v23407_v60 = vunpack.i.h.bf16 %v23406_v9  ;;  %v15508_v18 = vunpack.i.h.bf16 %v15506_v28  ;;  %vm23410_vm9 = vmmov %vm23403_vm13  ;;  %v23413_v11 = vld [vmem:[#allocation30_spill] sm:$0xff]  ;;  %v21474_v28 = vld [vmem:[%s22359_s5 + $0x180] sm:$0xff] }
 0x857   :  { %v8417_v12 = vsel %vm23403_vm13, %v23402_v41, %v15483_v39  ;;  %v15493_v38 = vunpack.i.h.bf16 %v15491_v51  ;;  %v15492_v23 = vunpack.i.l.bf16 %v15491_v51  ;;  %v8020_v22 = vsel %vm684_vm5, %v23404_v43, %v15497_v36  ;;  %v23408_v39 = vld [vmem:[#allocation10_spill] sm:$0xff]  ;;  %vm23412_vm14 = vmmov %vm23410_vm9 }
 0x858   :  { %v12717_v32 = vpack.c.bf16 %v8417_v12, %v8414_v8  ;;  %11387 = vmatmul.mubr.msk.f32.vlgmr.msra.gmra.mrb[48].mxu0 %vm23405_vm8, %v21431_v17  ;;  %v8023_v33 = vsel %vm684_vm5, %v23407_v60, %v15498_v0  ;;  %v23409_v35 = vunpack.i.h.bf16 %v21034_v56  ;;  %v23411_v21 = vunpack.i.h.bf16 %v20633_v25  ;;  %v15516_v7 = vpop.permute.xlu0 %15515  ;;  %v23415_v12 = vld [vmem:[#allocation52_spill] sm:$0xff]  ;;  %vm23416_vm7 = vmmov %vm23405_vm8  ;;  %v23417_v25 = vld [vmem:[#allocation11_spill] sm:$0xff] }
 0x859   :  { %9691 = vmatmul.mubr.f32.vlgmr.msra.gmra.mrb[36].mxu1 %v20843_v61  ;;  %9522 = vmatprep.mubr.f32.mxu0 %v23399_v19  ;;  %v12723_v0 = vpack.c.bf16 %v8023_v33, %v8020_v22  ;;  %v23414_v8 = vunpack.i.h.bf16 %v23413_v11  ;;  %v15517_v56 = vunpack.i.l.bf16 %v15516_v7  ;;  %v23418_v51 = vunpack.i.h.bf16 %v23417_v25  ;;  %vm23427_vm12 = vmmov %vm23416_vm7 }
 0x85a   :  { %12718 = vmatprep.subr.bf16.mxu1 %v12717_v32  ;;  %9695 = vmatprep.mubr.f32.mxu1 %v23408_v39  ;;  %v8420_v61 = vsel %vm23410_vm9, %v23409_v35, %v15492_v23  ;;  %v8423_v30 = vsel %vm23412_vm14, %v23411_v21, %v15493_v38  ;;  %v15501_v40 = vpop.permute.xlu1 %15500  ;;  %v15518_v38 = vunpack.i.h.bf16 %v15516_v7  ;;  %v23419_v23 = vld [vmem:[#allocation68_spill] sm:$0xff]  ;;  %vm23421_vm10 = vcmask 728064   ;;  %v23430_v7 = vld [vmem:[#allocation43_spill] sm:$0xff]  ;;  %vm23441_vm14 = vmmov %vm23416_vm7 }
 0x85b   :  { %12720 = vmatpush3.bf16.msra.mxu1 %v12719_v48  ;;  %v12721_v36 = vpack.c.bf16 %v8423_v30, %v8420_v61  ;;  %v15503_v34 = vunpack.i.h.bf16 %v15501_v40  ;;  %v15502_v13 = vunpack.i.l.bf16 %v15501_v40  ;;  %v8114_v41 = vsel %vm785_vm6, %v23414_v8, %v15507_v55  ;;  %vm23423_vm11 = vmmov %vm23421_vm10  ;;  %v23424_v61 = vld [vmem:[#allocation53_spill] sm:$0xff] }
 0x85c   :  { %11388 = vmatmul.mubr.msk.f32.gmra.mrb[50].mxu0 %vm23416_vm7, %v21452_v29  ;;  %v8117_v32 = vsel %vm785_vm6, %v23418_v51, %v15508_v18  ;;  %v23420_v48 = vunpack.i.h.bf16 %v20779_v62  ;;  %v23422_v22 = vunpack.i.h.bf16 %v20669_v52  ;;  %v15526_v39 = vpop.permute.xlu0 %15525  ;;  %v23425_v21 = vunpack.i.h.bf16 %v23424_v61  ;;  %v23428_v52 = vld [vmem:[#allocation36_spill] sm:$0xff]  ;;  %vm23432_vm15 = vmmov %vm23421_vm10  ;;  %v23446_v61 = vld [vmem:[#allocation54_spill] sm:$0xff] }
 0x85d   :  { %9696 = vmatmul.mubr.f32.gmra.mrb[38].mxu1 %v23415_v12  ;;  %12722 = vmatprep.subr.bf16.mxu1 %v12721_v36  ;;  %v12727_v35 = vpack.c.bf16 %v8117_v32, %v8114_v41  ;;  %v15528_v62 = vunpack.i.h.bf16 %v15526_v39  ;;  %v15527_v40 = vunpack.i.l.bf16 %v15526_v39  ;;  %v23426_v36 = vld [vmem:[#allocation42_spill] sm:$0xff]  ;;  %v23431_v11 = vunpack.i.h.bf16 %v21089_v37  ;;  %vm23434_vm13 = vmmov %vm23421_vm10  ;;  %v23438_v37 = vld [vmem:[#allocation25_spill] sm:$0xff] }
 0x85e   :  { %9700 = vmatprep.mubr.f32.mxu1 %v23419_v23  ;;  %v8514_v43 = vsel %vm23421_vm10, %v23420_v48, %v15502_v13  ;;  %v8517_v55 = vsel %vm23423_vm11, %v23422_v22, %v15503_v34  ;;  %v15511_v9 = vpop.permute.xlu1 %15510  ;;  %9528 = vmatprep.mubr.f32.mxu0 %v23399_v19  ;;  %v8120_v30 = vsel %vm785_vm6, %v23425_v21, %v15517_v56  ;;  %v23429_v34 = vunpack.i.h.bf16 %v23428_v52  ;;  %v23435_v48 = vld [vmem:[#allocation61_spill] sm:$0xff] }
 0x85f   :  { %12724 = vmatpush3.bf16.msra.mxu1 %v12723_v0  ;;  %v12725_v60 = vpack.c.bf16 %v8517_v55, %v8514_v43  ;;  %v15513_v33 = vunpack.i.h.bf16 %v15511_v9  ;;  %v15512_v18 = vunpack.i.l.bf16 %v15511_v9  ;;  %v21496_v0 = vld [vmem:[%s22359_s5 + $0x1b8] sm:$0xff]  ;;  %v23433_v41 = vunpack.i.h.bf16 %v20681_v27 }
 0x860   :  { %11389 = vmatmul.mubr.msk.f32.gmra.mrb[52].mxu0 %vm23427_vm12, %v21474_v28  ;;  %v8123_v13 = vsel %vm785_vm6, %v23429_v34, %v15518_v38  ;;  %v15536_v38 = vpop.permute.xlu0 %15535  ;;  %v23436_v43 = vunpack.i.h.bf16 %v23435_v48  ;;  %vm23437_vm8 = vcmask 875520   ;;  %v23439_v55 = vunpack.i.h.bf16 %v23438_v37  ;;  %v23456_v48 = vld [vmem:[#allocation45_spill] sm:$0xff]  ;;  %v23459_v37 = vld [vmem:[#allocation24_spill] sm:$0xff] }
 0x861   :  { %9701 = vmatmul.mubr.f32.gmra.mrb[40].mxu1 %v23426_v36  ;;  %12726 = vmatprep.subr.bf16.mxu1 %v12725_v60  ;;  %v8520_v8 = vsel %vm23432_vm15, %v23431_v11, %v15512_v18  ;;  %v8523_v56 = vsel %vm23434_vm13, %v23433_v41, %v15513_v33  ;;  %v12731_v23 = vpack.c.bf16 %v8123_v13, %v8120_v30  ;;  %vm23440_vm9 = vmmov %vm23437_vm8  ;;  %v15538_v27 = vunpack.i.h.bf16 %v15536_v38 }
 0x862   :  { %9705 = vmatprep.mubr.f32.mxu1 %v23430_v7  ;;  %v15521_v12 = vpop.permute.xlu1 %15520  ;;  %9534 = vmatprep.mubr.f32.mxu0 %v23399_v19  ;;  %v12729_v25 = vpack.c.bf16 %v8523_v56, %v8520_v8  ;;  %v8214_v22 = vsel %vm23437_vm8, %v23436_v43, %v15527_v40  ;;  %v8217_v9 = vsel %vm23440_vm9, %v23439_v55, %v15528_v62  ;;  %v15537_v60 = vunpack.i.l.bf16 %v15536_v38  ;;  %vm23448_vm11 = vmmov %vm23437_vm8  ;;  %v23449_v7 = vld [vmem:[#allocation37_spill] sm:$0xff] }
 0x863   :  { %12728 = vmatpush3.bf16.msra.mxu1 %v12727_v35  ;;  %v15523_v51 = vunpack.i.h.bf16 %v15521_v12  ;;  %v15522_v32 = vunpack.i.l.bf16 %v15521_v12  ;;  %v23442_v33 = vunpack.i.h.bf16 %v20728_v63  ;;  %vm23443_vm7 = vcmask 719872   ;;  %vm23451_vm12 = vmmov %vm23437_vm8 }
 0x864   :  { %11390 = vmatmul.mubr.msk.f32.gmra.mrb[54].mxu0 %vm23441_vm14, %v21496_v0  ;;  %12730 = vmatprep.subr.bf16.mxu1 %v12729_v25  ;;  %v23444_v39 = vunpack.i.h.bf16 %v20859_v46  ;;  %vm23445_vm10 = vmmov %vm23443_vm7  ;;  %v15546_v40 = vpop.permute.xlu0 %15545  ;;  %v12735_v36 = vpack.c.bf16 %v8217_v9, %v8214_v22  ;;  %v23447_v63 = vunpack.i.h.bf16 %v20974_v5  ;;  %v23450_v46 = vunpack.i.h.bf16 %v23449_v7 }
 0x865   :  { %9706 = vmatmul.mubr.f32.gmra.mrb[42].mxu1 %v20942_v6  ;;  %v8614_v18 = vsel %vm23443_vm7, %v23442_v33, %v15522_v32  ;;  %v15548_v52 = vunpack.i.h.bf16 %v15546_v40  ;;  %v15547_v34 = vunpack.i.l.bf16 %v15546_v40  ;;  %v23452_v8 = vunpack.i.h.bf16 %v21177_v54  ;;  %vm23453_vm15 = vmmov %vm23443_vm7 }
 0x866   :  { %v8617_v35 = vsel %vm23445_vm10, %v23444_v39, %v15523_v51  ;;  %9775 = vmatprep.mubr.f32.mxu1 %v23446_v61  ;;  %v15531_v21 = vpop.permute.xlu1 %15530  ;;  %v8220_v13 = vsel %vm23448_vm11, %v23447_v63, %v15537_v60  ;;  %v8223_v11 = vsel %vm23451_vm12, %v23450_v46, %v15538_v27  ;;  %v23454_v56 = vunpack.i.h.bf16 %v20922_v49  ;;  %vm23455_vm13 = vmmov %vm23443_vm7 }
 0x867   :  { %12732 = vmatpush3.bf16.msra.mxu1 %v12731_v23  ;;  %v12733_v30 = vpack.c.bf16 %v8617_v35, %v8614_v18  ;;  %v15533_v6 = vunpack.i.h.bf16 %v15531_v21  ;;  %v15532_v62 = vunpack.i.l.bf16 %v15531_v21  ;;  %v12739_v23 = vpack.c.bf16 %v8223_v11, %v8220_v13 }
 0x868   :  { %v15556_v5 = vpop.permute.xlu0 %15555  ;;  %v23457_v43 = vunpack.i.h.bf16 %v23456_v48  ;;  %vm23458_vm8 = vcmask 867328   ;;  %v23460_v55 = vunpack.i.h.bf16 %v23459_v37  ;;  %v23462_v27 = vunpack.i.h.bf16 %v20979_v59 }
 0x869   :  { %12734 = vmatprep.subr.bf16.mxu1 %v12733_v30  ;;  %v8620_v41 = vsel %vm23453_vm15, %v23452_v8, %v15532_v62  ;;  %v8623_v12 = vsel %vm23455_vm13, %v23454_v56, %v15533_v6  ;;  %vm23461_vm9 = vmmov %vm23458_vm8  ;;  %v15558_v9 = vunpack.i.h.bf16 %v15556_v5  ;;  %v15557_v49 = vunpack.i.l.bf16 %v15556_v5  ;;  %v23466_v62 = vld [vmem:[#allocation69_spill] sm:$0xff] }
 0x86a   :  { %v15541_v25 = vpop.permute.xlu1 %15540  ;;  %v12737_v51 = vpack.c.bf16 %v8623_v12, %v8620_v41  ;;  %v8314_v22 = vsel %vm23458_vm8, %v23457_v43, %v15547_v34  ;;  %v8317_v54 = vsel %vm23461_vm9, %v23460_v55, %v15548_v52  ;;  %vm23463_vm14 = vcmask 711680   ;;  %vm23468_vm10 = vmmov %vm23458_vm8  ;;  %v23469_v52 = vld [vmem:[#allocation46_spill] sm:$0xff] }
 0x86b   :  { %12736 = vmatpush3.bf16.msra.mxu1 %v12735_v36  ;;  %v15543_v32 = vunpack.i.h.bf16 %v15541_v25  ;;  %v15542_v38 = vunpack.i.l.bf16 %v15541_v25  ;;  %v23464_v33 = vunpack.i.h.bf16 %v20881_v2  ;;  %vm23465_vm7 = vmmov %vm23463_vm14  ;;  %v12743_v6 = vpack.c.bf16 %v8317_v54, %v8314_v22  ;;  %v23482_v55 = vld [vmem:[#allocation6_spill] sm:$0xff] }
 0x86c   :  { %12738 = vmatprep.subr.bf16.mxu1 %v12737_v51  ;;  %v15566_v30 = vpop.permute.xlu0 %15565  ;;  %v23467_v40 = vunpack.i.h.bf16 %v23466_v62  ;;  %v23470_v59 = vunpack.i.h.bf16 %v23469_v52  ;;  %vm23471_vm11 = vmmov %vm23458_vm8  ;;  %vm23474_vm13 = vcmask 703488   ;;  %v23484_v52 = vld [vmem:[#allocation7_spill] sm:$0xff] }
 0x86d   :  { %v8714_v60 = vsel %vm23463_vm14, %v23462_v27, %v15542_v38  ;;  %v8717_v18 = vsel %vm23465_vm7, %v23464_v33, %v15543_v32  ;;  %vm23472_vm12 = vmmov %vm23465_vm7  ;;  %v15568_v13 = vunpack.i.h.bf16 %v15566_v30  ;;  %v15567_v7 = vunpack.i.l.bf16 %v15566_v30 }
 0x86e   :  { %v15551_v39 = vpop.permute.xlu1 %15550  ;;  %v12741_v35 = vpack.c.bf16 %v8717_v18, %v8714_v60  ;;  %v8320_v36 = vsel %vm23468_vm10, %v23467_v40, %v15557_v49  ;;  %v8323_v34 = vsel %vm23471_vm11, %v23470_v59, %v15558_v9  ;;  %vm23473_vm15 = vmmov %vm23465_vm7  ;;  %vm23478_vm7 = vcmask 261120   ;;  %v23483_v49 = vld [vmem:[#allocation8_spill] sm:$0xff] }
 0x86f   :  { %12740 = vmatpush3.bf16.msra.mxu1 %v12739_v23  ;;  %v15553_v61 = vunpack.i.h.bf16 %v15551_v39  ;;  %v15552_v21 = vunpack.i.l.bf16 %v15551_v39  ;;  %v12747_v56 = vpack.c.bf16 %v8323_v34, %v8320_v36  ;;  %vm23475_vm8 = vmmov %vm23474_vm13  ;;  %v23485_v34 = vld [vmem:[#allocation13_spill] sm:$0xff] }
 0x870   :  { %12742 = vmatprep.subr.bf16.mxu1 %v12741_v35  ;;  %vm23476_vm9 = vmmov %vm23475_vm8 }
 0x871   :  { %v8720_v2 = vsel %vm23472_vm12, %v15428_v16, %v15552_v21  ;;  %v8723_v63 = vsel %vm23473_vm15, %v15383_v3, %v15553_v61  ;;  %v8820_v3 = vsel %vm23476_vm9, %v15473_v47, %v15567_v7  ;;  %vm23477_vm14 = vmmov %vm23475_vm8 }
 0x872   :  { %v15561_v46 = vpop.permute.xlu1 %15560  ;;  %v12745_v11 = vpack.c.bf16 %v8723_v63, %v8720_v2  ;;  %v8823_v16 = vsel %vm23477_vm14, %v15463_v31, %v15568_v13  ;;  %vm23479_vm10 = vmmov %vm23478_vm7  ;;  %v23486_v63 = vld [vmem:[#allocation9_spill] sm:$0xff] }
 0x873   :  { %12744 = vmatpush3.bf16.msra.mxu1 %v12743_v6  ;;  %v15563_v8 = vunpack.i.h.bf16 %v15561_v46  ;;  %v15562_v41 = vunpack.i.l.bf16 %v15561_v46  ;;  %v12753_v26 = vpack.c.bf16 %v8823_v16, %v8820_v3  ;;  %vm23480_vm11 = vmmov %vm23478_vm7  ;;  %v23487_v46 = vld [vmem:[#allocation14_spill] sm:$0xff] }
 0x874   :  { %12746 = vmatprep.subr.bf16.mxu1 %v12745_v11  ;;  %vm23481_vm12 = vmmov %vm23478_vm7 }
 0x875   :  { %v8814_v12 = vsel %vm23474_vm13, %v15413_v10, %v15562_v41  ;;  %v8817_v15 = vsel %vm23475_vm8, %v15438_v1, %v15563_v8  ;;  %v15939_v10 = vld [vmem:[%s22354_s2 + $0x28] sm:$0xff]  ;;  %vm23497_vm15 = vmmov %vm23478_vm7  ;;  %vm23498_vm13 = vcmask 875520  }
 0x876   :  { %v12749_v24 = vpack.c.bf16 %v8817_v15, %v8814_v12  ;;  %v21590_v1 = vpack.i.bf16 %v15939_v10, %v15940_v45  ;;  %vm23499_vm8 = vmmov %vm23498_vm13 }
 0x877   :  { %12748 = vmatpush3.bf16.msra.mxu1 %v12747_v56  ;;  %vm23500_vm9 = vmmov %vm23499_vm8 }
 0x878   :  { %12750 = vmatprep.subr.bf16.mxu1 %v12749_v24  ;;  %15570 = vrot.lane.b32.xlu1 %v21590_v1, %s15947_s30  ;;  %vm23501_vm14 = vmmov %vm23499_vm8 }
 0x879   :  { %v9161_v25 = vpop.permute.xlu0 %9160 }
 0x87a   :  { %9776 = vmatmul.mubr.f32.vlgmr.msra.gmra.mrb[44].mxu1 %v21323_v58  ;;  %v15941_v58 = vld [vmem:[%s22354_s2 + $0x50] sm:$0xff]  ;;  %v9156_v51 = vpop.permute.xlu1 %9155 }
 0x87b   :  { %12752 = vmatpush3.bf16.msra.mxu1 %v12749_v24  ;;  %9780 = vmatprep.mubr.f32.mxu1 %v21335_v14  ;;  %v15942_v14 = vld [vmem:[%s22354_s2 + $0x78] sm:$0xff] }
 0x87c   :  { %12754 = vmatprep.subr.bf16.mxu1 %v12753_v26  ;;  %15580 = vrot.lane.b32.xlu1 %v21590_v1, %s15948_s12  ;;  %v21602_v20 = vpack.i.bf16 %v15942_v14, %v15941_v58 }
 0x87d   :  { %v9171_v40 = vpop.permute.xlu0 %9170 }
 0x87e   :  { %9781 = vmatmul.mubr.f32.gmra.mrb[46].mxu1 %v21364_v44  ;;  %15575 = vrot.lane.b32.xlu0 %v21602_v20, %s15947_s30  ;;  %v9166_v36 = vpop.permute.xlu1 %9165 }
 0x87f   :  { %12756 = vmatpush3.bf16.msra.mxu1 %v12753_v26  ;;  %9785 = vmatprep.mubr.f32.mxu1 %v21376_v4 }
 0x880   :  { %15590 = vrot.lane.b32.xlu1 %v21590_v1, %s15949_s13 }
 0x882   :  { %9786 = vmatmul.mubr.f32.gmra.mrb[48].mxu1 %v21388_v57  ;;  %15585 = vrot.lane.b32.xlu0 %v21602_v20, %s15948_s12 }
 0x883   :  { %9790 = vmatprep.mubr.f32.mxu1 %v21405_v42 }
 0x886   :  { %9791 = vmatmul.mubr.f32.gmra.mrb[50].mxu1 %v21417_v53 }
 0x887   :  { %11905 = vmatprep.mubr.msk.f32.mxu1 %vm23478_vm7, %v21431_v17  ;;  %vm23502_vm7 = vmmov %vm23499_vm8 }
 0x88a   :  { %11906 = vmatmul.mubr.msk.f32.vlgmr.msra.gmra.mrb[52].mxu1 %vm23479_vm10, %v21452_v29  ;;  %vm23503_vm10 = vmmov %vm23502_vm7 }
 0x88b   :  { %11908 = vmatprep.mubr.msk.f32.mxu1 %vm23480_vm11, %v21474_v28  ;;  %vm23504_vm11 = vmmov %vm23502_vm7 }
 0x88e   :  { %11909 = vmatmul.mubr.msk.f32.gmra.mrb[54].mxu1 %vm23481_vm12, %v21496_v0  ;;  %vm23505_vm12 = vmmov %vm23502_vm7 }
 0x8ff   :  { %v11695_v31 = vpop.f32.mrb[28].mxu1 }
 0x900   :  { %v11696_v44 = vpop.f32.mrb[29].mxu1 }
 0x901   :  { %v11697_v50 = vadd.f32 %v11696_v44, %v11695_v31  ;;  %v23488_v31 = vld [vmem:[#allocation15_spill] sm:$0xff] }
 0x903   :  { %v11698_v47 = vpop.f32.mrb[30].mxu1  ;;  %v9608_v43 = vadd.f32 %v11697_v50, %v9156_v51 }
 0x904   :  { %v11699_v4 = vpop.f32.mrb[31].mxu1 }
 0x905   :  { %v11700_v57 = vadd.f32 %v11699_v4, %v11698_v47  ;;  %v23489_v4 = vld [vmem:[#allocation16_spill] sm:$0xff] }
 0x907   :  { %v11701_v42 = vpop.f32.mrb[32].mxu1  ;;  %v9613_v21 = vadd.f32 %v11700_v57, %v9161_v25 }
 0x908   :  { %v11702_v53 = vpop.f32.mrb[33].mxu1 }
 0x909   :  { %v11703_v17 = vadd.f32 %v11702_v53, %v11701_v42 }
 0x90b   :  { %v11704_v29 = vpop.f32.mrb[34].mxu1  ;;  %v9618_v56 = vadd.f32 %v11703_v17, %v9166_v36 }
 0x90c   :  { %v11705_v28 = vpop.f32.mrb[35].mxu1 }
 0x90d   :  { %v11706_v0 = vadd.f32 %v11705_v28, %v11704_v29 }
 0x90f   :  { %v9623_v12 = vadd.f32 %v11706_v0, %v9171_v40 }
 0x92b   :  { %v9518_v38 = vpop.f32.mrb[48].mxu0 }
 0x92c   :  { %v11739_v32 = vpop.f32.mrb[36].mxu1  ;;  %v12893_v5 = vadd.f32 %v9518_v38, %v9156_v51  ;;  %v9520_v48 = vpop.f32.mrb[49].mxu0 }
 0x92d   :  { %v11740_v23 = vpop.f32.mrb[37].mxu1  ;;  %v12894_v37 = vadd.f32 %v9520_v48, %v9156_v51  ;;  %v23490_v48 = vld [vmem:[#allocation21_spill] sm:$0xff] }
 0x92e   :  { %v11741_v22 = vadd.f32 %v11740_v23, %v11739_v32  ;;  %v9881_v54 = vadd.f32 %v12893_v5, %v23482_v55  ;;  %v23491_v55 = vld [vmem:[#allocation19_spill] sm:$0xff] }
 0x92f   :  { %v9882_v27 = vadd.f32 %v12894_v37, %v23483_v49  ;;  %v9524_v33 = vpop.f32.mrb[50].mxu0 }
 0x930   :  { %v21611_v9 = vadd.f32 %v11741_v22, %v9608_v43  ;;  %v11742_v60 = vpop.f32.mrb[38].mxu1  ;;  %v9893_v18 = vmax.f32 %v9881_v54, 0.0  ;;  %v12895_v39 = vadd.f32 %v9524_v33, %v9161_v25  ;;  %v9526_v61 = vpop.f32.mrb[51].mxu0 }
 0x931   :  { %v11743_v35 = vpop.f32.mrb[39].mxu1  ;;  %v9894_v30 = vmax.f32 %v9882_v27, 0.0  ;;  %v12896_v62 = vadd.f32 %v9526_v61, %v9161_v25 }
 0x932   :  { %v11744_v6 = vadd.f32 %v11743_v35, %v11742_v60  ;;  %v21615_v59 = vmul.f32 %v9893_v18, %v23484_v52  ;;  %v9884_v2 = vadd.f32 %v12895_v39, %v23485_v34 }
 0x933   :  { %v21619_v13 = vmul.f32 %v9894_v30, %v23486_v63  ;;  %v9885_v11 = vadd.f32 %v12896_v62, %v23487_v46  ;;  %v9530_v41 = vpop.f32.mrb[52].mxu0 }
 0x934   :  { %v21621_v7 = vadd.f32 %v11744_v6, %v9613_v21  ;;  %v11745_v8 = vpop.f32.mrb[40].mxu1  ;;  %v9896_v15 = vmax.f32 %v9884_v2, 0.0  ;;  %v12897_v24 = vadd.f32 %v9530_v41, %v9166_v36  ;;  %v9532_v16 = vpop.f32.mrb[53].mxu0 }
 0x935   :  { %v11746_v3 = vpop.f32.mrb[41].mxu1  ;;  %v9897_v26 = vmax.f32 %v9885_v11, 0.0  ;;  %v12898_v45 = vadd.f32 %v9532_v16, %v9166_v36  ;;  %v15594_v58 = vpack.i.bf16 %v21619_v13, %v21615_v59 }
 0x936   :  { %v11747_v10 = vadd.f32 %v11746_v3, %v11745_v8  ;;  %v21627_v14 = vmul.f32 %v9896_v15, %v23484_v52  ;;  %v9887_v44 = vadd.f32 %v12897_v24, %v23488_v31 }
 0x937   :  { %v21631_v50 = vmul.f32 %v9897_v26, %v23486_v63  ;;  %v9888_v57 = vadd.f32 %v12898_v45, %v23489_v4  ;;  %v9536_v53 = vpop.f32.mrb[54].mxu0  ;;  %15595 = vrot.lane.b32.xlu1 %v15594_v58, %s15947_s30 }
 0x938   :  { %v9703_v47 = vadd.f32 %v11747_v10, %v9618_v56  ;;  %v11748_v42 = vpop.f32.mrb[42].mxu1  ;;  %v9899_v17 = vmax.f32 %v9887_v44, 0.0  ;;  %v12899_v29 = vadd.f32 %v9536_v53, %v9171_v40  ;;  %v9538_v0 = vpop.f32.mrb[55].mxu0  ;;  %v21637_v25 = vpack.i.bf16 %v21627_v14, %v21615_v59  ;;  %v23492_v10 = vld [vmem:[#allocation17_spill] sm:$0xff]  ;;  %v23494_v53 = vld [vmem:[#allocation4_spill] sm:$0xff] }
 0x939   :  { %v11749_v28 = vpop.f32.mrb[43].mxu1  ;;  %v9900_v51 = vmax.f32 %v9888_v57, 0.0  ;;  %v12900_v38 = vadd.f32 %v9538_v0, %v9171_v40  ;;  %v15609_v5 = vpack.i.bf16 %v21631_v50, %v21627_v14  ;;  %v12789_v39 = vpack.c.bf16 %v21631_v50, %v21619_v13 }
 0x93a   :  { %v11750_v32 = vadd.f32 %v11749_v28, %v11748_v42  ;;  %v21642_v23 = vmul.f32 %v9899_v17, %v23484_v52  ;;  %v9890_v43 = vadd.f32 %v12899_v29, %v23490_v48  ;;  %v12791_v21 = vpack.c.bf16 %v21627_v14, %v21615_v59  ;;  %v23495_v29 = vld [vmem:[#allocation18_spill] sm:$0xff] }
 0x93b   :  { %v21646_v22 = vmul.f32 %v9900_v51, %v23486_v63  ;;  %v9891_v54 = vadd.f32 %v12900_v38, %v23491_v55  ;;  %15610 = vrot.lane.b32.xlu0 %v15609_v5, %s15947_s30  ;;  %15600 = vrot.lane.b32.xlu1 %v15594_v58, %s15948_s12  ;;  %v23496_v51 = vld [vmem:[#allocation20_spill] sm:$0xff] }
 0x93c   :  { %v9708_v37 = vadd.f32 %v11750_v32, %v9623_v12  ;;  %v9902_v49 = vmax.f32 %v9890_v43, 0.0 }
 0x93d   :  { %v9903_v27 = vmax.f32 %v9891_v54, 0.0  ;;  %v15624_v60 = vpack.i.bf16 %v21646_v22, %v21642_v23 }
 0x93e   :  { %v21654_v33 = vmul.f32 %v9902_v49, %v23484_v52 }
 0x93f   :  { %v21657_v18 = vmul.f32 %v9903_v27, %v23486_v63  ;;  %15615 = vrot.lane.b32.xlu0 %v15609_v5, %s15948_s12  ;;  %15605 = vrot.lane.b32.xlu1 %v15594_v58, %s15949_s13 }
 0x940   :  { %v21665_v35 = vpack.i.bf16 %v21654_v33, %v21642_v23  ;;  %v12795_v6 = vpack.c.bf16 %v21654_v33, %v21642_v23 }
 0x941   :  { %v15644_v61 = vpack.i.bf16 %v21657_v18, %v21654_v33  ;;  %v12793_v30 = vpack.c.bf16 %v21657_v18, %v21646_v22 }
 0x943   :  { %15620 = vrot.lane.b32.xlu0 %v15609_v5, %s15949_s13  ;;  %15645 = vrot.lane.b32.xlu1 %v15644_v61, %s15947_s30 }
 0x947   :  { %15625 = vrot.lane.b32.xlu0 %v15624_v60, %s15947_s30  ;;  %15650 = vrot.lane.b32.xlu1 %v15594_v58, %s15950_s14 }
 0x94b   :  { %15630 = vrot.lane.b32.xlu0 %v21602_v20, %s15949_s13  ;;  %15660 = vrot.lane.b32.xlu1 %v15644_v61, %s15948_s12 }
 0x94d   :  { %v11783_v62 = vpop.f32.mrb[44].mxu1 }
 0x94e   :  { %v11784_v40 = vpop.f32.mrb[45].mxu1 }
 0x94f   :  { %v11785_v36 = vadd.f32 %v11784_v40, %v11783_v62  ;;  %15635 = vrot.lane.b32.xlu0 %v15624_v60, %s15948_s12  ;;  %15665 = vrot.lane.b32.xlu1 %v21590_v1, %s15950_s14  ;;  %v15571_v40 = vpop.permute.xlu1 %15570 }
 0x951   :  { %v11786_v52 = vpop.f32.mrb[46].mxu1  ;;  %v9778_v34 = vadd.f32 %v11785_v36, %v21611_v9  ;;  %v21771_v36 = vld [vmem:[%s22355_s4 + $0xd0] sm:$0xff] }
 0x952   :  { %v11787_v2 = vpop.f32.mrb[47].mxu1  ;;  %11919 = vmatprep.mubr.msk.f32.mxu0 %vm23497_vm15, %v21771_v36 }
 0x953   :  { %v11788_v63 = vadd.f32 %v11787_v2, %v11786_v52  ;;  %15640 = vrot.lane.b32.xlu0 %v15624_v60, %s15949_s13  ;;  %15680 = vrot.lane.b32.xlu1 %v15644_v61, %s15949_s13  ;;  %v15945_v2 = vld [vmem:[%s22354_s2 + $0x70] sm:$0xff] }
 0x955   :  { %v11789_v46 = vpop.f32.mrb[48].mxu1  ;;  %v9783_v11 = vadd.f32 %v11788_v63, %v21621_v7  ;;  %v23493_v7 = vld [vmem:[#allocation5_spill] sm:$0xff]  ;;  %v15946_v63 = vld [vmem:[%s22354_s2 + $0x98] sm:$0xff] }
 0x956   :  { %v11790_v8 = vpop.f32.mrb[49].mxu1 }
 0x957   :  { %v11791_v41 = vadd.f32 %v11790_v8, %v11789_v46  ;;  %15655 = vrot.lane.b32.xlu0 %v15609_v5, %s15950_s14  ;;  %v15829_v46 = vpack.i.bf16 %v15946_v63, %v15945_v2 }
 0x959   :  { %v11792_v56 = vpop.f32.mrb[50].mxu1  ;;  %v9788_v12 = vadd.f32 %v11791_v41, %v9703_v47 }
 0x95a   :  { %v11793_v15 = vpop.f32.mrb[51].mxu1 }
 0x95b   :  { %v11794_v1 = vadd.f32 %v11793_v15, %v11792_v56  ;;  %15670 = vrot.lane.b32.xlu0 %v15624_v60, %s15950_s14 }
 0x95d   :  { %v11907_v9 = vpop.f32.mrb[52].mxu1  ;;  %v9793_v24 = vadd.f32 %v11794_v1, %v9708_v37  ;;  %v15573_v1 = vunpack.i.h.bf16 %v15571_v40 }
 0x95e   :  { %v9868_v3 = vadd.f32 %v11907_v9, %v9783_v11  ;;  %v9862_v16 = vpop.f32.mrb[53].mxu1  ;;  %v15576_v11 = vpop.permute.xlu0 %15575 }
 0x95f   :  { %v9863_v26 = vadd.f32 %v9862_v16, %v9778_v34  ;;  %15675 = vrot.lane.b32.xlu0 %v21602_v20, %s15950_s14  ;;  %v21783_v34 = vpop.permute.xlu1 %15580 }
 0x960   :  { %v9886_v45 = vadd.f32 %v9868_v3, %v23492_v10 }
 0x961   :  { %v9883_v58 = vadd.f32 %v9863_v26, %v23493_v7  ;;  %v11910_v31 = vpop.f32.mrb[54].mxu1 }
 0x962   :  { %v9898_v44 = vmax.f32 %v9886_v45, 0.0  ;;  %v9878_v4 = vadd.f32 %v11910_v31, %v9793_v24  ;;  %v9872_v47 = vpop.f32.mrb[55].mxu1  ;;  %v21798_v41 = vpop.permute.xlu0 %15585 }
 0x963   :  { %v9895_v57 = vmax.f32 %v9883_v58, 0.0  ;;  %v9873_v42 = vadd.f32 %v9872_v47, %v9788_v12  ;;  %v21794_v8 = vpop.permute.xlu1 %15590  ;;  %v15572_v12 = vunpack.i.l.bf16 %v15571_v40 }
 0x964   :  { %v21696_v17 = vmul.f32 %v9898_v44, %v23494_v53  ;;  %v9892_v28 = vadd.f32 %v9878_v4, %v23495_v29 }
 0x965   :  { %v21700_v0 = vmul.f32 %v9895_v57, %v23494_v53  ;;  %v9889_v32 = vadd.f32 %v9873_v42, %v23496_v51 }
 0x966   :  { %v9904_v38 = vmax.f32 %v9892_v28, 0.0  ;;  %v15689_v20 = vpack.i.bf16 %v21696_v17, %v21631_v50 }
 0x967   :  { %v9901_v5 = vmax.f32 %v9889_v32, 0.0  ;;  %v15684_v48 = vpack.i.bf16 %v21700_v0, %v21619_v13  ;;  %v15824_v37 = vpack.i.bf16 %v21696_v17, %v21700_v0  ;;  %v12829_v60 = vpack.c.bf16 %v21696_v17, %v21700_v0 }
 0x968   :  { %v21708_v43 = vmul.f32 %v9904_v38, %v23494_v53  ;;  %15690 = vrot.lane.b32.xlu0 %v15689_v20, %s15951_s19  ;;  %v15578_v38 = vunpack.i.h.bf16 %v15576_v11 }
 0x969   :  { %v21714_v55 = vmul.f32 %v9901_v5, %v23494_v53  ;;  %15685 = vrot.lane.b32.xlu1 %v15684_v48, %s15951_s19  ;;  %v11408_v53 = vld [vmem:[%s22356_s6 + $0x88] sm:$0xff] }
 0x96a   :  { %v15739_v54 = vpack.i.bf16 %v21708_v43, %v21657_v18 }
 0x96b   :  { %v15704_v49 = vpack.i.bf16 %v21714_v55, %v21646_v22  ;;  %v21723_v27 = vpack.i.bf16 %v21708_v43, %v21714_v55 }
 0x96d   :  { %15705 = vrot.lane.b32.xlu0 %v15704_v49, %s15951_s19  ;;  %15695 = vrot.lane.b32.xlu1 %v15644_v61, %s15950_s14  ;;  %v21754_v61 = vld [vmem:[%s22355_s4 + $0xc8] sm:$0xff] }
 0x96e   :  { %10975 = vmatprep.mubr.f32.mxu1 %v21754_v61 }
 0x971   :  { %15710 = vrot.lane.b32.xlu0 %v21665_v35, %s15951_s19  ;;  %15700 = vrot.lane.b32.xlu1 %v21637_v25, %s15951_s19 }
 0x975   :  { %15720 = vrot.lane.b32.xlu0 %v15689_v20, %s15952_s24  ;;  %15715 = vrot.lane.b32.xlu1 %v15684_v48, %s15952_s24 }
 0x979   :  { %15730 = vrot.lane.b32.xlu0 %v15704_v49, %s15952_s24  ;;  %15725 = vrot.lane.b32.xlu1 %v21637_v25, %s15952_s24 }
 0x97d   :  { %15735 = vrot.lane.b32.xlu0 %v21665_v35, %s15952_s24  ;;  %15740 = vrot.lane.b32.xlu1 %v15739_v54, %s15951_s19 }
 0x981   :  { %15750 = vrot.lane.b32.xlu0 %v15689_v20, %s15953_s25  ;;  %15745 = vrot.lane.b32.xlu1 %v15684_v48, %s15953_s25 }
 0x985   :  { %15765 = vrot.lane.b32.xlu0 %v15704_v49, %s15953_s25  ;;  %15755 = vrot.lane.b32.xlu1 %v15739_v54, %s15952_s24 }
 0x989   :  { %15775 = vrot.lane.b32.xlu0 %v21665_v35, %s15953_s25  ;;  %15760 = vrot.lane.b32.xlu1 %v21637_v25, %s15953_s25 }
 0x98d   :  { %15785 = vrot.lane.b32.xlu0 %v15689_v20, %s15954_s28  ;;  %15770 = vrot.lane.b32.xlu1 %v15739_v54, %s15953_s25  ;;  %v15577_v20 = vunpack.i.l.bf16 %v15576_v11 }
 0x991   :  { %15795 = vrot.lane.b32.xlu0 %v15704_v49, %s15954_s28  ;;  %15780 = vrot.lane.b32.xlu1 %v15684_v48, %s15954_s28 }
 0x995   :  { %15805 = vrot.lane.b32.xlu0 %v21665_v35, %s15954_s28  ;;  %15790 = vrot.lane.b32.xlu1 %v21637_v25, %s15954_s28  ;;  %v15943_v25 = vld [vmem:[%s22354_s2 + $0x20] sm:$0xff]  ;;  %v15944_v35 = vld [vmem:[%s22354_s2 + $0x48] sm:$0xff] }
 0x996   :  { %v15819_v52 = vpack.i.bf16 %v15944_v35, %v15943_v25  ;;  %v15583_v35 = vunpack.i.h.bf16 %v21783_v34 }
 0x999   :  { %15815 = vrot.lane.b32.xlu0 %v21723_v27, %s15947_s30  ;;  %15800 = vrot.lane.b32.xlu1 %v15739_v54, %s15954_s28  ;;  %v11407_v54 = vld [vmem:[%s22356_s6 + $0x80] sm:$0xff] }
 0x99d   :  { %15825 = vrot.lane.b32.xlu0 %v15824_v37, %s15948_s12  ;;  %15810 = vrot.lane.b32.xlu1 %v15824_v37, %s15947_s30 }
 0x9a1   :  { %15835 = vrot.lane.b32.xlu0 %v21723_v27, %s15948_s12  ;;  %15820 = vrot.lane.b32.xlu1 %v15819_v52, %s15951_s19 }
 0x9a5   :  { %15845 = vrot.lane.b32.xlu0 %v15824_v37, %s15949_s13  ;;  %15830 = vrot.lane.b32.xlu1 %v15829_v46, %s15951_s19 }
 0x9a9   :  { %15855 = vrot.lane.b32.xlu0 %v21723_v27, %s15949_s13  ;;  %15840 = vrot.lane.b32.xlu1 %v15819_v52, %s15952_s24  ;;  %v21803_v56 = vpop.permute.xlu1 %15595 }
 0x9aa   :  { %v15597_v15 = vunpack.i.l.bf16 %v21803_v56  ;;  %v15598_v9 = vunpack.i.h.bf16 %v21803_v56 }
 0x9ac   :  { %v10006_v10 = vsel %vm155_vm0, %v15572_v12, %v15597_v15  ;;  %v10007_v7 = vsel %vm155_vm0, %v15597_v15, %v15598_v9  ;;  %v15582_v12 = vunpack.i.l.bf16 %v21783_v34 }
 0x9ad   :  { %15865 = vrot.lane.b32.xlu0 %v15824_v37, %s15950_s14  ;;  %15850 = vrot.lane.b32.xlu1 %v15829_v46, %s15952_s24  ;;  %v21809_v24 = vpop.permute.xlu0 %15610  ;;  %v21811_v3 = vpop.permute.xlu1 %15600  ;;  %v11410_v37 = vld [vmem:[%s22356_s6 + $0x98] sm:$0xff] }
 0x9ae   :  { %v15613_v16 = vunpack.i.h.bf16 %v21809_v24  ;;  %v15612_v26 = vunpack.i.l.bf16 %v21809_v24  ;;  %v22694_v49 = vunpack.i.h.bf16 %v21811_v3 }
 0x9b0   :  { %v10009_v45 = vsel %vm155_vm0, %v15573_v1, %v15612_v26  ;;  %v10010_v58 = vsel %vm155_vm0, %v15612_v26, %v15613_v16 }
 0x9b1   :  { %15875 = vrot.lane.b32.xlu0 %v21723_v27, %s15950_s14  ;;  %15860 = vrot.lane.b32.xlu1 %v15819_v52, %s15953_s25  ;;  %v12759_v31 = vpack.c.bf16 %v10009_v45, %v10006_v10  ;;  %v21826_v44 = vpop.permute.xlu0 %15615  ;;  %v21828_v4 = vpop.permute.xlu1 %15605  ;;  %v12757_v47 = vpack.c.bf16 %v10010_v58, %v10007_v7  ;;  %v15602_v27 = vunpack.i.l.bf16 %v21811_v3  ;;  %v11409_v10 = vld [vmem:[%s22356_s6 + $0x90] sm:$0xff] }
 0x9b2   :  { %v22691_v29 = vunpack.i.h.bf16 %v21826_v44  ;;  %v15617_v28 = vunpack.i.l.bf16 %v21826_v44 }
 0x9b3   :  { %12758 = vmatprep.subr.bf16.mxu1 %v12757_v47  ;;  %v10107_v7 = vsel %vm256_vm1, %v15602_v27, %v22694_v49 }
 0x9b4   :  { %12760 = vmatpush1.bf16.msra.mxu1 %v12759_v31  ;;  %v10110_v2 = vsel %vm256_vm1, %v15617_v28, %v22691_v29  ;;  %v10109_v58 = vsel %vm256_vm1, %v15583_v35, %v15617_v28  ;;  %v22677_v28 = vunpack.i.h.bf16 %v21828_v4 }
 0x9b5   :  { %15885 = vrot.lane.b32.xlu0 %v15829_v46, %s15954_s28  ;;  %15870 = vrot.lane.b32.xlu1 %v15829_v46, %s15953_s25  ;;  %v21832_v57 = vpop.permute.xlu0 %15620  ;;  %v21834_v42 = vpop.permute.xlu1 %15645  ;;  %v12765_v34 = vpack.c.bf16 %v10110_v2, %v10107_v7 }
 0x9b6   :  { %v15647_v51 = vunpack.i.l.bf16 %v21834_v42  ;;  %v22702_v32 = vunpack.i.h.bf16 %v21834_v42  ;;  %v22676_v31 = vunpack.i.h.bf16 %v21832_v57  ;;  %v15622_v47 = vunpack.i.l.bf16 %v21832_v57 }
 0x9b7   :  { %v23507_v56 = vunpack.i.h.bf16 %v21834_v42 }
 0x9b8   :  { %v10016_v11 = vsel %vm155_vm0, %v15647_v51, %v22702_v32 }
 0x9b9   :  { %10886 = vperm.xlu0 %13327, %v11408_v53   ;;  %15880 = vrot.lane.b32.xlu1 %v15819_v52, %s15954_s28  ;;  %v21844_v5 = vpop.permute.xlu0 %15625  ;;  %v21846_v48 = vpop.permute.xlu1 %15650  ;;  %v10015_v52 = vsel %vm155_vm0, %v15578_v38, %v15647_v51  ;;  %v15593_v53 = vunpack.i.h.bf16 %v21794_v8 }
 0x9ba   :  { %v22704_v40 = vunpack.i.h.bf16 %v21844_v5  ;;  %v15627_v25 = vunpack.i.l.bf16 %v21844_v5  ;;  %v23506_v24 = vunpack.i.h.bf16 %v21844_v5  ;;  %v22161_v5 = vld [vmem:[%s22355_s4 + $0xe8] sm:$0xff] }
 0x9bc   :  { %v10012_v63 = vsel %vm155_vm0, %v15577_v20, %v15627_v25  ;;  %v10013_v46 = vsel %vm155_vm0, %v15627_v25, %v22704_v40  ;;  %v15588_v20 = vunpack.i.h.bf16 %v21798_v41 }
 0x9bd   :  { %10896 = vperm.xlu0 %13327, %v11410_v37   ;;  %10881 = vperm.xlu1 %13328, %v11407_v54   ;;  %v12763_v15 = vpack.c.bf16 %v10015_v52, %v10012_v63  ;;  %v15631_v1 = vpop.permute.xlu0 %15630  ;;  %v21871_v26 = vpop.permute.xlu1 %15660  ;;  %v12761_v45 = vpack.c.bf16 %v10016_v11, %v10013_v46  ;;  %v10106_v37 = vsel %vm256_vm1, %v15582_v12, %v15602_v27  ;;  %v15607_v54 = vunpack.i.l.bf16 %v21828_v4 }
 0x9be   :  { %v22680_v51 = vunpack.i.h.bf16 %v21871_v26  ;;  %v15662_v38 = vunpack.i.l.bf16 %v21871_v26  ;;  %v15587_v52 = vunpack.i.l.bf16 %v21798_v41  ;;  %v12767_v2 = vpack.c.bf16 %v10109_v58, %v10106_v37 }
 0x9bf   :  { %12762 = vmatprep.subr.bf16.mxu1 %v12761_v45  ;;  %v15592_v11 = vunpack.i.l.bf16 %v21794_v8  ;;  %v10210_v27 = vsel %vm357_vm2, %v15622_v47, %v22676_v31  ;;  %v10209_v45 = vsel %vm357_vm2, %v15593_v53, %v15622_v47  ;;  %v15632_v47 = vunpack.i.l.bf16 %v15631_v1 }
 0x9c0   :  { %12764 = vmatpush1.bf16.msra.mxu1 %v12763_v15  ;;  %v10115_v12 = vsel %vm256_vm1, %v15588_v20, %v15662_v38  ;;  %v10207_v20 = vsel %vm357_vm2, %v15607_v54, %v22677_v28  ;;  %v22682_v28 = vunpack.i.h.bf16 %v21846_v48 }
 0x9c1   :  { %10891 = vperm.xlu1 %13328, %v11409_v10   ;;  %v21889_v25 = vpop.permute.xlu0 %15635  ;;  %v15666_v35 = vpop.permute.xlu1 %15665  ;;  %12766 = vmatprep.subr.bf16.mxu1 %v12765_v34  ;;  %v10116_v10 = vsel %vm256_vm1, %v15662_v38, %v22680_v51  ;;  %v12773_v53 = vpack.c.bf16 %v10210_v27, %v10207_v20 }
 0x9c2   :  { %v22687_v63 = vunpack.i.h.bf16 %v21889_v25  ;;  %v15637_v46 = vunpack.i.l.bf16 %v21889_v25 }
 0x9c4   :  { %v10112_v15 = vsel %vm256_vm1, %v15587_v52, %v15637_v46  ;;  %12768 = vmatpush1.bf16.msra.mxu1 %v12767_v2  ;;  %v10113_v41 = vsel %vm256_vm1, %v15637_v46, %v22687_v63  ;;  %v15633_v46 = vunpack.i.h.bf16 %v15631_v1  ;;  %v15652_v1 = vunpack.i.l.bf16 %v21846_v48 }
 0x9c5   :  { %v12771_v8 = vpack.c.bf16 %v10115_v12, %v10112_v15  ;;  %v21907_v7 = vpop.permute.xlu0 %15640  ;;  %v21909_v58 = vpop.permute.xlu1 %15680  ;;  %v12769_v34 = vpack.c.bf16 %v10116_v10, %v10113_v41  ;;  %v10206_v12 = vsel %vm357_vm2, %v15592_v11, %v15607_v54  ;;  %v15668_v11 = vunpack.i.h.bf16 %v15666_v35 }
 0x9c6   :  { %v22679_v37 = vunpack.i.h.bf16 %v21907_v7  ;;  %v15642_v52 = vunpack.i.l.bf16 %v21907_v7  ;;  %v22678_v2 = vunpack.i.h.bf16 %v21909_v58  ;;  %v15682_v38 = vunpack.i.l.bf16 %v21909_v58 }
 0x9c7   :  { %12770 = vmatprep.subr.bf16.mxu1 %v12769_v34  ;;  %v12775_v10 = vpack.c.bf16 %v10209_v45, %v10206_v12 }
 0x9c8   :  { %12772 = vmatpush1.bf16.msra.mxu1 %v12771_v8  ;;  %v10213_v15 = vsel %vm357_vm2, %v15642_v52, %v22679_v37  ;;  %v10216_v41 = vsel %vm357_vm2, %v15682_v38, %v22678_v2  ;;  %v10212_v8 = vsel %vm357_vm2, %v15632_v47, %v15642_v52  ;;  %v10215_v34 = vsel %vm357_vm2, %v15633_v46, %v15682_v38 }
 0x9c9   :  { %v21925_v31 = vpop.permute.xlu0 %15655  ;;  %12774 = vmatprep.subr.bf16.mxu1 %v12773_v53  ;;  %v12777_v20 = vpack.c.bf16 %v10216_v41, %v10213_v15  ;;  %v15667_v53 = vunpack.i.l.bf16 %v15666_v35  ;;  %v12779_v12 = vpack.c.bf16 %v10215_v34, %v10212_v8  ;;  %v10307_v2 = vsel %vm458_vm3, %v15652_v1, %v22682_v28 }
 0x9ca   :  { %v22681_v27 = vunpack.i.h.bf16 %v21925_v31  ;;  %v15657_v54 = vunpack.i.l.bf16 %v21925_v31 }
 0x9cb   :  { %v10306_v38 = vsel %vm458_vm3, %v15667_v53, %v15652_v1 }
 0x9cc   :  { %12776 = vmatpush1.bf16.msra.mxu1 %v12775_v10  ;;  %v10310_v45 = vsel %vm458_vm3, %v15657_v54, %v22681_v27  ;;  %v10309_v37 = vsel %vm458_vm3, %v15668_v11, %v15657_v54 }
 0x9cd   :  { %12778 = vmatprep.subr.bf16.mxu1 %v12777_v20  ;;  %v21940_v51 = vpop.permute.xlu0 %15670  ;;  %v12781_v52 = vpack.c.bf16 %v10310_v45, %v10307_v2  ;;  %v12783_v46 = vpack.c.bf16 %v10309_v37, %v10306_v38 }
 0x9ce   :  { %v22684_v41 = vunpack.i.h.bf16 %v21940_v51  ;;  %v15672_v10 = vunpack.i.l.bf16 %v21940_v51 }
 0x9d0   :  { %12780 = vmatpush1.bf16.msra.mxu1 %v12779_v12  ;;  %v10313_v45 = vsel %vm458_vm3, %v15672_v10, %v22684_v41 }
 0x9d1   :  { %12782 = vmatprep.subr.bf16.mxu1 %v12781_v52  ;;  %v15676_v47 = vpop.permute.xlu0 %15675 }
 0x9d2   :  { %v15677_v8 = vunpack.i.l.bf16 %v15676_v47  ;;  %v15678_v2 = vunpack.i.h.bf16 %v15676_v47 }
 0x9d4   :  { %12784 = vmatpush1.bf16.msra.mxu1 %v12783_v46  ;;  %v10312_v34 = vsel %vm458_vm3, %v15677_v8, %v15672_v10 }
 0x9da   :  { %v21943_v15 = vpop.permute.xlu0 %15690 }
 0x9db   :  { %v21945_v35 = vpop.permute.xlu1 %15685  ;;  %v22700_v47 = vunpack.i.h.bf16 %v21943_v15  ;;  %v15692_v27 = vunpack.i.l.bf16 %v21943_v15 }
 0x9dc   :  { %v22701_v8 = vunpack.i.h.bf16 %v21945_v35 }
 0x9df   :  { %v21949_v54 = vpop.permute.xlu0 %15705  ;;  %v21951_v11 = vpop.permute.xlu1 %15695 }
 0x9e0   :  { %v22683_v1 = vunpack.i.h.bf16 %v21951_v11  ;;  %v15697_v37 = vunpack.i.l.bf16 %v21951_v11  ;;  %v22688_v14 = vunpack.i.h.bf16 %v21949_v54 }
 0x9e2   :  { %v10315_v20 = vsel %vm458_vm3, %v15678_v2, %v15697_v37  ;;  %v10316_v53 = vsel %vm458_vm3, %v15697_v37, %v22683_v1  ;;  %v15687_v2 = vunpack.i.l.bf16 %v21945_v35 }
 0x9e3   :  { %v12787_v12 = vpack.c.bf16 %v10315_v20, %v10312_v34  ;;  %v15711_v52 = vpop.permute.xlu0 %15710  ;;  %v15701_v38 = vpop.permute.xlu1 %15700  ;;  %v12785_v46 = vpack.c.bf16 %v10316_v53, %v10313_v45  ;;  %v10434_v45 = vsel %vm583_vm4, %v15692_v27, %v22700_v47 }
 0x9e4   :  { %v15703_v37 = vunpack.i.h.bf16 %v15701_v38  ;;  %v15702_v34 = vunpack.i.l.bf16 %v15701_v38  ;;  %v10431_v20 = vsel %vm583_vm4, %v15687_v2, %v22701_v8  ;;  %v15712_v41 = vunpack.i.l.bf16 %v15711_v52 }
 0x9e5   :  { %12786 = vmatprep.subr.bf16.mxu1 %v12785_v46 }
 0x9e6   :  { %12788 = vmatpush1.bf16.msra.mxu1 %v12787_v12  ;;  %v10433_v13 = vsel %vm583_vm4, %v15703_v37, %v15692_v27  ;;  %v10430_v50 = vsel %vm583_vm4, %v15702_v34, %v15687_v2 }
 0x9e7   :  { %v21967_v28 = vpop.permute.xlu0 %15720  ;;  %v21969_v10 = vpop.permute.xlu1 %15715  ;;  %12790 = vmatprep.subr.bf16.mxu1 %v12789_v39  ;;  %v12797_v39 = vpack.c.bf16 %v10434_v45, %v10431_v20  ;;  %v12799_v27 = vpack.c.bf16 %v10433_v13, %v10430_v50 }
 0x9e8   :  { %v22686_v38 = vunpack.i.h.bf16 %v21967_v28  ;;  %v15722_v46 = vunpack.i.l.bf16 %v21967_v28  ;;  %v22685_v1 = vunpack.i.h.bf16 %v21969_v10  ;;  %v15717_v59 = vunpack.i.l.bf16 %v21969_v10 }
 0x9ea   :  { %12792 = vmatpush1.bf16.msra.mxu1 %v12791_v21  ;;  %v15707_v21 = vunpack.i.l.bf16 %v21949_v54  ;;  %v10531_v45 = vsel %vm684_vm5, %v15717_v59, %v22685_v1  ;;  %v10534_v23 = vsel %vm684_vm5, %v15722_v46, %v22686_v38 }
 0x9eb   :  { %v21983_v53 = vpop.permute.xlu0 %15730  ;;  %v15726_v12 = vpop.permute.xlu1 %15725  ;;  %12794 = vmatprep.subr.bf16.mxu1 %v12793_v30  ;;  %v15713_v30 = vunpack.i.h.bf16 %v15711_v52 }
 0x9ec   :  { %v15728_v34 = vunpack.i.h.bf16 %v15726_v12  ;;  %v15727_v20 = vunpack.i.l.bf16 %v15726_v12  ;;  %v10436_v33 = vsel %vm583_vm4, %v15712_v41, %v15707_v21  ;;  %v10437_v52 = vsel %vm583_vm4, %v15707_v21, %v22688_v14 }
 0x9ed   :  { %v22690_v38 = vunpack.i.h.bf16 %v21983_v53  ;;  %v12805_v41 = vpack.c.bf16 %v10534_v23, %v10531_v45 }
 0x9ee   :  { %12796 = vmatpush1.bf16.msra.mxu1 %v12795_v6  ;;  %v10530_v63 = vsel %vm684_vm5, %v15727_v20, %v15717_v59 }
 0x9ef   :  { %v15736_v22 = vpop.permute.xlu0 %15735  ;;  %v21999_v18 = vpop.permute.xlu1 %15740  ;;  %12798 = vmatprep.subr.bf16.mxu1 %v12797_v39 }
 0x9f0   :  { %v22689_v2 = vunpack.i.h.bf16 %v21999_v18  ;;  %v15742_v37 = vunpack.i.l.bf16 %v21999_v18  ;;  %v15737_v21 = vunpack.i.l.bf16 %v15736_v22 }
 0x9f2   :  { %v10439_v6 = vsel %vm583_vm4, %v15713_v30, %v15742_v37  ;;  %12800 = vmatpush1.bf16.msra.mxu1 %v12799_v27  ;;  %v10440_v12 = vsel %vm583_vm4, %v15742_v37, %v22689_v2  ;;  %v15732_v30 = vunpack.i.l.bf16 %v21983_v53  ;;  %v10533_v27 = vsel %vm684_vm5, %v15728_v34, %v15722_v46 }
 0x9f3   :  { %v12803_v13 = vpack.c.bf16 %v10439_v6, %v10436_v33  ;;  %v22017_v50 = vpop.permute.xlu0 %15750  ;;  %v22019_v39 = vpop.permute.xlu1 %15745  ;;  %v12801_v1 = vpack.c.bf16 %v10440_v12, %v10437_v52  ;;  %v12807_v23 = vpack.c.bf16 %v10533_v27, %v10530_v63  ;;  %v15738_v46 = vunpack.i.h.bf16 %v15736_v22 }
 0x9f4   :  { %v22695_v14 = vunpack.i.h.bf16 %v22017_v50  ;;  %v15752_v37 = vunpack.i.l.bf16 %v22017_v50  ;;  %v22693_v33 = vunpack.i.h.bf16 %v22019_v39  ;;  %v15747_v6 = vunpack.i.l.bf16 %v22019_v39 }
 0x9f5   :  { %12802 = vmatprep.subr.bf16.mxu1 %v12801_v1  ;;  %v10536_v34 = vsel %vm684_vm5, %v15737_v21, %v15732_v30  ;;  %v10537_v20 = vsel %vm684_vm5, %v15732_v30, %v22690_v38 }
 0x9f6   :  { %12804 = vmatpush1.bf16.msra.mxu1 %v12803_v13  ;;  %v10631_v63 = vsel %vm785_vm6, %v15747_v6, %v22693_v33  ;;  %v10634_v22 = vsel %vm785_vm6, %v15752_v37, %v22695_v14 }
 0x9f7   :  { %v22029_v52 = vpop.permute.xlu0 %15765  ;;  %v22031_v45 = vpop.permute.xlu1 %15755  ;;  %12806 = vmatprep.subr.bf16.mxu1 %v12805_v41 }
 0x9f8   :  { %v22692_v59 = vunpack.i.h.bf16 %v22031_v45  ;;  %v15757_v1 = vunpack.i.l.bf16 %v22031_v45 }
 0x9fa   :  { %v10539_v12 = vsel %vm684_vm5, %v15738_v46, %v15757_v1  ;;  %12808 = vmatpush1.bf16.msra.mxu1 %v12807_v23  ;;  %v10540_v13 = vsel %vm684_vm5, %v15757_v1, %v22692_v59  ;;  %v22699_v23 = vunpack.i.h.bf16 %v22029_v52  ;;  %v15767_v46 = vunpack.i.l.bf16 %v22029_v52 }
 0x9fb   :  { %v12811_v41 = vpack.c.bf16 %v10539_v12, %v10536_v34  ;;  %v15776_v27 = vpop.permute.xlu0 %15775  ;;  %v15761_v21 = vpop.permute.xlu1 %15760  ;;  %v12809_v2 = vpack.c.bf16 %v10540_v13, %v10537_v20  ;;  %v12813_v1 = vpack.c.bf16 %v10634_v22, %v10631_v63 }
 0x9fc   :  { %v15763_v30 = vunpack.i.h.bf16 %v15761_v21  ;;  %v15762_v38 = vunpack.i.l.bf16 %v15761_v21  ;;  %v15777_v29 = vunpack.i.l.bf16 %v15776_v27  ;;  %v15778_v20 = vunpack.i.h.bf16 %v15776_v27 }
 0x9fd   :  { %12810 = vmatprep.subr.bf16.mxu1 %v12809_v2  ;;  %v10637_v2 = vsel %vm785_vm6, %v15767_v46, %v22699_v23 }
 0x9fe   :  { %v10633_v59 = vsel %vm785_vm6, %v15763_v30, %v15752_v37  ;;  %v10630_v33 = vsel %vm785_vm6, %v15762_v38, %v15747_v6  ;;  %12812 = vmatpush1.bf16.msra.mxu1 %v12811_v41  ;;  %v10636_v21 = vsel %vm785_vm6, %v15777_v29, %v15767_v46 }
 0x9ff   :  { %v12815_v49 = vpack.c.bf16 %v10633_v59, %v10630_v33  ;;  %v22053_v14 = vpop.permute.xlu0 %15785  ;;  %v22055_v34 = vpop.permute.xlu1 %15770  ;;  %12814 = vmatprep.subr.bf16.mxu1 %v12813_v1 }
 0xa00   :  { %v22698_v12 = vunpack.i.h.bf16 %v22055_v34  ;;  %v15772_v13 = vunpack.i.l.bf16 %v22055_v34  ;;  %v22696_v38 = vunpack.i.h.bf16 %v22053_v14  ;;  %v15787_v37 = vunpack.i.l.bf16 %v22053_v14 }
 0xa02   :  { %v10639_v33 = vsel %vm785_vm6, %v15778_v20, %v15772_v13  ;;  %12816 = vmatpush1.bf16.msra.mxu1 %v12815_v49  ;;  %v10640_v6 = vsel %vm785_vm6, %v15772_v13, %v22698_v12  ;;  %v22078_v49 = vld [vmem:[%s22355_s4 + $0xc0] sm:$0xff]  ;;  %v10734_v46 = vsel %vm23499_vm8, %v15787_v37, %v22696_v38 }
 0xa03   :  { %v12819_v59 = vpack.c.bf16 %v10639_v33, %v10636_v21  ;;  %v22069_v63 = vpop.permute.xlu0 %15795  ;;  %v22071_v22 = vpop.permute.xlu1 %15780  ;;  %v12817_v29 = vpack.c.bf16 %v10640_v6, %v10637_v2  ;;  %v22089_v21 = vld [vmem:[%s22355_s4 + $0xe0] sm:$0xff] }
 0xa04   :  { %v22697_v41 = vunpack.i.h.bf16 %v22071_v22  ;;  %v15782_v27 = vunpack.i.l.bf16 %v22071_v22 }
 0xa05   :  { %12818 = vmatprep.subr.bf16.mxu1 %v12817_v29  ;;  %v22098_v29 = vld [vmem:[%s22355_s4 + $0xd8] sm:$0xff] }
 0xa06   :  { %12820 = vmatpush1.bf16.msra.mxu1 %v12819_v59  ;;  %v10731_v30 = vsel %vm23498_vm13, %v15782_v27, %v22697_v41 }
 0xa07   :  { %v15806_v1 = vpop.permute.xlu0 %15805  ;;  %v15791_v20 = vpop.permute.xlu1 %15790  ;;  %v12821_v13 = vpack.c.bf16 %v10734_v46, %v10731_v30  ;;  %v15798_v30 = vunpack.i.h.bf16 %v22069_v63 }
 0xa08   :  { %v15793_v2 = vunpack.i.h.bf16 %v15791_v20  ;;  %v15792_v33 = vunpack.i.l.bf16 %v15791_v20  ;;  %v15807_v46 = vunpack.i.l.bf16 %v15806_v1 }
 0xa09   :  { %10976 = vmatmul.mubr.f32.vlgmr.msra.gmra.mrb[56].mxu1 %v22078_v49  ;;  %12822 = vmatprep.subr.bf16.mxu1 %v12821_v13  ;;  %v15808_v13 = vunpack.i.h.bf16 %v15806_v1 }
 0xa0a   :  { %v10733_v6 = vsel %vm23500_vm9, %v15793_v2, %v15787_v37  ;;  %v10730_v59 = vsel %vm23501_vm14, %v15792_v33, %v15782_v27  ;;  %10981 = vmatprep.mubr.f32.mxu1 %v22089_v21  ;;  %v22106_v37 = vld [vmem:[%s22355_s4 + $0xf8] sm:$0xff]  ;;  %v15797_v27 = vunpack.i.l.bf16 %v22069_v63 }
 0xa0b   :  { %v12823_v38 = vpack.c.bf16 %v10733_v6, %v10730_v59  ;;  %v15816_v41 = vpop.permute.xlu0 %15815  ;;  %v22101_v20 = vpop.permute.xlu1 %15800  ;;  %v22117_v6 = vld [vmem:[%s22355_s4 + $0xf0] sm:$0xff] }
 0xa0c   :  { %v22703_v2 = vunpack.i.h.bf16 %v22101_v20  ;;  %v15802_v33 = vunpack.i.l.bf16 %v22101_v20  ;;  %v10736_v59 = vsel %vm23503_vm10, %v15807_v46, %v15797_v27  ;;  %v10737_v47 = vsel %vm23505_vm12, %v15797_v27, %v15798_v30 }
 0xa0d   :  { %10982 = vmatmul.mubr.f32.gmra.mrb[58].mxu1 %v22098_v29 }
 0xa0e   :  { %v10739_v12 = vsel %vm23502_vm7, %v15808_v13, %v15802_v33  ;;  %12824 = vmatpush1.bf16.msra.mxu1 %v12823_v38  ;;  %10987 = vmatprep.mubr.f32.mxu1 %v22106_v37  ;;  %v10740_v62 = vsel %vm23504_vm11, %v15802_v33, %v22703_v2  ;;  %v22126_v13 = vld [vmem:[%s22355_s4 + $0x110] sm:$0xff]  ;;  %v22136_v33 = vld [vmem:[%s22355_s4 + $0x108] sm:$0xff] }
 0xa0f   :  { %v15826_v23 = vpop.permute.xlu0 %15825  ;;  %v15811_v1 = vpop.permute.xlu1 %15810  ;;  %v12827_v38 = vpack.c.bf16 %v10739_v12, %v10736_v59  ;;  %v12825_v46 = vpack.c.bf16 %v10740_v62, %v10737_v47  ;;  %v15818_v12 = vunpack.i.h.bf16 %v15816_v41  ;;  %v15817_v59 = vunpack.i.l.bf16 %v15816_v41 }
 0xa10   :  { %v15813_v8 = vunpack.i.h.bf16 %v15811_v1  ;;  %v15812_v32 = vunpack.i.l.bf16 %v15811_v1  ;;  %v15827_v17 = vunpack.i.l.bf16 %v15826_v23 }
 0xa11   :  { %10988 = vmatmul.mubr.f32.gmra.mrb[60].mxu1 %v22117_v6  ;;  %12826 = vmatprep.subr.bf16.mxu1 %v12825_v46 }
 0xa12   :  { %10993 = vmatprep.mubr.f32.mxu1 %v22126_v13  ;;  %12828 = vmatpush1.bf16.msra.mxu1 %v12827_v38  ;;  %v10011_v27 = vsel %vm155_vm0, %v15613_v16, %v15813_v8  ;;  %v10008_v62 = vsel %vm155_vm0, %v15598_v9, %v15812_v32  ;;  %v10014_v16 = vsel %vm155_vm0, %v23506_v24, %v15817_v59  ;;  %v15828_v32 = vunpack.i.h.bf16 %v15826_v23 }
 0xa13   :  { %v15836_v2 = vpop.permute.xlu0 %15835  ;;  %v15821_v40 = vpop.permute.xlu1 %15820  ;;  %12830 = vmatprep.subr.bf16.mxu1 %v12829_v60  ;;  %v12831_v46 = vpack.c.bf16 %v10011_v27, %v10008_v62  ;;  %v10017_v9 = vsel %vm155_vm0, %v23507_v56, %v15818_v12  ;;  %v23509_v8 = vunpack.i.h.bf16 %v21943_v15  ;;  %vm23513_vm0 = vmmov %vm23497_vm15 }
 0xa14   :  { %v15823_v47 = vunpack.i.h.bf16 %v15821_v40  ;;  %v15822_v1 = vunpack.i.l.bf16 %v15821_v40  ;;  %v23508_v40 = vunpack.i.h.bf16 %v21945_v35  ;;  %v12835_v27 = vpack.c.bf16 %v10017_v9, %v10014_v16  ;;  %vm23518_vm13 = vmmov %vm23513_vm0 }
 0xa15   :  { %10994 = vmatmul.mubr.f32.gmra.mrb[62].mxu1 %v22136_v33  ;;  %v15837_v62 = vunpack.i.l.bf16 %v15836_v2  ;;  %v23512_v35 = vunpack.i.h.bf16 %v21826_v44  ;;  %v15838_v24 = vunpack.i.h.bf16 %v15836_v2  ;;  %v23515_v2 = vunpack.i.h.bf16 %v21999_v18  ;;  %vm23544_vm9 = vmmov %vm23513_vm0 }
 0xa16   :  { %11064 = vmatprep.mubr.f32.mxu1 %v23399_v19  ;;  %v10432_v42 = vsel %vm583_vm4, %v23508_v40, %v15822_v1  ;;  %v10435_v23 = vsel %vm583_vm4, %v23509_v8, %v15823_v47 }
 0xa17   :  { %v15846_v38 = vpop.permute.xlu0 %15845  ;;  %v15831_v41 = vpop.permute.xlu1 %15830  ;;  %v10111_v1 = vsel %vm256_vm1, %v23512_v35, %v15828_v32  ;;  %v12837_v15 = vpack.c.bf16 %v10435_v23, %v10432_v42  ;;  %v23517_v42 = vunpack.i.h.bf16 %v21871_v26  ;;  %v23519_v26 = vunpack.i.h.bf16 %v21969_v10 }
 0xa18   :  { %v15833_v0 = vunpack.i.h.bf16 %v15831_v41  ;;  %v15832_v60 = vunpack.i.l.bf16 %v15831_v41  ;;  %v23511_v41 = vunpack.i.h.bf16 %v21811_v3  ;;  %v23514_v3 = vunpack.i.h.bf16 %v21949_v54 }
 0xa19   :  { %11411 = vmatmul.mubr.msk.f32.vlgmr.msra.gmra.mrb[56].mxu1 %vm23497_vm15, %v21771_v36  ;;  %v23510_v36 = vpack.c.bf16 %v21708_v43, %v21714_v55  ;;  %v22184_v55 = vld [vmem:[%s22355_s4 + $0x100] sm:$0xff]  ;;  %v10117_v8 = vsel %vm256_vm1, %v23517_v42, %v15838_v24  ;;  %v15848_v23 = vunpack.i.h.bf16 %v15846_v38  ;;  %v15847_v54 = vunpack.i.l.bf16 %v15846_v38 }
 0xa1a   :  { %12832 = vmatpush3.bf16.msra.mxu1 %v12831_v46  ;;  %11070 = vmatprep.mubr.f32.mxu1 %v23399_v19  ;;  %v10108_v46 = vsel %vm256_vm1, %v23511_v41, %v15827_v17  ;;  %v10438_v44 = vsel %vm583_vm4, %v23514_v3, %v15832_v60  ;;  %v10441_v16 = vsel %vm583_vm4, %v23515_v2, %v15833_v0  ;;  %v23516_v17 = vunpack.i.h.bf16 %v21889_v25  ;;  %v22204_v25 = vld [vmem:[%s22355_s4 + $0x118] sm:$0xff] }
 0xa1b   :  { %12834 = vmatprep.subr.bf16.mxu1 %v23510_v36  ;;  %v15856_v12 = vpop.permute.xlu0 %15855  ;;  %v15841_v59 = vpop.permute.xlu1 %15840  ;;  %v12839_v32 = vpack.c.bf16 %v10111_v1, %v10108_v46  ;;  %v12841_v18 = vpack.c.bf16 %v10441_v16, %v10438_v44  ;;  %v23520_v38 = vunpack.i.h.bf16 %v21967_v28  ;;  %v23522_v24 = vunpack.i.h.bf16 %v21832_v57 }
 0xa1c   :  { %v15843_v47 = vunpack.i.h.bf16 %v15841_v59  ;;  %v15842_v43 = vunpack.i.l.bf16 %v15841_v59  ;;  %v10114_v40 = vsel %vm256_vm1, %v23516_v17, %v15837_v62  ;;  %v15858_v46 = vunpack.i.h.bf16 %v15856_v12  ;;  %vm23523_vm1 = vmmov %vm23513_vm0 }
 0xa1d   :  { %11412 = vmatmul.mubr.msk.f32.gmra.mrb[58].mxu1 %vm23513_vm0, %v22161_v5  ;;  %v12843_v41 = vpack.c.bf16 %v10117_v8, %v10114_v40  ;;  %v15857_v35 = vunpack.i.l.bf16 %v15856_v12  ;;  %v10211_v10 = vsel %vm357_vm2, %v23522_v24, %v15848_v23  ;;  %v23525_v12 = vunpack.i.h.bf16 %v22031_v45 }
 0xa1e   :  { %12836 = vmatpush3.bf16.msra.mxu1 %v12835_v27  ;;  %11076 = vmatprep.mubr.f32.mxu1 %v23399_v19  ;;  %v10532_v36 = vsel %vm684_vm5, %v23519_v26, %v15842_v43  ;;  %v10535_v59 = vsel %vm684_vm5, %v23520_v38, %v15843_v47  ;;  %v23524_v43 = vunpack.i.h.bf16 %v21983_v53  ;;  %v23527_v17 = vunpack.i.h.bf16 %v21909_v58 }
 0xa1f   :  { %12838 = vmatprep.subr.bf16.mxu1 %v12837_v15  ;;  %v15866_v56 = vpop.permute.xlu0 %15865  ;;  %v15851_v9 = vpop.permute.xlu1 %15850  ;;  %v12845_v28 = vpack.c.bf16 %v10535_v59, %v10532_v36  ;;  %v23530_v58 = vunpack.i.h.bf16 %v21846_v48  ;;  %v23531_v36 = vunpack.i.h.bf16 %v21925_v31  ;;  %v23536_v24 = vunpack.i.h.bf16 %v22053_v14 }
 0xa20   :  { %v15853_v60 = vunpack.i.h.bf16 %v15851_v9  ;;  %v15852_v0 = vunpack.i.l.bf16 %v15851_v9  ;;  %v15867_v44 = vunpack.i.l.bf16 %v15866_v56  ;;  %v23526_v9 = vunpack.i.h.bf16 %v21907_v7 }
 0xa21   :  { %11413 = vmatmul.mubr.msk.f32.gmra.mrb[60].mxu1 %vm23518_vm13, %v22184_v55  ;;  %v10217_v53 = vsel %vm357_vm2, %v23527_v17, %v15858_v46  ;;  %v15868_v40 = vunpack.i.h.bf16 %v15866_v56 }
 0xa22   :  { %12840 = vmatpush3.bf16.msra.mxu1 %v12839_v32  ;;  %11082 = vmatprep.mubr.f32.mxu1 %v23399_v19  ;;  %v23521_v19 = vunpack.i.h.bf16 %v21828_v4  ;;  %v10538_v3 = vsel %vm684_vm5, %v23524_v43, %v15852_v0  ;;  %v10541_v4 = vsel %vm684_vm5, %v23525_v12, %v15853_v60  ;;  %v10214_v32 = vsel %vm357_vm2, %v23526_v9, %v15857_v35 }
 0xa23   :  { %12842 = vmatprep.subr.bf16.mxu1 %v12841_v18  ;;  %v15876_v27 = vpop.permute.xlu0 %15875  ;;  %v15861_v62 = vpop.permute.xlu1 %15860  ;;  %v12849_v8 = vpack.c.bf16 %v10541_v4, %v10538_v3  ;;  %v23528_v18 = vunpack.i.h.bf16 %v22019_v39  ;;  %v23529_v60 = vunpack.i.h.bf16 %v22017_v50  ;;  %v12851_v0 = vpack.c.bf16 %v10217_v53, %v10214_v32  ;;  %v11265_v53 = vld [vmem:[%s22360_s1 + $0x30] sm:$0xff] }
 0xa24   :  { %v10208_v1 = vsel %vm357_vm2, %v23521_v19, %v15847_v54  ;;  %v15863_v15 = vunpack.i.h.bf16 %v15861_v62  ;;  %v15862_v47 = vunpack.i.l.bf16 %v15861_v62  ;;  %v10308_v26 = vsel %vm458_vm3, %v23530_v58, %v15867_v44  ;;  %vm23535_vm2 = vmmov %vm23502_vm7  ;;  %v11263_v44 = vld [vmem:[%s22360_s1 + $0x20] sm:$0xff] }
 0xa25   :  { %11414 = vmatmul.mubr.msk.f32.gmra.mrb[62].mxu1 %vm23523_vm1, %v22204_v25  ;;  %v12847_v16 = vpack.c.bf16 %v10211_v10, %v10208_v1  ;;  %v10311_v38 = vsel %vm458_vm3, %v23531_v36, %v15868_v40  ;;  %v15878_v59 = vunpack.i.h.bf16 %v15876_v27  ;;  %v23532_v50 = vunpack.i.h.bf16 %v22029_v52  ;;  %vm23537_vm4 = vmmov %vm23535_vm2  ;;  %v11269_v36 = vld [vmem:[%s22360_s1 + $0x50] sm:$0xff] }
 0xa26   :  { %12844 = vmatpush3.bf16.msra.mxu1 %v12843_v41  ;;  %11153 = vmatprep.mubr.f32.mxu1 %v21754_v61  ;;  %v10632_v61 = vsel %vm785_vm6, %v23528_v18, %v15862_v47  ;;  %v10635_v7 = vsel %vm785_vm6, %v23529_v60, %v15863_v15  ;;  %v15877_v41 = vunpack.i.l.bf16 %v15876_v27  ;;  %v23533_v19 = vunpack.i.h.bf16 %v22055_v34  ;;  %vm23538_vm5 = vmmov %vm23535_vm2 }
 0xa27   :  { %12846 = vmatprep.subr.bf16.mxu1 %v12845_v28  ;;  %v15886_v57 = vpop.permute.xlu0 %15885  ;;  %v15871_v2 = vpop.permute.xlu1 %15870  ;;  %v12853_v46 = vpack.c.bf16 %v10635_v7, %v10632_v61  ;;  %v23534_v1 = vunpack.i.h.bf16 %v22071_v22  ;;  %v23539_v52 = vunpack.i.h.bf16 %v22101_v20  ;;  %vm23540_vm8 = vmmov %vm23535_vm2  ;;  %v12855_v15 = vpack.c.bf16 %v10311_v38, %v10308_v26 }
 0xa28   :  { %v15873_v42 = vunpack.i.h.bf16 %v15871_v2  ;;  %v15872_v45 = vunpack.i.l.bf16 %v15871_v2  ;;  %v15888_v23 = vunpack.i.h.bf16 %v15886_v57  ;;  %v15887_v54 = vunpack.i.l.bf16 %v15886_v57 }
 0xa29   :  { %v23541_v47 = vunpack.i.h.bf16 %v21940_v51  ;;  %v23542_v43 = vunpack.i.h.bf16 %v21951_v11 }
 0xa2a   :  { %12848 = vmatpush3.bf16.msra.mxu1 %v12847_v16  ;;  %v10638_v35 = vsel %vm785_vm6, %v23532_v50, %v15872_v45  ;;  %v10641_v48 = vsel %vm785_vm6, %v23533_v19, %v15873_v42  ;;  %v10738_v27 = vsel %vm23538_vm5, %v15798_v30, %v15887_v54  ;;  %v10741_v28 = vsel %vm23540_vm8, %v23539_v52, %v15888_v23  ;;  %vm23543_vm6 = vmmov %vm23513_vm0  ;;  %v11261_v52 = vld [vmem:[%s22360_s1 + $0x10] sm:$0xff] }
 0xa2b   :  { %12850 = vmatprep.subr.bf16.mxu1 %v12849_v8  ;;  %v15881_v56 = vpop.permute.xlu1 %15880  ;;  %v10314_v22 = vsel %vm458_vm3, %v23541_v47, %v15877_v41  ;;  %v10317_v14 = vsel %vm458_vm3, %v23542_v43, %v15878_v59  ;;  %v12857_v3 = vpack.c.bf16 %v10641_v48, %v10638_v35  ;;  %v12865_v63 = vpack.c.bf16 %v10741_v28, %v10738_v27  ;;  %vm23545_vm3 = vmmov %vm23513_vm0  ;;  %v11266_v8 = vld [vmem:[%s22360_s1 + $0x38] sm:$0xff] }
 0xa2c   :  { %v15883_v62 = vunpack.i.h.bf16 %v15881_v56  ;;  %v15882_v39 = vunpack.i.l.bf16 %v15881_v56  ;;  %v12859_v30 = vpack.c.bf16 %v10317_v14, %v10314_v22  ;;  %v11264_v14 = vld [vmem:[%s22360_s1 + $0x28] sm:$0xff] }
 0xa2e   :  { %12852 = vmatpush3.bf16.msra.mxu1 %v12851_v0  ;;  %v10732_v31 = vsel %vm23535_vm2, %v23534_v1, %v15882_v39  ;;  %v10735_v10 = vsel %vm23537_vm4, %v23536_v24, %v15883_v62  ;;  %v11268_v0 = vld [vmem:[%s22360_s1 + $0x48] sm:$0xff] }
 0xa2f   :  { %12854 = vmatprep.subr.bf16.mxu1 %v12853_v46  ;;  %v12861_v34 = vpack.c.bf16 %v10735_v10, %v10732_v31 }
 0xa31   :  { %12862 = vmatprep.subr.bf16.mxu0 %v12861_v34 }
 0xa32   :  { %12856 = vmatpush3.bf16.msra.mxu1 %v12855_v15  ;;  %12864 = vmatpush3.bf16.msra.mxu0 %v12861_v34 }
 0xa33   :  { %12858 = vmatprep.subr.bf16.mxu1 %v12857_v3  ;;  %12866 = vmatprep.subr.bf16.mxu0 %v12865_v63 }
 0xa36   :  { %12860 = vmatpush3.bf16.msra.mxu1 %v12859_v30  ;;  %12868 = vmatpush3.bf16.msra.mxu0 %v12865_v63 }
 0xa39   :  { %11154 = vmatmul.mubr.f32.vlgmr.msra.gmra.mrb[64].mxu1 %v22078_v49  ;;  %11920 = vmatmul.mubr.msk.f32.vlgmr.msra.gmra.mrb[56].mxu0 %vm23543_vm6, %v22161_v5  ;;  %v11259_v49 = vld [vmem:[%s22360_s1] sm:$0xff] }
 0xa3a   :  { %11158 = vmatprep.mubr.f32.mxu1 %v22089_v21  ;;  %11922 = vmatprep.mubr.msk.f32.mxu0 %vm23544_vm9, %v22184_v55  ;;  %v10887_v55 = vpop.permute.xlu0 %10886 }
 0xa3c   :  { %v10882_v51 = vpop.permute.xlu1 %10881 }
 0xa3d   :  { %11159 = vmatmul.mubr.f32.gmra.mrb[66].mxu1 %v22098_v29  ;;  %11923 = vmatmul.mubr.msk.f32.gmra.mrb[58].mxu0 %vm23545_vm3, %v22204_v25  ;;  %v11260_v29 = vld [vmem:[%s22360_s1 + $0x8] sm:$0xff] }
 0xa3e   :  { %11163 = vmatprep.mubr.f32.mxu1 %v22106_v37  ;;  %v10897_v61 = vpop.permute.xlu0 %10896 }
 0xa40   :  { %v10892_v9 = vpop.permute.xlu1 %10891 }
 0xa41   :  { %11164 = vmatmul.mubr.f32.gmra.mrb[68].mxu1 %v22117_v6 }
 0xa42   :  { %11168 = vmatprep.mubr.f32.mxu1 %v22126_v13  ;;  %v11262_v13 = vld [vmem:[%s22360_s1 + $0x18] sm:$0xff] }
 0xa45   :  { %11169 = vmatmul.mubr.f32.gmra.mrb[70].mxu1 %v22136_v33 }
 0xaec   :  { %v11066_v11 = vpop.f32.mrb[56].mxu1 }
 0xaed   :  { %v12901_v21 = vadd.f32 %v11066_v11, %v10882_v51  ;;  %v11068_v20 = vpop.f32.mrb[57].mxu1 }
 0xaee   :  { %v12902_v5 = vadd.f32 %v11068_v20, %v10882_v51 }
 0xaef   :  { %v11271_v37 = vadd.f32 %v12901_v21, %v11259_v49 }
 0xaf0   :  { %v11272_v6 = vadd.f32 %v12902_v5, %v11260_v29  ;;  %v11072_v25 = vpop.f32.mrb[58].mxu1  ;;  %v11267_v29 = vld [vmem:[%s22360_s1 + $0x40] sm:$0xff] }
 0xaf1   :  { %v11283_v33 = vmax.f32 %v11271_v37, 0.0  ;;  %v12903_v12 = vadd.f32 %v11072_v25, %v10887_v55  ;;  %v11074_v4 = vpop.f32.mrb[59].mxu1 }
 0xaf2   :  { %v11284_v57 = vmax.f32 %v11272_v6, 0.0  ;;  %v12904_v2 = vadd.f32 %v11074_v4, %v10887_v55 }
 0xaf3   :  { %11295 = vst [vmem:[%s22361_s7] sm:$0xff] %v11283_v33  ;;  %v11274_v16 = vadd.f32 %v12903_v12, %v11262_v13  ;;  %v11270_v13 = vld [vmem:[%s22360_s1 + $0x58] sm:$0xff] }
 0xaf4   :  { %11296 = vst [vmem:[%s22361_s7 + $0x8] sm:$0xff] %v11284_v57  ;;  %v11275_v32 = vadd.f32 %v12904_v2, %v11263_v44  ;;  %v11078_v17 = vpop.f32.mrb[60].mxu1 }
 0xaf5   :  { %v11286_v40 = vmax.f32 %v11274_v16, 0.0  ;;  %v12905_v42 = vadd.f32 %v11078_v17, %v10892_v9  ;;  %v11080_v45 = vpop.f32.mrb[61].mxu1 }
 0xaf6   :  { %v11287_v23 = vmax.f32 %v11275_v32, 0.0  ;;  %v12906_v54 = vadd.f32 %v11080_v45, %v10892_v9 }
 0xaf7   :  { %11298 = vst [vmem:[%s22361_s7 + $0x18] sm:$0xff] %v11286_v40  ;;  %v11277_v18 = vadd.f32 %v12905_v42, %v11265_v53 }
 0xaf8   :  { %11299 = vst [vmem:[%s22361_s7 + $0x20] sm:$0xff] %v11287_v23  ;;  %v11278_v60 = vadd.f32 %v12906_v54, %v11266_v8  ;;  %v11084_v7 = vpop.f32.mrb[62].mxu1 }
 0xaf9   :  { %v11289_v58 = vmax.f32 %v11277_v18, 0.0  ;;  %v12907_v26 = vadd.f32 %v11084_v7, %v10897_v61  ;;  %v11086_v56 = vpop.f32.mrb[63].mxu1 }
 0xafa   :  { %v11290_v38 = vmax.f32 %v11278_v60, 0.0  ;;  %v12908_v59 = vadd.f32 %v11086_v56, %v10897_v61 }
 0xafb   :  { %11301 = vst [vmem:[%s22361_s7 + $0x30] sm:$0xff] %v11289_v58  ;;  %v11280_v62 = vadd.f32 %v12907_v26, %v11268_v0 }
 0xafc   :  { %11302 = vst [vmem:[%s22361_s7 + $0x38] sm:$0xff] %v11290_v38  ;;  %v11281_v39 = vadd.f32 %v12908_v59, %v11269_v36 }
 0xafd   :  { %v11292_v41 = vmax.f32 %v11280_v62, 0.0 }
 0xafe   :  { %v11293_v46 = vmax.f32 %v11281_v39, 0.0 }
 0xaff   :  { %11304 = vst [vmem:[%s22361_s7 + $0x48] sm:$0xff] %v11292_v41 }
 0xb00   :  { %11305 = vst [vmem:[%s22361_s7 + $0x50] sm:$0xff] %v11293_v46 }
 0xb0c   :  { %v11835_v50 = vpop.f32.mrb[64].mxu1  ;;  %v11921_v35 = vpop.f32.mrb[56].mxu0 }
 0xb0d   :  { %v11836_v19 = vpop.f32.mrb[65].mxu1  ;;  %v11240_v48 = vpop.f32.mrb[57].mxu0 }
 0xb0e   :  { %v11837_v1 = vadd.f32 %v11836_v19, %v11835_v50 }
 0xb10   :  { %v11838_v31 = vpop.f32.mrb[66].mxu1  ;;  %v11156_v24 = vadd.f32 %v11837_v1, %v10882_v51  ;;  %v11924_v10 = vpop.f32.mrb[58].mxu0 }
 0xb11   :  { %v11839_v27 = vpop.f32.mrb[67].mxu1  ;;  %v11250_v28 = vpop.f32.mrb[59].mxu0 }
 0xb12   :  { %v11840_v34 = vadd.f32 %v11839_v27, %v11838_v31  ;;  %v11241_v15 = vadd.f32 %v11240_v48, %v11156_v24 }
 0xb14   :  { %v11161_v47 = vadd.f32 %v11840_v34, %v10887_v55  ;;  %v11273_v22 = vadd.f32 %v11261_v52, %v11241_v15  ;;  %v11841_v43 = vpop.f32.mrb[68].mxu1 }
 0xb15   :  { %v11842_v3 = vpop.f32.mrb[69].mxu1 }
 0xb16   :  { %v11246_v63 = vadd.f32 %v11921_v35, %v11161_v47  ;;  %v11285_v30 = vmax.f32 %v11273_v22, 0.0  ;;  %v11843_v51 = vadd.f32 %v11842_v3, %v11841_v43 }
 0xb18   :  { %v11276_v11 = vadd.f32 %v11264_v14, %v11246_v63  ;;  %11297 = vst [vmem:[%s22361_s7 + $0x10] sm:$0xff] %v11285_v30  ;;  %v11844_v49 = vpop.f32.mrb[70].mxu1  ;;  %v11166_v21 = vadd.f32 %v11843_v51, %v10892_v9 }
 0xb19   :  { %v11845_v20 = vpop.f32.mrb[71].mxu1 }
 0xb1a   :  { %v11288_v5 = vmax.f32 %v11276_v11, 0.0  ;;  %v11846_v37 = vadd.f32 %v11845_v20, %v11844_v49  ;;  %v11251_v55 = vadd.f32 %v11250_v28, %v11166_v21 }
 0xb1c   :  { %11300 = vst [vmem:[%s22361_s7 + $0x28] sm:$0xff] %v11288_v5  ;;  %v11171_v6 = vadd.f32 %v11846_v37, %v10897_v61  ;;  %v11279_v25 = vadd.f32 %v11267_v29, %v11251_v55 }
 0xb1e   :  { %v11256_v33 = vadd.f32 %v11924_v10, %v11171_v6  ;;  %v11291_v12 = vmax.f32 %v11279_v25, 0.0 }
 0xb20   :  { %v11282_v4 = vadd.f32 %v11270_v13, %v11256_v33  ;;  %11303 = vst [vmem:[%s22361_s7 + $0x40] sm:$0xff] %v11291_v12 }
 0xb22   :  { %v11294_v44 = vmax.f32 %v11282_v4, 0.0 }
 0xb24   :  { %11306 = vst [vmem:[%s22361_s7 + $0x58] sm:$0xff] %v11294_v44 }

</bundles_post_ra>
